<compile_context>
chip_gen: v7x
topology: tpu7x:2x2x1
jax: 0.10.0
libtpu: 0.0.40
codegen_flags: <defaults>
</compile_context>

<pallas_src>
import functools

import jax
import jax.numpy as jnp
from jax.experimental import pallas as pl
from jax.experimental.pallas import tpu as pltpu


_LAYER_CHANNELS = [(256, 128), (128, 64), (64, 32), (32, 16), (16, 3)]


# ----------------------------- fused kernel ---------------------------------

def _decoder_kernel(x_ref, w1_ref, b1_ref, w2_ref, b2_ref, w3_ref, b3_ref,
                    w4_ref, b4_ref, w5_ref, b5_ref, o_ref, a1_ref, a2_ref):
    """One pixel-row tile (TM rows). Column layouts (k = 2*kh + kw):

      x_ref : (TM, 256)    cols = ci
      a1    : (TM, 512)    cols = (k1, c1)         layer-1 output (scratch)
      a2    : (TM, 256)    cols = (k2, c2)         layer-2 output (scratch, per k1)
      y3    : (TM, 128)    cols = (k3, c3)         vreg-resident
      y4    : (TM, 256)    cols = (k3, k4, c4)     block-diagonal W4
      y5    : (TM, 192)    cols = (k3, k4, k5, co) block-diagonal W5
      o_ref : (16, TM, 192)  dim0 = k1*4 + k2
    """
    f32 = jnp.float32
    cdt = a1_ref.dtype

    # Hoist bias loads out of the unrolled loops.
    b1 = b1_ref[...]
    b2 = b2_ref[...]
    b3 = b3_ref[...]
    b4 = b4_ref[...]
    b5 = b5_ref[...]

    def dense(x, w_ref, b):
        y = jnp.dot(x, w_ref[...], preferred_element_type=f32) + b
        return jnp.maximum(y, 0.0)

    # Layer 1: single 512-lane-wide matmul (fills the MXU), cols = (k1, c1).
    a1_ref[...] = dense(x_ref[...], w1_ref, b1).astype(cdt)

    for k1 in range(4):                                   # k1 = 2*kh1 + kw1
        # Layer 2 for this k1 child: 256-lane-wide matmul, cols = (k2, c2).
        x1 = a1_ref[:, k1 * 128:(k1 + 1) * 128]           # aligned 128-lane slice
        a2_ref[...] = dense(x1, w2_ref, b2).astype(cdt)

        for k2 in range(4):                                # k2 = 2*kh2 + kw2
            x2 = a2_ref[:, k2 * 64:(k2 + 1) * 64]
            # Layers 3/4/5 fused in vregs: no intermediate VMEM slabs.
            y3 = dense(x2, w3_ref, b3).astype(cdt)         # (TM, 128) = (k3, c3)
            y4 = dense(y3, w4_ref, b4).astype(cdt)         # (TM, 256) = (k3, k4, c4)
            y5 = dense(y4, w5_ref, b5)                     # (TM, 192) = (k3, k4, k5, co)
            o_ref[k1 * 4 + k2, :, :] = y5.astype(o_ref.dtype)


# ----------------------------- parameter repacking ---------------------------

def _col_cat(w):
    """torch ConvTranspose2d weight (Cin, Cout, 2, 2) -> (Cin, 4*Cout).

    Column index = (2*kh + kw) * Cout + co.
    """
    cin, cout = w.shape[0], w.shape[1]
    return jnp.transpose(w, (0, 2, 3, 1)).reshape(cin, 4 * cout)


def _block_diag(block, n):
    r, c = block.shape
    out = jnp.zeros((n * r, n * c), block.dtype)
    for i in range(n):
        out = out.at[i * r:(i + 1) * r, i * c:(i + 1) * c].set(block)
    return out


def _prep_params(params, cdt):
    (w1, b1), (w2, b2), (w3, b3), (w4, b4), (w5, b5) = params

    w1c = _col_cat(w1).astype(cdt)                         # (256, 512)  cols (k1, c1)
    w2c = _col_cat(w2).astype(cdt)                         # (128, 256)  cols (k2, c2)
    w3c = _col_cat(w3).astype(cdt)                         # (64, 128)   cols (k3, c3)
    # Block-diagonal over k3: rows (k3, c3) -> cols (k3, k4, c4).
    w4bd = _block_diag(_col_cat(w4), 4).astype(cdt)        # (128, 256)
    # Block-diagonal over (k3, k4): rows (k3, k4, c4) -> cols (k3, k4, k5, co).
    w5bd = _block_diag(_col_cat(w5), 16).astype(cdt)       # (256, 192)

    b1r = jnp.tile(b1, 4).reshape(1, -1).astype(jnp.float32)    # (1, 512)
    b2r = jnp.tile(b2, 4).reshape(1, -1).astype(jnp.float32)    # (1, 256)
    b3r = jnp.tile(b3, 4).reshape(1, -1).astype(jnp.float32)    # (1, 128)
    b4r = jnp.tile(b4, 16).reshape(1, -1).astype(jnp.float32)   # (1, 256)
    b5r = jnp.tile(b5, 64).reshape(1, -1).astype(jnp.float32)   # (1, 192)
    return (w1c, b1r, w2c, b2r, w3c, b3r, w4bd, b4r, w5bd, b5r)


# ----------------------------- wrapper ---------------------------------------

def _round_up(x, m):
    return (x + m - 1) // m * m


def conv_decoder_pallas(x_nchw, params, *, compute_dtype=jnp.bfloat16,
                        kernel_out_dtype=None, tile_rows=128):
    """Forward pass of ConvDecoder.  x_nchw: (N, 256, H, W) -> (N, 3, 32H, 32W)."""
    N, C, H, W = x_nchw.shape
    assert C == _LAYER_CHANNELS[0][0], C
    cdt = compute_dtype
    odt = kernel_out_dtype if kernel_out_dtype is not None else cdt

    # Fold batch into the pixel-row axis; tile rows for the grid.
    M = N * H * W
    TM = min(tile_rows, _round_up(M, 8))
    M_pad = _round_up(M, TM)
    G = M_pad // TM

    x2d = jnp.transpose(x_nchw, (0, 2, 3, 1)).reshape(M, C).astype(cdt)
    if M_pad != M:
        x2d = jnp.pad(x2d, ((0, M_pad - M), (0, 0)))       # zero rows -> discarded

    ops = _prep_params(params, cdt)
    const = lambda g: (0, 0)

    # MACs per input pixel: L1 + 4*(L2 + 4*(L3 + L4bd + L5bd)).
    macs_per_row = 131072 + 4 * (32768 + 4 * (8192 + 32768 + 49152))
    w_bytes = sum(int(w.size) * w.dtype.itemsize for w in ops)
    cost = pl.CostEstimate(
        flops=2 * macs_per_row * M_pad,
        transcendentals=0,
        bytes_accessed=(int(x2d.size) * x2d.dtype.itemsize + w_bytes
                        + 16 * M_pad * 192 * jnp.dtype(odt).itemsize))

    out = pl.pallas_call(
        _decoder_kernel,
        out_shape=jax.ShapeDtypeStruct((16, M_pad, 192), odt),
        grid_spec=pltpu.PrefetchScalarGridSpec(
            num_scalar_prefetch=0,
            grid=(G,),
            in_specs=[
                pl.BlockSpec((TM, 256), lambda g: (g, 0)),   # x pixel-row tile
                pl.BlockSpec((256, 512), const),             # W1 (lane-concat)
                pl.BlockSpec((1, 512), const),               # b1
                pl.BlockSpec((128, 256), const),             # W2 (lane-concat)
                pl.BlockSpec((1, 256), const),               # b2
                pl.BlockSpec((64, 128), const),              # W3 (lane-concat)
                pl.BlockSpec((1, 128), const),               # b3
                pl.BlockSpec((128, 256), const),             # W4 (block-diag over k3)
                pl.BlockSpec((1, 256), const),               # b4
                pl.BlockSpec((256, 192), const),             # W5 (block-diag over k3,k4)
                pl.BlockSpec((1, 192), const),               # b5
            ],
            out_specs=pl.BlockSpec((16, TM, 192), lambda g: (0, g, 0)),
            scratch_shapes=[
                pltpu.VMEM((TM, 512), cdt),   # a1: layer-1 output, cols (k1, c1)
                pltpu.VMEM((TM, 256), cdt),   # a2: layer-2 output, cols (k2, c2)
            ],
        ),
        compiler_params=pltpu.CompilerParams(
            dimension_semantics=("parallel",)),
        cost_estimate=cost,
    )(x2d, *ops)

    # Single de-interleave transpose to NCHW.  A downstream consumer could take
    # the kernel output (patch-major: [k1k2, pixel, (k3,k4,k5,co)]) directly and
    # skip this extra HBM pass.
    out = out[:, :M, :]
    y = out.reshape(2, 2, 2, 2, N, H, W, 2, 2, 2, 2, 2, 2, 3)
    #   axes:      kh1 kw1 kh2 kw2 n  h  w  kh3 kw3 kh4 kw4 kh5 kw5 co
    #               0   1   2   3  4  5  6   7   8   9  10  11  12  13
    y = jnp.transpose(y, (4, 13, 5, 0, 2, 7, 9, 11, 6, 1, 3, 8, 10, 12))
    # OH = 32h + 16kh1 + 8kh2 + 4kh3 + 2kh4 + kh5 ; OW analogous.
    return y.reshape(N, 3, 32 * H, 32 * W).astype(x_nchw.dtype)


# ---------------- parameters (deterministic, synthetic) ----------------------

def init_params(key):
    params = []
    for i, (cin, cout) in enumerate(_LAYER_CHANNELS):
        kw_key, kb_key = jax.random.split(jax.random.fold_in(key, i))
        bound = 1.0 / jnp.sqrt(jnp.float32(cout * 2 * 2))
        w = jax.random.uniform(kw_key, (cin, cout, 2, 2), jnp.float32,
                               minval=-bound, maxval=bound)
        b = jax.random.uniform(kb_key, (cout,), jnp.float32,
                               minval=-bound, maxval=bound)
        params.append((w, b))
    return params


# ---------------- pure-JAX reference (direct transposed-conv formula) --------

def conv_decoder_ref(x_nchw, params):
    x = jnp.transpose(x_nchw, (0, 2, 3, 1))  # NCHW -> NHWC
    for (w, b) in params:
        n, h, wd, _ = x.shape
        cout = w.shape[1]
        y = jnp.einsum('nhwc,cokl->nhkwlo', x, w,
                       precision=jax.lax.Precision.HIGHEST)
        y = y.reshape(n, 2 * h, 2 * wd, cout) + b
        x = jnp.maximum(y, 0.0)
    return jnp.transpose(x, (0, 3, 1, 2))    # NHWC -> NCHW


if __name__ == "__main__":
    key = jax.random.PRNGKey(0)
    pkey, xkey = jax.random.split(key)
    params = init_params(pkey)

    N, C, H, W = 2, 256, 4, 4
    x = jax.random.normal(xkey, (N, C, H, W), jnp.float32)

    # bf16 matmul operands / f32 accumulation, bf16 kernel output (default config).
    decode_bf16 = jax.jit(functools.partial(conv_decoder_pallas,
                                            compute_dtype=jnp.bfloat16))
    out = jax.block_until_ready(decode_bf16(x, params))
    assert out.shape == (N, 3, 32 * H, 32 * W), out.shape

    ref = jax.block_until_ready(conv_decoder_ref(x, params))
    scale = float(jnp.max(jnp.abs(ref)))
    err = float(jnp.max(jnp.abs(out - ref)))
    # bf16 operands + bf16 output over 5 layers: ~1% typical max error.
    assert err <= 2.5e-2 * scale + 1e-3, (err, scale)

    # f32 compute / f32 output path (same kernel, different operand dtype).
    decode_f32 = jax.jit(functools.partial(conv_decoder_pallas,
                                           compute_dtype=jnp.float32))
    out32 = jax.block_until_ready(decode_f32(x, params))
    err32 = float(jnp.max(jnp.abs(out32 - ref)))
    assert err32 <= 2e-2 * scale + 1e-3, (err32, scale)

    print("KERNEL_OK")
</pallas_src>

<mosaic_0001>
module attributes {stable_mosaic.version = 11 : i64} {
  func.func @_decoder_kernel(%arg0: i32, %arg1: memref<32x256xbf16, #tpu.memory_space<vmem>>, %arg2: memref<256x512xbf16, #tpu.memory_space<vmem>>, %arg3: memref<1x512xf32, #tpu.memory_space<vmem>>, %arg4: memref<128x256xbf16, #tpu.memory_space<vmem>>, %arg5: memref<1x256xf32, #tpu.memory_space<vmem>>, %arg6: memref<64x128xbf16, #tpu.memory_space<vmem>>, %arg7: memref<1x128xf32, #tpu.memory_space<vmem>>, %arg8: memref<128x256xbf16, #tpu.memory_space<vmem>>, %arg9: memref<1x256xf32, #tpu.memory_space<vmem>>, %arg10: memref<256x192xbf16, #tpu.memory_space<vmem>>, %arg11: memref<1x192xf32, #tpu.memory_space<vmem>>, %arg12: memref<16x32x192xbf16, #tpu.memory_space<vmem>>, %arg13: memref<32x512xbf16, #tpu.memory_space<vmem>>, %arg14: memref<32x256xbf16, #tpu.memory_space<vmem>>) attributes {dimension_semantics = [#tpu.dimension_semantics<parallel>], iteration_bounds = array<i64: 1>, scalar_prefetch = 0 : i64, scratch_operands = 2 : i64, tpu.core_type = #tpu.core_type<tc>, window_params = [{transform_indices = @transform_0, window_bounds = array<i64: 32, 256>}, {pipeline_mode = #tpu.pipeline_mode<synchronous>, transform_indices = @transform_1, window_bounds = array<i64: 256, 512>}, {pipeline_mode = #tpu.pipeline_mode<synchronous>, transform_indices = @transform_2, window_bounds = array<i64: 1, 512>}, {pipeline_mode = #tpu.pipeline_mode<synchronous>, transform_indices = @transform_3, window_bounds = array<i64: 128, 256>}, {pipeline_mode = #tpu.pipeline_mode<synchronous>, transform_indices = @transform_4, window_bounds = array<i64: 1, 256>}, {pipeline_mode = #tpu.pipeline_mode<synchronous>, transform_indices = @transform_5, window_bounds = array<i64: 64, 128>}, {pipeline_mode = #tpu.pipeline_mode<synchronous>, transform_indices = @transform_6, window_bounds = array<i64: 1, 128>}, {pipeline_mode = #tpu.pipeline_mode<synchronous>, transform_indices = @transform_7, window_bounds = array<i64: 128, 256>}, {pipeline_mode = #tpu.pipeline_mode<synchronous>, transform_indices = @transform_8, window_bounds = array<i64: 1, 256>}, {pipeline_mode = #tpu.pipeline_mode<synchronous>, transform_indices = @transform_9, window_bounds = array<i64: 256, 192>}, {pipeline_mode = #tpu.pipeline_mode<synchronous>, transform_indices = @transform_10, window_bounds = array<i64: 1, 192>}, {transform_indices = @transform_11, window_bounds = array<i64: 16, 32, 192>}]} {
    %c0 = arith.constant 0 : index
    %c0_0 = arith.constant 0 : index
    %0 = vector.load %arg3[%c0, %c0_0] : memref<1x512xf32, #tpu.memory_space<vmem>>, vector<1x512xf32>
    %c0_1 = arith.constant 0 : index
    %c0_2 = arith.constant 0 : index
    %1 = vector.load %arg5[%c0_1, %c0_2] : memref<1x256xf32, #tpu.memory_space<vmem>>, vector<1x256xf32>
    %c0_3 = arith.constant 0 : index
    %c0_4 = arith.constant 0 : index
    %2 = vector.load %arg7[%c0_3, %c0_4] : memref<1x128xf32, #tpu.memory_space<vmem>>, vector<1x128xf32>
    %c0_5 = arith.constant 0 : index
    %c0_6 = arith.constant 0 : index
    %3 = vector.load %arg9[%c0_5, %c0_6] : memref<1x256xf32, #tpu.memory_space<vmem>>, vector<1x256xf32>
    %c0_7 = arith.constant 0 : index
    %c0_8 = arith.constant 0 : index
    %4 = vector.load %arg11[%c0_7, %c0_8] : memref<1x192xf32, #tpu.memory_space<vmem>>, vector<1x192xf32>
    %c0_9 = arith.constant 0 : index
    %c0_10 = arith.constant 0 : index
    %5 = vector.load %arg1[%c0_9, %c0_10] : memref<32x256xbf16, #tpu.memory_space<vmem>>, vector<32x256xbf16>
    %c0_11 = arith.constant 0 : index
    %c0_12 = arith.constant 0 : index
    %6 = vector.load %arg2[%c0_11, %c0_12] : memref<256x512xbf16, #tpu.memory_space<vmem>>, vector<256x512xbf16>
    %cst = arith.constant dense<0.000000e+00> : vector<32x512xf32>
    %7 = tpu.matmul %5, %6, %cst {dimension_numbers = #tpu.dot_dimension_numbers<[1], [0], [0], [1], [0, 0, 1, 1], [], []>} : vector<32x256xbf16>, vector<256x512xbf16>, vector<32x512xf32> -> vector<32x512xf32>
    %8 = vector.broadcast %0 : vector<1x512xf32> to vector<32x512xf32>
    %9 = arith.addf %7, %8 : vector<32x512xf32>
    %cst_13 = arith.constant 0.000000e+00 : f32
    %10 = vector.broadcast %cst_13 : f32 to vector<32x512xf32>
    %11 = arith.maximumf %9, %10 : vector<32x512xf32>
    %12 = arith.truncf %11 : vector<32x512xf32> to vector<32x512xbf16>
    %c0_14 = arith.constant 0 : index
    %c0_15 = arith.constant 0 : index
    %13 = vector.load %arg13[%c0_14, %c0_15] : memref<32x512xbf16, #tpu.memory_space<vmem>>, vector<32x512xbf16>
    tpu.vector_store %arg13[%c0_14, %c0_15], %12 {strides = array<i32>} : memref<32x512xbf16, #tpu.memory_space<vmem>>, vector<32x512xbf16>,
    %c0_16 = arith.constant 0 : index
    %c0_17 = arith.constant 0 : index
    %14 = vector.load %arg13[%c0_16, %c0_17] : memref<32x512xbf16, #tpu.memory_space<vmem>>, vector<32x128xbf16>
    %c0_18 = arith.constant 0 : index
    %c0_19 = arith.constant 0 : index
    %15 = vector.load %arg4[%c0_18, %c0_19] : memref<128x256xbf16, #tpu.memory_space<vmem>>, vector<128x256xbf16>
    %cst_20 = arith.constant dense<0.000000e+00> : vector<32x256xf32>
    %16 = tpu.matmul %14, %15, %cst_20 {dimension_numbers = #tpu.dot_dimension_numbers<[1], [0], [0], [1], [0, 0, 1, 1], [], []>} : vector<32x128xbf16>, vector<128x256xbf16>, vector<32x256xf32> -> vector<32x256xf32>
    %17 = vector.broadcast %1 : vector<1x256xf32> to vector<32x256xf32>
    %18 = arith.addf %16, %17 : vector<32x256xf32>
    %cst_21 = arith.constant 0.000000e+00 : f32
    %19 = vector.broadcast %cst_21 : f32 to vector<32x256xf32>
    %20 = arith.maximumf %18, %19 : vector<32x256xf32>
    %21 = arith.truncf %20 : vector<32x256xf32> to vector<32x256xbf16>
    %c0_22 = arith.constant 0 : index
    %c0_23 = arith.constant 0 : index
    %22 = vector.load %arg14[%c0_22, %c0_23] : memref<32x256xbf16, #tpu.memory_space<vmem>>, vector<32x256xbf16>
    tpu.vector_store %arg14[%c0_22, %c0_23], %21 {strides = array<i32>} : memref<32x256xbf16, #tpu.memory_space<vmem>>, vector<32x256xbf16>,
    %c0_24 = arith.constant 0 : index
    %c0_25 = arith.constant 0 : index
    %23 = vector.load %arg14[%c0_24, %c0_25] : memref<32x256xbf16, #tpu.memory_space<vmem>>, vector<32x64xbf16>
    %c0_26 = arith.constant 0 : index
    %c0_27 = arith.constant 0 : index
    %24 = vector.load %arg6[%c0_26, %c0_27] : memref<64x128xbf16, #tpu.memory_space<vmem>>, vector<64x128xbf16>
    %cst_28 = arith.constant dense<0.000000e+00> : vector<32x128xf32>
    %25 = tpu.matmul %23, %24, %cst_28 {dimension_numbers = #tpu.dot_dimension_numbers<[1], [0], [0], [1], [0, 0, 1, 1], [], []>} : vector<32x64xbf16>, vector<64x128xbf16>, vector<32x128xf32> -> vector<32x128xf32>
    %26 = vector.broadcast %2 : vector<1x128xf32> to vector<32x128xf32>
    %27 = arith.addf %25, %26 : vector<32x128xf32>
    %cst_29 = arith.constant 0.000000e+00 : f32
    %28 = vector.broadcast %cst_29 : f32 to vector<32x128xf32>
    %29 = arith.maximumf %27, %28 : vector<32x128xf32>
    %30 = arith.truncf %29 : vector<32x128xf32> to vector<32x128xbf16>
    %c0_30 = arith.constant 0 : index
    %c0_31 = arith.constant 0 : index
    %31 = vector.load %arg8[%c0_30, %c0_31] : memref<128x256xbf16, #tpu.memory_space<vmem>>, vector<128x256xbf16>
    %cst_32 = arith.constant dense<0.000000e+00> : vector<32x256xf32>
    %32 = tpu.matmul %30, %31, %cst_32 {dimension_numbers = #tpu.dot_dimension_numbers<[1], [0], [0], [1], [0, 0, 1, 1], [], []>} : vector<32x128xbf16>, vector<128x256xbf16>, vector<32x256xf32> -> vector<32x256xf32>
    %33 = vector.broadcast %3 : vector<1x256xf32> to vector<32x256xf32>
    %34 = arith.addf %32, %33 : vector<32x256xf32>
    %cst_33 = arith.constant 0.000000e+00 : f32
    %35 = vector.broadcast %cst_33 : f32 to vector<32x256xf32>
    %36 = arith.maximumf %34, %35 : vector<32x256xf32>
    %37 = arith.truncf %36 : vector<32x256xf32> to vector<32x256xbf16>
    %c0_34 = arith.constant 0 : index
    %c0_35 = arith.constant 0 : index
    %38 = vector.load %arg10[%c0_34, %c0_35] : memref<256x192xbf16, #tpu.memory_space<vmem>>, vector<256x192xbf16>
    %cst_36 = arith.constant dense<0.000000e+00> : vector<32x192xf32>
    %39 = tpu.matmul %37, %38, %cst_36 {dimension_numbers = #tpu.dot_dimension_numbers<[1], [0], [0], [1], [0, 0, 1, 1], [], []>} : vector<32x256xbf16>, vector<256x192xbf16>, vector<32x192xf32> -> vector<32x192xf32>
    %40 = vector.broadcast %4 : vector<1x192xf32> to vector<32x192xf32>
    %41 = arith.addf %39, %40 : vector<32x192xf32>
    %cst_37 = arith.constant 0.000000e+00 : f32
    %42 = vector.broadcast %cst_37 : f32 to vector<32x192xf32>
    %43 = arith.maximumf %41, %42 : vector<32x192xf32>
    %44 = arith.truncf %43 : vector<32x192xf32> to vector<32x192xbf16>
    %c0_38 = arith.constant 0 : index
    %c0_39 = arith.constant 0 : index
    %c0_40 = arith.constant 0 : index
    %45 = vector.load %arg12[%c0_38, %c0_39, %c0_40] : memref<16x32x192xbf16, #tpu.memory_space<vmem>>, vector<1x32x192xbf16>
    %46 = vector.shape_cast %45 : vector<1x32x192xbf16> to vector<32x192xbf16>
    %47 = vector.shape_cast %44 : vector<32x192xbf16> to vector<1x32x192xbf16>
    tpu.vector_store %arg12[%c0_38, %c0_39, %c0_40], %47 {strides = array<i32>} : memref<16x32x192xbf16, #tpu.memory_space<vmem>>, vector<1x32x192xbf16>,
    %c0_41 = arith.constant 0 : index
    %c64 = arith.constant 64 : index
    %48 = vector.load %arg14[%c0_41, %c64] : memref<32x256xbf16, #tpu.memory_space<vmem>>, vector<32x64xbf16>
    %c0_42 = arith.constant 0 : index
    %c0_43 = arith.constant 0 : index
    %49 = vector.load %arg6[%c0_42, %c0_43] : memref<64x128xbf16, #tpu.memory_space<vmem>>, vector<64x128xbf16>
    %cst_44 = arith.constant dense<0.000000e+00> : vector<32x128xf32>
    %50 = tpu.matmul %48, %49, %cst_44 {dimension_numbers = #tpu.dot_dimension_numbers<[1], [0], [0], [1], [0, 0, 1, 1], [], []>} : vector<32x64xbf16>, vector<64x128xbf16>, vector<32x128xf32> -> vector<32x128xf32>
    %51 = vector.broadcast %2 : vector<1x128xf32> to vector<32x128xf32>
    %52 = arith.addf %50, %51 : vector<32x128xf32>
    %cst_45 = arith.constant 0.000000e+00 : f32
    %53 = vector.broadcast %cst_45 : f32 to vector<32x128xf32>
    %54 = arith.maximumf %52, %53 : vector<32x128xf32>
    %55 = arith.truncf %54 : vector<32x128xf32> to vector<32x128xbf16>
    %c0_46 = arith.constant 0 : index
    %c0_47 = arith.constant 0 : index
    %56 = vector.load %arg8[%c0_46, %c0_47] : memref<128x256xbf16, #tpu.memory_space<vmem>>, vector<128x256xbf16>
    %cst_48 = arith.constant dense<0.000000e+00> : vector<32x256xf32>
    %57 = tpu.matmul %55, %56, %cst_48 {dimension_numbers = #tpu.dot_dimension_numbers<[1], [0], [0], [1], [0, 0, 1, 1], [], []>} : vector<32x128xbf16>, vector<128x256xbf16>, vector<32x256xf32> -> vector<32x256xf32>
    %58 = vector.broadcast %3 : vector<1x256xf32> to vector<32x256xf32>
    %59 = arith.addf %57, %58 : vector<32x256xf32>
    %cst_49 = arith.constant 0.000000e+00 : f32
    %60 = vector.broadcast %cst_49 : f32 to vector<32x256xf32>
    %61 = arith.maximumf %59, %60 : vector<32x256xf32>
    %62 = arith.truncf %61 : vector<32x256xf32> to vector<32x256xbf16>
    %c0_50 = arith.constant 0 : index
    %c0_51 = arith.constant 0 : index
    %63 = vector.load %arg10[%c0_50, %c0_51] : memref<256x192xbf16, #tpu.memory_space<vmem>>, vector<256x192xbf16>
    %cst_52 = arith.constant dense<0.000000e+00> : vector<32x192xf32>
    %64 = tpu.matmul %62, %63, %cst_52 {dimension_numbers = #tpu.dot_dimension_numbers<[1], [0], [0], [1], [0, 0, 1, 1], [], []>} : vector<32x256xbf16>, vector<256x192xbf16>, vector<32x192xf32> -> vector<32x192xf32>
    %65 = vector.broadcast %4 : vector<1x192xf32> to vector<32x192xf32>
    %66 = arith.addf %64, %65 : vector<32x192xf32>
    %cst_53 = arith.constant 0.000000e+00 : f32
    %67 = vector.broadcast %cst_53 : f32 to vector<32x192xf32>
    %68 = arith.maximumf %66, %67 : vector<32x192xf32>
    %69 = arith.truncf %68 : vector<32x192xf32> to vector<32x192xbf16>
    %c1 = arith.constant 1 : index
    %c0_54 = arith.constant 0 : index
    %c0_55 = arith.constant 0 : index
    %70 = vector.load %arg12[%c1, %c0_54, %c0_55] : memref<16x32x192xbf16, #tpu.memory_space<vmem>>, vector<1x32x192xbf16>
    %71 = vector.shape_cast %70 : vector<1x32x192xbf16> to vector<32x192xbf16>
    %72 = vector.shape_cast %69 : vector<32x192xbf16> to vector<1x32x192xbf16>
    tpu.vector_store %arg12[%c1, %c0_54, %c0_55], %72 {strides = array<i32>} : memref<16x32x192xbf16, #tpu.memory_space<vmem>>, vector<1x32x192xbf16>,
    %c0_56 = arith.constant 0 : index
    %c128 = arith.constant 128 : index
    %73 = vector.load %arg14[%c0_56, %c128] : memref<32x256xbf16, #tpu.memory_space<vmem>>, vector<32x64xbf16>
    %c0_57 = arith.constant 0 : index
    %c0_58 = arith.constant 0 : index
    %74 = vector.load %arg6[%c0_57, %c0_58] : memref<64x128xbf16, #tpu.memory_space<vmem>>, vector<64x128xbf16>
    %cst_59 = arith.constant dense<0.000000e+00> : vector<32x128xf32>
    %75 = tpu.matmul %73, %74, %cst_59 {dimension_numbers = #tpu.dot_dimension_numbers<[1], [0], [0], [1], [0, 0, 1, 1], [], []>} : vector<32x64xbf16>, vector<64x128xbf16>, vector<32x128xf32> -> vector<32x128xf32>
    %76 = vector.broadcast %2 : vector<1x128xf32> to vector<32x128xf32>
    %77 = arith.addf %75, %76 : vector<32x128xf32>
    %cst_60 = arith.constant 0.000000e+00 : f32
    %78 = vector.broadcast %cst_60 : f32 to vector<32x128xf32>
    %79 = arith.maximumf %77, %78 : vector<32x128xf32>
    %80 = arith.truncf %79 : vector<32x128xf32> to vector<32x128xbf16>
    %c0_61 = arith.constant 0 : index
    %c0_62 = arith.constant 0 : index
    %81 = vector.load %arg8[%c0_61, %c0_62] : memref<128x256xbf16, #tpu.memory_space<vmem>>, vector<128x256xbf16>
    %cst_63 = arith.constant dense<0.000000e+00> : vector<32x256xf32>
    %82 = tpu.matmul %80, %81, %cst_63 {dimension_numbers = #tpu.dot_dimension_numbers<[1], [0], [0], [1], [0, 0, 1, 1], [], []>} : vector<32x128xbf16>, vector<128x256xbf16>, vector<32x256xf32> -> vector<32x256xf32>
    %83 = vector.broadcast %3 : vector<1x256xf32> to vector<32x256xf32>
    %84 = arith.addf %82, %83 : vector<32x256xf32>
    %cst_64 = arith.constant 0.000000e+00 : f32
    %85 = vector.broadcast %cst_64 : f32 to vector<32x256xf32>
    %86 = arith.maximumf %84, %85 : vector<32x256xf32>
    %87 = arith.truncf %86 : vector<32x256xf32> to vector<32x256xbf16>
    %c0_65 = arith.constant 0 : index
    %c0_66 = arith.constant 0 : index
    %88 = vector.load %arg10[%c0_65, %c0_66] : memref<256x192xbf16, #tpu.memory_space<vmem>>, vector<256x192xbf16>
    %cst_67 = arith.constant dense<0.000000e+00> : vector<32x192xf32>
    %89 = tpu.matmul %87, %88, %cst_67 {dimension_numbers = #tpu.dot_dimension_numbers<[1], [0], [0], [1], [0, 0, 1, 1], [], []>} : vector<32x256xbf16>, vector<256x192xbf16>, vector<32x192xf32> -> vector<32x192xf32>
    %90 = vector.broadcast %4 : vector<1x192xf32> to vector<32x192xf32>
    %91 = arith.addf %89, %90 : vector<32x192xf32>
    %cst_68 = arith.constant 0.000000e+00 : f32
    %92 = vector.broadcast %cst_68 : f32 to vector<32x192xf32>
    %93 = arith.maximumf %91, %92 : vector<32x192xf32>
    %94 = arith.truncf %93 : vector<32x192xf32> to vector<32x192xbf16>
    %c2 = arith.constant 2 : index
    %c0_69 = arith.constant 0 : index
    %c0_70 = arith.constant 0 : index
    %95 = vector.load %arg12[%c2, %c0_69, %c0_70] : memref<16x32x192xbf16, #tpu.memory_space<vmem>>, vector<1x32x192xbf16>
    %96 = vector.shape_cast %95 : vector<1x32x192xbf16> to vector<32x192xbf16>
    %97 = vector.shape_cast %94 : vector<32x192xbf16> to vector<1x32x192xbf16>
    tpu.vector_store %arg12[%c2, %c0_69, %c0_70], %97 {strides = array<i32>} : memref<16x32x192xbf16, #tpu.memory_space<vmem>>, vector<1x32x192xbf16>,
    %c0_71 = arith.constant 0 : index
    %c192 = arith.constant 192 : index
    %98 = vector.load %arg14[%c0_71, %c192] : memref<32x256xbf16, #tpu.memory_space<vmem>>, vector<32x64xbf16>
    %c0_72 = arith.constant 0 : index
    %c0_73 = arith.constant 0 : index
    %99 = vector.load %arg6[%c0_72, %c0_73] : memref<64x128xbf16, #tpu.memory_space<vmem>>, vector<64x128xbf16>
    %cst_74 = arith.constant dense<0.000000e+00> : vector<32x128xf32>
    %100 = tpu.matmul %98, %99, %cst_74 {dimension_numbers = #tpu.dot_dimension_numbers<[1], [0], [0], [1], [0, 0, 1, 1], [], []>} : vector<32x64xbf16>, vector<64x128xbf16>, vector<32x128xf32> -> vector<32x128xf32>
    %101 = vector.broadcast %2 : vector<1x128xf32> to vector<32x128xf32>
    %102 = arith.addf %100, %101 : vector<32x128xf32>
    %cst_75 = arith.constant 0.000000e+00 : f32
    %103 = vector.broadcast %cst_75 : f32 to vector<32x128xf32>
    %104 = arith.maximumf %102, %103 : vector<32x128xf32>
    %105 = arith.truncf %104 : vector<32x128xf32> to vector<32x128xbf16>
    %c0_76 = arith.constant 0 : index
    %c0_77 = arith.constant 0 : index
    %106 = vector.load %arg8[%c0_76, %c0_77] : memref<128x256xbf16, #tpu.memory_space<vmem>>, vector<128x256xbf16>
    %cst_78 = arith.constant dense<0.000000e+00> : vector<32x256xf32>
    %107 = tpu.matmul %105, %106, %cst_78 {dimension_numbers = #tpu.dot_dimension_numbers<[1], [0], [0], [1], [0, 0, 1, 1], [], []>} : vector<32x128xbf16>, vector<128x256xbf16>, vector<32x256xf32> -> vector<32x256xf32>
    %108 = vector.broadcast %3 : vector<1x256xf32> to vector<32x256xf32>
    %109 = arith.addf %107, %108 : vector<32x256xf32>
    %cst_79 = arith.constant 0.000000e+00 : f32
    %110 = vector.broadcast %cst_79 : f32 to vector<32x256xf32>
    %111 = arith.maximumf %109, %110 : vector<32x256xf32>
    %112 = arith.truncf %111 : vector<32x256xf32> to vector<32x256xbf16>
    %c0_80 = arith.constant 0 : index
    %c0_81 = arith.constant 0 : index
    %113 = vector.load %arg10[%c0_80, %c0_81] : memref<256x192xbf16, #tpu.memory_space<vmem>>, vector<256x192xbf16>
    %cst_82 = arith.constant dense<0.000000e+00> : vector<32x192xf32>
    %114 = tpu.matmul %112, %113, %cst_82 {dimension_numbers = #tpu.dot_dimension_numbers<[1], [0], [0], [1], [0, 0, 1, 1], [], []>} : vector<32x256xbf16>, vector<256x192xbf16>, vector<32x192xf32> -> vector<32x192xf32>
    %115 = vector.broadcast %4 : vector<1x192xf32> to vector<32x192xf32>
    %116 = arith.addf %114, %115 : vector<32x192xf32>
    %cst_83 = arith.constant 0.000000e+00 : f32
    %117 = vector.broadcast %cst_83 : f32 to vector<32x192xf32>
    %118 = arith.maximumf %116, %117 : vector<32x192xf32>
    %119 = arith.truncf %118 : vector<32x192xf32> to vector<32x192xbf16>
    %c3 = arith.constant 3 : index
    %c0_84 = arith.constant 0 : index
    %c0_85 = arith.constant 0 : index
    %120 = vector.load %arg12[%c3, %c0_84, %c0_85] : memref<16x32x192xbf16, #tpu.memory_space<vmem>>, vector<1x32x192xbf16>
    %121 = vector.shape_cast %120 : vector<1x32x192xbf16> to vector<32x192xbf16>
    %122 = vector.shape_cast %119 : vector<32x192xbf16> to vector<1x32x192xbf16>
    tpu.vector_store %arg12[%c3, %c0_84, %c0_85], %122 {strides = array<i32>} : memref<16x32x192xbf16, #tpu.memory_space<vmem>>, vector<1x32x192xbf16>,
    %c0_86 = arith.constant 0 : index
    %c128_87 = arith.constant 128 : index
    %123 = vector.load %arg13[%c0_86, %c128_87] : memref<32x512xbf16, #tpu.memory_space<vmem>>, vector<32x128xbf16>
    %c0_88 = arith.constant 0 : index
    %c0_89 = arith.constant 0 : index
    %124 = vector.load %arg4[%c0_88, %c0_89] : memref<128x256xbf16, #tpu.memory_space<vmem>>, vector<128x256xbf16>
    %cst_90 = arith.constant dense<0.000000e+00> : vector<32x256xf32>
    %125 = tpu.matmul %123, %124, %cst_90 {dimension_numbers = #tpu.dot_dimension_numbers<[1], [0], [0], [1], [0, 0, 1, 1], [], []>} : vector<32x128xbf16>, vector<128x256xbf16>, vector<32x256xf32> -> vector<32x256xf32>
    %126 = vector.broadcast %1 : vector<1x256xf32> to vector<32x256xf32>
    %127 = arith.addf %125, %126 : vector<32x256xf32>
    %cst_91 = arith.constant 0.000000e+00 : f32
    %128 = vector.broadcast %cst_91 : f32 to vector<32x256xf32>
    %129 = arith.maximumf %127, %128 : vector<32x256xf32>
    %130 = arith.truncf %129 : vector<32x256xf32> to vector<32x256xbf16>
    %c0_92 = arith.constant 0 : index
    %c0_93 = arith.constant 0 : index
    %131 = vector.load %arg14[%c0_92, %c0_93] : memref<32x256xbf16, #tpu.memory_space<vmem>>, vector<32x256xbf16>
    tpu.vector_store %arg14[%c0_92, %c0_93], %130 {strides = array<i32>} : memref<32x256xbf16, #tpu.memory_space<vmem>>, vector<32x256xbf16>,
    %c0_94 = arith.constant 0 : index
    %c0_95 = arith.constant 0 : index
    %132 = vector.load %arg14[%c0_94, %c0_95] : memref<32x256xbf16, #tpu.memory_space<vmem>>, vector<32x64xbf16>
    %c0_96 = arith.constant 0 : index
    %c0_97 = arith.constant 0 : index
    %133 = vector.load %arg6[%c0_96, %c0_97] : memref<64x128xbf16, #tpu.memory_space<vmem>>, vector<64x128xbf16>
    %cst_98 = arith.constant dense<0.000000e+00> : vector<32x128xf32>
    %134 = tpu.matmul %132, %133, %cst_98 {dimension_numbers = #tpu.dot_dimension_numbers<[1], [0], [0], [1], [0, 0, 1, 1], [], []>} : vector<32x64xbf16>, vector<64x128xbf16>, vector<32x128xf32> -> vector<32x128xf32>
    %135 = vector.broadcast %2 : vector<1x128xf32> to vector<32x128xf32>
    %136 = arith.addf %134, %135 : vector<32x128xf32>
    %cst_99 = arith.constant 0.000000e+00 : f32
    %137 = vector.broadcast %cst_99 : f32 to vector<32x128xf32>
    %138 = arith.maximumf %136, %137 : vector<32x128xf32>
    %139 = arith.truncf %138 : vector<32x128xf32> to vector<32x128xbf16>
    %c0_100 = arith.constant 0 : index
    %c0_101 = arith.constant 0 : index
    %140 = vector.load %arg8[%c0_100, %c0_101] : memref<128x256xbf16, #tpu.memory_space<vmem>>, vector<128x256xbf16>
    %cst_102 = arith.constant dense<0.000000e+00> : vector<32x256xf32>
    %141 = tpu.matmul %139, %140, %cst_102 {dimension_numbers = #tpu.dot_dimension_numbers<[1], [0], [0], [1], [0, 0, 1, 1], [], []>} : vector<32x128xbf16>, vector<128x256xbf16>, vector<32x256xf32> -> vector<32x256xf32>
    %142 = vector.broadcast %3 : vector<1x256xf32> to vector<32x256xf32>
    %143 = arith.addf %141, %142 : vector<32x256xf32>
    %cst_103 = arith.constant 0.000000e+00 : f32
    %144 = vector.broadcast %cst_103 : f32 to vector<32x256xf32>
    %145 = arith.maximumf %143, %144 : vector<32x256xf32>
    %146 = arith.truncf %145 : vector<32x256xf32> to vector<32x256xbf16>
    %c0_104 = arith.constant 0 : index
    %c0_105 = arith.constant 0 : index
    %147 = vector.load %arg10[%c0_104, %c0_105] : memref<256x192xbf16, #tpu.memory_space<vmem>>, vector<256x192xbf16>
    %cst_106 = arith.constant dense<0.000000e+00> : vector<32x192xf32>
    %148 = tpu.matmul %146, %147, %cst_106 {dimension_numbers = #tpu.dot_dimension_numbers<[1], [0], [0], [1], [0, 0, 1, 1], [], []>} : vector<32x256xbf16>, vector<256x192xbf16>, vector<32x192xf32> -> vector<32x192xf32>
    %149 = vector.broadcast %4 : vector<1x192xf32> to vector<32x192xf32>
    %150 = arith.addf %148, %149 : vector<32x192xf32>
    %cst_107 = arith.constant 0.000000e+00 : f32
    %151 = vector.broadcast %cst_107 : f32 to vector<32x192xf32>
    %152 = arith.maximumf %150, %151 : vector<32x192xf32>
    %153 = arith.truncf %152 : vector<32x192xf32> to vector<32x192xbf16>
    %c4 = arith.constant 4 : index
    %c0_108 = arith.constant 0 : index
    %c0_109 = arith.constant 0 : index
    %154 = vector.load %arg12[%c4, %c0_108, %c0_109] : memref<16x32x192xbf16, #tpu.memory_space<vmem>>, vector<1x32x192xbf16>
    %155 = vector.shape_cast %154 : vector<1x32x192xbf16> to vector<32x192xbf16>
    %156 = vector.shape_cast %153 : vector<32x192xbf16> to vector<1x32x192xbf16>
    tpu.vector_store %arg12[%c4, %c0_108, %c0_109], %156 {strides = array<i32>} : memref<16x32x192xbf16, #tpu.memory_space<vmem>>, vector<1x32x192xbf16>,
    %c0_110 = arith.constant 0 : index
    %c64_111 = arith.constant 64 : index
    %157 = vector.load %arg14[%c0_110, %c64_111] : memref<32x256xbf16, #tpu.memory_space<vmem>>, vector<32x64xbf16>
    %c0_112 = arith.constant 0 : index
    %c0_113 = arith.constant 0 : index
    %158 = vector.load %arg6[%c0_112, %c0_113] : memref<64x128xbf16, #tpu.memory_space<vmem>>, vector<64x128xbf16>
    %cst_114 = arith.constant dense<0.000000e+00> : vector<32x128xf32>
    %159 = tpu.matmul %157, %158, %cst_114 {dimension_numbers = #tpu.dot_dimension_numbers<[1], [0], [0], [1], [0, 0, 1, 1], [], []>} : vector<32x64xbf16>, vector<64x128xbf16>, vector<32x128xf32> -> vector<32x128xf32>
    %160 = vector.broadcast %2 : vector<1x128xf32> to vector<32x128xf32>
    %161 = arith.addf %159, %160 : vector<32x128xf32>
    %cst_115 = arith.constant 0.000000e+00 : f32
    %162 = vector.broadcast %cst_115 : f32 to vector<32x128xf32>
    %163 = arith.maximumf %161, %162 : vector<32x128xf32>
    %164 = arith.truncf %163 : vector<32x128xf32> to vector<32x128xbf16>
    %c0_116 = arith.constant 0 : index
    %c0_117 = arith.constant 0 : index
    %165 = vector.load %arg8[%c0_116, %c0_117] : memref<128x256xbf16, #tpu.memory_space<vmem>>, vector<128x256xbf16>
    %cst_118 = arith.constant dense<0.000000e+00> : vector<32x256xf32>
    %166 = tpu.matmul %164, %165, %cst_118 {dimension_numbers = #tpu.dot_dimension_numbers<[1], [0], [0], [1], [0, 0, 1, 1], [], []>} : vector<32x128xbf16>, vector<128x256xbf16>, vector<32x256xf32> -> vector<32x256xf32>
    %167 = vector.broadcast %3 : vector<1x256xf32> to vector<32x256xf32>
    %168 = arith.addf %166, %167 : vector<32x256xf32>
    %cst_119 = arith.constant 0.000000e+00 : f32
    %169 = vector.broadcast %cst_119 : f32 to vector<32x256xf32>
    %170 = arith.maximumf %168, %169 : vector<32x256xf32>
    %171 = arith.truncf %170 : vector<32x256xf32> to vector<32x256xbf16>
    %c0_120 = arith.constant 0 : index
    %c0_121 = arith.constant 0 : index
    %172 = vector.load %arg10[%c0_120, %c0_121] : memref<256x192xbf16, #tpu.memory_space<vmem>>, vector<256x192xbf16>
    %cst_122 = arith.constant dense<0.000000e+00> : vector<32x192xf32>
    %173 = tpu.matmul %171, %172, %cst_122 {dimension_numbers = #tpu.dot_dimension_numbers<[1], [0], [0], [1], [0, 0, 1, 1], [], []>} : vector<32x256xbf16>, vector<256x192xbf16>, vector<32x192xf32> -> vector<32x192xf32>
    %174 = vector.broadcast %4 : vector<1x192xf32> to vector<32x192xf32>
    %175 = arith.addf %173, %174 : vector<32x192xf32>
    %cst_123 = arith.constant 0.000000e+00 : f32
    %176 = vector.broadcast %cst_123 : f32 to vector<32x192xf32>
    %177 = arith.maximumf %175, %176 : vector<32x192xf32>
    %178 = arith.truncf %177 : vector<32x192xf32> to vector<32x192xbf16>
    %c5 = arith.constant 5 : index
    %c0_124 = arith.constant 0 : index
    %c0_125 = arith.constant 0 : index
    %179 = vector.load %arg12[%c5, %c0_124, %c0_125] : memref<16x32x192xbf16, #tpu.memory_space<vmem>>, vector<1x32x192xbf16>
    %180 = vector.shape_cast %179 : vector<1x32x192xbf16> to vector<32x192xbf16>
    %181 = vector.shape_cast %178 : vector<32x192xbf16> to vector<1x32x192xbf16>
    tpu.vector_store %arg12[%c5, %c0_124, %c0_125], %181 {strides = array<i32>} : memref<16x32x192xbf16, #tpu.memory_space<vmem>>, vector<1x32x192xbf16>,
    %c0_126 = arith.constant 0 : index
    %c128_127 = arith.constant 128 : index
    %182 = vector.load %arg14[%c0_126, %c128_127] : memref<32x256xbf16, #tpu.memory_space<vmem>>, vector<32x64xbf16>
    %c0_128 = arith.constant 0 : index
    %c0_129 = arith.constant 0 : index
    %183 = vector.load %arg6[%c0_128, %c0_129] : memref<64x128xbf16, #tpu.memory_space<vmem>>, vector<64x128xbf16>
    %cst_130 = arith.constant dense<0.000000e+00> : vector<32x128xf32>
    %184 = tpu.matmul %182, %183, %cst_130 {dimension_numbers = #tpu.dot_dimension_numbers<[1], [0], [0], [1], [0, 0, 1, 1], [], []>} : vector<32x64xbf16>, vector<64x128xbf16>, vector<32x128xf32> -> vector<32x128xf32>
    %185 = vector.broadcast %2 : vector<1x128xf32> to vector<32x128xf32>
    %186 = arith.addf %184, %185 : vector<32x128xf32>
    %cst_131 = arith.constant 0.000000e+00 : f32
    %187 = vector.broadcast %cst_131 : f32 to vector<32x128xf32>
    %188 = arith.maximumf %186, %187 : vector<32x128xf32>
    %189 = arith.truncf %188 : vector<32x128xf32> to vector<32x128xbf16>
    %c0_132 = arith.constant 0 : index
    %c0_133 = arith.constant 0 : index
    %190 = vector.load %arg8[%c0_132, %c0_133] : memref<128x256xbf16, #tpu.memory_space<vmem>>, vector<128x256xbf16>
    %cst_134 = arith.constant dense<0.000000e+00> : vector<32x256xf32>
    %191 = tpu.matmul %189, %190, %cst_134 {dimension_numbers = #tpu.dot_dimension_numbers<[1], [0], [0], [1], [0, 0, 1, 1], [], []>} : vector<32x128xbf16>, vector<128x256xbf16>, vector<32x256xf32> -> vector<32x256xf32>
    %192 = vector.broadcast %3 : vector<1x256xf32> to vector<32x256xf32>
    %193 = arith.addf %191, %192 : vector<32x256xf32>
    %cst_135 = arith.constant 0.000000e+00 : f32
    %194 = vector.broadcast %cst_135 : f32 to vector<32x256xf32>
    %195 = arith.maximumf %193, %194 : vector<32x256xf32>
    %196 = arith.truncf %195 : vector<32x256xf32> to vector<32x256xbf16>
    %c0_136 = arith.constant 0 : index
    %c0_137 = arith.constant 0 : index
    %197 = vector.load %arg10[%c0_136, %c0_137] : memref<256x192xbf16, #tpu.memory_space<vmem>>, vector<256x192xbf16>
    %cst_138 = arith.constant dense<0.000000e+00> : vector<32x192xf32>
    %198 = tpu.matmul %196, %197, %cst_138 {dimension_numbers = #tpu.dot_dimension_numbers<[1], [0], [0], [1], [0, 0, 1, 1], [], []>} : vector<32x256xbf16>, vector<256x192xbf16>, vector<32x192xf32> -> vector<32x192xf32>
    %199 = vector.broadcast %4 : vector<1x192xf32> to vector<32x192xf32>
    %200 = arith.addf %198, %199 : vector<32x192xf32>
    %cst_139 = arith.constant 0.000000e+00 : f32
    %201 = vector.broadcast %cst_139 : f32 to vector<32x192xf32>
    %202 = arith.maximumf %200, %201 : vector<32x192xf32>
    %203 = arith.truncf %202 : vector<32x192xf32> to vector<32x192xbf16>
    %c6 = arith.constant 6 : index
    %c0_140 = arith.constant 0 : index
    %c0_141 = arith.constant 0 : index
    %204 = vector.load %arg12[%c6, %c0_140, %c0_141] : memref<16x32x192xbf16, #tpu.memory_space<vmem>>, vector<1x32x192xbf16>
    %205 = vector.shape_cast %204 : vector<1x32x192xbf16> to vector<32x192xbf16>
    %206 = vector.shape_cast %203 : vector<32x192xbf16> to vector<1x32x192xbf16>
    tpu.vector_store %arg12[%c6, %c0_140, %c0_141], %206 {strides = array<i32>} : memref<16x32x192xbf16, #tpu.memory_space<vmem>>, vector<1x32x192xbf16>,
    %c0_142 = arith.constant 0 : index
    %c192_143 = arith.constant 192 : index
    %207 = vector.load %arg14[%c0_142, %c192_143] : memref<32x256xbf16, #tpu.memory_space<vmem>>, vector<32x64xbf16>
    %c0_144 = arith.constant 0 : index
    %c0_145 = arith.constant 0 : index
    %208 = vector.load %arg6[%c0_144, %c0_145] : memref<64x128xbf16, #tpu.memory_space<vmem>>, vector<64x128xbf16>
    %cst_146 = arith.constant dense<0.000000e+00> : vector<32x128xf32>
    %209 = tpu.matmul %207, %208, %cst_146 {dimension_numbers = #tpu.dot_dimension_numbers<[1], [0], [0], [1], [0, 0, 1, 1], [], []>} : vector<32x64xbf16>, vector<64x128xbf16>, vector<32x128xf32> -> vector<32x128xf32>
    %210 = vector.broadcast %2 : vector<1x128xf32> to vector<32x128xf32>
    %211 = arith.addf %209, %210 : vector<32x128xf32>
    %cst_147 = arith.constant 0.000000e+00 : f32
    %212 = vector.broadcast %cst_147 : f32 to vector<32x128xf32>
    %213 = arith.maximumf %211, %212 : vector<32x128xf32>
    %214 = arith.truncf %213 : vector<32x128xf32> to vector<32x128xbf16>
    %c0_148 = arith.constant 0 : index
    %c0_149 = arith.constant 0 : index
    %215 = vector.load %arg8[%c0_148, %c0_149] : memref<128x256xbf16, #tpu.memory_space<vmem>>, vector<128x256xbf16>
    %cst_150 = arith.constant dense<0.000000e+00> : vector<32x256xf32>
    %216 = tpu.matmul %214, %215, %cst_150 {dimension_numbers = #tpu.dot_dimension_numbers<[1], [0], [0], [1], [0, 0, 1, 1], [], []>} : vector<32x128xbf16>, vector<128x256xbf16>, vector<32x256xf32> -> vector<32x256xf32>
    %217 = vector.broadcast %3 : vector<1x256xf32> to vector<32x256xf32>
    %218 = arith.addf %216, %217 : vector<32x256xf32>
    %cst_151 = arith.constant 0.000000e+00 : f32
    %219 = vector.broadcast %cst_151 : f32 to vector<32x256xf32>
    %220 = arith.maximumf %218, %219 : vector<32x256xf32>
    %221 = arith.truncf %220 : vector<32x256xf32> to vector<32x256xbf16>
    %c0_152 = arith.constant 0 : index
    %c0_153 = arith.constant 0 : index
    %222 = vector.load %arg10[%c0_152, %c0_153] : memref<256x192xbf16, #tpu.memory_space<vmem>>, vector<256x192xbf16>
    %cst_154 = arith.constant dense<0.000000e+00> : vector<32x192xf32>
    %223 = tpu.matmul %221, %222, %cst_154 {dimension_numbers = #tpu.dot_dimension_numbers<[1], [0], [0], [1], [0, 0, 1, 1], [], []>} : vector<32x256xbf16>, vector<256x192xbf16>, vector<32x192xf32> -> vector<32x192xf32>
    %224 = vector.broadcast %4 : vector<1x192xf32> to vector<32x192xf32>
    %225 = arith.addf %223, %224 : vector<32x192xf32>
    %cst_155 = arith.constant 0.000000e+00 : f32
    %226 = vector.broadcast %cst_155 : f32 to vector<32x192xf32>
    %227 = arith.maximumf %225, %226 : vector<32x192xf32>
    %228 = arith.truncf %227 : vector<32x192xf32> to vector<32x192xbf16>
    %c7 = arith.constant 7 : index
    %c0_156 = arith.constant 0 : index
    %c0_157 = arith.constant 0 : index
    %229 = vector.load %arg12[%c7, %c0_156, %c0_157] : memref<16x32x192xbf16, #tpu.memory_space<vmem>>, vector<1x32x192xbf16>
    %230 = vector.shape_cast %229 : vector<1x32x192xbf16> to vector<32x192xbf16>
    %231 = vector.shape_cast %228 : vector<32x192xbf16> to vector<1x32x192xbf16>
    tpu.vector_store %arg12[%c7, %c0_156, %c0_157], %231 {strides = array<i32>} : memref<16x32x192xbf16, #tpu.memory_space<vmem>>, vector<1x32x192xbf16>,
    %c0_158 = arith.constant 0 : index
    %c256 = arith.constant 256 : index
    %232 = vector.load %arg13[%c0_158, %c256] : memref<32x512xbf16, #tpu.memory_space<vmem>>, vector<32x128xbf16>
    %c0_159 = arith.constant 0 : index
    %c0_160 = arith.constant 0 : index
    %233 = vector.load %arg4[%c0_159, %c0_160] : memref<128x256xbf16, #tpu.memory_space<vmem>>, vector<128x256xbf16>
    %cst_161 = arith.constant dense<0.000000e+00> : vector<32x256xf32>
    %234 = tpu.matmul %232, %233, %cst_161 {dimension_numbers = #tpu.dot_dimension_numbers<[1], [0], [0], [1], [0, 0, 1, 1], [], []>} : vector<32x128xbf16>, vector<128x256xbf16>, vector<32x256xf32> -> vector<32x256xf32>
    %235 = vector.broadcast %1 : vector<1x256xf32> to vector<32x256xf32>
    %236 = arith.addf %234, %235 : vector<32x256xf32>
    %cst_162 = arith.constant 0.000000e+00 : f32
    %237 = vector.broadcast %cst_162 : f32 to vector<32x256xf32>
    %238 = arith.maximumf %236, %237 : vector<32x256xf32>
    %239 = arith.truncf %238 : vector<32x256xf32> to vector<32x256xbf16>
    %c0_163 = arith.constant 0 : index
    %c0_164 = arith.constant 0 : index
    %240 = vector.load %arg14[%c0_163, %c0_164] : memref<32x256xbf16, #tpu.memory_space<vmem>>, vector<32x256xbf16>
    tpu.vector_store %arg14[%c0_163, %c0_164], %239 {strides = array<i32>} : memref<32x256xbf16, #tpu.memory_space<vmem>>, vector<32x256xbf16>,
    %c0_165 = arith.constant 0 : index
    %c0_166 = arith.constant 0 : index
    %241 = vector.load %arg14[%c0_165, %c0_166] : memref<32x256xbf16, #tpu.memory_space<vmem>>, vector<32x64xbf16>
    %c0_167 = arith.constant 0 : index
    %c0_168 = arith.constant 0 : index
    %242 = vector.load %arg6[%c0_167, %c0_168] : memref<64x128xbf16, #tpu.memory_space<vmem>>, vector<64x128xbf16>
    %cst_169 = arith.constant dense<0.000000e+00> : vector<32x128xf32>
    %243 = tpu.matmul %241, %242, %cst_169 {dimension_numbers = #tpu.dot_dimension_numbers<[1], [0], [0], [1], [0, 0, 1, 1], [], []>} : vector<32x64xbf16>, vector<64x128xbf16>, vector<32x128xf32> -> vector<32x128xf32>
    %244 = vector.broadcast %2 : vector<1x128xf32> to vector<32x128xf32>
    %245 = arith.addf %243, %244 : vector<32x128xf32>
    %cst_170 = arith.constant 0.000000e+00 : f32
    %246 = vector.broadcast %cst_170 : f32 to vector<32x128xf32>
    %247 = arith.maximumf %245, %246 : vector<32x128xf32>
    %248 = arith.truncf %247 : vector<32x128xf32> to vector<32x128xbf16>
    %c0_171 = arith.constant 0 : index
    %c0_172 = arith.constant 0 : index
    %249 = vector.load %arg8[%c0_171, %c0_172] : memref<128x256xbf16, #tpu.memory_space<vmem>>, vector<128x256xbf16>
    %cst_173 = arith.constant dense<0.000000e+00> : vector<32x256xf32>
    %250 = tpu.matmul %248, %249, %cst_173 {dimension_numbers = #tpu.dot_dimension_numbers<[1], [0], [0], [1], [0, 0, 1, 1], [], []>} : vector<32x128xbf16>, vector<128x256xbf16>, vector<32x256xf32> -> vector<32x256xf32>
    %251 = vector.broadcast %3 : vector<1x256xf32> to vector<32x256xf32>
    %252 = arith.addf %250, %251 : vector<32x256xf32>
    %cst_174 = arith.constant 0.000000e+00 : f32
    %253 = vector.broadcast %cst_174 : f32 to vector<32x256xf32>
    %254 = arith.maximumf %252, %253 : vector<32x256xf32>
    %255 = arith.truncf %254 : vector<32x256xf32> to vector<32x256xbf16>
    %c0_175 = arith.constant 0 : index
    %c0_176 = arith.constant 0 : index
    %256 = vector.load %arg10[%c0_175, %c0_176] : memref<256x192xbf16, #tpu.memory_space<vmem>>, vector<256x192xbf16>
    %cst_177 = arith.constant dense<0.000000e+00> : vector<32x192xf32>
    %257 = tpu.matmul %255, %256, %cst_177 {dimension_numbers = #tpu.dot_dimension_numbers<[1], [0], [0], [1], [0, 0, 1, 1], [], []>} : vector<32x256xbf16>, vector<256x192xbf16>, vector<32x192xf32> -> vector<32x192xf32>
    %258 = vector.broadcast %4 : vector<1x192xf32> to vector<32x192xf32>
    %259 = arith.addf %257, %258 : vector<32x192xf32>
    %cst_178 = arith.constant 0.000000e+00 : f32
    %260 = vector.broadcast %cst_178 : f32 to vector<32x192xf32>
    %261 = arith.maximumf %259, %260 : vector<32x192xf32>
    %262 = arith.truncf %261 : vector<32x192xf32> to vector<32x192xbf16>
    %c8 = arith.constant 8 : index
    %c0_179 = arith.constant 0 : index
    %c0_180 = arith.constant 0 : index
    %263 = vector.load %arg12[%c8, %c0_179, %c0_180] : memref<16x32x192xbf16, #tpu.memory_space<vmem>>, vector<1x32x192xbf16>
    %264 = vector.shape_cast %263 : vector<1x32x192xbf16> to vector<32x192xbf16>
    %265 = vector.shape_cast %262 : vector<32x192xbf16> to vector<1x32x192xbf16>
    tpu.vector_store %arg12[%c8, %c0_179, %c0_180], %265 {strides = array<i32>} : memref<16x32x192xbf16, #tpu.memory_space<vmem>>, vector<1x32x192xbf16>,
    %c0_181 = arith.constant 0 : index
    %c64_182 = arith.constant 64 : index
    %266 = vector.load %arg14[%c0_181, %c64_182] : memref<32x256xbf16, #tpu.memory_space<vmem>>, vector<32x64xbf16>
    %c0_183 = arith.constant 0 : index
    %c0_184 = arith.constant 0 : index
    %267 = vector.load %arg6[%c0_183, %c0_184] : memref<64x128xbf16, #tpu.memory_space<vmem>>, vector<64x128xbf16>
    %cst_185 = arith.constant dense<0.000000e+00> : vector<32x128xf32>
    %268 = tpu.matmul %266, %267, %cst_185 {dimension_numbers = #tpu.dot_dimension_numbers<[1], [0], [0], [1], [0, 0, 1, 1], [], []>} : vector<32x64xbf16>, vector<64x128xbf16>, vector<32x128xf32> -> vector<32x128xf32>
    %269 = vector.broadcast %2 : vector<1x128xf32> to vector<32x128xf32>
    %270 = arith.addf %268, %269 : vector<32x128xf32>
    %cst_186 = arith.constant 0.000000e+00 : f32
    %271 = vector.broadcast %cst_186 : f32 to vector<32x128xf32>
    %272 = arith.maximumf %270, %271 : vector<32x128xf32>
    %273 = arith.truncf %272 : vector<32x128xf32> to vector<32x128xbf16>
    %c0_187 = arith.constant 0 : index
    %c0_188 = arith.constant 0 : index
    %274 = vector.load %arg8[%c0_187, %c0_188] : memref<128x256xbf16, #tpu.memory_space<vmem>>, vector<128x256xbf16>
    %cst_189 = arith.constant dense<0.000000e+00> : vector<32x256xf32>
    %275 = tpu.matmul %273, %274, %cst_189 {dimension_numbers = #tpu.dot_dimension_numbers<[1], [0], [0], [1], [0, 0, 1, 1], [], []>} : vector<32x128xbf16>, vector<128x256xbf16>, vector<32x256xf32> -> vector<32x256xf32>
    %276 = vector.broadcast %3 : vector<1x256xf32> to vector<32x256xf32>
    %277 = arith.addf %275, %276 : vector<32x256xf32>
    %cst_190 = arith.constant 0.000000e+00 : f32
    %278 = vector.broadcast %cst_190 : f32 to vector<32x256xf32>
    %279 = arith.maximumf %277, %278 : vector<32x256xf32>
    %280 = arith.truncf %279 : vector<32x256xf32> to vector<32x256xbf16>
    %c0_191 = arith.constant 0 : index
    %c0_192 = arith.constant 0 : index
    %281 = vector.load %arg10[%c0_191, %c0_192] : memref<256x192xbf16, #tpu.memory_space<vmem>>, vector<256x192xbf16>
    %cst_193 = arith.constant dense<0.000000e+00> : vector<32x192xf32>
    %282 = tpu.matmul %280, %281, %cst_193 {dimension_numbers = #tpu.dot_dimension_numbers<[1], [0], [0], [1], [0, 0, 1, 1], [], []>} : vector<32x256xbf16>, vector<256x192xbf16>, vector<32x192xf32> -> vector<32x192xf32>
    %283 = vector.broadcast %4 : vector<1x192xf32> to vector<32x192xf32>
    %284 = arith.addf %282, %283 : vector<32x192xf32>
    %cst_194 = arith.constant 0.000000e+00 : f32
    %285 = vector.broadcast %cst_194 : f32 to vector<32x192xf32>
    %286 = arith.maximumf %284, %285 : vector<32x192xf32>
    %287 = arith.truncf %286 : vector<32x192xf32> to vector<32x192xbf16>
    %c9 = arith.constant 9 : index
    %c0_195 = arith.constant 0 : index
    %c0_196 = arith.constant 0 : index
    %288 = vector.load %arg12[%c9, %c0_195, %c0_196] : memref<16x32x192xbf16, #tpu.memory_space<vmem>>, vector<1x32x192xbf16>
    %289 = vector.shape_cast %288 : vector<1x32x192xbf16> to vector<32x192xbf16>
    %290 = vector.shape_cast %287 : vector<32x192xbf16> to vector<1x32x192xbf16>
    tpu.vector_store %arg12[%c9, %c0_195, %c0_196], %290 {strides = array<i32>} : memref<16x32x192xbf16, #tpu.memory_space<vmem>>, vector<1x32x192xbf16>,
    %c0_197 = arith.constant 0 : index
    %c128_198 = arith.constant 128 : index
    %291 = vector.load %arg14[%c0_197, %c128_198] : memref<32x256xbf16, #tpu.memory_space<vmem>>, vector<32x64xbf16>
    %c0_199 = arith.constant 0 : index
    %c0_200 = arith.constant 0 : index
    %292 = vector.load %arg6[%c0_199, %c0_200] : memref<64x128xbf16, #tpu.memory_space<vmem>>, vector<64x128xbf16>
    %cst_201 = arith.constant dense<0.000000e+00> : vector<32x128xf32>
    %293 = tpu.matmul %291, %292, %cst_201 {dimension_numbers = #tpu.dot_dimension_numbers<[1], [0], [0], [1], [0, 0, 1, 1], [], []>} : vector<32x64xbf16>, vector<64x128xbf16>, vector<32x128xf32> -> vector<32x128xf32>
    %294 = vector.broadcast %2 : vector<1x128xf32> to vector<32x128xf32>
    %295 = arith.addf %293, %294 : vector<32x128xf32>
    %cst_202 = arith.constant 0.000000e+00 : f32
    %296 = vector.broadcast %cst_202 : f32 to vector<32x128xf32>
    %297 = arith.maximumf %295, %296 : vector<32x128xf32>
    %298 = arith.truncf %297 : vector<32x128xf32> to vector<32x128xbf16>
    %c0_203 = arith.constant 0 : index
    %c0_204 = arith.constant 0 : index
    %299 = vector.load %arg8[%c0_203, %c0_204] : memref<128x256xbf16, #tpu.memory_space<vmem>>, vector<128x256xbf16>
    %cst_205 = arith.constant dense<0.000000e+00> : vector<32x256xf32>
    %300 = tpu.matmul %298, %299, %cst_205 {dimension_numbers = #tpu.dot_dimension_numbers<[1], [0], [0], [1], [0, 0, 1, 1], [], []>} : vector<32x128xbf16>, vector<128x256xbf16>, vector<32x256xf32> -> vector<32x256xf32>
    %301 = vector.broadcast %3 : vector<1x256xf32> to vector<32x256xf32>
    %302 = arith.addf %300, %301 : vector<32x256xf32>
    %cst_206 = arith.constant 0.000000e+00 : f32
    %303 = vector.broadcast %cst_206 : f32 to vector<32x256xf32>
    %304 = arith.maximumf %302, %303 : vector<32x256xf32>
    %305 = arith.truncf %304 : vector<32x256xf32> to vector<32x256xbf16>
    %c0_207 = arith.constant 0 : index
    %c0_208 = arith.constant 0 : index
    %306 = vector.load %arg10[%c0_207, %c0_208] : memref<256x192xbf16, #tpu.memory_space<vmem>>, vector<256x192xbf16>
    %cst_209 = arith.constant dense<0.000000e+00> : vector<32x192xf32>
    %307 = tpu.matmul %305, %306, %cst_209 {dimension_numbers = #tpu.dot_dimension_numbers<[1], [0], [0], [1], [0, 0, 1, 1], [], []>} : vector<32x256xbf16>, vector<256x192xbf16>, vector<32x192xf32> -> vector<32x192xf32>
    %308 = vector.broadcast %4 : vector<1x192xf32> to vector<32x192xf32>
    %309 = arith.addf %307, %308 : vector<32x192xf32>
    %cst_210 = arith.constant 0.000000e+00 : f32
    %310 = vector.broadcast %cst_210 : f32 to vector<32x192xf32>
    %311 = arith.maximumf %309, %310 : vector<32x192xf32>
    %312 = arith.truncf %311 : vector<32x192xf32> to vector<32x192xbf16>
    %c10 = arith.constant 10 : index
    %c0_211 = arith.constant 0 : index
    %c0_212 = arith.constant 0 : index
    %313 = vector.load %arg12[%c10, %c0_211, %c0_212] : memref<16x32x192xbf16, #tpu.memory_space<vmem>>, vector<1x32x192xbf16>
    %314 = vector.shape_cast %313 : vector<1x32x192xbf16> to vector<32x192xbf16>
    %315 = vector.shape_cast %312 : vector<32x192xbf16> to vector<1x32x192xbf16>
    tpu.vector_store %arg12[%c10, %c0_211, %c0_212], %315 {strides = array<i32>} : memref<16x32x192xbf16, #tpu.memory_space<vmem>>, vector<1x32x192xbf16>,
    %c0_213 = arith.constant 0 : index
    %c192_214 = arith.constant 192 : index
    %316 = vector.load %arg14[%c0_213, %c192_214] : memref<32x256xbf16, #tpu.memory_space<vmem>>, vector<32x64xbf16>
    %c0_215 = arith.constant 0 : index
    %c0_216 = arith.constant 0 : index
    %317 = vector.load %arg6[%c0_215, %c0_216] : memref<64x128xbf16, #tpu.memory_space<vmem>>, vector<64x128xbf16>
    %cst_217 = arith.constant dense<0.000000e+00> : vector<32x128xf32>
    %318 = tpu.matmul %316, %317, %cst_217 {dimension_numbers = #tpu.dot_dimension_numbers<[1], [0], [0], [1], [0, 0, 1, 1], [], []>} : vector<32x64xbf16>, vector<64x128xbf16>, vector<32x128xf32> -> vector<32x128xf32>
    %319 = vector.broadcast %2 : vector<1x128xf32> to vector<32x128xf32>
    %320 = arith.addf %318, %319 : vector<32x128xf32>
    %cst_218 = arith.constant 0.000000e+00 : f32
    %321 = vector.broadcast %cst_218 : f32 to vector<32x128xf32>
    %322 = arith.maximumf %320, %321 : vector<32x128xf32>
    %323 = arith.truncf %322 : vector<32x128xf32> to vector<32x128xbf16>
    %c0_219 = arith.constant 0 : index
    %c0_220 = arith.constant 0 : index
    %324 = vector.load %arg8[%c0_219, %c0_220] : memref<128x256xbf16, #tpu.memory_space<vmem>>, vector<128x256xbf16>
    %cst_221 = arith.constant dense<0.000000e+00> : vector<32x256xf32>
    %325 = tpu.matmul %323, %324, %cst_221 {dimension_numbers = #tpu.dot_dimension_numbers<[1], [0], [0], [1], [0, 0, 1, 1], [], []>} : vector<32x128xbf16>, vector<128x256xbf16>, vector<32x256xf32> -> vector<32x256xf32>
    %326 = vector.broadcast %3 : vector<1x256xf32> to vector<32x256xf32>
    %327 = arith.addf %325, %326 : vector<32x256xf32>
    %cst_222 = arith.constant 0.000000e+00 : f32
    %328 = vector.broadcast %cst_222 : f32 to vector<32x256xf32>
    %329 = arith.maximumf %327, %328 : vector<32x256xf32>
    %330 = arith.truncf %329 : vector<32x256xf32> to vector<32x256xbf16>
    %c0_223 = arith.constant 0 : index
    %c0_224 = arith.constant 0 : index
    %331 = vector.load %arg10[%c0_223, %c0_224] : memref<256x192xbf16, #tpu.memory_space<vmem>>, vector<256x192xbf16>
    %cst_225 = arith.constant dense<0.000000e+00> : vector<32x192xf32>
    %332 = tpu.matmul %330, %331, %cst_225 {dimension_numbers = #tpu.dot_dimension_numbers<[1], [0], [0], [1], [0, 0, 1, 1], [], []>} : vector<32x256xbf16>, vector<256x192xbf16>, vector<32x192xf32> -> vector<32x192xf32>
    %333 = vector.broadcast %4 : vector<1x192xf32> to vector<32x192xf32>
    %334 = arith.addf %332, %333 : vector<32x192xf32>
    %cst_226 = arith.constant 0.000000e+00 : f32
    %335 = vector.broadcast %cst_226 : f32 to vector<32x192xf32>
    %336 = arith.maximumf %334, %335 : vector<32x192xf32>
    %337 = arith.truncf %336 : vector<32x192xf32> to vector<32x192xbf16>
    %c11 = arith.constant 11 : index
    %c0_227 = arith.constant 0 : index
    %c0_228 = arith.constant 0 : index
    %338 = vector.load %arg12[%c11, %c0_227, %c0_228] : memref<16x32x192xbf16, #tpu.memory_space<vmem>>, vector<1x32x192xbf16>
    %339 = vector.shape_cast %338 : vector<1x32x192xbf16> to vector<32x192xbf16>
    %340 = vector.shape_cast %337 : vector<32x192xbf16> to vector<1x32x192xbf16>
    tpu.vector_store %arg12[%c11, %c0_227, %c0_228], %340 {strides = array<i32>} : memref<16x32x192xbf16, #tpu.memory_space<vmem>>, vector<1x32x192xbf16>,
    %c0_229 = arith.constant 0 : index
    %c384 = arith.constant 384 : index
    %341 = vector.load %arg13[%c0_229, %c384] : memref<32x512xbf16, #tpu.memory_space<vmem>>, vector<32x128xbf16>
    %c0_230 = arith.constant 0 : index
    %c0_231 = arith.constant 0 : index
    %342 = vector.load %arg4[%c0_230, %c0_231] : memref<128x256xbf16, #tpu.memory_space<vmem>>, vector<128x256xbf16>
    %cst_232 = arith.constant dense<0.000000e+00> : vector<32x256xf32>
    %343 = tpu.matmul %341, %342, %cst_232 {dimension_numbers = #tpu.dot_dimension_numbers<[1], [0], [0], [1], [0, 0, 1, 1], [], []>} : vector<32x128xbf16>, vector<128x256xbf16>, vector<32x256xf32> -> vector<32x256xf32>
    %344 = vector.broadcast %1 : vector<1x256xf32> to vector<32x256xf32>
    %345 = arith.addf %343, %344 : vector<32x256xf32>
    %cst_233 = arith.constant 0.000000e+00 : f32
    %346 = vector.broadcast %cst_233 : f32 to vector<32x256xf32>
    %347 = arith.maximumf %345, %346 : vector<32x256xf32>
    %348 = arith.truncf %347 : vector<32x256xf32> to vector<32x256xbf16>
    %c0_234 = arith.constant 0 : index
    %c0_235 = arith.constant 0 : index
    %349 = vector.load %arg14[%c0_234, %c0_235] : memref<32x256xbf16, #tpu.memory_space<vmem>>, vector<32x256xbf16>
    tpu.vector_store %arg14[%c0_234, %c0_235], %348 {strides = array<i32>} : memref<32x256xbf16, #tpu.memory_space<vmem>>, vector<32x256xbf16>,
    %c0_236 = arith.constant 0 : index
    %c0_237 = arith.constant 0 : index
    %350 = vector.load %arg14[%c0_236, %c0_237] : memref<32x256xbf16, #tpu.memory_space<vmem>>, vector<32x64xbf16>
    %c0_238 = arith.constant 0 : index
    %c0_239 = arith.constant 0 : index
    %351 = vector.load %arg6[%c0_238, %c0_239] : memref<64x128xbf16, #tpu.memory_space<vmem>>, vector<64x128xbf16>
    %cst_240 = arith.constant dense<0.000000e+00> : vector<32x128xf32>
    %352 = tpu.matmul %350, %351, %cst_240 {dimension_numbers = #tpu.dot_dimension_numbers<[1], [0], [0], [1], [0, 0, 1, 1], [], []>} : vector<32x64xbf16>, vector<64x128xbf16>, vector<32x128xf32> -> vector<32x128xf32>
    %353 = vector.broadcast %2 : vector<1x128xf32> to vector<32x128xf32>
    %354 = arith.addf %352, %353 : vector<32x128xf32>
    %cst_241 = arith.constant 0.000000e+00 : f32
    %355 = vector.broadcast %cst_241 : f32 to vector<32x128xf32>
    %356 = arith.maximumf %354, %355 : vector<32x128xf32>
    %357 = arith.truncf %356 : vector<32x128xf32> to vector<32x128xbf16>
    %c0_242 = arith.constant 0 : index
    %c0_243 = arith.constant 0 : index
    %358 = vector.load %arg8[%c0_242, %c0_243] : memref<128x256xbf16, #tpu.memory_space<vmem>>, vector<128x256xbf16>
    %cst_244 = arith.constant dense<0.000000e+00> : vector<32x256xf32>
    %359 = tpu.matmul %357, %358, %cst_244 {dimension_numbers = #tpu.dot_dimension_numbers<[1], [0], [0], [1], [0, 0, 1, 1], [], []>} : vector<32x128xbf16>, vector<128x256xbf16>, vector<32x256xf32> -> vector<32x256xf32>
    %360 = vector.broadcast %3 : vector<1x256xf32> to vector<32x256xf32>
    %361 = arith.addf %359, %360 : vector<32x256xf32>
    %cst_245 = arith.constant 0.000000e+00 : f32
    %362 = vector.broadcast %cst_245 : f32 to vector<32x256xf32>
    %363 = arith.maximumf %361, %362 : vector<32x256xf32>
    %364 = arith.truncf %363 : vector<32x256xf32> to vector<32x256xbf16>
    %c0_246 = arith.constant 0 : index
    %c0_247 = arith.constant 0 : index
    %365 = vector.load %arg10[%c0_246, %c0_247] : memref<256x192xbf16, #tpu.memory_space<vmem>>, vector<256x192xbf16>
    %cst_248 = arith.constant dense<0.000000e+00> : vector<32x192xf32>
    %366 = tpu.matmul %364, %365, %cst_248 {dimension_numbers = #tpu.dot_dimension_numbers<[1], [0], [0], [1], [0, 0, 1, 1], [], []>} : vector<32x256xbf16>, vector<256x192xbf16>, vector<32x192xf32> -> vector<32x192xf32>
    %367 = vector.broadcast %4 : vector<1x192xf32> to vector<32x192xf32>
    %368 = arith.addf %366, %367 : vector<32x192xf32>
    %cst_249 = arith.constant 0.000000e+00 : f32
    %369 = vector.broadcast %cst_249 : f32 to vector<32x192xf32>
    %370 = arith.maximumf %368, %369 : vector<32x192xf32>
    %371 = arith.truncf %370 : vector<32x192xf32> to vector<32x192xbf16>
    %c12 = arith.constant 12 : index
    %c0_250 = arith.constant 0 : index
    %c0_251 = arith.constant 0 : index
    %372 = vector.load %arg12[%c12, %c0_250, %c0_251] : memref<16x32x192xbf16, #tpu.memory_space<vmem>>, vector<1x32x192xbf16>
    %373 = vector.shape_cast %372 : vector<1x32x192xbf16> to vector<32x192xbf16>
    %374 = vector.shape_cast %371 : vector<32x192xbf16> to vector<1x32x192xbf16>
    tpu.vector_store %arg12[%c12, %c0_250, %c0_251], %374 {strides = array<i32>} : memref<16x32x192xbf16, #tpu.memory_space<vmem>>, vector<1x32x192xbf16>,
    %c0_252 = arith.constant 0 : index
    %c64_253 = arith.constant 64 : index
    %375 = vector.load %arg14[%c0_252, %c64_253] : memref<32x256xbf16, #tpu.memory_space<vmem>>, vector<32x64xbf16>
    %c0_254 = arith.constant 0 : index
    %c0_255 = arith.constant 0 : index
    %376 = vector.load %arg6[%c0_254, %c0_255] : memref<64x128xbf16, #tpu.memory_space<vmem>>, vector<64x128xbf16>
    %cst_256 = arith.constant dense<0.000000e+00> : vector<32x128xf32>
    %377 = tpu.matmul %375, %376, %cst_256 {dimension_numbers = #tpu.dot_dimension_numbers<[1], [0], [0], [1], [0, 0, 1, 1], [], []>} : vector<32x64xbf16>, vector<64x128xbf16>, vector<32x128xf32> -> vector<32x128xf32>
    %378 = vector.broadcast %2 : vector<1x128xf32> to vector<32x128xf32>
    %379 = arith.addf %377, %378 : vector<32x128xf32>
    %cst_257 = arith.constant 0.000000e+00 : f32
    %380 = vector.broadcast %cst_257 : f32 to vector<32x128xf32>
    %381 = arith.maximumf %379, %380 : vector<32x128xf32>
    %382 = arith.truncf %381 : vector<32x128xf32> to vector<32x128xbf16>
    %c0_258 = arith.constant 0 : index
    %c0_259 = arith.constant 0 : index
    %383 = vector.load %arg8[%c0_258, %c0_259] : memref<128x256xbf16, #tpu.memory_space<vmem>>, vector<128x256xbf16>
    %cst_260 = arith.constant dense<0.000000e+00> : vector<32x256xf32>
    %384 = tpu.matmul %382, %383, %cst_260 {dimension_numbers = #tpu.dot_dimension_numbers<[1], [0], [0], [1], [0, 0, 1, 1], [], []>} : vector<32x128xbf16>, vector<128x256xbf16>, vector<32x256xf32> -> vector<32x256xf32>
    %385 = vector.broadcast %3 : vector<1x256xf32> to vector<32x256xf32>
    %386 = arith.addf %384, %385 : vector<32x256xf32>
    %cst_261 = arith.constant 0.000000e+00 : f32
    %387 = vector.broadcast %cst_261 : f32 to vector<32x256xf32>
    %388 = arith.maximumf %386, %387 : vector<32x256xf32>
    %389 = arith.truncf %388 : vector<32x256xf32> to vector<32x256xbf16>
    %c0_262 = arith.constant 0 : index
    %c0_263 = arith.constant 0 : index
    %390 = vector.load %arg10[%c0_262, %c0_263] : memref<256x192xbf16, #tpu.memory_space<vmem>>, vector<256x192xbf16>
    %cst_264 = arith.constant dense<0.000000e+00> : vector<32x192xf32>
    %391 = tpu.matmul %389, %390, %cst_264 {dimension_numbers = #tpu.dot_dimension_numbers<[1], [0], [0], [1], [0, 0, 1, 1], [], []>} : vector<32x256xbf16>, vector<256x192xbf16>, vector<32x192xf32> -> vector<32x192xf32>
    %392 = vector.broadcast %4 : vector<1x192xf32> to vector<32x192xf32>
    %393 = arith.addf %391, %392 : vector<32x192xf32>
    %cst_265 = arith.constant 0.000000e+00 : f32
    %394 = vector.broadcast %cst_265 : f32 to vector<32x192xf32>
    %395 = arith.maximumf %393, %394 : vector<32x192xf32>
    %396 = arith.truncf %395 : vector<32x192xf32> to vector<32x192xbf16>
    %c13 = arith.constant 13 : index
    %c0_266 = arith.constant 0 : index
    %c0_267 = arith.constant 0 : index
    %397 = vector.load %arg12[%c13, %c0_266, %c0_267] : memref<16x32x192xbf16, #tpu.memory_space<vmem>>, vector<1x32x192xbf16>
    %398 = vector.shape_cast %397 : vector<1x32x192xbf16> to vector<32x192xbf16>
    %399 = vector.shape_cast %396 : vector<32x192xbf16> to vector<1x32x192xbf16>
    tpu.vector_store %arg12[%c13, %c0_266, %c0_267], %399 {strides = array<i32>} : memref<16x32x192xbf16, #tpu.memory_space<vmem>>, vector<1x32x192xbf16>,
    %c0_268 = arith.constant 0 : index
    %c128_269 = arith.constant 128 : index
    %400 = vector.load %arg14[%c0_268, %c128_269] : memref<32x256xbf16, #tpu.memory_space<vmem>>, vector<32x64xbf16>
    %c0_270 = arith.constant 0 : index
    %c0_271 = arith.constant 0 : index
    %401 = vector.load %arg6[%c0_270, %c0_271] : memref<64x128xbf16, #tpu.memory_space<vmem>>, vector<64x128xbf16>
    %cst_272 = arith.constant dense<0.000000e+00> : vector<32x128xf32>
    %402 = tpu.matmul %400, %401, %cst_272 {dimension_numbers = #tpu.dot_dimension_numbers<[1], [0], [0], [1], [0, 0, 1, 1], [], []>} : vector<32x64xbf16>, vector<64x128xbf16>, vector<32x128xf32> -> vector<32x128xf32>
    %403 = vector.broadcast %2 : vector<1x128xf32> to vector<32x128xf32>
    %404 = arith.addf %402, %403 : vector<32x128xf32>
    %cst_273 = arith.constant 0.000000e+00 : f32
    %405 = vector.broadcast %cst_273 : f32 to vector<32x128xf32>
    %406 = arith.maximumf %404, %405 : vector<32x128xf32>
    %407 = arith.truncf %406 : vector<32x128xf32> to vector<32x128xbf16>
    %c0_274 = arith.constant 0 : index
    %c0_275 = arith.constant 0 : index
    %408 = vector.load %arg8[%c0_274, %c0_275] : memref<128x256xbf16, #tpu.memory_space<vmem>>, vector<128x256xbf16>
    %cst_276 = arith.constant dense<0.000000e+00> : vector<32x256xf32>
    %409 = tpu.matmul %407, %408, %cst_276 {dimension_numbers = #tpu.dot_dimension_numbers<[1], [0], [0], [1], [0, 0, 1, 1], [], []>} : vector<32x128xbf16>, vector<128x256xbf16>, vector<32x256xf32> -> vector<32x256xf32>
    %410 = vector.broadcast %3 : vector<1x256xf32> to vector<32x256xf32>
    %411 = arith.addf %409, %410 : vector<32x256xf32>
    %cst_277 = arith.constant 0.000000e+00 : f32
    %412 = vector.broadcast %cst_277 : f32 to vector<32x256xf32>
    %413 = arith.maximumf %411, %412 : vector<32x256xf32>
    %414 = arith.truncf %413 : vector<32x256xf32> to vector<32x256xbf16>
    %c0_278 = arith.constant 0 : index
    %c0_279 = arith.constant 0 : index
    %415 = vector.load %arg10[%c0_278, %c0_279] : memref<256x192xbf16, #tpu.memory_space<vmem>>, vector<256x192xbf16>
    %cst_280 = arith.constant dense<0.000000e+00> : vector<32x192xf32>
    %416 = tpu.matmul %414, %415, %cst_280 {dimension_numbers = #tpu.dot_dimension_numbers<[1], [0], [0], [1], [0, 0, 1, 1], [], []>} : vector<32x256xbf16>, vector<256x192xbf16>, vector<32x192xf32> -> vector<32x192xf32>
    %417 = vector.broadcast %4 : vector<1x192xf32> to vector<32x192xf32>
    %418 = arith.addf %416, %417 : vector<32x192xf32>
    %cst_281 = arith.constant 0.000000e+00 : f32
    %419 = vector.broadcast %cst_281 : f32 to vector<32x192xf32>
    %420 = arith.maximumf %418, %419 : vector<32x192xf32>
    %421 = arith.truncf %420 : vector<32x192xf32> to vector<32x192xbf16>
    %c14 = arith.constant 14 : index
    %c0_282 = arith.constant 0 : index
    %c0_283 = arith.constant 0 : index
    %422 = vector.load %arg12[%c14, %c0_282, %c0_283] : memref<16x32x192xbf16, #tpu.memory_space<vmem>>, vector<1x32x192xbf16>
    %423 = vector.shape_cast %422 : vector<1x32x192xbf16> to vector<32x192xbf16>
    %424 = vector.shape_cast %421 : vector<32x192xbf16> to vector<1x32x192xbf16>
    tpu.vector_store %arg12[%c14, %c0_282, %c0_283], %424 {strides = array<i32>} : memref<16x32x192xbf16, #tpu.memory_space<vmem>>, vector<1x32x192xbf16>,
    %c0_284 = arith.constant 0 : index
    %c192_285 = arith.constant 192 : index
    %425 = vector.load %arg14[%c0_284, %c192_285] : memref<32x256xbf16, #tpu.memory_space<vmem>>, vector<32x64xbf16>
    %c0_286 = arith.constant 0 : index
    %c0_287 = arith.constant 0 : index
    %426 = vector.load %arg6[%c0_286, %c0_287] : memref<64x128xbf16, #tpu.memory_space<vmem>>, vector<64x128xbf16>
    %cst_288 = arith.constant dense<0.000000e+00> : vector<32x128xf32>
    %427 = tpu.matmul %425, %426, %cst_288 {dimension_numbers = #tpu.dot_dimension_numbers<[1], [0], [0], [1], [0, 0, 1, 1], [], []>} : vector<32x64xbf16>, vector<64x128xbf16>, vector<32x128xf32> -> vector<32x128xf32>
    %428 = vector.broadcast %2 : vector<1x128xf32> to vector<32x128xf32>
    %429 = arith.addf %427, %428 : vector<32x128xf32>
    %cst_289 = arith.constant 0.000000e+00 : f32
    %430 = vector.broadcast %cst_289 : f32 to vector<32x128xf32>
    %431 = arith.maximumf %429, %430 : vector<32x128xf32>
    %432 = arith.truncf %431 : vector<32x128xf32> to vector<32x128xbf16>
    %c0_290 = arith.constant 0 : index
    %c0_291 = arith.constant 0 : index
    %433 = vector.load %arg8[%c0_290, %c0_291] : memref<128x256xbf16, #tpu.memory_space<vmem>>, vector<128x256xbf16>
    %cst_292 = arith.constant dense<0.000000e+00> : vector<32x256xf32>
    %434 = tpu.matmul %432, %433, %cst_292 {dimension_numbers = #tpu.dot_dimension_numbers<[1], [0], [0], [1], [0, 0, 1, 1], [], []>} : vector<32x128xbf16>, vector<128x256xbf16>, vector<32x256xf32> -> vector<32x256xf32>
    %435 = vector.broadcast %3 : vector<1x256xf32> to vector<32x256xf32>
    %436 = arith.addf %434, %435 : vector<32x256xf32>
    %cst_293 = arith.constant 0.000000e+00 : f32
    %437 = vector.broadcast %cst_293 : f32 to vector<32x256xf32>
    %438 = arith.maximumf %436, %437 : vector<32x256xf32>
    %439 = arith.truncf %438 : vector<32x256xf32> to vector<32x256xbf16>
    %c0_294 = arith.constant 0 : index
    %c0_295 = arith.constant 0 : index
    %440 = vector.load %arg10[%c0_294, %c0_295] : memref<256x192xbf16, #tpu.memory_space<vmem>>, vector<256x192xbf16>
    %cst_296 = arith.constant dense<0.000000e+00> : vector<32x192xf32>
    %441 = tpu.matmul %439, %440, %cst_296 {dimension_numbers = #tpu.dot_dimension_numbers<[1], [0], [0], [1], [0, 0, 1, 1], [], []>} : vector<32x256xbf16>, vector<256x192xbf16>, vector<32x192xf32> -> vector<32x192xf32>
    %442 = vector.broadcast %4 : vector<1x192xf32> to vector<32x192xf32>
    %443 = arith.addf %441, %442 : vector<32x192xf32>
    %cst_297 = arith.constant 0.000000e+00 : f32
    %444 = vector.broadcast %cst_297 : f32 to vector<32x192xf32>
    %445 = arith.maximumf %443, %444 : vector<32x192xf32>
    %446 = arith.truncf %445 : vector<32x192xf32> to vector<32x192xbf16>
    %c15 = arith.constant 15 : index
    %c0_298 = arith.constant 0 : index
    %c0_299 = arith.constant 0 : index
    %447 = vector.load %arg12[%c15, %c0_298, %c0_299] : memref<16x32x192xbf16, #tpu.memory_space<vmem>>, vector<1x32x192xbf16>
    %448 = vector.shape_cast %447 : vector<1x32x192xbf16> to vector<32x192xbf16>
    %449 = vector.shape_cast %446 : vector<32x192xbf16> to vector<1x32x192xbf16>
    tpu.vector_store %arg12[%c15, %c0_298, %c0_299], %449 {strides = array<i32>} : memref<16x32x192xbf16, #tpu.memory_space<vmem>>, vector<1x32x192xbf16>,
    return
  }
  func.func @transform_0(%arg0: i32) -> (i32, i32) {
    %c0_i32 = arith.constant 0 : i32
    %c0_i32_0 = arith.constant 0 : i32
    return %arg0, %c0_i32 : i32, i32
  }
  func.func @transform_1(%arg0: i32) -> (i32, i32) {
    %c0_i32 = arith.constant 0 : i32
    %c0_i32_0 = arith.constant 0 : i32
    %c0_i32_1 = arith.constant 0 : i32
    return %c0_i32, %c0_i32_0 : i32, i32
  }
  func.func @transform_2(%arg0: i32) -> (i32, i32) {
    %c0_i32 = arith.constant 0 : i32
    %c0_i32_0 = arith.constant 0 : i32
    %c0_i32_1 = arith.constant 0 : i32
    return %c0_i32, %c0_i32_0 : i32, i32
  }
  func.func @transform_3(%arg0: i32) -> (i32, i32) {
    %c0_i32 = arith.constant 0 : i32
    %c0_i32_0 = arith.constant 0 : i32
    %c0_i32_1 = arith.constant 0 : i32
    return %c0_i32, %c0_i32_0 : i32, i32
  }
  func.func @transform_4(%arg0: i32) -> (i32, i32) {
    %c0_i32 = arith.constant 0 : i32
    %c0_i32_0 = arith.constant 0 : i32
    %c0_i32_1 = arith.constant 0 : i32
    return %c0_i32, %c0_i32_0 : i32, i32
  }
  func.func @transform_5(%arg0: i32) -> (i32, i32) {
    %c0_i32 = arith.constant 0 : i32
    %c0_i32_0 = arith.constant 0 : i32
    %c0_i32_1 = arith.constant 0 : i32
    return %c0_i32, %c0_i32_0 : i32, i32
  }
  func.func @transform_6(%arg0: i32) -> (i32, i32) {
    %c0_i32 = arith.constant 0 : i32
    %c0_i32_0 = arith.constant 0 : i32
    %c0_i32_1 = arith.constant 0 : i32
    return %c0_i32, %c0_i32_0 : i32, i32
  }
  func.func @transform_7(%arg0: i32) -> (i32, i32) {
    %c0_i32 = arith.constant 0 : i32
    %c0_i32_0 = arith.constant 0 : i32
    %c0_i32_1 = arith.constant 0 : i32
    return %c0_i32, %c0_i32_0 : i32, i32
  }
  func.func @transform_8(%arg0: i32) -> (i32, i32) {
    %c0_i32 = arith.constant 0 : i32
    %c0_i32_0 = arith.constant 0 : i32
    %c0_i32_1 = arith.constant 0 : i32
    return %c0_i32, %c0_i32_0 : i32, i32
  }
  func.func @transform_9(%arg0: i32) -> (i32, i32) {
    %c0_i32 = arith.constant 0 : i32
    %c0_i32_0 = arith.constant 0 : i32
    %c0_i32_1 = arith.constant 0 : i32
    return %c0_i32, %c0_i32_0 : i32, i32
  }
  func.func @transform_10(%arg0: i32) -> (i32, i32) {
    %c0_i32 = arith.constant 0 : i32
    %c0_i32_0 = arith.constant 0 : i32
    %c0_i32_1 = arith.constant 0 : i32
    return %c0_i32, %c0_i32_0 : i32, i32
  }
  func.func @transform_11(%arg0: i32) -> (i32, i32, i32) {
    %c0_i32 = arith.constant 0 : i32
    %c0_i32_0 = arith.constant 0 : i32
    %c0_i32_1 = arith.constant 0 : i32
    return %c0_i32, %arg0, %c0_i32_0 : i32, i32, i32
  }
}

</mosaic_0001>

<bundles_post_ra>
// kernel: tile.34
= control target key start
LH: loop header
LB: loop body
LE: loop exit
PB: predicated region body
PF: predicated region fallthrough
CT: control target
= control target key end

     0   :  { %s6_s8 = smov 3  ;;  %vm8_vm0 = vcmask 523264   ;;  %s30_s9 = smov 64   ;;  %vm15_vm1 = vcmask 1048064   ;;  %s50_s0 = inlined_call_operand.vmem [shape: f32[4,64], index: 0, kind: input, shape index: {}]   ;;  %s51_s1 = inlined_call_operand.vmem [shape: f32[1,256], index: 1, kind: output, shape index: {}]  }
   0x1   :  { %v4_v0 = vld [vmem:[%s50_s0] sm:$0xf]  ;;  %s11_s0 = smov 3 }
   0x2   :  { %5 = vst [vmem:[#allocation1] sm:$0xf] %v4_v0 }
   0x9   :  { %v12_v1 = vld [vmem:[#allocation1 + $0x1] ss:$2 sm:%s11_s0]   ;;  %v7_v2 = vld [vmem:[#allocation1] ss:$2 sm:%s6_s8]  }
   0xa   :  { %13 = vrot.lane.b32.xlu0 %v12_v1, %s30_s9  ;;  %9 = vst.msk [vmem:[#allocation0] ss:$8 sm:$0x3] %vm8_vm0, %v7_v2  }
  0x7c   :  { %v14_v3 = vpop.permute.xlu0 %13  }
  0x7d   :  { %16 = vst.msk [vmem:[#allocation0] ss:$8 sm:$0x3] %vm15_vm1, %v14_v3  }
  0x84   :  { %v20_v4 = vld [vmem:[#allocation0] sm:$0x1]  ;;  %v24_v5 = vld [vmem:[#allocation0 + $0x8] sm:$0x1] }
  0x85   :  { %22 = vst [vmem:[%s51_s1] sm:$0x1] %v20_v4  ;;  %28 = vst [vmem:[%s51_s1 + $0x1] sm:$0x1] %v24_v5 }

// kernel: tile.33
= control target key start
LH: loop header
LB: loop body
LE: loop exit
PB: predicated region body
PF: predicated region fallthrough
CT: control target
= control target key end

     0   :  { %2 = vsyncpa [#allocation1], 0  ;;  %s44_s6 = smov [#allocation0]   ;;  %s70_s0 = inlined_call_operand.hbm [shape: f32[64], index: 0, kind: input, shape index: {}]   ;;  %s71_s1 = inlined_call_operand.vmem [shape: f32[4,64], index: 1, kind: output, shape index: {}]  }
   0x1   :  { %s9_s7 = sshll.u32 %s44_s6, 4  ;;  %s20_s10 = scalar_lea.hbm %s70_s0, 16  ;;  %s10_s7 = int_to_ptr.vmem [resolvable:$true] %s9_s7 }
   0x2   :  { %p21_p0 = scmp.ne.s32.totalorder %s70_s0, %s20_s10  ;;  %p24_p1 = scmp.lt.u32.totalorder %s20_s10, %s70_s0 }
   0x4   :  { %p26_p2 = pnand %p24_p1, %p21_p0 }
   0x6   :  { %29 = shalt.err (!%p26_p2)
}
   0x7   :  { %s30_s15 = scalar_lea.vmem %s10_s7, 16  ;;  %s34_s16 = scalar_lea.vmem %s10_s7, 32 }
   0x8   :  { %p31_p3 = scmp.ne.s32.totalorder %s10_s7, %s30_s15  ;;  %p35_p4 = scmp.lt.s32.totalorder %s10_s7, %s10_s7 }
   0x9   :  { %p36_p5 = scmp.lt.s32.totalorder %s34_s16, %s30_s15 }
   0xb   :  { %p37_p6 = por %p36_p5, %p35_p4 }
   0xd   :  { %p38_p7 = pnand %p37_p6, %p31_p3 }
   0xf   :  { %41 = shalt.err (!%p38_p7)
}
  0x10   :  { %12 = dma.hbm_to_vmem [thread:$0]  %s70_s0, 16, %s10_s7, [#allocation1]  }
  0x11   :  { %42 = dma.done.wait [#allocation1], 16  }
  0x12   :  { %43 = vsyncadd [#allocation1], 4294967280  ;;  %v16_v0 = vld [vmem:[#allocation0] ss:$0 sm:$0xff] }
  0x13   :  { %17 = vst [vmem:[%s71_s1] sm:$0xf] %v16_v0 }
  0x14   :  { %18 = vsyncpa [#allocation1], 1 }

// kernel: tile.38
= control target key start
LH: loop header
LB: loop body
LE: loop exit
PB: predicated region body
PF: predicated region fallthrough
CT: control target
= control target key end

     0   :  { %2 = vsyncpa [#allocation1], 0  ;;  %s44_s6 = smov [#allocation0]   ;;  %s70_s0 = inlined_call_operand.hbm [shape: f32[32], index: 0, kind: input, shape index: {}]   ;;  %s71_s1 = inlined_call_operand.vmem [shape: f32[4,32], index: 1, kind: output, shape index: {}]  }
   0x1   :  { %s9_s7 = sshll.u32 %s44_s6, 4  ;;  %s20_s10 = scalar_lea.hbm %s70_s0, 16  ;;  %s10_s7 = int_to_ptr.vmem [resolvable:$true] %s9_s7 }
   0x2   :  { %p21_p0 = scmp.ne.s32.totalorder %s70_s0, %s20_s10  ;;  %p24_p1 = scmp.lt.u32.totalorder %s20_s10, %s70_s0 }
   0x4   :  { %p26_p2 = pnand %p24_p1, %p21_p0 }
   0x6   :  { %29 = shalt.err (!%p26_p2)
}
   0x7   :  { %s30_s15 = scalar_lea.vmem %s10_s7, 16  ;;  %s34_s16 = scalar_lea.vmem %s10_s7, 32 }
   0x8   :  { %p31_p3 = scmp.ne.s32.totalorder %s10_s7, %s30_s15  ;;  %p35_p4 = scmp.lt.s32.totalorder %s10_s7, %s10_s7 }
   0x9   :  { %p36_p5 = scmp.lt.s32.totalorder %s34_s16, %s30_s15 }
   0xb   :  { %p37_p6 = por %p36_p5, %p35_p4 }
   0xd   :  { %p38_p7 = pnand %p37_p6, %p31_p3 }
   0xf   :  { %41 = shalt.err (!%p38_p7)
}
  0x10   :  { %12 = dma.hbm_to_vmem [thread:$0]  %s70_s0, 16, %s10_s7, [#allocation1]  }
  0x11   :  { %42 = dma.done.wait [#allocation1], 16  }
  0x12   :  { %43 = vsyncadd [#allocation1], 4294967280  ;;  %v16_v0 = vld [vmem:[#allocation0] ss:$0 sm:$0xff] }
  0x13   :  { %17 = vst [vmem:[%s71_s1] sm:$0xf] %v16_v0 }
  0x14   :  { %18 = vsyncpa [#allocation1], 1 }

// kernel: tile.28
= control target key start
LH: loop header
LB: loop body
LE: loop exit
PB: predicated region body
PF: predicated region fallthrough
CT: control target
= control target key end

     0   :  { %2 = vsyncpa [#allocation1], 0  ;;  %s44_s6 = smov [#allocation0]   ;;  %s70_s0 = inlined_call_operand.hbm [shape: f32[128], index: 0, kind: input, shape index: {}]   ;;  %s71_s1 = inlined_call_operand.vmem [shape: f32[4,128], index: 1, kind: output, shape index: {}]  }
   0x1   :  { %s9_s7 = sshll.u32 %s44_s6, 4  ;;  %s20_s10 = scalar_lea.hbm %s70_s0, 16  ;;  %s10_s7 = int_to_ptr.vmem [resolvable:$true] %s9_s7 }
   0x2   :  { %p21_p0 = scmp.ne.s32.totalorder %s70_s0, %s20_s10  ;;  %p24_p1 = scmp.lt.u32.totalorder %s20_s10, %s70_s0 }
   0x4   :  { %p26_p2 = pnand %p24_p1, %p21_p0 }
   0x6   :  { %29 = shalt.err (!%p26_p2)
}
   0x7   :  { %s30_s15 = scalar_lea.vmem %s10_s7, 16  ;;  %s34_s16 = scalar_lea.vmem %s10_s7, 32 }
   0x8   :  { %p31_p3 = scmp.ne.s32.totalorder %s10_s7, %s30_s15  ;;  %p35_p4 = scmp.lt.s32.totalorder %s10_s7, %s10_s7 }
   0x9   :  { %p36_p5 = scmp.lt.s32.totalorder %s34_s16, %s30_s15 }
   0xb   :  { %p37_p6 = por %p36_p5, %p35_p4 }
   0xd   :  { %p38_p7 = pnand %p37_p6, %p31_p3 }
   0xf   :  { %41 = shalt.err (!%p38_p7)
}
  0x10   :  { %12 = dma.hbm_to_vmem [thread:$0]  %s70_s0, 16, %s10_s7, [#allocation1]  }
  0x11   :  { %42 = dma.done.wait [#allocation1], 16  }
  0x12   :  { %43 = vsyncadd [#allocation1], 4294967280  ;;  %v16_v0 = vld [vmem:[#allocation0] ss:$0 sm:$0xff] }
  0x13   :  { %17 = vst [vmem:[%s71_s1] sm:$0xf] %v16_v0 }
  0x14   :  { %18 = vsyncpa [#allocation1], 1 }

// kernel: tile.39
= control target key start
LH: loop header
LB: loop body
LE: loop exit
PB: predicated region body
PF: predicated region fallthrough
CT: control target
= control target key end

     0   :  { %vm7_vm0 = vcmask 261120   ;;  %s37_s8 = smov 32   ;;  %s38_s9 = smov 64   ;;  %vm13_vm1 = vcmask 1048320   ;;  %vm19_vm2 = vcmask 785920   ;;  %vm25_vm3 = vcmask 523520   ;;  %s55_s0 = inlined_call_operand.vmem [shape: f32[4,32], index: 0, kind: input, shape index: {}]   ;;  %s56_s1 = inlined_call_operand.vmem [shape: f32[1,128], index: 1, kind: output, shape index: {}]  }
   0x1   :  { %v4_v0 = vld [vmem:[%s55_s0] sm:$0xf]  ;;  %s36_s0 = smov 96  }
   0x2   :  { %5 = vst [vmem:[#allocation1] sm:$0xf] %v4_v0 }
   0x9   :  { %v10_v1 = vld [vmem:[#allocation1 + $0x3] sm:$0x1]   ;;  %v22_v2 = vld [vmem:[#allocation1 + $0x1] sm:$0x1]   ;;  %v6_v3 = vld [vmem:[#allocation1] sm:$0x1]  }
   0xa   :  { %11 = vrot.lane.b32.xlu0 %v10_v1, %s36_s0  ;;  %23 = vrot.lane.b32.xlu1 %v22_v2, %s37_s8  ;;  %v16_v4 = vld [vmem:[#allocation1 + $0x2] sm:$0x1]   ;;  %8 = vst.msk [vmem:[#allocation0] sm:$0x1] %vm7_vm0, %v6_v3  }
   0xe   :  { %17 = vrot.lane.b32.xlu0 %v16_v4, %s38_s9 }
  0x7c   :  { %v12_v5 = vpop.permute.xlu0 %11   ;;  %v24_v6 = vpop.permute.xlu1 %23  }
  0x7d   :  { %14 = vst.msk [vmem:[#allocation0] sm:$0x1] %vm13_vm1, %v12_v5  }
  0x80   :  { %v18_v7 = vpop.permute.xlu0 %17  }
  0x81   :  { %20 = vst.msk [vmem:[#allocation0] sm:$0x1] %vm19_vm2, %v18_v7  }
  0x82   :  { %26 = vst.msk [vmem:[#allocation0] sm:$0x1] %vm25_vm3, %v24_v6  }
  0x89   :  { %v30_v8 = vld [vmem:[#allocation0] sm:$0x1] }
  0x8a   :  { %32 = vst [vmem:[%s56_s1] sm:$0x1] %v30_v8 }

// kernel: tile.43
= control target key start
LH: loop header
LB: loop body
LE: loop exit
PB: predicated region body
PF: predicated region fallthrough
CT: control target
= control target key end

     0   :  { %2 = vsyncpa [#allocation1], 0  ;;  %s47_s6 = smov [#allocation0]   ;;  %s76_s0 = inlined_call_operand.hbm [shape: f32[16], index: 0, kind: input, shape index: {}]   ;;  %s77_s1 = inlined_call_operand.vmem [shape: f32[16,16], index: 1, kind: output, shape index: {}]  }
   0x1   :  { %s9_s7 = sshll.u32 %s47_s6, 4  ;;  %s23_s10 = scalar_lea.hbm %s76_s0, 16  ;;  %s10_s7 = int_to_ptr.vmem [resolvable:$true] %s9_s7 }
   0x2   :  { %p24_p0 = scmp.ne.s32.totalorder %s76_s0, %s23_s10  ;;  %p27_p1 = scmp.lt.u32.totalorder %s23_s10, %s76_s0 }
   0x4   :  { %p29_p2 = pnand %p27_p1, %p24_p0 }
   0x6   :  { %32 = shalt.err (!%p29_p2)
}
   0x7   :  { %s33_s15 = scalar_lea.vmem %s10_s7, 16  ;;  %s37_s16 = scalar_lea.vmem %s10_s7, 32 }
   0x8   :  { %p34_p3 = scmp.ne.s32.totalorder %s10_s7, %s33_s15  ;;  %p38_p4 = scmp.lt.s32.totalorder %s10_s7, %s10_s7 }
   0x9   :  { %p39_p5 = scmp.lt.s32.totalorder %s37_s16, %s33_s15 }
   0xb   :  { %p40_p6 = por %p39_p5, %p38_p4 }
   0xd   :  { %p41_p7 = pnand %p40_p6, %p34_p3 }
   0xf   :  { %44 = shalt.err (!%p41_p7)
}
  0x10   :  { %12 = dma.hbm_to_vmem [thread:$0]  %s76_s0, 16, %s10_s7, [#allocation1]  }
  0x11   :  { %45 = dma.done.wait [#allocation1], 16  }
  0x12   :  { %46 = vsyncadd [#allocation1], 4294967280  ;;  %v16_v0 = vld [vmem:[#allocation0] ss:$0 sm:$0xff] }
  0x13   :  { %17 = vst [vmem:[%s77_s1] sm:$0xff] %v16_v0  ;;  %21 = vst [vmem:[%s77_s1 + $0x8] sm:$0xff] %v16_v0 }
  0x14   :  { %20 = vsyncpa [#allocation1], 1 }

// kernel: tile.44
= control target key start
LH: loop header
LB: loop body
LE: loop exit
PB: predicated region body
PF: predicated region fallthrough
CT: control target
= control target key end

     0   :  { %s7_s6 = smov 3  ;;  %s21_s9 = smov 3  ;;  %vm4_vm0 = vcmask 130048   ;;  %vm11_vm1 = vcmask 1048448   ;;  %vm18_vm2 = vcmask 917248   ;;  %vm25_vm3 = vcmask 786048   ;;  %s128_s0 = inlined_call_operand.vmem [shape: f32[16,16], index: 0, kind: input, shape index: {}]   ;;  %s129_s1 = inlined_call_operand.vmem [shape: f32[1,256], index: 1, kind: output, shape index: {}]  }
   0x1   :  { %v66_v0 = vld [vmem:[%s128_s0 + $0x7] ss:$8 sm:%s7_s6]   ;;  %s81_s10 = smov 112   ;;  %v68_v1 = vld [vmem:[%s128_s0 + $0x5] ss:$8 sm:%s21_s9]   ;;  %s14_s13 = smov 3 }
   0x2   :  { %9 = vrot.lane.b32.xlu0 %v66_v0, %s81_s10  ;;  %s82_s14 = smov 80   ;;  %v67_v2 = vld [vmem:[%s128_s0 + $0x6] ss:$8 sm:%s14_s13]   ;;  %s28_s17 = smov 3  ;;  %vm32_vm4 = vcmask 654848   ;;  %vm39_vm5 = vcmask 523648  }
   0x3   :  { %23 = vrot.lane.b32.xlu1 %v68_v1, %s82_s14  ;;  %v69_v3 = vld [vmem:[%s128_s0 + $0x4] ss:$8 sm:%s28_s17]   ;;  %s35_s20 = smov 3  ;;  %s42_s21 = smov 3  ;;  %vm46_vm6 = vcmask 392448   ;;  %vm53_vm7 = vcmask 261248  }
   0x4   :  { %s83_s22 = smov 96   ;;  %s84_s23 = smov 64   ;;  %v70_v4 = vld [vmem:[%s128_s0 + $0x3] ss:$8 sm:%s35_s20]   ;;  %v71_v5 = vld [vmem:[%s128_s0 + $0x2] ss:$8 sm:%s42_s21]  }
   0x5   :  { %s2_s26 = smov 3  ;;  %s49_s29 = smov 3 }
   0x6   :  { %16 = vrot.lane.b32.xlu0 %v67_v2, %s83_s22  ;;  %v3_v6 = vld [vmem:[%s128_s0] ss:$8 sm:%s2_s26]   ;;  %s85_s3 = smov 48   ;;  %s86_s4 = smov 32  }
   0x7   :  { %30 = vrot.lane.b32.xlu1 %v69_v3, %s84_s23  ;;  %5 = vst.msk [vmem:[#allocation0] ss:$8 sm:$0x3] %vm4_vm0, %v3_v6   ;;  %v72_v7 = vld [vmem:[%s128_s0 + $0x1] ss:$8 sm:%s49_s29]   ;;  %s87_s0 = smov 16  }
   0xa   :  { %37 = vrot.lane.b32.xlu0 %v70_v4, %s85_s3 }
   0xb   :  { %44 = vrot.lane.b32.xlu1 %v71_v5, %s86_s4 }
   0xe   :  { %51 = vrot.lane.b32.xlu0 %v72_v7, %s87_s0 }
  0x74   :  { %v10_v8 = vpop.permute.xlu0 %9  }
  0x75   :  { %12 = vst.msk [vmem:[#allocation0] ss:$8 sm:$0x3] %vm11_vm1, %v10_v8   ;;  %v24_v9 = vpop.permute.xlu1 %23  }
  0x78   :  { %v17_v10 = vpop.permute.xlu0 %16  }
  0x79   :  { %19 = vst.msk [vmem:[#allocation0] ss:$8 sm:$0x3] %vm18_vm2, %v17_v10   ;;  %v31_v11 = vpop.permute.xlu1 %30  }
  0x7a   :  { %26 = vst.msk [vmem:[#allocation0] ss:$8 sm:$0x3] %vm25_vm3, %v24_v9  }
  0x7b   :  { %33 = vst.msk [vmem:[#allocation0] ss:$8 sm:$0x3] %vm32_vm4, %v31_v11  }
  0x7c   :  { %v38_v12 = vpop.permute.xlu0 %37  }
  0x7d   :  { %40 = vst.msk [vmem:[#allocation0] ss:$8 sm:$0x3] %vm39_vm5, %v38_v12   ;;  %v45_v13 = vpop.permute.xlu1 %44  }
  0x7e   :  { %47 = vst.msk [vmem:[#allocation0] ss:$8 sm:$0x3] %vm46_vm6, %v45_v13  }
  0x80   :  { %v52_v14 = vpop.permute.xlu0 %51  }
  0x81   :  { %54 = vst.msk [vmem:[#allocation0] ss:$8 sm:$0x3] %vm53_vm7, %v52_v14  }
  0x88   :  { %v58_v15 = vld [vmem:[#allocation0] sm:$0x1]  ;;  %v62_v16 = vld [vmem:[#allocation0 + $0x8] sm:$0x1] }
  0x89   :  { %60 = vst [vmem:[%s129_s1] sm:$0x1] %v58_v15  ;;  %73 = vst [vmem:[%s129_s1 + $0x1] sm:$0x1] %v62_v16 }

// kernel: tile.48
= control target key start
LH: loop header
LB: loop body
LE: loop exit
PB: predicated region body
PF: predicated region fallthrough
CT: control target
= control target key end

     0   :  { %2 = vsyncpa [#allocation1], 0  ;;  %s65_s6 = smov [#allocation0]   ;;  %s112_s0 = inlined_call_operand.hbm [shape: f32[3], index: 0, kind: input, shape index: {}]   ;;  %s113_s1 = inlined_call_operand.vmem [shape: f32[64,3], index: 1, kind: output, shape index: {}]  }
   0x1   :  { %s9_s7 = sshll.u32 %s65_s6, 4  ;;  %s41_s10 = scalar_lea.hbm %s112_s0, 16  ;;  %s10_s7 = int_to_ptr.vmem [resolvable:$true] %s9_s7 }
   0x2   :  { %p42_p0 = scmp.ne.s32.totalorder %s112_s0, %s41_s10  ;;  %p45_p1 = scmp.lt.u32.totalorder %s41_s10, %s112_s0 }
   0x4   :  { %p47_p2 = pnand %p45_p1, %p42_p0 }
   0x6   :  { %50 = shalt.err (!%p47_p2)
}
   0x7   :  { %s51_s15 = scalar_lea.vmem %s10_s7, 16  ;;  %s55_s16 = scalar_lea.vmem %s10_s7, 32 }
   0x8   :  { %p52_p3 = scmp.ne.s32.totalorder %s10_s7, %s51_s15  ;;  %p56_p4 = scmp.lt.s32.totalorder %s10_s7, %s10_s7 }
   0x9   :  { %p57_p5 = scmp.lt.s32.totalorder %s55_s16, %s51_s15 }
   0xb   :  { %p58_p6 = por %p57_p5, %p56_p4 }
   0xd   :  { %p59_p7 = pnand %p58_p6, %p52_p3 }
   0xf   :  { %62 = shalt.err (!%p59_p7)
}
  0x10   :  { %12 = dma.hbm_to_vmem [thread:$0]  %s112_s0, 16, %s10_s7, [#allocation1]  }
  0x11   :  { %63 = dma.done.wait [#allocation1], 16  }
  0x12   :  { %64 = vsyncadd [#allocation1], 4294967280  ;;  %v16_v0 = vld [vmem:[#allocation0] ss:$0 sm:$0xff] }
  0x13   :  { %17 = vst [vmem:[%s113_s1] sm:$0xff] %v16_v0  ;;  %33 = vst [vmem:[%s113_s1 + $0x8] sm:$0xff] %v16_v0 }
  0x14   :  { %34 = vst [vmem:[%s113_s1 + $0x10] sm:$0xff] %v16_v0  ;;  %35 = vst [vmem:[%s113_s1 + $0x18] sm:$0xff] %v16_v0 }
  0x15   :  { %36 = vst [vmem:[%s113_s1 + $0x20] sm:$0xff] %v16_v0  ;;  %37 = vst [vmem:[%s113_s1 + $0x28] sm:$0xff] %v16_v0 }
  0x16   :  { %38 = vst [vmem:[%s113_s1 + $0x30] sm:$0xff] %v16_v0  ;;  %39 = vst [vmem:[%s113_s1 + $0x38] sm:$0xff] %v16_v0 }
  0x17   :  { %32 = vsyncpa [#allocation1], 1 }

// kernel: tile.49
= control target key start
LH: loop header
LB: loop body
LE: loop exit
PB: predicated region body
PF: predicated region fallthrough
CT: control target
= control target key end

     0   :  { %vm9_vm0 = vcmask 15360   ;;  %s550_s12 = smov 126   ;;  %s551_s13 = smov 120   ;;  %vm3_vm1 = vcmask 23552   ;;  %vm13_vm2 = vcmask 7168   ;;  %vm16_vm3 = vcmask 1048560   ;;  %s824_s0 = inlined_call_operand.vmem [shape: f32[64,3], index: 0, kind: input, shape index: {}]   ;;  %s825_s1 = inlined_call_operand.vmem [shape: f32[1,192], index: 1, kind: output, shape index: {}]  }
   0x1   :  { %v422_v0 = vld [vmem:[%s824_s0 + $0x2a] sm:$0x1]   ;;  %v425_v3 = vld [vmem:[%s824_s0 + $0x28] sm:$0x1]   ;;  %v424_v4 = vld [vmem:[%s824_s0 + $0x29] sm:$0x1]  }
   0x2   :  { %v423_v1 = vld [vmem:[%s824_s0 + $0x2a] sm:$0x1]   ;;  %26 = vrot.lane.b32.xlu1 %v425_v3, %s551_s13  ;;  %v426_v5 = vld [vmem:[%s824_s0 + $0x27] sm:$0x1]   ;;  %s552_s18 = smov 123   ;;  %s553_s19 = smov 117  }
   0x3   :  { %v10_v2 = vsel %vm9_vm0, %v423_v1, %v422_v0  ;;  %v427_v6 = vld [vmem:[%s824_s0 + $0x26] sm:$0x1]   ;;  %v428_v7 = vld [vmem:[%s824_s0 + $0x25] sm:$0x1]   ;;  %s554_s24 = smov 114   ;;  %s555_s25 = smov 111  }
   0x4   :  { %11 = vrot.lane.b32.xlu0 %v10_v2, %s550_s12  ;;  %v429_v8 = vld [vmem:[%s824_s0 + $0x24] sm:$0x1]   ;;  %v430_v9 = vld [vmem:[%s824_s0 + $0x23] sm:$0x1]   ;;  %s556_s30 = smov 108   ;;  %s557_s2 = smov 105  }
   0x5   :  { %v431_v10 = vld [vmem:[%s824_s0 + $0x22] sm:$0x1]   ;;  %v432_v11 = vld [vmem:[%s824_s0 + $0x21] sm:$0x1]   ;;  %s558_s7 = smov 102   ;;  %s559_s8 = smov 99  }
   0x6   :  { %32 = vrot.lane.b32.xlu1 %v426_v5, %s553_s19  ;;  %v433_v12 = vld [vmem:[%s824_s0 + $0x20] sm:$0x1]   ;;  %v434_v13 = vld [vmem:[%s824_s0 + $0x1f] sm:$0x1]   ;;  %s560_s13 = smov 96   ;;  %s561_s14 = smov 93  }
   0x7   :  { %v435_v14 = vld [vmem:[%s824_s0 + $0x1e] sm:$0x1]   ;;  %v436_v15 = vld [vmem:[%s824_s0 + $0x1d] sm:$0x1]   ;;  %s562_s19 = smov 90   ;;  %s563_s20 = smov 87  }
   0x8   :  { %20 = vrot.lane.b32.xlu0 %v424_v4, %s552_s18  ;;  %v437_v16 = vld [vmem:[%s824_s0 + $0x1c] sm:$0x1]   ;;  %v438_v17 = vld [vmem:[%s824_s0 + $0x1b] sm:$0x1]   ;;  %v2_v18 = vld [vmem:[%s824_s0] sm:$0x1]  }
   0x9   :  { %s564_s27 = smov 84   ;;  %s565_s28 = smov 81   ;;  %4 = vst.msk [vmem:[#allocation0] sm:$0x1] %vm3_vm1, %v2_v18   ;;  %v439_v19 = vld [vmem:[%s824_s0 + $0x1a] sm:$0x1]  }
   0xa   :  { %44 = vrot.lane.b32.xlu1 %v428_v7, %s555_s25  ;;  %v440_v20 = vld [vmem:[%s824_s0 + $0x19] sm:$0x1]   ;;  %s566_s4 = smov 78   ;;  %s567_s5 = smov 75   ;;  %v441_v21 = vld [vmem:[%s824_s0 + $0x18] sm:$0x1]  }
   0xb   :  { %v442_v22 = vld [vmem:[%s824_s0 + $0x17] sm:$0x1]   ;;  %s568_s10 = smov 72   ;;  %s569_s11 = smov 69   ;;  %v443_v23 = vld [vmem:[%s824_s0 + $0x16] sm:$0x1]  }
   0xc   :  { %38 = vrot.lane.b32.xlu0 %v427_v6, %s554_s24  ;;  %v444_v24 = vld [vmem:[%s824_s0 + $0x15] sm:$0x1]   ;;  %s570_s16 = smov 66   ;;  %s571_s17 = smov 63   ;;  %v445_v25 = vld [vmem:[%s824_s0 + $0x3f] sm:$0x1]  }
   0xd   :  { %v446_v26 = vld [vmem:[%s824_s0 + $0x14] sm:$0x1]   ;;  %s572_s22 = smov 61   ;;  %s573_s23 = smov 60   ;;  %v447_v27 = vld [vmem:[%s824_s0 + $0x3e] sm:$0x1]  }
   0xe   :  { %56 = vrot.lane.b32.xlu1 %v430_v9, %s557_s2  ;;  %v448_v28 = vld [vmem:[%s824_s0 + $0x13] sm:$0x1]   ;;  %s575_s29 = smov 57   ;;  %v449_v29 = vld [vmem:[%s824_s0 + $0x3d] sm:$0x1]   ;;  %s577_s6 = smov 54  }
   0xf   :  { %v450_v30 = vld [vmem:[%s824_s0 + $0x12] sm:$0x1]   ;;  %v451_v31 = vld [vmem:[%s824_s0 + $0x3c] sm:$0x1]   ;;  %v452_v32 = vld [vmem:[%s824_s0 + $0x11] sm:$0x1]  }
  0x10   :  { %50 = vrot.lane.b32.xlu0 %v429_v8, %s556_s30  ;;  %s579_s12 = smov 51   ;;  %v453_v33 = vld [vmem:[%s824_s0 + $0x3b] sm:$0x1]   ;;  %v454_v34 = vld [vmem:[%s824_s0 + $0x10] sm:$0x1]   ;;  %s581_s18 = smov 48  }
  0x11   :  { %v455_v35 = vld [vmem:[%s824_s0 + $0x3a] sm:$0x1]   ;;  %v456_v36 = vld [vmem:[%s824_s0 + $0xf] sm:$0x1]   ;;  %s583_s24 = smov 45   ;;  %s585_s30 = smov 42  }
  0x12   :  { %68 = vrot.lane.b32.xlu1 %v432_v11, %s559_s8  ;;  %v457_v37 = vld [vmem:[%s824_s0 + $0x39] sm:$0x1]   ;;  %v458_v38 = vld [vmem:[%s824_s0 + $0xe] sm:$0x1]   ;;  %v459_v39 = vld [vmem:[%s824_s0 + $0x38] sm:$0x1]  }
  0x13   :  { %v460_v40 = vld [vmem:[%s824_s0 + $0xd] sm:$0x1]   ;;  %v461_v41 = vld [vmem:[%s824_s0 + $0x37] sm:$0x1]   ;;  %v462_v42 = vld [vmem:[%s824_s0 + $0xc] sm:$0x1]  }
  0x14   :  { %62 = vrot.lane.b32.xlu0 %v431_v10, %s558_s7  ;;  %s587_s7 = smov 39   ;;  %v463_v43 = vld [vmem:[%s824_s0 + $0x36] sm:$0x1]   ;;  %v464_v44 = vld [vmem:[%s824_s0 + $0xb] sm:$0x1]   ;;  %s593_s25 = smov 30  }
  0x15   :  { %v465_v45 = vld [vmem:[%s824_s0 + $0x35] sm:$0x1]   ;;  %v466_v46 = vld [vmem:[%s824_s0 + $0xa] sm:$0x1]   ;;  %v467_v47 = vld [vmem:[%s824_s0 + $0x34] sm:$0x1]  }
  0x16   :  { %80 = vrot.lane.b32.xlu1 %v434_v13, %s561_s14  ;;  %v468_v48 = vld [vmem:[%s824_s0 + $0x9] sm:$0x1]   ;;  %s595_s2 = smov 27   ;;  %v469_v49 = vld [vmem:[%s824_s0 + $0x33] sm:$0x1]   ;;  %s597_s8 = smov 24  }
  0x17   :  { %v470_v50 = vld [vmem:[%s824_s0 + $0x8] sm:$0x1]   ;;  %v471_v51 = vld [vmem:[%s824_s0 + $0x32] sm:$0x1]   ;;  %v472_v52 = vld [vmem:[%s824_s0 + $0x7] sm:$0x1]  }
  0x18   :  { %74 = vrot.lane.b32.xlu0 %v433_v12, %s560_s13  ;;  %s589_s13 = smov 36   ;;  %s599_s14 = smov 21   ;;  %v473_v53 = vld [vmem:[%s824_s0 + $0x31] sm:$0x1]   ;;  %v474_v54 = vld [vmem:[%s824_s0 + $0x6] sm:$0x1]  }
  0x19   :  { %v475_v55 = vld [vmem:[%s824_s0 + $0x30] sm:$0x1]   ;;  %v476_v56 = vld [vmem:[%s824_s0 + $0x5] sm:$0x1]   ;;  %s603_s26 = smov 15   ;;  %s605_s3 = smov 12  }
  0x1a   :  { %92 = vrot.lane.b32.xlu1 %v436_v15, %s563_s20  ;;  %s601_s20 = smov 18   ;;  %v477_v57 = vld [vmem:[%s824_s0 + $0x2f] sm:$0x1]   ;;  %v478_v58 = vld [vmem:[%s824_s0 + $0x4] sm:$0x1]   ;;  %s607_s9 = smov 9  }
  0x1b   :  { %v479_v59 = vld [vmem:[%s824_s0 + $0x2e] sm:$0x1]   ;;  %v480_v60 = vld [vmem:[%s824_s0 + $0x3] sm:$0x1]   ;;  %v481_v61 = vld [vmem:[%s824_s0 + $0x2d] sm:$0x1]  }
  0x1c   :  { %86 = vrot.lane.b32.xlu0 %v435_v14, %s562_s19  ;;  %s591_s19 = smov 33   ;;  %v482_v62 = vld [vmem:[%s824_s0 + $0x2] sm:$0x1]   ;;  %vm28_vm4 = vcmask 1007552   ;;  %vm22_vm5 = vcmask 1032152   ;;  %s609_s15 = smov 6  }
  0x1d   :  { %v483_v1 = vld [vmem:[%s824_s0 + $0x2c] sm:$0x1]   ;;  %v484_v2 = vld [vmem:[%s824_s0 + $0x1] sm:$0x1]   ;;  %vm34_vm6 = vcmask 982952   ;;  %vm40_vm7 = vcmask 958352  }
  0x1e   :  { %104 = vrot.lane.b32.xlu1 %v438_v17, %s565_s28  ;;  %s574_s28 = smov 58   ;;  %s611_s21 = smov 3   ;;  %v485_v5 = vld [vmem:[%s824_s0 + $0x2b] sm:$0x1]   ;;  %vm46_vm8 = vcmask 933752   ;;  %vm52_vm9 = vcmask 909152  }
  0x1f   :  { %s612_s0 = smov 1   ;;  %vm58_vm10 = vcmask 884552   ;;  %vm64_vm11 = vcmask 859952   ;;  %vm70_vm12 = vcmask 835352   ;;  %vm76_vm13 = vcmask 810752  }
  0x20   :  { %98 = vrot.lane.b32.xlu0 %v437_v16, %s564_s27  ;;  %vm82_vm14 = vcmask 786152   ;;  %vm88_vm15 = vcmask 761552   ;;  %vm94_vm0 = vcmask 736952   ;;  %vm100_vm1 = vcmask 712352  }
  0x22   :  { %116 = vrot.lane.b32.xlu1 %v440_v20, %s567_s5  ;;  %s576_s5 = smov 55  }
  0x24   :  { %110 = vrot.lane.b32.xlu0 %v439_v19, %s566_s4 }
  0x26   :  { %128 = vrot.lane.b32.xlu1 %v442_v22, %s569_s11  ;;  %s578_s11 = smov 52  }
  0x28   :  { %122 = vrot.lane.b32.xlu0 %v441_v21, %s568_s10 }
  0x2a   :  { %140 = vrot.lane.b32.xlu1 %v444_v24, %s571_s17  ;;  %s580_s17 = smov 49  }
  0x2c   :  { %134 = vrot.lane.b32.xlu0 %v443_v23, %s570_s16 }
  0x2e   :  { %153 = vrot.lane.b32.xlu1 %v446_v26, %s573_s23  ;;  %s582_s23 = smov 46  }
  0x30   :  { %146 = vrot.lane.b32.xlu0 %v445_v25, %s572_s22 }
  0x32   :  { %166 = vrot.lane.b32.xlu1 %v448_v28, %s575_s29  ;;  %s584_s29 = smov 43  }
  0x34   :  { %159 = vrot.lane.b32.xlu0 %v447_v27, %s574_s28 }
  0x36   :  { %179 = vrot.lane.b32.xlu1 %v450_v30, %s577_s6  ;;  %s586_s6 = smov 40  }
  0x38   :  { %172 = vrot.lane.b32.xlu0 %v449_v29, %s576_s5 }
  0x3a   :  { %192 = vrot.lane.b32.xlu1 %v452_v32, %s579_s12  ;;  %s588_s12 = smov 37  }
  0x3c   :  { %185 = vrot.lane.b32.xlu0 %v451_v31, %s578_s11 }
  0x3e   :  { %205 = vrot.lane.b32.xlu1 %v454_v34, %s581_s18  ;;  %s590_s18 = smov 34  }
  0x40   :  { %198 = vrot.lane.b32.xlu0 %v453_v33, %s580_s17 }
  0x42   :  { %218 = vrot.lane.b32.xlu1 %v456_v36, %s583_s24  ;;  %s592_s24 = smov 31  }
  0x44   :  { %211 = vrot.lane.b32.xlu0 %v455_v35, %s582_s23 }
  0x46   :  { %231 = vrot.lane.b32.xlu1 %v458_v38, %s585_s30  ;;  %s594_s30 = smov 28  }
  0x48   :  { %224 = vrot.lane.b32.xlu0 %v457_v37, %s584_s29 }
  0x4a   :  { %244 = vrot.lane.b32.xlu1 %v460_v40, %s587_s7  ;;  %s596_s7 = smov 25  }
  0x4c   :  { %237 = vrot.lane.b32.xlu0 %v459_v39, %s586_s6 }
  0x4e   :  { %257 = vrot.lane.b32.xlu1 %v462_v42, %s589_s13  ;;  %s598_s13 = smov 22  }
  0x50   :  { %250 = vrot.lane.b32.xlu0 %v461_v41, %s588_s12 }
  0x52   :  { %270 = vrot.lane.b32.xlu1 %v464_v44, %s591_s19  ;;  %s600_s19 = smov 19  }
  0x54   :  { %263 = vrot.lane.b32.xlu0 %v463_v43, %s590_s18 }
  0x56   :  { %283 = vrot.lane.b32.xlu1 %v466_v46, %s593_s25  ;;  %s602_s25 = smov 16  }
  0x58   :  { %276 = vrot.lane.b32.xlu0 %v465_v45, %s592_s24 }
  0x5a   :  { %296 = vrot.lane.b32.xlu1 %v468_v48, %s595_s2  ;;  %s604_s2 = smov 13  }
  0x5c   :  { %289 = vrot.lane.b32.xlu0 %v467_v47, %s594_s30 }
  0x5e   :  { %309 = vrot.lane.b32.xlu1 %v470_v50, %s597_s8  ;;  %s606_s8 = smov 10  }
  0x60   :  { %302 = vrot.lane.b32.xlu0 %v469_v49, %s596_s7 }
  0x62   :  { %322 = vrot.lane.b32.xlu1 %v472_v52, %s599_s14  ;;  %s608_s14 = smov 7  }
  0x64   :  { %315 = vrot.lane.b32.xlu0 %v471_v51, %s598_s13 }
  0x66   :  { %335 = vrot.lane.b32.xlu1 %v474_v54, %s601_s20  ;;  %s610_s20 = smov 4  }
  0x68   :  { %328 = vrot.lane.b32.xlu0 %v473_v53, %s600_s19 }
  0x6a   :  { %348 = vrot.lane.b32.xlu1 %v476_v56, %s603_s26 }
  0x6c   :  { %341 = vrot.lane.b32.xlu0 %v475_v55, %s602_s25 }
  0x6e   :  { %361 = vrot.lane.b32.xlu1 %v478_v58, %s605_s3 }
  0x70   :  { %354 = vrot.lane.b32.xlu0 %v477_v57, %s604_s2 }
  0x72   :  { %374 = vrot.lane.b32.xlu1 %v480_v60, %s607_s9 }
  0x74   :  { %367 = vrot.lane.b32.xlu0 %v479_v59, %s606_s8  ;;  %v27_v0 = vpop.permute.xlu1 %26  }
  0x76   :  { %v12_v63 = vpop.permute.xlu0 %11   ;;  %387 = vrot.lane.b32.xlu1 %v482_v62, %s609_s15 }
  0x77   :  { %15 = vst.msk [vmem:[#allocation0 + $0x8] sm:$0x1] %vm13_vm2, %v12_v63   ;;  %vm106_vm2 = vcmask 687752  }
  0x78   :  { %17 = vst.msk [vmem:[#allocation0] sm:$0x1] %vm16_vm3, %v12_v63   ;;  %380 = vrot.lane.b32.xlu0 %v481_v61, %s608_s14  ;;  %v33_v4 = vpop.permute.xlu1 %32   ;;  %vm112_vm3 = vcmask 663152  }
  0x7a   :  { %v21_v3 = vpop.permute.xlu0 %20   ;;  %400 = vrot.lane.b32.xlu1 %v484_v2, %s611_s21 }
  0x7b   :  { %23 = vst.msk [vmem:[#allocation0] sm:$0x1] %vm22_vm5, %v21_v3   ;;  %vm124_vm5 = vcmask 613952  }
  0x7c   :  { %29 = vst.msk [vmem:[#allocation0] sm:$0x1] %vm28_vm4, %v27_v0   ;;  %393 = vrot.lane.b32.xlu0 %v483_v1, %s610_s20  ;;  %v45_v7 = vpop.permute.xlu1 %44   ;;  %vm118_vm4 = vcmask 638552  }
  0x7d   :  { %35 = vst.msk [vmem:[#allocation0] sm:$0x1] %vm34_vm6, %v33_v4   ;;  %vm130_vm6 = vcmask 589352  }
  0x7e   :  { %v39_v6 = vpop.permute.xlu0 %38  }
  0x7f   :  { %41 = vst.msk [vmem:[#allocation0] sm:$0x1] %vm40_vm7, %v39_v6   ;;  %vm136_vm7 = vcmask 564752  }
  0x80   :  { %406 = vrot.lane.b32.xlu0 %v485_v5, %s612_s0  ;;  %47 = vst.msk [vmem:[#allocation0] sm:$0x1] %vm46_vm8, %v45_v7   ;;  %v57_v9 = vpop.permute.xlu1 %56   ;;  %vm142_vm8 = vcmask 540152  }
  0x82   :  { %v51_v8 = vpop.permute.xlu0 %50  }
  0x83   :  { %53 = vst.msk [vmem:[#allocation0] sm:$0x1] %vm52_vm9, %v51_v8   ;;  %vm148_vm9 = vcmask 523752  }
  0x84   :  { %59 = vst.msk [vmem:[#allocation0] sm:$0x1] %vm58_vm10, %v57_v9   ;;  %v69_v11 = vpop.permute.xlu1 %68   ;;  %vm155_vm10 = vcmask 515552  }
  0x86   :  { %v63_v10 = vpop.permute.xlu0 %62  }
  0x87   :  { %65 = vst.msk [vmem:[#allocation0] sm:$0x1] %vm64_vm11, %v63_v10   ;;  %vm161_vm11 = vcmask 499152  }
  0x88   :  { %71 = vst.msk [vmem:[#allocation0] sm:$0x1] %vm70_vm12, %v69_v11   ;;  %v81_v13 = vpop.permute.xlu1 %80   ;;  %vm168_vm12 = vcmask 490952  }
  0x8a   :  { %v75_v12 = vpop.permute.xlu0 %74  }
  0x8b   :  { %77 = vst.msk [vmem:[#allocation0] sm:$0x1] %vm76_vm13, %v75_v12   ;;  %vm174_vm13 = vcmask 474552  }
  0x8c   :  { %83 = vst.msk [vmem:[#allocation0] sm:$0x1] %vm82_vm14, %v81_v13   ;;  %v93_v15 = vpop.permute.xlu1 %92   ;;  %vm181_vm14 = vcmask 466352  }
  0x8e   :  { %v87_v14 = vpop.permute.xlu0 %86  }
  0x8f   :  { %89 = vst.msk [vmem:[#allocation0] sm:$0x1] %vm88_vm15, %v87_v14   ;;  %vm187_vm15 = vcmask 449952  }
  0x90   :  { %95 = vst.msk [vmem:[#allocation0] sm:$0x1] %vm94_vm0, %v93_v15   ;;  %v105_v17 = vpop.permute.xlu1 %104   ;;  %vm194_vm0 = vcmask 441752  }
  0x92   :  { %v99_v16 = vpop.permute.xlu0 %98  }
  0x93   :  { %101 = vst.msk [vmem:[#allocation0] sm:$0x1] %vm100_vm1, %v99_v16   ;;  %vm200_vm1 = vcmask 425352  }
  0x94   :  { %107 = vst.msk [vmem:[#allocation0] sm:$0x1] %vm106_vm2, %v105_v17   ;;  %v117_v19 = vpop.permute.xlu1 %116   ;;  %vm207_vm2 = vcmask 417152  }
  0x96   :  { %v111_v18 = vpop.permute.xlu0 %110  }
  0x97   :  { %113 = vst.msk [vmem:[#allocation0] sm:$0x1] %vm112_vm3, %v111_v18   ;;  %vm213_vm3 = vcmask 400752  }
  0x98   :  { %119 = vst.msk [vmem:[#allocation0] sm:$0x1] %vm118_vm4, %v117_v19   ;;  %v129_v21 = vpop.permute.xlu1 %128   ;;  %vm220_vm4 = vcmask 392552  }
  0x9a   :  { %v123_v20 = vpop.permute.xlu0 %122  }
  0x9b   :  { %125 = vst.msk [vmem:[#allocation0] sm:$0x1] %vm124_vm5, %v123_v20   ;;  %vm226_vm5 = vcmask 376152  }
  0x9c   :  { %131 = vst.msk [vmem:[#allocation0] sm:$0x1] %vm130_vm6, %v129_v21   ;;  %v141_v23 = vpop.permute.xlu1 %140   ;;  %vm233_vm6 = vcmask 367952  }
  0x9e   :  { %v135_v22 = vpop.permute.xlu0 %134  }
  0x9f   :  { %137 = vst.msk [vmem:[#allocation0] sm:$0x1] %vm136_vm7, %v135_v22   ;;  %vm239_vm7 = vcmask 351552  }
  0xa0   :  { %143 = vst.msk [vmem:[#allocation0] sm:$0x1] %vm142_vm8, %v141_v23   ;;  %v154_v25 = vpop.permute.xlu1 %153   ;;  %vm246_vm8 = vcmask 343352  }
  0xa1   :  { %156 = vst.msk [vmem:[#allocation0] sm:$0x1] %vm155_vm10, %v154_v25   ;;  %vm259_vm10 = vcmask 318752  }
  0xa2   :  { %v147_v24 = vpop.permute.xlu0 %146  }
  0xa3   :  { %150 = vst.msk [vmem:[#allocation0 + $0x8] sm:$0x1] %vm148_vm9, %v147_v24   ;;  %vm252_vm9 = vcmask 326952  }
  0xa4   :  { %v167_v27 = vpop.permute.xlu1 %166  }
  0xa5   :  { %169 = vst.msk [vmem:[#allocation0] sm:$0x1] %vm168_vm12, %v167_v27   ;;  %vm272_vm12 = vcmask 294152  }
  0xa6   :  { %v160_v26 = vpop.permute.xlu0 %159  }
  0xa7   :  { %163 = vst.msk [vmem:[#allocation0 + $0x8] sm:$0x1] %vm161_vm11, %v160_v26   ;;  %vm265_vm11 = vcmask 302352  }
  0xa8   :  { %v180_v29 = vpop.permute.xlu1 %179  }
  0xa9   :  { %182 = vst.msk [vmem:[#allocation0] sm:$0x1] %vm181_vm14, %v180_v29   ;;  %vm285_vm14 = vcmask 269552  }
  0xaa   :  { %v173_v28 = vpop.permute.xlu0 %172  }
  0xab   :  { %176 = vst.msk [vmem:[#allocation0 + $0x8] sm:$0x1] %vm174_vm13, %v173_v28   ;;  %vm278_vm13 = vcmask 277752  }
  0xac   :  { %v193_v31 = vpop.permute.xlu1 %192  }
  0xad   :  { %195 = vst.msk [vmem:[#allocation0] sm:$0x1] %vm194_vm0, %v193_v31   ;;  %vm298_vm0 = vcmask 244952  }
  0xae   :  { %v186_v30 = vpop.permute.xlu0 %185  }
  0xaf   :  { %189 = vst.msk [vmem:[#allocation0 + $0x8] sm:$0x1] %vm187_vm15, %v186_v30   ;;  %vm291_vm15 = vcmask 253152  }
  0xb0   :  { %v206_v33 = vpop.permute.xlu1 %205  }
  0xb1   :  { %208 = vst.msk [vmem:[#allocation0] sm:$0x1] %vm207_vm2, %v206_v33   ;;  %vm311_vm2 = vcmask 220352  }
  0xb2   :  { %v199_v32 = vpop.permute.xlu0 %198  }
  0xb3   :  { %202 = vst.msk [vmem:[#allocation0 + $0x8] sm:$0x1] %vm200_vm1, %v199_v32   ;;  %vm304_vm1 = vcmask 228552  }
  0xb4   :  { %v219_v35 = vpop.permute.xlu1 %218  }
  0xb5   :  { %221 = vst.msk [vmem:[#allocation0] sm:$0x1] %vm220_vm4, %v219_v35   ;;  %vm324_vm4 = vcmask 195752  }
  0xb6   :  { %v212_v34 = vpop.permute.xlu0 %211  }
  0xb7   :  { %215 = vst.msk [vmem:[#allocation0 + $0x8] sm:$0x1] %vm213_vm3, %v212_v34   ;;  %vm317_vm3 = vcmask 203952  }
  0xb8   :  { %v232_v37 = vpop.permute.xlu1 %231  }
  0xb9   :  { %234 = vst.msk [vmem:[#allocation0] sm:$0x1] %vm233_vm6, %v232_v37   ;;  %vm337_vm6 = vcmask 171152  }
  0xba   :  { %v225_v36 = vpop.permute.xlu0 %224  }
  0xbb   :  { %228 = vst.msk [vmem:[#allocation0 + $0x8] sm:$0x1] %vm226_vm5, %v225_v36   ;;  %vm330_vm5 = vcmask 179352  }
  0xbc   :  { %v245_v39 = vpop.permute.xlu1 %244  }
  0xbd   :  { %247 = vst.msk [vmem:[#allocation0] sm:$0x1] %vm246_vm8, %v245_v39   ;;  %vm350_vm8 = vcmask 146552  }
  0xbe   :  { %v238_v38 = vpop.permute.xlu0 %237  }
  0xbf   :  { %241 = vst.msk [vmem:[#allocation0 + $0x8] sm:$0x1] %vm239_vm7, %v238_v38   ;;  %vm343_vm7 = vcmask 154752  }
  0xc0   :  { %v258_v41 = vpop.permute.xlu1 %257  }
  0xc1   :  { %260 = vst.msk [vmem:[#allocation0] sm:$0x1] %vm259_vm10, %v258_v41   ;;  %vm363_vm10 = vcmask 121952  }
  0xc2   :  { %v251_v40 = vpop.permute.xlu0 %250  }
  0xc3   :  { %254 = vst.msk [vmem:[#allocation0 + $0x8] sm:$0x1] %vm252_vm9, %v251_v40   ;;  %vm356_vm9 = vcmask 130152  }
  0xc4   :  { %v271_v43 = vpop.permute.xlu1 %270  }
  0xc5   :  { %273 = vst.msk [vmem:[#allocation0] sm:$0x1] %vm272_vm12, %v271_v43   ;;  %vm376_vm12 = vcmask 97352  }
  0xc6   :  { %v264_v42 = vpop.permute.xlu0 %263  }
  0xc7   :  { %267 = vst.msk [vmem:[#allocation0 + $0x8] sm:$0x1] %vm265_vm11, %v264_v42   ;;  %vm369_vm11 = vcmask 105552  }
  0xc8   :  { %v284_v45 = vpop.permute.xlu1 %283  }
  0xc9   :  { %286 = vst.msk [vmem:[#allocation0] sm:$0x1] %vm285_vm14, %v284_v45   ;;  %vm389_vm14 = vcmask 72752  }
  0xca   :  { %v277_v44 = vpop.permute.xlu0 %276  }
  0xcb   :  { %280 = vst.msk [vmem:[#allocation0 + $0x8] sm:$0x1] %vm278_vm13, %v277_v44   ;;  %vm382_vm13 = vcmask 80952  }
  0xcc   :  { %v297_v47 = vpop.permute.xlu1 %296  }
  0xcd   :  { %299 = vst.msk [vmem:[#allocation0] sm:$0x1] %vm298_vm0, %v297_v47   ;;  %vm402_vm0 = vcmask 48152  }
  0xce   :  { %v290_v46 = vpop.permute.xlu0 %289  }
  0xcf   :  { %293 = vst.msk [vmem:[#allocation0 + $0x8] sm:$0x1] %vm291_vm15, %v290_v46   ;;  %vm395_vm15 = vcmask 56352  }
  0xd0   :  { %v310_v49 = vpop.permute.xlu1 %309  }
  0xd1   :  { %312 = vst.msk [vmem:[#allocation0] sm:$0x1] %vm311_vm2, %v310_v49  }
  0xd2   :  { %v303_v48 = vpop.permute.xlu0 %302  }
  0xd3   :  { %306 = vst.msk [vmem:[#allocation0 + $0x8] sm:$0x1] %vm304_vm1, %v303_v48   ;;  %vm408_vm1 = vcmask 31752  }
  0xd4   :  { %v323_v51 = vpop.permute.xlu1 %322  }
  0xd5   :  { %325 = vst.msk [vmem:[#allocation0] sm:$0x1] %vm324_vm4, %v323_v51  }
  0xd6   :  { %v316_v50 = vpop.permute.xlu0 %315  }
  0xd7   :  { %319 = vst.msk [vmem:[#allocation0 + $0x8] sm:$0x1] %vm317_vm3, %v316_v50  }
  0xd8   :  { %v336_v53 = vpop.permute.xlu1 %335  }
  0xd9   :  { %338 = vst.msk [vmem:[#allocation0] sm:$0x1] %vm337_vm6, %v336_v53  }
  0xda   :  { %v329_v52 = vpop.permute.xlu0 %328  }
  0xdb   :  { %332 = vst.msk [vmem:[#allocation0 + $0x8] sm:$0x1] %vm330_vm5, %v329_v52  }
  0xdc   :  { %v349_v55 = vpop.permute.xlu1 %348  }
  0xdd   :  { %351 = vst.msk [vmem:[#allocation0] sm:$0x1] %vm350_vm8, %v349_v55  }
  0xde   :  { %v342_v54 = vpop.permute.xlu0 %341  }
  0xdf   :  { %345 = vst.msk [vmem:[#allocation0 + $0x8] sm:$0x1] %vm343_vm7, %v342_v54  }
  0xe0   :  { %v362_v57 = vpop.permute.xlu1 %361  }
  0xe1   :  { %364 = vst.msk [vmem:[#allocation0] sm:$0x1] %vm363_vm10, %v362_v57  }
  0xe2   :  { %v355_v56 = vpop.permute.xlu0 %354  }
  0xe3   :  { %358 = vst.msk [vmem:[#allocation0 + $0x8] sm:$0x1] %vm356_vm9, %v355_v56  }
  0xe4   :  { %v375_v59 = vpop.permute.xlu1 %374  }
  0xe5   :  { %377 = vst.msk [vmem:[#allocation0] sm:$0x1] %vm376_vm12, %v375_v59  }
  0xe6   :  { %v368_v58 = vpop.permute.xlu0 %367  }
  0xe7   :  { %371 = vst.msk [vmem:[#allocation0 + $0x8] sm:$0x1] %vm369_vm11, %v368_v58  }
  0xe8   :  { %v388_v61 = vpop.permute.xlu1 %387  }
  0xe9   :  { %390 = vst.msk [vmem:[#allocation0] sm:$0x1] %vm389_vm14, %v388_v61  }
  0xea   :  { %v381_v60 = vpop.permute.xlu0 %380  }
  0xeb   :  { %384 = vst.msk [vmem:[#allocation0 + $0x8] sm:$0x1] %vm382_vm13, %v381_v60  }
  0xec   :  { %v401_v63 = vpop.permute.xlu1 %400  }
  0xed   :  { %403 = vst.msk [vmem:[#allocation0] sm:$0x1] %vm402_vm0, %v401_v63  }
  0xee   :  { %v394_v62 = vpop.permute.xlu0 %393  }
  0xef   :  { %397 = vst.msk [vmem:[#allocation0 + $0x8] sm:$0x1] %vm395_vm15, %v394_v62  }
  0xf2   :  { %v407_v0 = vpop.permute.xlu0 %406  }
  0xf3   :  { %410 = vst.msk [vmem:[#allocation0 + $0x8] sm:$0x1] %vm408_vm1, %v407_v0  }
  0xf4   :  { %v414_v1 = vld [vmem:[#allocation0] sm:$0x1] }
  0xf5   :  { %416 = vst [vmem:[%s825_s1] sm:$0x1] %v414_v1 }
  0xfa   :  { %v418_v2 = vld [vmem:[#allocation0 + $0x8] sm:$0x1] }
  0xfb   :  { %486 = vst [vmem:[%s825_s1 + $0x1] sm:$0x1] %v418_v2 }

// kernel: conv_decoder_pallas.1
= control target key start
LH: loop header
LB: loop body
LE: loop exit
PB: predicated region body
PF: predicated region fallthrough
CT: control target
= control target key end

     0   :  { %vm829_vm0 = vcmask 523264   ;;  %vm1351_vm1 = vcmask 1043456   ;;  %vm1352_vm2 = vcmask 523268   ;;  %s15780_s1 = inlined_call_operand.vmem [shape: bf16[256,512], index: 1, kind: input, shape index: {}]   ;;  %s15781_s0 = inlined_call_operand.vmem [shape: bf16[32,256], index: 0, kind: input, shape index: {}]   ;;  %s15782_s3 = inlined_call_operand.vmem [shape: bf16[128,256], index: 3, kind: input, shape index: {}]   ;;  %s15783_s2 = inlined_call_operand.vmem [shape: f32[1,512], index: 2, kind: input, shape index: {}]   ;;  %s15784_s5 = inlined_call_operand.vmem [shape: bf16[64,128], index: 5, kind: input, shape index: {}]   ;;  %s15785_s4 = inlined_call_operand.vmem [shape: f32[1,256], index: 4, kind: input, shape index: {}]   ;;  %s15786_s7 = inlined_call_operand.vmem [shape: bf16[128,256], index: 7, kind: input, shape index: {}]   ;;  %s15787_s9 = inlined_call_operand.vmem [shape: bf16[256,192], index: 9, kind: input, shape index: {}]   ;;  %s15788_s6 = inlined_call_operand.vmem [shape: f32[1,128], index: 6, kind: input, shape index: {}]   ;;  %s15789_s8 = inlined_call_operand.vmem [shape: f32[1,256], index: 8, kind: input, shape index: {}]   ;;  %s15790_s10 = inlined_call_operand.vmem [shape: f32[1,192], index: 10, kind: input, shape index: {}]   ;;  %s15791_s11 = inlined_call_operand.vmem [shape: bf16[16,32,192], index: 11, kind: output, shape index: {}]  }
   0x1   :  { %v11456_v0 = vld [vmem:[%s15780_s1 + $0x4] ss:$16 sps:$4 sm:$0xff]   ;;  %v11458_v1 = vld [vmem:[%s15780_s1] ss:$16 sps:$4 sm:$0xff]   ;;  %v11510_v16 = vld [vmem:[%s15780_s1 + $0xc] ss:$16 sps:$4 sm:$0xff]  }
   0x2   :  { %473 = vmatprep.subr.bf16.mxu0 %v11456_v0  ;;  %v11459_v2 = vld [vmem:[%s15780_s1 + $0x24] ss:$16 sps:$4 sm:$0xff]   ;;  %v11461_v3 = vld [vmem:[%s15780_s1 + $0x20] ss:$16 sps:$4 sm:$0xff]   ;;  %v11512_v17 = vld [vmem:[%s15780_s1 + $0x8] ss:$16 sps:$4 sm:$0xff]   ;;  %526 = vmatprep.subr.bf16.mxu1 %v11510_v16 }
   0x3   :  { %474 = vmatpush1.bf16.msra.mxu0 %v11458_v1  ;;  %v11462_v4 = vld [vmem:[%s15780_s1 + $0x44] ss:$16 sps:$4 sm:$0xff]   ;;  %v11464_v5 = vld [vmem:[%s15780_s1 + $0x40] ss:$16 sps:$4 sm:$0xff]   ;;  %v11513_v19 = vld [vmem:[%s15780_s1 + $0x2c] ss:$16 sps:$4 sm:$0xff]   ;;  %527 = vmatpush1.bf16.msra.mxu1 %v11512_v17 }
   0x4   :  { %475 = vmatprep.subr.bf16.mxu0 %v11459_v2  ;;  %v11465_v6 = vld [vmem:[%s15780_s1 + $0x64] ss:$16 sps:$4 sm:$0xff]   ;;  %v11467_v7 = vld [vmem:[%s15780_s1 + $0x60] ss:$16 sps:$4 sm:$0xff]   ;;  %v11515_v21 = vld [vmem:[%s15780_s1 + $0x28] ss:$16 sps:$4 sm:$0xff]   ;;  %528 = vmatprep.subr.bf16.mxu1 %v11513_v19 }
   0x5   :  { %v11468_v8 = vld [vmem:[%s15780_s1 + $0x84] ss:$16 sps:$4 sm:$0xff]   ;;  %v11470_v9 = vld [vmem:[%s15780_s1 + $0x80] ss:$16 sps:$4 sm:$0xff]   ;;  %v11516_v22 = vld [vmem:[%s15780_s1 + $0x4c] ss:$16 sps:$4 sm:$0xff]  }
   0x6   :  { %v11471_v10 = vld [vmem:[%s15780_s1 + $0xa4] ss:$16 sps:$4 sm:$0xff]   ;;  %v11473_v11 = vld [vmem:[%s15780_s1 + $0xa0] ss:$16 sps:$4 sm:$0xff]   ;;  %v11518_v25 = vld [vmem:[%s15780_s1 + $0x48] ss:$16 sps:$4 sm:$0xff]  }
   0x7   :  { %476 = vmatpush1.bf16.msra.mxu0 %v11461_v3  ;;  %v11474_v12 = vld [vmem:[%s15780_s1 + $0xc4] ss:$16 sps:$4 sm:$0xff]   ;;  %v11476_v14 = vld [vmem:[%s15780_s1 + $0xc0] ss:$16 sps:$4 sm:$0xff]   ;;  %529 = vmatpush1.bf16.msra.mxu1 %v11515_v21  ;;  %v11519_v26 = vld [vmem:[%s15780_s1 + $0x6c] ss:$16 sps:$4 sm:$0xff]   ;;  %v113_v21 = vlaneseq }
   0x8   :  { %477 = vmatprep.subr.bf16.mxu0 %v11462_v4  ;;  %v11506_v13 = vld [vmem:[%s15781_s0 + $0x4] ss:$8 sps:$4 sm:$0xff]   ;;  %v11479_v18 = vld [vmem:[%s15780_s1 + $0xe0] ss:$16 sps:$4 sm:$0xff]   ;;  %530 = vmatprep.subr.bf16.mxu1 %v11516_v22  ;;  %v11521_v29 = vld [vmem:[%s15780_s1 + $0x68] ss:$16 sps:$4 sm:$0xff]  }
   0x9   :  { %v11477_v15 = vld [vmem:[%s15780_s1 + $0xe4] ss:$16 sps:$4 sm:$0xff]   ;;  %505 = vmatprep.mubr.bf16.mxu0 %v11506_v13  ;;  %558 = vmatprep.mubr.bf16.mxu1 %v11506_v13  ;;  %v11482_v23 = vld [vmem:[%s15780_s1 + $0x100] ss:$16 sps:$4 sm:$0xff]   ;;  %v11522_v30 = vld [vmem:[%s15780_s1 + $0x8c] ss:$16 sps:$4 sm:$0xff]  }
   0xa   :  { %v11480_v20 = vld [vmem:[%s15780_s1 + $0x104] ss:$16 sps:$4 sm:$0xff]   ;;  %v11485_v27 = vld [vmem:[%s15780_s1 + $0x120] ss:$16 sps:$4 sm:$0xff]   ;;  %v11524_v33 = vld [vmem:[%s15780_s1 + $0x88] ss:$16 sps:$4 sm:$0xff]  }
   0xb   :  { %478 = vmatpush1.bf16.msra.mxu0 %v11464_v5  ;;  %v11483_v24 = vld [vmem:[%s15780_s1 + $0x124] ss:$16 sps:$4 sm:$0xff]   ;;  %531 = vmatpush1.bf16.msra.mxu1 %v11518_v25  ;;  %v11488_v31 = vld [vmem:[%s15780_s1 + $0x140] ss:$16 sps:$4 sm:$0xff]   ;;  %v11525_v34 = vld [vmem:[%s15780_s1 + $0xac] ss:$16 sps:$4 sm:$0xff]  }
   0xc   :  { %479 = vmatprep.subr.bf16.mxu0 %v11465_v6  ;;  %v11486_v28 = vld [vmem:[%s15780_s1 + $0x144] ss:$16 sps:$4 sm:$0xff]   ;;  %532 = vmatprep.subr.bf16.mxu1 %v11519_v26  ;;  %v11491_v35 = vld [vmem:[%s15780_s1 + $0x160] ss:$16 sps:$4 sm:$0xff]   ;;  %v11527_v37 = vld [vmem:[%s15780_s1 + $0xa8] ss:$16 sps:$4 sm:$0xff]  }
   0xd   :  { %v11489_v32 = vld [vmem:[%s15780_s1 + $0x164] ss:$16 sps:$4 sm:$0xff]   ;;  %v11528_v38 = vld [vmem:[%s15780_s1 + $0xcc] ss:$16 sps:$4 sm:$0xff]   ;;  %v11494_v39 = vld [vmem:[%s15780_s1 + $0x180] ss:$16 sps:$4 sm:$0xff]  }
   0xe   :  { %v11492_v36 = vld [vmem:[%s15780_s1 + $0x184] ss:$16 sps:$4 sm:$0xff]   ;;  %v11530_v41 = vld [vmem:[%s15780_s1 + $0xc8] ss:$16 sps:$4 sm:$0xff]   ;;  %v11531_v42 = vld [vmem:[%s15780_s1 + $0xec] ss:$16 sps:$4 sm:$0xff]  }
   0xf   :  { %480 = vmatpush1.bf16.msra.mxu0 %v11467_v7  ;;  %533 = vmatpush1.bf16.msra.mxu1 %v11521_v29  ;;  %v11495_v40 = vld [vmem:[%s15780_s1 + $0x1a4] ss:$16 sps:$4 sm:$0xff]   ;;  %v11497_v43 = vld [vmem:[%s15780_s1 + $0x1a0] ss:$16 sps:$4 sm:$0xff]   ;;  %v11533_v45 = vld [vmem:[%s15780_s1 + $0xe8] ss:$16 sps:$4 sm:$0xff]  }
  0x10   :  { %481 = vmatprep.subr.bf16.mxu0 %v11468_v8  ;;  %534 = vmatprep.subr.bf16.mxu1 %v11522_v30  ;;  %v11498_v44 = vld [vmem:[%s15780_s1 + $0x1c4] ss:$16 sps:$4 sm:$0xff]   ;;  %v11534_v46 = vld [vmem:[%s15780_s1 + $0x10c] ss:$16 sps:$4 sm:$0xff]   ;;  %v11500_v47 = vld [vmem:[%s15780_s1 + $0x1c0] ss:$16 sps:$4 sm:$0xff]  }
  0x11   :  { %v11536_v48 = vld [vmem:[%s15780_s1 + $0x108] ss:$16 sps:$4 sm:$0xff]   ;;  %v11501_v49 = vld [vmem:[%s15780_s1 + $0x1e4] ss:$16 sps:$4 sm:$0xff]   ;;  %v11537_v50 = vld [vmem:[%s15780_s1 + $0x12c] ss:$16 sps:$4 sm:$0xff]  }
  0x12   :  { %v11503_v51 = vld [vmem:[%s15780_s1 + $0x1e0] ss:$16 sps:$4 sm:$0xff]   ;;  %v11539_v52 = vld [vmem:[%s15780_s1 + $0x128] ss:$16 sps:$4 sm:$0xff]   ;;  %v11540_v53 = vld [vmem:[%s15780_s1 + $0x14c] ss:$16 sps:$4 sm:$0xff]  }
  0x13   :  { %482 = vmatpush1.bf16.msra.mxu0 %v11470_v9  ;;  %535 = vmatpush1.bf16.msra.mxu1 %v11524_v33  ;;  %v11504_v54 = vld [vmem:[%s15781_s0] ss:$8 sps:$4 sm:$0xff]   ;;  %v11507_v55 = vld [vmem:[%s15781_s0 + $0x14] ss:$8 sps:$4 sm:$0xff]   ;;  %v11509_v60 = vld [vmem:[%s15781_s0 + $0x10] ss:$8 sps:$4 sm:$0xff]  }
  0x14   :  { %483 = vmatprep.subr.bf16.mxu0 %v11471_v10  ;;  %536 = vmatprep.subr.bf16.mxu1 %v11525_v34  ;;  %v11542_v56 = vld [vmem:[%s15780_s1 + $0x148] ss:$16 sps:$4 sm:$0xff]   ;;  %v11543_v57 = vld [vmem:[%s15780_s1 + $0x16c] ss:$16 sps:$4 sm:$0xff]   ;;  %v114_v22 = vshrl.u32 %v113_v21, 7  ;;  %vm12956_vm3 = vmor %vm1352_vm2, %vm1351_vm1 }
  0x15   :  { %v11545_v58 = vld [vmem:[%s15780_s1 + $0x168] ss:$16 sps:$4 sm:$0xff]   ;;  %v11546_v59 = vld [vmem:[%s15780_s1 + $0x18c] ss:$16 sps:$4 sm:$0xff]  }
  0x16   :  { %v11548_v61 = vld [vmem:[%s15780_s1 + $0x188] ss:$16 sps:$4 sm:$0xff]   ;;  %v11549_v62 = vld [vmem:[%s15780_s1 + $0x1ac] ss:$16 sps:$4 sm:$0xff]   ;;  %v12463_v25 = vsub.s32 1, %v114_v22 }
  0x17   :  { %484 = vmatpush1.bf16.msra.mxu0 %v11473_v11  ;;  %537 = vmatpush1.bf16.msra.mxu1 %v11527_v37  ;;  %v11551_v63 = vld [vmem:[%s15780_s1 + $0x1a8] ss:$16 sps:$4 sm:$0xff]   ;;  %v11552_v0 = vld [vmem:[%s15780_s1 + $0x1cc] ss:$16 sps:$4 sm:$0xff]  }
  0x18   :  { %485 = vmatprep.subr.bf16.mxu0 %v11474_v12  ;;  %538 = vmatprep.subr.bf16.mxu1 %v11528_v38  ;;  %v11554_v1 = vld [vmem:[%s15780_s1 + $0x1c8] ss:$16 sps:$4 sm:$0xff]   ;;  %v11555_v2 = vld [vmem:[%s15780_s1 + $0x1ec] ss:$16 sps:$4 sm:$0xff]   ;;  %15826 = vst [vmem:[#allocation5_spill] sm:$0xff] %v12463_v25 }
  0x19   :  { %v11557_v3 = vld [vmem:[%s15780_s1 + $0x1e8] ss:$16 sps:$4 sm:$0xff]   ;;  %v11560_v4 = vld [vmem:[%s15782_s3 + $0x4] ss:$8 sps:$4 sm:$0xff]   ;;  %v11563_v6 = vld [vmem:[%s15782_s3 + $0x14] ss:$8 sps:$4 sm:$0xff]  }
  0x1a   :  { %v11558_v5 = vld [vmem:[%s15782_s3] ss:$8 sps:$4 sm:$0xff]   ;;  %v11561_v7 = vld [vmem:[%s15782_s3 + $0x10] ss:$8 sps:$4 sm:$0xff]   ;;  %v11566_v8 = vld [vmem:[%s15782_s3 + $0x24] ss:$8 sps:$4 sm:$0xff]  }
  0x1b   :  { %486 = vmatpush1.bf16.msra.mxu0 %v11476_v14  ;;  %539 = vmatpush1.bf16.msra.mxu1 %v11530_v41  ;;  %v11564_v9 = vld [vmem:[%s15782_s3 + $0x20] ss:$8 sps:$4 sm:$0xff]   ;;  %v11569_v10 = vld [vmem:[%s15782_s3 + $0x34] ss:$8 sps:$4 sm:$0xff]   ;;  %v11567_v11 = vld [vmem:[%s15782_s3 + $0x30] ss:$8 sps:$4 sm:$0xff]  }
  0x1c   :  { %487 = vmatprep.subr.bf16.mxu0 %v11477_v15  ;;  %540 = vmatprep.subr.bf16.mxu1 %v11531_v42  ;;  %v11572_v12 = vld [vmem:[%s15782_s3 + $0x44] ss:$8 sps:$4 sm:$0xff]   ;;  %v11570_v13 = vld [vmem:[%s15782_s3 + $0x40] ss:$8 sps:$4 sm:$0xff]   ;;  %v11575_v14 = vld [vmem:[%s15782_s3 + $0x54] ss:$8 sps:$4 sm:$0xff]  }
  0x1d   :  { %v11573_v15 = vld [vmem:[%s15782_s3 + $0x50] ss:$8 sps:$4 sm:$0xff]   ;;  %v11578_v16 = vld [vmem:[%s15782_s3 + $0x64] ss:$8 sps:$4 sm:$0xff]   ;;  %v11576_v17 = vld [vmem:[%s15782_s3 + $0x60] ss:$8 sps:$4 sm:$0xff]  }
  0x1e   :  { %v11579_v19 = vld [vmem:[%s15782_s3 + $0x70] ss:$8 sps:$4 sm:$0xff]  }
  0x1f   :  { %488 = vmatpush1.bf16.msra.mxu0 %v11479_v18  ;;  %541 = vmatpush1.bf16.msra.mxu1 %v11533_v45  ;;  %v11581_v18 = vld [vmem:[%s15782_s3 + $0x74] ss:$8 sps:$4 sm:$0xff]  }
  0x20   :  { %489 = vmatprep.subr.bf16.mxu0 %v11480_v20  ;;  %542 = vmatprep.subr.bf16.mxu1 %v11534_v46  ;;  %v15792_v20 = vmov 0  }
  0x23   :  { %490 = vmatpush1.bf16.msra.mxu0 %v11482_v23  ;;  %543 = vmatpush1.bf16.msra.mxu1 %v11536_v48  ;;  %v12458_v23 = vsub.s32 0, %v114_v22 }
  0x24   :  { %491 = vmatprep.subr.bf16.mxu0 %v11483_v24  ;;  %544 = vmatprep.subr.bf16.mxu1 %v11537_v50  ;;  %v39_v24 = vld [vmem:[%s15783_s2] sm:$0xf] }
  0x25   :  { %15825 = vst [vmem:[#allocation4_spill] sm:$0xff] %v12458_v23  ;;  %v116_v26 = vrot.slane %v39_v24, %v12458_v23 }
  0x27   :  { %492 = vmatpush1.bf16.msra.mxu0 %v11485_v27  ;;  %545 = vmatpush1.bf16.msra.mxu1 %v11539_v52  ;;  %v120_v27 = vrot.slane %v39_v24, %v12463_v25 }
  0x28   :  { %493 = vmatprep.subr.bf16.mxu0 %v11486_v28  ;;  %546 = vmatprep.subr.bf16.mxu1 %v11540_v53 }
  0x2b   :  { %494 = vmatpush1.bf16.msra.mxu0 %v11488_v31  ;;  %547 = vmatpush1.bf16.msra.mxu1 %v11542_v56  ;;  %v123_v56 = vsub.s32 2, %v114_v22 }
  0x2c   :  { %495 = vmatprep.subr.bf16.mxu0 %v11489_v32  ;;  %548 = vmatprep.subr.bf16.mxu1 %v11543_v57  ;;  %v127_v57 = vsub.s32 3, %v114_v22 }
  0x2f   :  { %496 = vmatpush1.bf16.msra.mxu0 %v11491_v35  ;;  %549 = vmatpush1.bf16.msra.mxu1 %v11545_v58  ;;  %v124_v58 = vrot.slane %v39_v24, %v123_v56 }
  0x30   :  { %497 = vmatprep.subr.bf16.mxu0 %v11492_v36  ;;  %550 = vmatprep.subr.bf16.mxu1 %v11546_v59  ;;  %v128_v59 = vrot.slane %v39_v24, %v127_v57 }
  0x33   :  { %498 = vmatpush1.bf16.msra.mxu0 %v11494_v39  ;;  %551 = vmatpush1.bf16.msra.mxu1 %v11548_v61 }
  0x34   :  { %499 = vmatprep.subr.bf16.mxu0 %v11495_v40  ;;  %552 = vmatprep.subr.bf16.mxu1 %v11549_v62 }
  0x37   :  { %500 = vmatpush1.bf16.msra.mxu0 %v11497_v43  ;;  %553 = vmatpush1.bf16.msra.mxu1 %v11551_v63 }
  0x38   :  { %501 = vmatprep.subr.bf16.mxu0 %v11498_v44  ;;  %554 = vmatprep.subr.bf16.mxu1 %v11552_v0 }
  0x3b   :  { %502 = vmatpush1.bf16.msra.mxu0 %v11500_v47  ;;  %555 = vmatpush1.bf16.msra.mxu1 %v11554_v1 }
  0x3c   :  { %503 = vmatprep.subr.bf16.mxu0 %v11501_v49  ;;  %556 = vmatprep.subr.bf16.mxu1 %v11555_v2 }
  0x3f   :  { %504 = vmatpush1.bf16.msra.mxu0 %v11503_v51  ;;  %557 = vmatpush1.bf16.msra.mxu1 %v11557_v3 }
  0x40   :  { %720 = vmatprep.subr.bf16.mxu1 %v11560_v4 }
  0x42   :  { %506 = vmatmul.mubr.bf16.vlgmr.msra.gmra.mrb[0].mxu0 %v11504_v54  ;;  %559 = vmatmul.mubr.bf16.vlgmr.msra.gmra.mrb[0].mxu1 %v11504_v54 }
  0x43   :  { %515 = vmatprep.mubr.bf16.mxu0 %v11507_v55  ;;  %721 = vmatpush1.bf16.msra.mxu1 %v11558_v5 }
  0x44   :  { %568 = vmatprep.mubr.bf16.mxu1 %v11507_v55  ;;  %722 = vmatprep.subr.bf16.mxu1 %v11563_v6 }
  0x47   :  { %723 = vmatpush1.bf16.msra.mxu1 %v11561_v7 }
  0x48   :  { %724 = vmatprep.subr.bf16.mxu1 %v11566_v8 }
  0x4a   :  { %516 = vmatmul.mubr.bf16.gmra.mrb[4].mxu0 %v11509_v60  ;;  %569 = vmatmul.mubr.bf16.gmra.mrb[4].mxu1 %v11509_v60 }
  0x4b   :  { %725 = vmatpush1.bf16.msra.mxu1 %v11564_v9  ;;  %752 = vmatprep.mubr.bf16.mxu1 %v15792_v20 }
  0x4c   :  { %726 = vmatprep.subr.bf16.mxu1 %v11569_v10 }
  0x4f   :  { %727 = vmatpush1.bf16.msra.mxu1 %v11567_v11 }
  0x50   :  { %728 = vmatprep.subr.bf16.mxu1 %v11572_v12 }
  0x53   :  { %729 = vmatpush1.bf16.msra.mxu1 %v11570_v13 }
  0x54   :  { %730 = vmatprep.subr.bf16.mxu1 %v11575_v14 }
  0x57   :  { %731 = vmatpush1.bf16.msra.mxu1 %v11573_v15 }
  0x58   :  { %732 = vmatprep.subr.bf16.mxu1 %v11578_v16 }
  0x5b   :  { %733 = vmatpush1.bf16.msra.mxu1 %v11576_v17 }
  0x5c   :  { %734 = vmatprep.subr.bf16.mxu1 %v11581_v18 }
  0x5f   :  { %735 = vmatpush1.bf16.msra.mxu1 %v11579_v19 }
 0x115   :  { %v507_v28 = vpop.f32.mrb[0].mxu0  ;;  %v560_v60 = vpop.f32.mrb[0].mxu1 }
 0x116   :  { %v508_v29 = vadd.f32 %v507_v28, %v116_v26  ;;  %v509_v30 = vpop.f32.mrb[1].mxu0  ;;  %v561_v61 = vadd.f32 %v560_v60, %v124_v58  ;;  %v562_v62 = vpop.f32.mrb[1].mxu1  ;;  %v11583_v28 = vld [vmem:[%s15784_s5 + $0x8] sm:$0xff]  }
 0x117   :  { %v510_v31 = vadd.f32 %v509_v30, %v120_v27  ;;  %v511_v32 = vpop.f32.mrb[2].mxu0  ;;  %v563_v63 = vadd.f32 %v562_v62, %v128_v59  ;;  %v564_v0 = vpop.f32.mrb[2].mxu1  ;;  %v11585_v30 = vld [vmem:[%s15784_s5 + $0x18] sm:$0xff]  }
 0x118   :  { %v512_v33 = vadd.f32 %v511_v32, %v116_v26  ;;  %v513_v34 = vpop.f32.mrb[3].mxu0  ;;  %v579_v36 = vmax.f32 %v508_v29, 0.0  ;;  %v581_v1 = vmax.f32 %v561_v61, 0.0  ;;  %v565_v2 = vadd.f32 %v564_v0, %v124_v58  ;;  %v566_v3 = vpop.f32.mrb[3].mxu1  ;;  %v11584_v29 = vld [vmem:[%s15784_s5 + $0x10] sm:$0xff]  }
 0x119   :  { %v514_v35 = vadd.f32 %v513_v34, %v120_v27  ;;  %v580_v38 = vmax.f32 %v510_v31, 0.0  ;;  %v582_v4 = vmax.f32 %v563_v63, 0.0  ;;  %v567_v5 = vadd.f32 %v566_v3, %v128_v59  ;;  %v40_v31 = vld [vmem:[%s15785_s4] sm:$0x3]  ;;  %s12144_s4 = smov 64  }
 0x11a   :  { %v583_v37 = vmax.f32 %v512_v33, 0.0  ;;  %v585_v6 = vmax.f32 %v565_v2, 0.0  ;;  %v12496_v32 = vrot.slane %v40_v31, %v12458_v23  ;;  %v12499_v33 = vrot.slane %v40_v31, %v12463_v25  ;;  %v12522_v63 = vld [vmem:[%s15786_s7] ss:$8 sps:$4 sm:$0xff]   ;;  %v12534_v3 = vld [vmem:[%s15786_s7 + $0x10] ss:$8 sps:$4 sm:$0xff]  }
 0x11b   :  { %v584_v39 = vmax.f32 %v514_v35, 0.0  ;;  %v586_v7 = vmax.f32 %v567_v5, 0.0  ;;  %v12549_v5 = vld [vmem:[%s15786_s7 + $0x20] ss:$8 sps:$4 sm:$0xff]   ;;  %v12666_v31 = vld [vmem:[%s15787_s9 + $0x30] ss:$8 sps:$4 sm:$0xff]  }
 0x11c   :  { %v595_v40 = vpack.c.bf16 %v583_v37, %v579_v36  ;;  %v12472_v8 = vpack.c.bf16 %v585_v6, %v581_v1  ;;  %15833 = vst [vmem:[#allocation12_spill] sm:$0xff] %v12496_v32  ;;  %15834 = vst [vmem:[#allocation13_spill] sm:$0xff] %v12499_v33  ;;  %v12527_v1 = vld [vmem:[%s15786_s7 + $0x14] ss:$8 sps:$4 sm:$0xff]  }
 0x11d   :  { %v12467_v41 = vpack.c.bf16 %v584_v39, %v580_v38  ;;  %v517_v42 = vpop.f32.mrb[4].mxu0  ;;  %v12474_v9 = vpack.c.bf16 %v586_v7, %v582_v4  ;;  %v570_v10 = vpop.f32.mrb[4].mxu1  ;;  %v12541_v4 = vld [vmem:[%s15786_s7 + $0x24] ss:$8 sps:$4 sm:$0xff]   ;;  %v12556_v6 = vld [vmem:[%s15786_s7 + $0x34] ss:$8 sps:$4 sm:$0xff]  }
 0x11e   :  { %v518_v43 = vadd.f32 %v517_v42, %v116_v26  ;;  %v519_v44 = vpop.f32.mrb[5].mxu0  ;;  %753 = vmatmul.mubr.bf16.vlgmr.msra.gmra.mrb[8].mxu1 %v595_v40  ;;  %15829 = vst [vmem:[#allocation8_spill] sm:$0xff] %v12472_v8  ;;  %v571_v11 = vadd.f32 %v570_v10, %v124_v58  ;;  %v572_v12 = vpop.f32.mrb[5].mxu1  ;;  %v12563_v7 = vld [vmem:[%s15786_s7 + $0x30] ss:$8 sps:$4 sm:$0xff]  }
 0x11f   :  { %15827 = vst [vmem:[#allocation6_spill] sm:$0xff] %v12467_v41  ;;  %v520_v45 = vadd.f32 %v519_v44, %v120_v27  ;;  %v521_v46 = vpop.f32.mrb[6].mxu0  ;;  %762 = vmatprep.mubr.bf16.mxu1 %v15792_v20  ;;  %15830 = vst [vmem:[#allocation9_spill] sm:$0xff] %v12474_v9  ;;  %v573_v13 = vadd.f32 %v572_v12, %v128_v59  ;;  %v574_v14 = vpop.f32.mrb[6].mxu1  ;;  %v12568_v10 = vld [vmem:[%s15786_s7 + $0x44] ss:$8 sps:$4 sm:$0xff]  }
 0x120   :  { %v522_v47 = vadd.f32 %v521_v46, %v116_v26  ;;  %v523_v48 = vpop.f32.mrb[7].mxu0  ;;  %v587_v50 = vmax.f32 %v518_v43, 0.0  ;;  %v589_v15 = vmax.f32 %v571_v11, 0.0  ;;  %v575_v16 = vadd.f32 %v574_v14, %v124_v58  ;;  %v576_v17 = vpop.f32.mrb[7].mxu1  ;;  %v12575_v11 = vld [vmem:[%s15786_s7 + $0x40] ss:$8 sps:$4 sm:$0xff]  }
 0x121   :  { %v524_v49 = vadd.f32 %v523_v48, %v120_v27  ;;  %v588_v52 = vmax.f32 %v520_v45, 0.0  ;;  %v590_v18 = vmax.f32 %v573_v13, 0.0  ;;  %v577_v19 = vadd.f32 %v576_v17, %v128_v59  ;;  %v11582_v27 = vld [vmem:[%s15784_s5] sm:$0xff]   ;;  %v12580_v12 = vld [vmem:[%s15786_s7 + $0x54] ss:$8 sps:$4 sm:$0xff]  }
 0x122   :  { %v591_v51 = vmax.f32 %v522_v47, 0.0  ;;  %v593_v21 = vmax.f32 %v575_v16, 0.0  ;;  %11262 = vmatprep.subr.bf16.mxu1 %v11582_v27  ;;  %v12587_v13 = vld [vmem:[%s15786_s7 + $0x50] ss:$8 sps:$4 sm:$0xff]   ;;  %v12595_v14 = vld [vmem:[%s15786_s7 + $0x64] ss:$8 sps:$4 sm:$0xff]  }
 0x123   :  { %v592_v53 = vmax.f32 %v524_v49, 0.0  ;;  %v594_v22 = vmax.f32 %v577_v19, 0.0  ;;  %11263 = vmatpush3.bf16.msra.mxu1 %v11582_v27  ;;  %v12607_v16 = vld [vmem:[%s15786_s7 + $0x74] ss:$8 sps:$4 sm:$0xff]   ;;  %v12612_v17 = vld [vmem:[%s15786_s7 + $0x70] ss:$8 sps:$4 sm:$0xff]  }
 0x124   :  { %v599_v54 = vpack.c.bf16 %v591_v51, %v587_v50  ;;  %v12476_v24 = vpack.c.bf16 %v593_v21, %v589_v15  ;;  %11264 = vmatprep.subr.bf16.mxu1 %v11583_v28  ;;  %v12600_v15 = vld [vmem:[%s15786_s7 + $0x60] ss:$8 sps:$4 sm:$0xff]   ;;  %15836 = vst [vmem:[#allocation15_spill] sm:$0xff] %v12607_v16  ;;  %15837 = vst [vmem:[#allocation16_spill] sm:$0xff] %v12612_v17  ;;  %v12630_v21 = vld [vmem:[%s15787_s9 + $0x4] ss:$8 sps:$4 sm:$0xff]  }
 0x125   :  { %v12470_v55 = vpack.c.bf16 %v592_v53, %v588_v52  ;;  %v12478_v26 = vpack.c.bf16 %v594_v22, %v590_v18  ;;  %v12513_v52 = vld [vmem:[%s15786_s7 + $0x4] ss:$8 sps:$4 sm:$0xff]   ;;  %15835 = vst [vmem:[#allocation14_spill] sm:$0xff] %v12600_v15  ;;  %v12625_v19 = vld [vmem:[%s15787_s9] ss:$8 sps:$4 sm:$0xff]   ;;  %15838 = vst [vmem:[#allocation17_spill] sm:$0xff] %v12630_v21  ;;  %1266 = vmatprep.subr.bf16.mxu0 %v12630_v21 }
 0x126   :  { %763 = vmatmul.mubr.bf16.gmra.mrb[12].mxu1 %v599_v54  ;;  %15831 = vst [vmem:[#allocation10_spill] sm:$0xff] %v12476_v24  ;;  %v12619_v18 = vld [vmem:[%s15784_s5] sm:$0xff]   ;;  %v12635_v22 = vld [vmem:[%s15787_s9 + $0x14] ss:$8 sps:$4 sm:$0xff]   ;;  %1267 = vmatpush1.bf16.msra.mxu0 %v12625_v19  ;;  %v12642_v27 = vld [vmem:[%s15787_s9 + $0x10] ss:$8 sps:$4 sm:$0xff]  }
 0x127   :  { %15828 = vst [vmem:[#allocation7_spill] sm:$0xff] %v12470_v55  ;;  %15832 = vst [vmem:[#allocation11_spill] sm:$0xff] %v12478_v26  ;;  %11265 = vmatpush3.bf16.msra.mxu1 %v11583_v28  ;;  %1268 = vmatprep.subr.bf16.mxu0 %v12635_v22  ;;  %v12648_v28 = vld [vmem:[%s15787_s9 + $0x24] ss:$8 sps:$4 sm:$0xff]  }
 0x128   :  { %11266 = vmatprep.subr.bf16.mxu1 %v11584_v29 }
 0x12a   :  { %1269 = vmatpush1.bf16.msra.mxu0 %v12642_v27 }
 0x12b   :  { %11267 = vmatpush3.bf16.msra.mxu1 %v11584_v29  ;;  %v12654_v29 = vld [vmem:[%s15787_s9 + $0x20] ss:$8 sps:$4 sm:$0xff]   ;;  %1270 = vmatprep.subr.bf16.mxu0 %v12648_v28 }
 0x12c   :  { %11268 = vmatprep.subr.bf16.mxu1 %v11585_v30 }
 0x12e   :  { %1271 = vmatpush1.bf16.msra.mxu0 %v12654_v29 }
 0x12f   :  { %11269 = vmatpush3.bf16.msra.mxu1 %v11585_v30  ;;  %v12660_v30 = vld [vmem:[%s15787_s9 + $0x34] ss:$8 sps:$4 sm:$0xff]  }
 0x130   :  { %998 = vmatprep.subr.bf16.mxu1 %v12513_v52  ;;  %1272 = vmatprep.subr.bf16.mxu0 %v12660_v30 }
 0x132   :  { %1273 = vmatpush1.bf16.msra.mxu0 %v12666_v31 }
 0x1f1   :  { %v754_v34 = vpop.f32.mrb[8].mxu1 }
 0x1f2   :  { %v755_v35 = vadd.f32 %v754_v34, %v12496_v32  ;;  %v756_v36 = vpop.f32.mrb[9].mxu1  ;;  %v12672_v34 = vld [vmem:[%s15787_s9 + $0x44] ss:$8 sps:$4 sm:$0xff]  }
 0x1f3   :  { %v757_v37 = vadd.f32 %v756_v36, %v12499_v33  ;;  %v758_v38 = vpop.f32.mrb[10].mxu1  ;;  %1274 = vmatprep.subr.bf16.mxu0 %v12672_v34  ;;  %v12684_v36 = vld [vmem:[%s15787_s9 + $0x54] ss:$8 sps:$4 sm:$0xff]  }
 0x1f4   :  { %v759_v39 = vadd.f32 %v758_v38, %v12496_v32  ;;  %v760_v40 = vpop.f32.mrb[11].mxu1  ;;  %v773_v43 = vmax.f32 %v755_v35, 0.0  ;;  %v12678_v35 = vld [vmem:[%s15787_s9 + $0x40] ss:$8 sps:$4 sm:$0xff]   ;;  %v12694_v38 = vld [vmem:[%s15787_s9 + $0x64] ss:$8 sps:$4 sm:$0xff]  }
 0x1f5   :  { %v761_v42 = vadd.f32 %v760_v40, %v12499_v33  ;;  %v774_v45 = vmax.f32 %v757_v37, 0.0  ;;  %v12689_v37 = vld [vmem:[%s15787_s9 + $0x50] ss:$8 sps:$4 sm:$0xff]   ;;  %1275 = vmatpush1.bf16.msra.mxu0 %v12678_v35  ;;  %v12706_v40 = vld [vmem:[%s15787_s9 + $0x74] ss:$8 sps:$4 sm:$0xff]  }
 0x1f6   :  { %v775_v44 = vmax.f32 %v759_v39, 0.0  ;;  %1276 = vmatprep.subr.bf16.mxu0 %v12684_v36  ;;  %v12701_v39 = vld [vmem:[%s15787_s9 + $0x60] ss:$8 sps:$4 sm:$0xff]  }
 0x1f7   :  { %v776_v46 = vmax.f32 %v761_v42, 0.0  ;;  %v12713_v42 = vld [vmem:[%s15787_s9 + $0x70] ss:$8 sps:$4 sm:$0xff]  }
 0x1f8   :  { %v781_v47 = vpack.c.bf16 %v775_v44, %v773_v43  ;;  %v12718_v43 = vld [vmem:[%s15787_s9 + $0x84] ss:$8 sps:$4 sm:$0xff]   ;;  %v12725_v44 = vld [vmem:[%s15787_s9 + $0x80] ss:$8 sps:$4 sm:$0xff]  }
 0x1f9   :  { %v12505_v48 = vpack.c.bf16 %v776_v46, %v774_v45  ;;  %v764_v49 = vpop.f32.mrb[12].mxu1  ;;  %1277 = vmatpush1.bf16.msra.mxu0 %v12689_v37  ;;  %v12730_v45 = vld [vmem:[%s15787_s9 + $0x94] ss:$8 sps:$4 sm:$0xff]   ;;  %v12737_v46 = vld [vmem:[%s15787_s9 + $0x90] ss:$8 sps:$4 sm:$0xff]  }
 0x1fa   :  { %v765_v50 = vadd.f32 %v764_v49, %v12496_v32  ;;  %v766_v51 = vpop.f32.mrb[13].mxu1  ;;  %1370 = vrot.lane.b32.xlu0 %v781_v47, %s12144_s4  ;;  %11270 = vmatprep.mubr.msk.bf16.mxu1 %vm829_vm0, %v781_v47  ;;  %v12742_v47 = vld [vmem:[%s15787_s9 + $0xa4] ss:$8 sps:$4 sm:$0xff]   ;;  %v12749_v49 = vld [vmem:[%s15787_s9 + $0xa0] ss:$8 sps:$4 sm:$0xff]  }
 0x1fb   :  { %v767_v53 = vadd.f32 %v766_v51, %v12499_v33  ;;  %v768_v54 = vpop.f32.mrb[14].mxu1  ;;  %1278 = vmatprep.subr.bf16.mxu0 %v12694_v38  ;;  %v12761_v51 = vld [vmem:[%s15787_s9 + $0xb0] ss:$8 sps:$4 sm:$0xff]  }
 0x1fc   :  { %v769_v56 = vadd.f32 %v768_v54, %v12496_v32  ;;  %v770_v57 = vpop.f32.mrb[15].mxu1  ;;  %v777_v59 = vmax.f32 %v765_v50, 0.0  ;;  %v12754_v50 = vld [vmem:[%s15787_s9 + $0xb4] ss:$8 sps:$4 sm:$0xff]   ;;  %v12773_v54 = vld [vmem:[%s15787_s9 + $0xc0] ss:$8 sps:$4 sm:$0xff]  }
 0x1fd   :  { %v771_v58 = vadd.f32 %v770_v57, %v12499_v33  ;;  %v778_v61 = vmax.f32 %v767_v53, 0.0  ;;  %1279 = vmatpush1.bf16.msra.mxu0 %v12701_v39  ;;  %v12766_v53 = vld [vmem:[%s15787_s9 + $0xc4] ss:$8 sps:$4 sm:$0xff]   ;;  %v12785_v57 = vld [vmem:[%s15787_s9 + $0xd0] ss:$8 sps:$4 sm:$0xff]  }
 0x1fe   :  { %v779_v60 = vmax.f32 %v769_v56, 0.0  ;;  %1280 = vmatprep.subr.bf16.mxu0 %v12706_v40  ;;  %v12778_v56 = vld [vmem:[%s15787_s9 + $0xd4] ss:$8 sps:$4 sm:$0xff]   ;;  %15839 = vst [vmem:[#allocation18_spill] sm:$0xff] %v12785_v57 }
 0x1ff   :  { %v780_v62 = vmax.f32 %v771_v58, 0.0  ;;  %v12793_v58 = vld [vmem:[%s15788_s6] ss:$0 sm:$0xff] }
 0x200   :  { %v783_v0 = vpack.c.bf16 %v779_v60, %v777_v59 }
 0x201   :  { %v12529_v2 = vpack.c.bf16 %v780_v62, %v778_v61  ;;  %1281 = vmatpush1.bf16.msra.mxu0 %v12713_v42 }
 0x202   :  { %1372 = vrot.lane.b32.xlu0 %v783_v0, %s12144_s4  ;;  %11271 = vmatmul.mubr.msk.bf16.vlgmr.msra.gmra.mrb[16].mxu1 %vm829_vm0, %v783_v0 }
 0x203   :  { %999 = vmatpush1.bf16.msra.mxu1 %v12522_v63  ;;  %1030 = vmatprep.mubr.bf16.mxu1 %v15792_v20 }
 0x204   :  { %1000 = vmatprep.subr.bf16.mxu1 %v12527_v1  ;;  %1282 = vmatprep.subr.bf16.mxu0 %v12718_v43 }
 0x205   :  { %1283 = vmatpush1.bf16.msra.mxu0 %v12725_v44 }
 0x206   :  { %2452 = vrot.lane.b32.xlu0 %v12505_v48, %s12144_s4  ;;  %1284 = vmatprep.subr.bf16.mxu0 %v12730_v45 }
 0x207   :  { %1001 = vmatpush1.bf16.msra.mxu1 %v12534_v3 }
 0x208   :  { %1002 = vmatprep.subr.bf16.mxu1 %v12541_v4 }
 0x209   :  { %1285 = vmatpush1.bf16.msra.mxu0 %v12737_v46 }
 0x20a   :  { %1286 = vmatprep.subr.bf16.mxu0 %v12742_v47 }
 0x20b   :  { %1003 = vmatpush1.bf16.msra.mxu1 %v12549_v5 }
 0x20c   :  { %1004 = vmatprep.subr.bf16.mxu1 %v12556_v6 }
 0x20d   :  { %1287 = vmatpush1.bf16.msra.mxu0 %v12749_v49 }
 0x20e   :  { %1288 = vmatprep.subr.bf16.mxu0 %v12754_v50 }
 0x20f   :  { %1005 = vmatpush1.bf16.msra.mxu1 %v12563_v7 }
 0x210   :  { %1006 = vmatprep.subr.bf16.mxu1 %v12568_v10 }
 0x211   :  { %1289 = vmatpush1.bf16.msra.mxu0 %v12761_v51 }
 0x212   :  { %1290 = vmatprep.subr.bf16.mxu0 %v12766_v53 }
 0x213   :  { %1007 = vmatpush1.bf16.msra.mxu1 %v12575_v11 }
 0x214   :  { %1008 = vmatprep.subr.bf16.mxu1 %v12580_v12 }
 0x215   :  { %1291 = vmatpush1.bf16.msra.mxu0 %v12773_v54 }
 0x216   :  { %1292 = vmatprep.subr.bf16.mxu0 %v12778_v56 }
 0x217   :  { %1009 = vmatpush1.bf16.msra.mxu1 %v12587_v13 }
 0x218   :  { %1010 = vmatprep.subr.bf16.mxu1 %v12595_v14 }
 0x219   :  { %1293 = vmatpush1.bf16.msra.mxu0 %v12785_v57  ;;  %v11611_v57 = vld [vmem:[%s15784_s5 + $0x8] sm:$0xff]  }
 0x21b   :  { %1011 = vmatpush1.bf16.msra.mxu1 %v12600_v15 }
 0x21c   :  { %1012 = vmatprep.subr.bf16.mxu1 %v12607_v16 }
 0x21f   :  { %1013 = vmatpush1.bf16.msra.mxu1 %v12612_v17 }
 0x220   :  { %11274 = vmatprep.subr.bf16.mxu1 %v12619_v18 }
 0x2d5   :  { %v11272_v59 = vpop.f32.mrb[16].mxu1 }
 0x2d6   :  { %v879_v60 = vadd.f32 %v11272_v59, %v12793_v58  ;;  %v870_v61 = vpop.f32.mrb[17].mxu1  ;;  %v15840_v59 = vmov 0  }
 0x2d7   :  { %v871_v62 = vadd.f32 %v12793_v58, %v870_v61  ;;  %v11273_v0 = vpop.f32.mrb[18].mxu1 }
 0x2d8   :  { %v882_v20 = vadd.f32 %v11273_v0, %v12793_v58  ;;  %v873_v26 = vpop.f32.mrb[19].mxu1  ;;  %v887_v24 = vmax.f32 %v879_v60, 0.0 }
 0x2d9   :  { %v874_v9 = vadd.f32 %v12793_v58, %v873_v26  ;;  %v885_v33 = vmax.f32 %v871_v62, 0.0  ;;  %v11612_v26 = vld [vmem:[%s15784_s5 + $0x10] sm:$0xff]  }
 0x2da   :  { %v888_v8 = vmax.f32 %v882_v20, 0.0  ;;  %v11613_v20 = vld [vmem:[%s15784_s5 + $0x18] sm:$0xff]  }
 0x2db   :  { %v886_v32 = vmax.f32 %v874_v9, 0.0  ;;  %v12837_v9 = vld [vmem:[%s15787_s9 + $0xe0] ss:$8 sps:$4 sm:$0xff]  }
 0x2dc   :  { %v890_v55 = vpack.c.bf16 %v888_v8, %v887_v24  ;;  %v1371_v8 = vpop.permute.xlu0 %1370  ;;  %15841 = vst [vmem:[#allocation19_spill] sm:$0xff] %v12837_v9  ;;  %v12844_v24 = vld [vmem:[%s15787_s9 + $0xf4] ss:$8 sps:$4 sm:$0xff]  }
 0x2dd   :  { %v889_v41 = vpack.c.bf16 %v886_v32, %v885_v33  ;;  %15842 = vst [vmem:[#allocation20_spill] sm:$0xff] %v12844_v24  ;;  %v12849_v32 = vld [vmem:[%s15787_s9 + $0xf0] ss:$8 sps:$4 sm:$0xff]   ;;  %v11662_v33 = vld [vmem:[%s15784_s5] sm:$0xff]  }
 0x2de   :  { %15843 = vst [vmem:[#allocation21_spill] sm:$0xff] %v12849_v32 }
 0x2df   :  { %1031 = vmatmul.mubr.bf16.vlgmr.msra.gmra.mrb[20].mxu1 %v889_v41 }
 0x2e0   :  { %11275 = vmatpush3.bf16.msra.mxu1 %v12619_v18  ;;  %1040 = vmatprep.mubr.bf16.mxu1 %v15840_v59  ;;  %v1373_v41 = vpop.permute.xlu0 %1372 }
 0x2e1   :  { %11276 = vmatprep.subr.bf16.mxu1 %v11611_v57 }
 0x2e4   :  { %11277 = vmatpush3.bf16.msra.mxu1 %v11611_v57 }
 0x2e5   :  { %11278 = vmatprep.subr.bf16.mxu1 %v11612_v26 }
 0x2e7   :  { %1041 = vmatmul.mubr.bf16.gmra.mrb[24].mxu1 %v890_v55  ;;  %v12832_v55 = vld [vmem:[%s15787_s9 + $0xe4] ss:$8 sps:$4 sm:$0xff]  }
 0x2e8   :  { %11279 = vmatpush3.bf16.msra.mxu1 %v11612_v26  ;;  %11282 = vmatprep.mubr.msk.bf16.mxu1 %vm829_vm0, %v1371_v8 }
 0x2e9   :  { %11280 = vmatprep.subr.bf16.mxu1 %v11613_v20  ;;  %1294 = vmatprep.subr.bf16.mxu0 %v12832_v55 }
 0x2ea   :  { %1295 = vmatpush1.bf16.msra.mxu0 %v12837_v9 }
 0x2eb   :  { %1296 = vmatprep.subr.bf16.mxu0 %v12844_v24 }
 0x2ec   :  { %11281 = vmatpush3.bf16.msra.mxu1 %v11613_v20 }
 0x2ed   :  { %1555 = vmatprep.subr.bf16.mxu1 %v12513_v52  ;;  %v42_v52 = vld [vmem:[%s15789_s8] sm:$0x3] }
 0x2ee   :  { %1297 = vmatpush1.bf16.msra.mxu0 %v12849_v32  ;;  %v12861_v18 = vrot.slane %v42_v52, %v12458_v23  ;;  %v12864_v57 = vrot.slane %v42_v52, %v12463_v25 }
 0x2ef   :  { %11283 = vmatmul.mubr.msk.bf16.vlgmr.msra.gmra.mrb[28].mxu1 %vm829_vm0, %v1373_v41  ;;  %1812 = vmatprep.subr.bf16.mxu0 %v12630_v21 }
 0x2f0   :  { %1556 = vmatpush1.bf16.msra.mxu1 %v12522_v63  ;;  %1587 = vmatprep.mubr.bf16.mxu1 %v15840_v59 }
 0x2f1   :  { %1557 = vmatprep.subr.bf16.mxu1 %v12527_v1 }
 0x2f4   :  { %1558 = vmatpush1.bf16.msra.mxu1 %v12534_v3 }
 0x2f5   :  { %1559 = vmatprep.subr.bf16.mxu1 %v12541_v4 }
 0x2f8   :  { %1560 = vmatpush1.bf16.msra.mxu1 %v12549_v5 }
 0x2f9   :  { %1561 = vmatprep.subr.bf16.mxu1 %v12556_v6 }
 0x2fc   :  { %1562 = vmatpush1.bf16.msra.mxu1 %v12563_v7 }
 0x2fd   :  { %1563 = vmatprep.subr.bf16.mxu1 %v12568_v10 }
 0x300   :  { %1564 = vmatpush1.bf16.msra.mxu1 %v12575_v11 }
 0x301   :  { %1565 = vmatprep.subr.bf16.mxu1 %v12580_v12 }
 0x304   :  { %1566 = vmatpush1.bf16.msra.mxu1 %v12587_v13 }
 0x305   :  { %1567 = vmatprep.subr.bf16.mxu1 %v12595_v14 }
 0x308   :  { %1568 = vmatpush1.bf16.msra.mxu1 %v12600_v15 }
 0x309   :  { %1569 = vmatprep.subr.bf16.mxu1 %v12607_v16 }
 0x30c   :  { %1570 = vmatpush1.bf16.msra.mxu1 %v12612_v17 }
 0x30d   :  { %11286 = vmatprep.subr.bf16.mxu1 %v11662_v33 }
 0x3b2   :  { %v1032_v60 = vpop.f32.mrb[20].mxu1 }
 0x3b3   :  { %v1033_v61 = vadd.f32 %v1032_v60, %v12861_v18  ;;  %v1034_v62 = vpop.f32.mrb[21].mxu1 }
 0x3b4   :  { %v1035_v0 = vadd.f32 %v1034_v62, %v12864_v57  ;;  %v1036_v26 = vpop.f32.mrb[22].mxu1 }
 0x3b5   :  { %v1037_v20 = vadd.f32 %v1036_v26, %v12861_v18  ;;  %v1038_v8 = vpop.f32.mrb[23].mxu1  ;;  %v1051_v21 = vmax.f32 %v1033_v61, 0.0 }
 0x3b6   :  { %v1039_v41 = vadd.f32 %v1038_v8, %v12864_v57  ;;  %v1052_v17 = vmax.f32 %v1035_v0, 0.0 }
 0x3b7   :  { %v1053_v32 = vmax.f32 %v1037_v20, 0.0 }
 0x3b8   :  { %v1054_v23 = vmax.f32 %v1039_v41, 0.0 }
 0x3b9   :  { %v1059_v24 = vpack.c.bf16 %v1053_v32, %v1051_v21 }
 0x3ba   :  { %v1060_v16 = vpack.c.bf16 %v1054_v23, %v1052_v17  ;;  %v1042_v52 = vpop.f32.mrb[24].mxu1 }
 0x3bb   :  { %v1043_v25 = vadd.f32 %v1042_v52, %v12861_v18  ;;  %v1044_v9 = vpop.f32.mrb[25].mxu1 }
 0x3bc   :  { %v1045_v60 = vadd.f32 %v1044_v9, %v12864_v57  ;;  %v1046_v15 = vpop.f32.mrb[26].mxu1  ;;  %1298 = vmatprep.mubr.bf16.mxu0 %v1060_v16 }
 0x3bd   :  { %v1047_v62 = vadd.f32 %v1046_v15, %v12861_v18  ;;  %v1048_v26 = vpop.f32.mrb[27].mxu1  ;;  %1299 = vmatmul.mubr.bf16.vlgmr.msra.gmra.mrb[8].mxu0 %v1059_v24  ;;  %v1055_v61 = vmax.f32 %v1043_v25, 0.0 }
 0x3be   :  { %v1049_v8 = vadd.f32 %v1048_v26, %v12864_v57  ;;  %1813 = vmatpush1.bf16.msra.mxu0 %v12625_v19  ;;  %v1056_v23 = vmax.f32 %v1045_v60, 0.0 }
 0x3bf   :  { %v1057_v0 = vmax.f32 %v1047_v62, 0.0  ;;  %1814 = vmatprep.subr.bf16.mxu0 %v12635_v22 }
 0x3c0   :  { %v1058_v17 = vmax.f32 %v1049_v8, 0.0 }
 0x3c1   :  { %v1061_v21 = vpack.c.bf16 %v1057_v0, %v1055_v61 }
 0x3c2   :  { %v1062_v32 = vpack.c.bf16 %v1058_v17, %v1056_v23  ;;  %v11284_v20 = vpop.f32.mrb[28].mxu1  ;;  %1815 = vmatpush1.bf16.msra.mxu0 %v12642_v27  ;;  %v11663_v23 = vld [vmem:[%s15784_s5 + $0x8] sm:$0xff]   ;;  %v11664_v17 = vld [vmem:[%s15784_s5 + $0x10] sm:$0xff]  }
 0x3c3   :  { %v1447_v16 = vadd.f32 %v11284_v20, %v12793_v58  ;;  %v1438_v15 = vpop.f32.mrb[29].mxu1  ;;  %1816 = vmatprep.subr.bf16.mxu0 %v12648_v28 }
 0x3c4   :  { %v1439_v9 = vadd.f32 %v12793_v58, %v1438_v15  ;;  %1308 = vmatprep.mubr.bf16.mxu0 %v1062_v32  ;;  %v11285_v24 = vpop.f32.mrb[30].mxu1 }
 0x3c5   :  { %v1450_v25 = vadd.f32 %v11285_v24, %v12793_v58  ;;  %1309 = vmatmul.mubr.bf16.gmra.mrb[12].mxu0 %v1061_v21  ;;  %v1441_v41 = vpop.f32.mrb[31].mxu1  ;;  %v1455_v60 = vmax.f32 %v1447_v16, 0.0  ;;  %v11665_v21 = vld [vmem:[%s15784_s5 + $0x18] sm:$0xff]  }
 0x3c6   :  { %v1442_v52 = vadd.f32 %v12793_v58, %v1441_v41  ;;  %1817 = vmatpush1.bf16.msra.mxu0 %v12654_v29  ;;  %v1453_v26 = vmax.f32 %v1439_v9, 0.0 }
 0x3c7   :  { %v1456_v62 = vmax.f32 %v1450_v25, 0.0  ;;  %1818 = vmatprep.subr.bf16.mxu0 %v12660_v30 }
 0x3c8   :  { %v1454_v8 = vmax.f32 %v1442_v52, 0.0 }
 0x3c9   :  { %v1458_v61 = vpack.c.bf16 %v1456_v62, %v1455_v60  ;;  %v15855_v62 = vmov 0 }
 0x3ca   :  { %v1457_v0 = vpack.c.bf16 %v1454_v8, %v1453_v26  ;;  %1819 = vmatpush1.bf16.msra.mxu0 %v12666_v31  ;;  %v15856_v62 = vsel %vm12956_vm3, 4294967295, %v15855_v62 }
 0x3cb   :  { %1820 = vmatprep.subr.bf16.mxu0 %v12672_v34 }
 0x3cc   :  { %1588 = vmatmul.mubr.bf16.vlgmr.msra.gmra.mrb[32].mxu1 %v1457_v0 }
 0x3cd   :  { %11287 = vmatpush3.bf16.msra.mxu1 %v11662_v33  ;;  %1597 = vmatprep.mubr.bf16.mxu1 %v15840_v59  ;;  %v12138_v33 = vld [vmem:[%s15786_s7 + $0x4] ss:$8 sps:$4 sm:$0xff]  }
 0x3ce   :  { %11288 = vmatprep.subr.bf16.mxu1 %v11663_v23  ;;  %1821 = vmatpush1.bf16.msra.mxu0 %v12678_v35 }
 0x3cf   :  { %1822 = vmatprep.subr.bf16.mxu0 %v12684_v36 }
 0x3d1   :  { %11289 = vmatpush3.bf16.msra.mxu1 %v11663_v23 }
 0x3d2   :  { %11290 = vmatprep.subr.bf16.mxu1 %v11664_v17  ;;  %1823 = vmatpush1.bf16.msra.mxu0 %v12689_v37 }
 0x3d3   :  { %1824 = vmatprep.subr.bf16.mxu0 %v12694_v38 }
 0x3d4   :  { %1598 = vmatmul.mubr.bf16.gmra.mrb[36].mxu1 %v1458_v61 }
 0x3d5   :  { %11291 = vmatpush3.bf16.msra.mxu1 %v11664_v17  ;;  %11294 = vmatprep.mubr.msk.bf16.mxu1 %vm829_vm0, %v12505_v48  ;;  %v15844_v48 = vld [vmem:[#allocation18_spill] sm:$0xff] }
 0x3d6   :  { %11292 = vmatprep.subr.bf16.mxu1 %v11665_v21  ;;  %1825 = vmatpush1.bf16.msra.mxu0 %v12701_v39 }
 0x3d7   :  { %1826 = vmatprep.subr.bf16.mxu0 %v12706_v40 }
 0x3d9   :  { %11293 = vmatpush3.bf16.msra.mxu1 %v11665_v21 }
 0x3da   :  { %1827 = vmatpush1.bf16.msra.mxu0 %v12713_v42  ;;  %2093 = vmatprep.subr.bf16.mxu1 %v12138_v33 }
 0x3db   :  { %1828 = vmatprep.subr.bf16.mxu0 %v12718_v43 }
 0x3dc   :  { %11295 = vmatmul.mubr.msk.bf16.vlgmr.msra.gmra.mrb[40].mxu1 %vm829_vm0, %v12529_v2 }
 0x3dd   :  { %2094 = vmatpush1.bf16.msra.mxu1 %v12522_v63  ;;  %2125 = vmatprep.mubr.bf16.mxu1 %v15840_v59  ;;  %v15845_v63 = vld [vmem:[#allocation14_spill] sm:$0xff] }
 0x3de   :  { %1829 = vmatpush1.bf16.msra.mxu0 %v12725_v44  ;;  %2095 = vmatprep.subr.bf16.mxu1 %v12527_v1  ;;  %v15846_v1 = vld [vmem:[#allocation19_spill] sm:$0xff]  ;;  %15857 = vst [vmem:[#allocation14_spill] sm:$0xff] %v15856_v62 }
 0x3df   :  { %1830 = vmatprep.subr.bf16.mxu0 %v12730_v45 }
 0x3e1   :  { %2096 = vmatpush1.bf16.msra.mxu1 %v12534_v3  ;;  %v15847_v3 = vld [vmem:[#allocation15_spill] sm:$0xff] }
 0x3e2   :  { %1831 = vmatpush1.bf16.msra.mxu0 %v12737_v46  ;;  %2097 = vmatprep.subr.bf16.mxu1 %v12541_v4  ;;  %v15848_v4 = vld [vmem:[#allocation20_spill] sm:$0xff] }
 0x3e3   :  { %1832 = vmatprep.subr.bf16.mxu0 %v12742_v47 }
 0x3e5   :  { %2098 = vmatpush1.bf16.msra.mxu1 %v12549_v5  ;;  %v15849_v5 = vld [vmem:[#allocation16_spill] sm:$0xff] }
 0x3e6   :  { %1833 = vmatpush1.bf16.msra.mxu0 %v12749_v49  ;;  %2099 = vmatprep.subr.bf16.mxu1 %v12556_v6  ;;  %v15850_v6 = vld [vmem:[#allocation21_spill] sm:$0xff] }
 0x3e7   :  { %1834 = vmatprep.subr.bf16.mxu0 %v12754_v50 }
 0x3e9   :  { %2100 = vmatpush1.bf16.msra.mxu1 %v12563_v7  ;;  %v15851_v7 = vld [vmem:[#allocation17_spill] sm:$0xff] }
 0x3ea   :  { %1835 = vmatpush1.bf16.msra.mxu0 %v12761_v51  ;;  %2101 = vmatprep.subr.bf16.mxu1 %v12568_v10  ;;  %v43_v10 = vld [vmem:[%s15790_s10] sm:$0x3] }
 0x3eb   :  { %1836 = vmatprep.subr.bf16.mxu0 %v12766_v53 }
 0x3ed   :  { %2102 = vmatpush1.bf16.msra.mxu1 %v12575_v11  ;;  %v15852_v11 = vld [vmem:[#allocation4_spill] sm:$0xff] }
 0x3ee   :  { %1837 = vmatpush1.bf16.msra.mxu0 %v12773_v54  ;;  %2103 = vmatprep.subr.bf16.mxu1 %v12580_v12  ;;  %v12947_v12 = vrot.slane %v43_v10, %v15852_v11 }
 0x3ef   :  { %1838 = vmatprep.subr.bf16.mxu0 %v12778_v56 }
 0x3f1   :  { %2104 = vmatpush1.bf16.msra.mxu1 %v12587_v13  ;;  %v15853_v13 = vld [vmem:[#allocation5_spill] sm:$0xff] }
 0x3f2   :  { %1839 = vmatpush1.bf16.msra.mxu0 %v15844_v48  ;;  %2105 = vmatprep.subr.bf16.mxu1 %v12595_v14  ;;  %v12950_v14 = vrot.slane %v43_v10, %v15853_v13 }
 0x3f3   :  { %1840 = vmatprep.subr.bf16.mxu0 %v12832_v55 }
 0x3f4   :  { %15854 = vst [vmem:[#allocation18_spill] sm:$0xff] %v12950_v14 }
 0x3f5   :  { %2106 = vmatpush1.bf16.msra.mxu1 %v15845_v63 }
 0x3f6   :  { %1841 = vmatpush1.bf16.msra.mxu0 %v15846_v1  ;;  %2107 = vmatprep.subr.bf16.mxu1 %v15847_v3 }
 0x3f7   :  { %1842 = vmatprep.subr.bf16.mxu0 %v15848_v4 }
 0x3f9   :  { %2108 = vmatpush1.bf16.msra.mxu1 %v15849_v5 }
 0x3fa   :  { %1843 = vmatpush1.bf16.msra.mxu0 %v15850_v6  ;;  %2350 = vmatprep.subr.bf16.mxu1 %v15851_v7 }
 0x490   :  { %v1300_v32 = vpop.f32.mrb[8].mxu0 }
 0x491   :  { %v1301_v20 = vadd.f32 %v1300_v32, %v12947_v12  ;;  %v1302_v16 = vpop.f32.mrb[9].mxu0 }
 0x492   :  { %v1303_v15 = vadd.f32 %v1302_v16, %v12950_v14  ;;  %v1304_v9 = vpop.f32.mrb[10].mxu0 }
 0x493   :  { %v1319_v24 = vmax.f32 %v1301_v20, 0.0  ;;  %v1305_v25 = vadd.f32 %v1304_v9, %v12947_v12  ;;  %v1306_v41 = vpop.f32.mrb[11].mxu0 }
 0x494   :  { %v1320_v52 = vmax.f32 %v1303_v15, 0.0  ;;  %v1307_v60 = vadd.f32 %v1306_v41, %v12950_v14 }
 0x495   :  { %v1321_v26 = vmax.f32 %v1305_v25, 0.0 }
 0x496   :  { %v11102_v8 = vpack.c.bf16 %v1320_v52, %v1319_v24  ;;  %v1322_v61 = vmax.f32 %v1307_v60, 0.0 }
 0x498   :  { %1354 = vst.msk [vmem:[%s15791_s11] sm:$0xff] %vm12956_vm3, %v11102_v8  ;;  %v11103_v0 = vpack.c.bf16 %v1322_v61, %v1321_v26  ;;  %v1310_v23 = vpop.f32.mrb[12].mxu0 }
 0x499   :  { %v1311_v17 = vadd.f32 %v1310_v23, %v12947_v12  ;;  %v1312_v21 = vpop.f32.mrb[13].mxu0 }
 0x49a   :  { %1355 = vst.msk [vmem:[%s15791_s11 + $0x8] sm:$0xff] %vm12956_vm3, %v11103_v0  ;;  %v1313_v33 = vadd.f32 %v1312_v21, %v12950_v14  ;;  %v1314_v63 = vpop.f32.mrb[14].mxu0 }
 0x49b   :  { %v1323_v3 = vmax.f32 %v1311_v17, 0.0  ;;  %v1315_v5 = vadd.f32 %v1314_v63, %v12947_v12  ;;  %v1316_v7 = vpop.f32.mrb[15].mxu0 }
 0x49c   :  { %v1324_v10 = vmax.f32 %v1313_v33, 0.0  ;;  %v1317_v11 = vadd.f32 %v1316_v7, %v12950_v14 }
 0x49d   :  { %v1325_v13 = vmax.f32 %v1315_v5, 0.0 }
 0x49e   :  { %v11104_v32 = vpack.c.bf16 %v1324_v10, %v1323_v3  ;;  %v1326_v20 = vmax.f32 %v1317_v11, 0.0 }
 0x49f   :  { %v1589_v16 = vpop.f32.mrb[32].mxu1 }
 0x4a0   :  { %1356 = vst.msk [vmem:[%s15791_s11 + $0x10] sm:$0xff] %vm12956_vm3, %v11104_v32  ;;  %v11105_v15 = vpack.c.bf16 %v1326_v20, %v1325_v13  ;;  %v1590_v9 = vadd.f32 %v1589_v16, %v12861_v18  ;;  %v1591_v24 = vpop.f32.mrb[33].mxu1 }
 0x4a1   :  { %v1592_v25 = vadd.f32 %v1591_v24, %v12864_v57  ;;  %v1593_v41 = vpop.f32.mrb[34].mxu1 }
 0x4a2   :  { %1357 = vst.msk [vmem:[%s15791_s11 + $0x18] sm:$0xff] %vm12956_vm3, %v11105_v15  ;;  %v1594_v52 = vadd.f32 %v1593_v41, %v12861_v18  ;;  %v1595_v60 = vpop.f32.mrb[35].mxu1  ;;  %v1608_v8 = vmax.f32 %v1590_v9, 0.0 }
 0x4a3   :  { %v1596_v26 = vadd.f32 %v1595_v60, %v12864_v57  ;;  %v1609_v0 = vmax.f32 %v1592_v25, 0.0 }
 0x4a4   :  { %v1610_v61 = vmax.f32 %v1594_v52, 0.0 }
 0x4a5   :  { %v1611_v23 = vmax.f32 %v1596_v26, 0.0 }
 0x4a6   :  { %v1616_v17 = vpack.c.bf16 %v1610_v61, %v1608_v8  ;;  %v2453_v8 = vpop.permute.xlu0 %2452 }
 0x4a7   :  { %v1617_v21 = vpack.c.bf16 %v1611_v23, %v1609_v0  ;;  %v1599_v33 = vpop.f32.mrb[36].mxu1 }
 0x4a8   :  { %v1600_v63 = vadd.f32 %v1599_v33, %v12861_v18  ;;  %v1601_v3 = vpop.f32.mrb[37].mxu1 }
 0x4a9   :  { %v1602_v5 = vadd.f32 %v1601_v3, %v12864_v57  ;;  %v1603_v7 = vpop.f32.mrb[38].mxu1  ;;  %1844 = vmatprep.mubr.bf16.mxu0 %v1617_v21 }
 0x4aa   :  { %v1604_v10 = vadd.f32 %v1603_v7, %v12861_v18  ;;  %v1605_v11 = vpop.f32.mrb[39].mxu1  ;;  %1845 = vmatmul.mubr.bf16.vlgmr.msra.gmra.mrb[16].mxu0 %v1616_v17  ;;  %v1612_v32 = vmax.f32 %v1600_v63, 0.0 }
 0x4ab   :  { %v1606_v13 = vadd.f32 %v1605_v11, %v12864_v57  ;;  %v1613_v16 = vmax.f32 %v1602_v5, 0.0 }
 0x4ac   :  { %v1614_v20 = vmax.f32 %v1604_v10, 0.0 }
 0x4ad   :  { %v1615_v15 = vmax.f32 %v1606_v13, 0.0 }
 0x4ae   :  { %v1618_v9 = vpack.c.bf16 %v1614_v20, %v1612_v32 }
 0x4af   :  { %v1619_v24 = vpack.c.bf16 %v1615_v15, %v1613_v16  ;;  %v11296_v25 = vpop.f32.mrb[40].mxu1 }
 0x4b0   :  { %v1985_v41 = vadd.f32 %v11296_v25, %v12793_v58  ;;  %v1976_v52 = vpop.f32.mrb[41].mxu1 }
 0x4b1   :  { %v1977_v60 = vadd.f32 %v12793_v58, %v1976_v52  ;;  %1854 = vmatprep.mubr.bf16.mxu0 %v1619_v24  ;;  %v11297_v26 = vpop.f32.mrb[42].mxu1  ;;  %v11666_v52 = vld [vmem:[%s15782_s3] ss:$8 sps:$4 sm:$0xff]  }
 0x4b2   :  { %v1988_v61 = vadd.f32 %v11297_v26, %v12793_v58  ;;  %1855 = vmatmul.mubr.bf16.gmra.mrb[20].mxu0 %v1618_v9  ;;  %v1979_v0 = vpop.f32.mrb[43].mxu1  ;;  %v1993_v17 = vmax.f32 %v1985_v41, 0.0 }
 0x4b3   :  { %v1980_v23 = vadd.f32 %v12793_v58, %v1979_v0  ;;  %11306 = vmatprep.mubr.msk.bf16.mxu0 %vm829_vm0, %v2453_v8  ;;  %v1991_v33 = vmax.f32 %v1977_v60, 0.0  ;;  %v11671_v8 = vld [vmem:[%s15782_s3 + $0x14] ss:$8 sps:$4 sm:$0xff]  }
 0x4b4   :  { %v1994_v21 = vmax.f32 %v1988_v61, 0.0 }
 0x4b5   :  { %v1992_v63 = vmax.f32 %v1980_v23, 0.0 }
 0x4b6   :  { %v1996_v3 = vpack.c.bf16 %v1994_v21, %v1993_v17 }
 0x4b7   :  { %v1995_v5 = vpack.c.bf16 %v1992_v63, %v1991_v33  ;;  %v11669_v33 = vld [vmem:[%s15782_s3 + $0x10] ss:$8 sps:$4 sm:$0xff]  }
 0x4b9   :  { %2126 = vmatmul.mubr.bf16.vlgmr.msra.gmra.mrb[44].mxu1 %v1995_v5  ;;  %v11674_v5 = vld [vmem:[%s15782_s3 + $0x24] ss:$8 sps:$4 sm:$0xff]  }
 0x4ba   :  { %2135 = vmatprep.mubr.bf16.mxu1 %v15840_v59  ;;  %2351 = vmatpush1.bf16.msra.mxu1 %v12625_v19  ;;  %v11668_v19 = vld [vmem:[%s15782_s3 + $0x4] ss:$8 sps:$4 sm:$0xff]  }
 0x4bb   :  { %2352 = vmatprep.subr.bf16.mxu1 %v12635_v22 }
 0x4be   :  { %2353 = vmatpush1.bf16.msra.mxu1 %v12642_v27 }
 0x4bf   :  { %2354 = vmatprep.subr.bf16.mxu1 %v12648_v28 }
 0x4c1   :  { %2136 = vmatmul.mubr.bf16.gmra.mrb[48].mxu1 %v1996_v3 }
 0x4c2   :  { %2355 = vmatpush1.bf16.msra.mxu1 %v12654_v29 }
 0x4c3   :  { %2356 = vmatprep.subr.bf16.mxu1 %v12660_v30 }
 0x4c6   :  { %2357 = vmatpush1.bf16.msra.mxu1 %v12666_v31 }
 0x4c7   :  { %2358 = vmatprep.subr.bf16.mxu1 %v12672_v34 }
 0x4ca   :  { %2359 = vmatpush1.bf16.msra.mxu1 %v12678_v35 }
 0x4cb   :  { %2360 = vmatprep.subr.bf16.mxu1 %v12684_v36 }
 0x4ce   :  { %2361 = vmatpush1.bf16.msra.mxu1 %v12689_v37 }
 0x4cf   :  { %2362 = vmatprep.subr.bf16.mxu1 %v12694_v38 }
 0x4d2   :  { %2363 = vmatpush1.bf16.msra.mxu1 %v12701_v39 }
 0x4d3   :  { %2364 = vmatprep.subr.bf16.mxu1 %v12706_v40 }
 0x4d6   :  { %2365 = vmatpush1.bf16.msra.mxu1 %v12713_v42 }
 0x4d7   :  { %2366 = vmatprep.subr.bf16.mxu1 %v12718_v43 }
 0x4da   :  { %2367 = vmatpush1.bf16.msra.mxu1 %v12725_v44 }
 0x4db   :  { %2368 = vmatprep.subr.bf16.mxu1 %v12730_v45 }
 0x4de   :  { %2369 = vmatpush1.bf16.msra.mxu1 %v12737_v46 }
 0x4df   :  { %2370 = vmatprep.subr.bf16.mxu1 %v12742_v47 }
 0x4e2   :  { %2371 = vmatpush1.bf16.msra.mxu1 %v12749_v49 }
 0x4e3   :  { %2372 = vmatprep.subr.bf16.mxu1 %v12754_v50 }
 0x4e6   :  { %2373 = vmatpush1.bf16.msra.mxu1 %v12761_v51 }
 0x4e7   :  { %2374 = vmatprep.subr.bf16.mxu1 %v12766_v53 }
 0x4ea   :  { %2375 = vmatpush1.bf16.msra.mxu1 %v12773_v54 }
 0x4eb   :  { %2376 = vmatprep.subr.bf16.mxu1 %v12778_v56 }
 0x4ee   :  { %2377 = vmatpush1.bf16.msra.mxu1 %v15844_v48 }
 0x4ef   :  { %2378 = vmatprep.subr.bf16.mxu1 %v12832_v55 }
 0x4f2   :  { %2379 = vmatpush1.bf16.msra.mxu1 %v15846_v1 }
 0x4f3   :  { %2380 = vmatprep.subr.bf16.mxu1 %v15848_v4 }
 0x4f6   :  { %2381 = vmatpush1.bf16.msra.mxu1 %v15850_v6 }
 0x4f7   :  { %3082 = vmatprep.subr.bf16.mxu1 %v11668_v19 }
 0x57d   :  { %v1846_v22 = vpop.f32.mrb[16].mxu0 }
 0x57e   :  { %v1847_v27 = vadd.f32 %v1846_v22, %v12947_v12  ;;  %v1848_v28 = vpop.f32.mrb[17].mxu0 }
 0x57f   :  { %v1849_v29 = vadd.f32 %v1848_v28, %v12950_v14  ;;  %v1850_v30 = vpop.f32.mrb[18].mxu0 }
 0x580   :  { %v1865_v31 = vmax.f32 %v1847_v27, 0.0  ;;  %v1851_v34 = vadd.f32 %v1850_v30, %v12947_v12  ;;  %v1852_v35 = vpop.f32.mrb[19].mxu0  ;;  %v11677_v30 = vld [vmem:[%s15782_s3 + $0x34] ss:$8 sps:$4 sm:$0xff]  }
 0x581   :  { %v1866_v36 = vmax.f32 %v1849_v29, 0.0  ;;  %v1853_v37 = vadd.f32 %v1852_v35, %v12950_v14  ;;  %v11672_v29 = vld [vmem:[%s15782_s3 + $0x20] ss:$8 sps:$4 sm:$0xff]  }
 0x582   :  { %v1867_v38 = vmax.f32 %v1851_v34, 0.0  ;;  %v11680_v34 = vld [vmem:[%s15782_s3 + $0x44] ss:$8 sps:$4 sm:$0xff]   ;;  %v11678_v35 = vld [vmem:[%s15782_s3 + $0x40] ss:$8 sps:$4 sm:$0xff]  }
 0x583   :  { %v11106_v39 = vpack.c.bf16 %v1866_v36, %v1865_v31  ;;  %v1868_v40 = vmax.f32 %v1853_v37, 0.0  ;;  %v11675_v31 = vld [vmem:[%s15782_s3 + $0x30] ss:$8 sps:$4 sm:$0xff]   ;;  %v11683_v36 = vld [vmem:[%s15782_s3 + $0x54] ss:$8 sps:$4 sm:$0xff]  }
 0x584   :  { %v11681_v37 = vld [vmem:[%s15782_s3 + $0x50] ss:$8 sps:$4 sm:$0xff]  }
 0x585   :  { %10182 = vst.msk [vmem:[%s15791_s11 + $0x20] sm:$0xff] %vm12956_vm3, %v11106_v39  ;;  %v11107_v42 = vpack.c.bf16 %v1868_v40, %v1867_v38  ;;  %v1856_v43 = vpop.f32.mrb[20].mxu0  ;;  %v11686_v38 = vld [vmem:[%s15782_s3 + $0x64] ss:$8 sps:$4 sm:$0xff]   ;;  %v11684_v39 = vld [vmem:[%s15782_s3 + $0x60] ss:$8 sps:$4 sm:$0xff]  }
 0x586   :  { %v1857_v44 = vadd.f32 %v1856_v43, %v12947_v12  ;;  %v1858_v45 = vpop.f32.mrb[21].mxu0  ;;  %v11689_v40 = vld [vmem:[%s15782_s3 + $0x74] ss:$8 sps:$4 sm:$0xff]  }
 0x587   :  { %10183 = vst.msk [vmem:[%s15791_s11 + $0x28] sm:$0xff] %vm12956_vm3, %v11107_v42  ;;  %v1859_v46 = vadd.f32 %v1858_v45, %v12950_v14  ;;  %v1860_v47 = vpop.f32.mrb[22].mxu0  ;;  %v11687_v42 = vld [vmem:[%s15782_s3 + $0x70] ss:$8 sps:$4 sm:$0xff]   ;;  %v11690_v45 = vld [vmem:[%s15784_s5] sm:$0xff]  }
 0x588   :  { %v1869_v49 = vmax.f32 %v1857_v44, 0.0  ;;  %v1861_v50 = vadd.f32 %v1860_v47, %v12947_v12  ;;  %v1862_v51 = vpop.f32.mrb[23].mxu0  ;;  %v15858_v43 = vld [vmem:[#allocation6_spill] sm:$0xff]  ;;  %v15859_v44 = vld [vmem:[#allocation7_spill] sm:$0xff] }
 0x589   :  { %v1870_v53 = vmax.f32 %v1859_v46, 0.0  ;;  %v1863_v54 = vadd.f32 %v1862_v51, %v12950_v14  ;;  %v11691_v46 = vld [vmem:[%s15784_s5 + $0x8] sm:$0xff]   ;;  %v11692_v47 = vld [vmem:[%s15784_s5 + $0x10] sm:$0xff]  }
 0x58a   :  { %v1871_v56 = vmax.f32 %v1861_v50, 0.0  ;;  %v11694_v50 = vld [vmem:[%s15784_s5] sm:$0xff]  }
 0x58b   :  { %v11108_v58 = vpack.c.bf16 %v1870_v53, %v1869_v49  ;;  %v1872_v55 = vmax.f32 %v1863_v54, 0.0  ;;  %v11693_v49 = vld [vmem:[%s15784_s5 + $0x18] sm:$0xff]   ;;  %11298 = vmatprep.subr.bf16.mxu0 %v11694_v50 }
 0x58c   :  { %v2127_v48 = vpop.f32.mrb[44].mxu1  ;;  %11299 = vmatpush3.bf16.msra.mxu0 %v11694_v50 }
 0x58d   :  { %10184 = vst.msk [vmem:[%s15791_s11 + $0x30] sm:$0xff] %vm12956_vm3, %v11108_v58  ;;  %v11109_v1 = vpack.c.bf16 %v1872_v55, %v1871_v56  ;;  %v2128_v4 = vadd.f32 %v2127_v48, %v12861_v18  ;;  %v2129_v6 = vpop.f32.mrb[45].mxu1 }
 0x58e   :  { %v2130_v7 = vadd.f32 %v2129_v6, %v12864_v57  ;;  %v2131_v10 = vpop.f32.mrb[46].mxu1 }
 0x58f   :  { %10185 = vst.msk [vmem:[%s15791_s11 + $0x38] sm:$0xff] %vm12956_vm3, %v11109_v1  ;;  %v2132_v11 = vadd.f32 %v2131_v10, %v12861_v18  ;;  %v2133_v13 = vpop.f32.mrb[47].mxu1  ;;  %v2146_v20 = vmax.f32 %v2128_v4, 0.0 }
 0x590   :  { %v2134_v32 = vadd.f32 %v2133_v13, %v12864_v57  ;;  %v2147_v15 = vmax.f32 %v2130_v7, 0.0 }
 0x591   :  { %v2148_v16 = vmax.f32 %v2132_v11, 0.0 }
 0x592   :  { %v2149_v9 = vmax.f32 %v2134_v32, 0.0 }
 0x593   :  { %v2154_v24 = vpack.c.bf16 %v2148_v16, %v2146_v20 }
 0x594   :  { %v2155_v25 = vpack.c.bf16 %v2149_v9, %v2147_v15  ;;  %v2137_v41 = vpop.f32.mrb[48].mxu1 }
 0x595   :  { %v2138_v60 = vadd.f32 %v2137_v41, %v12861_v18  ;;  %v2139_v26 = vpop.f32.mrb[49].mxu1 }
 0x596   :  { %v2140_v61 = vadd.f32 %v2139_v26, %v12864_v57  ;;  %v2141_v0 = vpop.f32.mrb[50].mxu1  ;;  %2382 = vmatprep.mubr.bf16.mxu1 %v2155_v25 }
 0x597   :  { %v2142_v23 = vadd.f32 %v2141_v0, %v12861_v18  ;;  %v2143_v17 = vpop.f32.mrb[51].mxu1  ;;  %2383 = vmatmul.mubr.bf16.vlgmr.msra.gmra.mrb[52].mxu1 %v2154_v24  ;;  %v2150_v63 = vmax.f32 %v2138_v60, 0.0 }
 0x598   :  { %v2144_v21 = vadd.f32 %v2143_v17, %v12864_v57  ;;  %3083 = vmatpush1.bf16.msra.mxu1 %v11666_v52  ;;  %v2151_v19 = vmax.f32 %v2140_v61, 0.0  ;;  %v11696_v17 = vld [vmem:[%s15784_s5 + $0x10] sm:$0xff]  }
 0x599   :  { %v2152_v3 = vmax.f32 %v2142_v23, 0.0  ;;  %3084 = vmatprep.subr.bf16.mxu1 %v11671_v8  ;;  %v11695_v23 = vld [vmem:[%s15784_s5 + $0x8] sm:$0xff]  }
 0x59a   :  { %v2153_v22 = vmax.f32 %v2144_v21, 0.0  ;;  %11300 = vmatprep.subr.bf16.mxu0 %v11695_v23 }
 0x59b   :  { %v2156_v27 = vpack.c.bf16 %v2152_v3, %v2150_v63  ;;  %11301 = vmatpush3.bf16.msra.mxu0 %v11695_v23 }
 0x59c   :  { %v2157_v28 = vpack.c.bf16 %v2153_v22, %v2151_v19  ;;  %3085 = vmatpush1.bf16.msra.mxu1 %v11669_v33  ;;  %11302 = vmatprep.subr.bf16.mxu0 %v11696_v17  ;;  %v15860_v33 = vld [vmem:[#allocation12_spill] sm:$0xff] }
 0x59d   :  { %3086 = vmatprep.subr.bf16.mxu1 %v11674_v5  ;;  %v15861_v5 = vld [vmem:[#allocation13_spill] sm:$0xff] }
 0x59e   :  { %2392 = vmatprep.mubr.bf16.mxu1 %v2157_v28 }
 0x59f   :  { %2393 = vmatmul.mubr.bf16.gmra.mrb[56].mxu1 %v2156_v27  ;;  %11303 = vmatpush3.bf16.msra.mxu0 %v11696_v17  ;;  %v11697_v27 = vld [vmem:[%s15784_s5 + $0x18] sm:$0xff]  }
 0x5a0   :  { %3087 = vmatpush1.bf16.msra.mxu1 %v11672_v29  ;;  %3114 = vmatprep.mubr.bf16.mxu1 %v15840_v59 }
 0x5a1   :  { %3088 = vmatprep.subr.bf16.mxu1 %v11677_v30  ;;  %11304 = vmatprep.subr.bf16.mxu0 %v11697_v27 }
 0x5a3   :  { %11305 = vmatpush3.bf16.msra.mxu0 %v11697_v27 }
 0x5a4   :  { %3089 = vmatpush1.bf16.msra.mxu1 %v11675_v31 }
 0x5a5   :  { %3090 = vmatprep.subr.bf16.mxu1 %v11680_v34 }
 0x5a8   :  { %3091 = vmatpush1.bf16.msra.mxu1 %v11678_v35 }
 0x5a9   :  { %3092 = vmatprep.subr.bf16.mxu1 %v11683_v36 }
 0x5ac   :  { %3093 = vmatpush1.bf16.msra.mxu1 %v11681_v37 }
 0x5ad   :  { %3094 = vmatprep.subr.bf16.mxu1 %v11686_v38 }
 0x5b0   :  { %3095 = vmatpush1.bf16.msra.mxu1 %v11684_v39 }
 0x5b1   :  { %3096 = vmatprep.subr.bf16.mxu1 %v11689_v40  ;;  %v13178_v40 = vld [vmem:[%s15786_s7 + $0x4] ss:$8 sps:$4 sm:$0xff]  }
 0x5b2   :  { %2637 = vmatprep.subr.bf16.mxu0 %v13178_v40 }
 0x5b4   :  { %3097 = vmatpush1.bf16.msra.mxu1 %v11687_v42 }
 0x5b5   :  { %11310 = vmatprep.subr.bf16.mxu1 %v11690_v45 }
 0x5b7   :  { %3115 = vmatmul.mubr.bf16.vlgmr.msra.gmra.mrb[60].mxu1 %v15858_v43 }
 0x5b8   :  { %3124 = vmatprep.mubr.bf16.mxu1 %v15840_v59  ;;  %11311 = vmatpush3.bf16.msra.mxu1 %v11690_v45 }
 0x5b9   :  { %11312 = vmatprep.subr.bf16.mxu1 %v11691_v46 }
 0x5bc   :  { %11313 = vmatpush3.bf16.msra.mxu1 %v11691_v46 }
 0x5bd   :  { %11314 = vmatprep.subr.bf16.mxu1 %v11692_v47 }
 0x5bf   :  { %3125 = vmatmul.mubr.bf16.gmra.mrb[64].mxu1 %v15859_v44 }
 0x5c0   :  { %11315 = vmatpush3.bf16.msra.mxu1 %v11692_v47 }
 0x5c1   :  { %11316 = vmatprep.subr.bf16.mxu1 %v11693_v49 }
 0x5c4   :  { %11317 = vmatpush3.bf16.msra.mxu1 %v11693_v49 }
 0x5c5   :  { %3342 = vmatprep.subr.bf16.mxu1 %v13178_v40 }
 0x66a   :  { %v2384_v51 = vpop.f32.mrb[52].mxu1 }
 0x66b   :  { %v2385_v53 = vadd.f32 %v2384_v51, %v12947_v12  ;;  %v2386_v54 = vpop.f32.mrb[53].mxu1 }
 0x66c   :  { %v2387_v56 = vadd.f32 %v2386_v54, %v12950_v14  ;;  %v2388_v58 = vpop.f32.mrb[54].mxu1 }
 0x66d   :  { %v2403_v55 = vmax.f32 %v2385_v53, 0.0  ;;  %v2389_v48 = vadd.f32 %v2388_v58, %v12947_v12  ;;  %v2390_v1 = vpop.f32.mrb[55].mxu1 }
 0x66e   :  { %v2404_v4 = vmax.f32 %v2387_v56, 0.0  ;;  %v2391_v6 = vadd.f32 %v2390_v1, %v12950_v14  ;;  %v13191_v56 = vld [vmem:[%s15786_s7] ss:$8 sps:$4 sm:$0xff]   ;;  %v13206_v1 = vld [vmem:[%s15786_s7 + $0x10] ss:$8 sps:$4 sm:$0xff]  }
 0x66f   :  { %v2405_v7 = vmax.f32 %v2389_v48, 0.0 }
 0x670   :  { %v11110_v10 = vpack.c.bf16 %v2404_v4, %v2403_v55  ;;  %v2406_v11 = vmax.f32 %v2391_v6, 0.0  ;;  %v13196_v55 = vld [vmem:[%s15786_s7 + $0x14] ss:$8 sps:$4 sm:$0xff]   ;;  %v13213_v4 = vld [vmem:[%s15786_s7 + $0x24] ss:$8 sps:$4 sm:$0xff]  }
 0x671   :  { %v13221_v6 = vld [vmem:[%s15786_s7 + $0x20] ss:$8 sps:$4 sm:$0xff]  }
 0x672   :  { %10244 = vst.msk [vmem:[%s15791_s11 + $0x40] sm:$0xff] %vm12956_vm3, %v11110_v10  ;;  %v11111_v13 = vpack.c.bf16 %v2406_v11, %v2405_v7  ;;  %v2394_v32 = vpop.f32.mrb[56].mxu1  ;;  %v13227_v7 = vld [vmem:[%s15786_s7 + $0x34] ss:$8 sps:$4 sm:$0xff]   ;;  %v13239_v10 = vld [vmem:[%s15786_s7 + $0x44] ss:$8 sps:$4 sm:$0xff]  }
 0x673   :  { %v2395_v20 = vadd.f32 %v2394_v32, %v12947_v12  ;;  %v2396_v16 = vpop.f32.mrb[57].mxu1  ;;  %v13245_v11 = vld [vmem:[%s15786_s7 + $0x40] ss:$8 sps:$4 sm:$0xff]   ;;  %v13257_v32 = vld [vmem:[%s15786_s7 + $0x50] ss:$8 sps:$4 sm:$0xff]  }
 0x674   :  { %10245 = vst.msk [vmem:[%s15791_s11 + $0x48] sm:$0xff] %vm12956_vm3, %v11111_v13  ;;  %v2397_v15 = vadd.f32 %v2396_v16, %v12950_v14  ;;  %v2398_v9 = vpop.f32.mrb[58].mxu1  ;;  %v13251_v13 = vld [vmem:[%s15786_s7 + $0x54] ss:$8 sps:$4 sm:$0xff]   ;;  %v13269_v16 = vld [vmem:[%s15786_s7 + $0x60] ss:$8 sps:$4 sm:$0xff]  }
 0x675   :  { %v2407_v24 = vmax.f32 %v2395_v20, 0.0  ;;  %v2399_v25 = vadd.f32 %v2398_v9, %v12947_v12  ;;  %v2400_v41 = vpop.f32.mrb[59].mxu1  ;;  %v13264_v20 = vld [vmem:[%s15786_s7 + $0x64] ss:$8 sps:$4 sm:$0xff]   ;;  %v13281_v9 = vld [vmem:[%s15786_s7 + $0x70] ss:$8 sps:$4 sm:$0xff]  }
 0x676   :  { %v2408_v52 = vmax.f32 %v2397_v15, 0.0  ;;  %v2401_v60 = vadd.f32 %v2400_v41, %v12950_v14  ;;  %v13276_v15 = vld [vmem:[%s15786_s7 + $0x74] ss:$8 sps:$4 sm:$0xff]  }
 0x677   :  { %v2409_v26 = vmax.f32 %v2399_v25, 0.0 }
 0x678   :  { %v11112_v8 = vpack.c.bf16 %v2408_v52, %v2407_v24  ;;  %v2410_v61 = vmax.f32 %v2401_v60, 0.0  ;;  %v11722_v24 = vld [vmem:[%s15784_s5] sm:$0xff]  }
 0x67a   :  { %10246 = vst.msk [vmem:[%s15791_s11 + $0x50] sm:$0xff] %vm12956_vm3, %v11112_v8  ;;  %v11113_v0 = vpack.c.bf16 %v2410_v61, %v2409_v26  ;;  %v13308_v26 = vld [vmem:[%s15788_s6] ss:$0 sm:$0xff] }
 0x67c   :  { %10247 = vst.msk [vmem:[%s15791_s11 + $0x58] sm:$0xff] %vm12956_vm3, %v11113_v0 }
 0x68a   :  { %v3116_v21 = vpop.f32.mrb[60].mxu1 }
 0x68b   :  { %v3117_v63 = vadd.f32 %v3116_v21, %v15860_v33  ;;  %v3118_v3 = vpop.f32.mrb[61].mxu1 }
 0x68c   :  { %v3119_v19 = vadd.f32 %v3118_v3, %v15861_v5  ;;  %v3120_v22 = vpop.f32.mrb[62].mxu1 }
 0x68d   :  { %v3121_v28 = vadd.f32 %v3120_v22, %v15860_v33  ;;  %v3122_v29 = vpop.f32.mrb[63].mxu1  ;;  %v3135_v31 = vmax.f32 %v3117_v63, 0.0 }
 0x68e   :  { %v3123_v30 = vadd.f32 %v3122_v29, %v15861_v5  ;;  %v3136_v35 = vmax.f32 %v3119_v19, 0.0 }
 0x68f   :  { %v3137_v34 = vmax.f32 %v3121_v28, 0.0 }
 0x690   :  { %v3138_v36 = vmax.f32 %v3123_v30, 0.0  ;;  %v11723_v30 = vld [vmem:[%s15784_s5 + $0x8] sm:$0xff]  }
 0x691   :  { %v3143_v37 = vpack.c.bf16 %v3137_v34, %v3135_v31  ;;  %v11724_v31 = vld [vmem:[%s15784_s5 + $0x10] sm:$0xff]   ;;  %v11725_v34 = vld [vmem:[%s15784_s5 + $0x18] sm:$0xff]  }
 0x692   :  { %v13173_v38 = vpack.c.bf16 %v3138_v36, %v3136_v35  ;;  %v3126_v39 = vpop.f32.mrb[64].mxu1  ;;  %v13346_v35 = vld [vmem:[%s15784_s5] sm:$0xff]  }
 0x693   :  { %v3127_v42 = vadd.f32 %v3126_v39, %v15860_v33  ;;  %v3128_v43 = vpop.f32.mrb[65].mxu1  ;;  %3701 = vrot.lane.b32.xlu1 %v3143_v37, %s12144_s4  ;;  %11318 = vmatprep.mubr.msk.bf16.mxu1 %vm829_vm0, %v3143_v37 }
 0x694   :  { %v3129_v44 = vadd.f32 %v3128_v43, %v15861_v5  ;;  %v3130_v45 = vpop.f32.mrb[66].mxu1 }
 0x695   :  { %v3131_v46 = vadd.f32 %v3130_v45, %v15860_v33  ;;  %v3132_v47 = vpop.f32.mrb[67].mxu1  ;;  %v3139_v50 = vmax.f32 %v3127_v42, 0.0 }
 0x696   :  { %v3133_v49 = vadd.f32 %v3132_v47, %v15861_v5  ;;  %v3140_v53 = vmax.f32 %v3129_v44, 0.0 }
 0x697   :  { %v3141_v51 = vmax.f32 %v3131_v46, 0.0 }
 0x698   :  { %v3142_v54 = vmax.f32 %v3133_v49, 0.0 }
 0x699   :  { %v3145_v58 = vpack.c.bf16 %v3141_v51, %v3139_v50 }
 0x69a   :  { %v13198_v48 = vpack.c.bf16 %v3142_v54, %v3140_v53  ;;  %v13357_v54 = vld [vmem:[%s15787_s9] ss:$8 sps:$4 sm:$0xff]  }
 0x69b   :  { %3703 = vrot.lane.b32.xlu1 %v3145_v58, %s12144_s4  ;;  %11319 = vmatmul.mubr.msk.bf16.vlgmr.msra.gmra.mrb[68].mxu1 %vm829_vm0, %v3145_v58  ;;  %v13367_v58 = vld [vmem:[%s15787_s9 + $0x14] ss:$8 sps:$4 sm:$0xff]  }
 0x69c   :  { %3343 = vmatpush1.bf16.msra.mxu1 %v13191_v56  ;;  %3374 = vmatprep.mubr.bf16.mxu1 %v15840_v59 }
 0x69d   :  { %3344 = vmatprep.subr.bf16.mxu1 %v13196_v55 }
 0x69f   :  { %2454 = vrot.lane.b32.xlu1 %v12529_v2, %s12144_s4  ;;  %v13233_v2 = vld [vmem:[%s15786_s7 + $0x30] ss:$8 sps:$4 sm:$0xff]  }
 0x6a0   :  { %3345 = vmatpush1.bf16.msra.mxu1 %v13206_v1 }
 0x6a1   :  { %3346 = vmatprep.subr.bf16.mxu1 %v13213_v4 }
 0x6a4   :  { %3347 = vmatpush1.bf16.msra.mxu1 %v13221_v6 }
 0x6a5   :  { %3348 = vmatprep.subr.bf16.mxu1 %v13227_v7 }
 0x6a8   :  { %3349 = vmatpush1.bf16.msra.mxu1 %v13233_v2 }
 0x6a9   :  { %3350 = vmatprep.subr.bf16.mxu1 %v13239_v10 }
 0x6ac   :  { %3351 = vmatpush1.bf16.msra.mxu1 %v13245_v11 }
 0x6ad   :  { %3352 = vmatprep.subr.bf16.mxu1 %v13251_v13 }
 0x6b0   :  { %3353 = vmatpush1.bf16.msra.mxu1 %v13257_v32 }
 0x6b1   :  { %3354 = vmatprep.subr.bf16.mxu1 %v13264_v20 }
 0x6b4   :  { %3355 = vmatpush1.bf16.msra.mxu1 %v13269_v16 }
 0x6b5   :  { %3356 = vmatprep.subr.bf16.mxu1 %v13276_v15 }
 0x6b8   :  { %3357 = vmatpush1.bf16.msra.mxu1 %v13281_v9 }
 0x6b9   :  { %11322 = vmatprep.subr.bf16.mxu1 %v11722_v24 }
 0x705   :  { %v3702_v25 = vpop.permute.xlu1 %3701 }
 0x70d   :  { %v3704_v41 = vpop.permute.xlu1 %3703 }
 0x711   :  { %v2455_v52 = vpop.permute.xlu1 %2454 }
 0x712   :  { %11307 = vmatmul.mubr.msk.bf16.vlgmr.msra.gmra.mrb[24].mxu0 %vm829_vm0, %v2455_v52  ;;  %v13476_v52 = vld [vmem:[%s15787_s9 + $0xa4] ss:$8 sps:$4 sm:$0xff]  }
 0x713   :  { %2638 = vmatpush1.bf16.msra.mxu0 %v13191_v56  ;;  %2669 = vmatprep.mubr.bf16.mxu0 %v15840_v59 }
 0x714   :  { %2639 = vmatprep.subr.bf16.mxu0 %v13196_v55 }
 0x717   :  { %2640 = vmatpush1.bf16.msra.mxu0 %v13206_v1 }
 0x718   :  { %2641 = vmatprep.subr.bf16.mxu0 %v13213_v4 }
 0x71b   :  { %2642 = vmatpush1.bf16.msra.mxu0 %v13221_v6 }
 0x71c   :  { %2643 = vmatprep.subr.bf16.mxu0 %v13227_v7 }
 0x71f   :  { %2644 = vmatpush1.bf16.msra.mxu0 %v13233_v2 }
 0x720   :  { %2645 = vmatprep.subr.bf16.mxu0 %v13239_v10 }
 0x723   :  { %2646 = vmatpush1.bf16.msra.mxu0 %v13245_v11 }
 0x724   :  { %2647 = vmatprep.subr.bf16.mxu0 %v13251_v13 }
 0x727   :  { %2648 = vmatpush1.bf16.msra.mxu0 %v13257_v32 }
 0x728   :  { %2649 = vmatprep.subr.bf16.mxu0 %v13264_v20 }
 0x72b   :  { %2650 = vmatpush1.bf16.msra.mxu0 %v13269_v16 }
 0x72c   :  { %2651 = vmatprep.subr.bf16.mxu0 %v13276_v15 }
 0x72f   :  { %2652 = vmatpush1.bf16.msra.mxu0 %v13281_v9 }
 0x76e   :  { %v11320_v60 = vpop.f32.mrb[68].mxu1 }
 0x76f   :  { %v3234_v8 = vadd.f32 %v13308_v26, %v11320_v60  ;;  %v3225_v61 = vpop.f32.mrb[69].mxu1  ;;  %v13482_v60 = vld [vmem:[%s15787_s9 + $0xa0] ss:$8 sps:$4 sm:$0xff]  }
 0x770   :  { %v3226_v0 = vadd.f32 %v13308_v26, %v3225_v61  ;;  %v11321_v23 = vpop.f32.mrb[70].mxu1  ;;  %v13494_v61 = vld [vmem:[%s15787_s9 + $0xb0] ss:$8 sps:$4 sm:$0xff]  }
 0x771   :  { %v3237_v17 = vadd.f32 %v13308_v26, %v11321_v23  ;;  %v3228_v21 = vpop.f32.mrb[71].mxu1  ;;  %v3242_v3 = vmax.f32 %v3234_v8, 0.0  ;;  %v13488_v8 = vld [vmem:[%s15787_s9 + $0xb4] ss:$8 sps:$4 sm:$0xff]   ;;  %v13506_v23 = vld [vmem:[%s15787_s9 + $0xc0] ss:$8 sps:$4 sm:$0xff]  }
 0x772   :  { %v3229_v63 = vadd.f32 %v13308_v26, %v3228_v21  ;;  %v3240_v22 = vmax.f32 %v3226_v0, 0.0  ;;  %v13500_v0 = vld [vmem:[%s15787_s9 + $0xc4] ss:$8 sps:$4 sm:$0xff]   ;;  %v13518_v21 = vld [vmem:[%s15787_s9 + $0xd0] ss:$8 sps:$4 sm:$0xff]  }
 0x773   :  { %v3243_v19 = vmax.f32 %v3237_v17, 0.0  ;;  %v13512_v17 = vld [vmem:[%s15787_s9 + $0xd4] ss:$8 sps:$4 sm:$0xff]  }
 0x774   :  { %v3241_v27 = vmax.f32 %v3229_v63, 0.0  ;;  %v13525_v63 = vld [vmem:[%s15787_s9 + $0xe4] ss:$8 sps:$4 sm:$0xff]  }
 0x775   :  { %v3245_v28 = vpack.c.bf16 %v3243_v19, %v3242_v3  ;;  %v13530_v3 = vld [vmem:[%s15787_s9 + $0xe0] ss:$8 sps:$4 sm:$0xff]   ;;  %v13537_v19 = vld [vmem:[%s15787_s9 + $0xf4] ss:$8 sps:$4 sm:$0xff]  }
 0x776   :  { %v3244_v29 = vpack.c.bf16 %v3241_v27, %v3240_v22  ;;  %v13542_v22 = vld [vmem:[%s15787_s9 + $0xf0] ss:$8 sps:$4 sm:$0xff]  }
 0x778   :  { %3375 = vmatmul.mubr.bf16.vlgmr.msra.gmra.mrb[72].mxu1 %v3244_v29 }
 0x779   :  { %11323 = vmatpush3.bf16.msra.mxu1 %v11722_v24  ;;  %3384 = vmatprep.mubr.bf16.mxu1 %v15840_v59  ;;  %v13458_v24 = vld [vmem:[%s15787_s9 + $0x80] ss:$8 sps:$4 sm:$0xff]  }
 0x77a   :  { %11324 = vmatprep.subr.bf16.mxu1 %v11723_v30 }
 0x77d   :  { %11325 = vmatpush3.bf16.msra.mxu1 %v11723_v30 }
 0x77e   :  { %11326 = vmatprep.subr.bf16.mxu1 %v11724_v31 }
 0x780   :  { %3385 = vmatmul.mubr.bf16.gmra.mrb[76].mxu1 %v3245_v28 }
 0x781   :  { %11327 = vmatpush3.bf16.msra.mxu1 %v11724_v31  ;;  %11330 = vmatprep.mubr.msk.bf16.mxu1 %vm829_vm0, %v3702_v25  ;;  %v13464_v25 = vld [vmem:[%s15787_s9 + $0x94] ss:$8 sps:$4 sm:$0xff]  }
 0x782   :  { %11328 = vmatprep.subr.bf16.mxu1 %v11725_v34 }
 0x785   :  { %11329 = vmatpush3.bf16.msra.mxu1 %v11725_v34 }
 0x786   :  { %3886 = vmatprep.subr.bf16.mxu1 %v13178_v40 }
 0x788   :  { %11331 = vmatmul.mubr.msk.bf16.vlgmr.msra.gmra.mrb[80].mxu1 %vm829_vm0, %v3704_v41  ;;  %v13470_v41 = vld [vmem:[%s15787_s9 + $0x90] ss:$8 sps:$4 sm:$0xff]  }
 0x789   :  { %3887 = vmatpush1.bf16.msra.mxu1 %v13191_v56  ;;  %3918 = vmatprep.mubr.bf16.mxu1 %v15840_v59  ;;  %v13362_v56 = vld [vmem:[%s15787_s9 + $0x4] ss:$8 sps:$4 sm:$0xff]  }
 0x78a   :  { %3888 = vmatprep.subr.bf16.mxu1 %v13196_v55  ;;  %2894 = vmatprep.subr.bf16.mxu0 %v13362_v56  ;;  %v13374_v55 = vld [vmem:[%s15787_s9 + $0x10] ss:$8 sps:$4 sm:$0xff]  }
 0x78d   :  { %3889 = vmatpush1.bf16.msra.mxu1 %v13206_v1  ;;  %v13380_v1 = vld [vmem:[%s15787_s9 + $0x24] ss:$8 sps:$4 sm:$0xff]  }
 0x78e   :  { %3890 = vmatprep.subr.bf16.mxu1 %v13213_v4  ;;  %v13386_v4 = vld [vmem:[%s15787_s9 + $0x20] ss:$8 sps:$4 sm:$0xff]  }
 0x791   :  { %3891 = vmatpush1.bf16.msra.mxu1 %v13221_v6  ;;  %v13392_v6 = vld [vmem:[%s15787_s9 + $0x34] ss:$8 sps:$4 sm:$0xff]  }
 0x792   :  { %3892 = vmatprep.subr.bf16.mxu1 %v13227_v7  ;;  %v13398_v7 = vld [vmem:[%s15787_s9 + $0x30] ss:$8 sps:$4 sm:$0xff]  }
 0x795   :  { %3893 = vmatpush1.bf16.msra.mxu1 %v13233_v2  ;;  %v13404_v2 = vld [vmem:[%s15787_s9 + $0x44] ss:$8 sps:$4 sm:$0xff]  }
 0x796   :  { %3894 = vmatprep.subr.bf16.mxu1 %v13239_v10  ;;  %v13410_v10 = vld [vmem:[%s15787_s9 + $0x40] ss:$8 sps:$4 sm:$0xff]  }
 0x799   :  { %3895 = vmatpush1.bf16.msra.mxu1 %v13245_v11  ;;  %v13416_v11 = vld [vmem:[%s15787_s9 + $0x54] ss:$8 sps:$4 sm:$0xff]  }
 0x79a   :  { %3896 = vmatprep.subr.bf16.mxu1 %v13251_v13  ;;  %v13422_v13 = vld [vmem:[%s15787_s9 + $0x50] ss:$8 sps:$4 sm:$0xff]  }
 0x79d   :  { %3897 = vmatpush1.bf16.msra.mxu1 %v13257_v32  ;;  %v13428_v32 = vld [vmem:[%s15787_s9 + $0x64] ss:$8 sps:$4 sm:$0xff]  }
 0x79e   :  { %3898 = vmatprep.subr.bf16.mxu1 %v13264_v20  ;;  %v13434_v20 = vld [vmem:[%s15787_s9 + $0x60] ss:$8 sps:$4 sm:$0xff]  }
 0x7a1   :  { %3899 = vmatpush1.bf16.msra.mxu1 %v13269_v16  ;;  %v13440_v16 = vld [vmem:[%s15787_s9 + $0x74] ss:$8 sps:$4 sm:$0xff]  }
 0x7a2   :  { %3900 = vmatprep.subr.bf16.mxu1 %v13276_v15  ;;  %v13446_v15 = vld [vmem:[%s15787_s9 + $0x70] ss:$8 sps:$4 sm:$0xff]  }
 0x7a5   :  { %3901 = vmatpush1.bf16.msra.mxu1 %v13281_v9  ;;  %v13452_v9 = vld [vmem:[%s15787_s9 + $0x84] ss:$8 sps:$4 sm:$0xff]  }
 0x7a6   :  { %11334 = vmatprep.subr.bf16.mxu1 %v13346_v35 }
 0x7e5   :  { %v11308_v36 = vpop.f32.mrb[24].mxu0 }
 0x7e6   :  { %v2529_v37 = vadd.f32 %v13308_v26, %v11308_v36  ;;  %v2520_v39 = vpop.f32.mrb[25].mxu0 }
 0x7e7   :  { %v2521_v40 = vadd.f32 %v13308_v26, %v2520_v39  ;;  %v11309_v42 = vpop.f32.mrb[26].mxu0 }
 0x7e8   :  { %v2532_v43 = vadd.f32 %v13308_v26, %v11309_v42  ;;  %v2523_v44 = vpop.f32.mrb[27].mxu0  ;;  %v2537_v46 = vmax.f32 %v2529_v37, 0.0 }
 0x7e9   :  { %v2524_v45 = vadd.f32 %v13308_v26, %v2523_v44  ;;  %v2535_v49 = vmax.f32 %v2521_v40, 0.0 }
 0x7ea   :  { %v2538_v47 = vmax.f32 %v2532_v43, 0.0 }
 0x7eb   :  { %v2536_v50 = vmax.f32 %v2524_v45, 0.0 }
 0x7ec   :  { %v2540_v51 = vpack.c.bf16 %v2538_v47, %v2537_v46 }
 0x7ed   :  { %v2539_v53 = vpack.c.bf16 %v2536_v50, %v2535_v49 }
 0x7ef   :  { %2670 = vmatmul.mubr.bf16.vlgmr.msra.gmra.mrb[28].mxu0 %v2539_v53 }
 0x7f0   :  { %2679 = vmatprep.mubr.bf16.mxu0 %v15840_v59  ;;  %2895 = vmatpush1.bf16.msra.mxu0 %v13357_v54 }
 0x7f1   :  { %2896 = vmatprep.subr.bf16.mxu0 %v13367_v58 }
 0x7f4   :  { %2897 = vmatpush1.bf16.msra.mxu0 %v13374_v55 }
 0x7f5   :  { %2898 = vmatprep.subr.bf16.mxu0 %v13380_v1 }
 0x7f7   :  { %2680 = vmatmul.mubr.bf16.gmra.mrb[32].mxu0 %v2540_v51 }
 0x7f8   :  { %2899 = vmatpush1.bf16.msra.mxu0 %v13386_v4 }
 0x7f9   :  { %2900 = vmatprep.subr.bf16.mxu0 %v13392_v6 }
 0x7fc   :  { %2901 = vmatpush1.bf16.msra.mxu0 %v13398_v7 }
 0x7fd   :  { %2902 = vmatprep.subr.bf16.mxu0 %v13404_v2 }
 0x800   :  { %2903 = vmatpush1.bf16.msra.mxu0 %v13410_v10 }
 0x801   :  { %2904 = vmatprep.subr.bf16.mxu0 %v13416_v11 }
 0x804   :  { %2905 = vmatpush1.bf16.msra.mxu0 %v13422_v13 }
 0x805   :  { %2906 = vmatprep.subr.bf16.mxu0 %v13428_v32 }
 0x808   :  { %2907 = vmatpush1.bf16.msra.mxu0 %v13434_v20 }
 0x809   :  { %2908 = vmatprep.subr.bf16.mxu0 %v13440_v16 }
 0x80c   :  { %2909 = vmatpush1.bf16.msra.mxu0 %v13446_v15 }
 0x80d   :  { %2910 = vmatprep.subr.bf16.mxu0 %v13452_v9 }
 0x810   :  { %2911 = vmatpush1.bf16.msra.mxu0 %v13458_v24 }
 0x811   :  { %2912 = vmatprep.subr.bf16.mxu0 %v13464_v25 }
 0x814   :  { %2913 = vmatpush1.bf16.msra.mxu0 %v13470_v41 }
 0x815   :  { %2914 = vmatprep.subr.bf16.mxu0 %v13476_v52 }
 0x818   :  { %2915 = vmatpush1.bf16.msra.mxu0 %v13482_v60 }
 0x819   :  { %2916 = vmatprep.subr.bf16.mxu0 %v13488_v8 }
 0x81c   :  { %2917 = vmatpush1.bf16.msra.mxu0 %v13494_v61 }
 0x81d   :  { %2918 = vmatprep.subr.bf16.mxu0 %v13500_v0 }
 0x820   :  { %2919 = vmatpush1.bf16.msra.mxu0 %v13506_v23 }
 0x821   :  { %2920 = vmatprep.subr.bf16.mxu0 %v13512_v17 }
 0x824   :  { %2921 = vmatpush1.bf16.msra.mxu0 %v13518_v21 }
 0x825   :  { %2922 = vmatprep.subr.bf16.mxu0 %v13525_v63 }
 0x828   :  { %2923 = vmatpush1.bf16.msra.mxu0 %v13530_v3 }
 0x829   :  { %2924 = vmatprep.subr.bf16.mxu0 %v13537_v19 }
 0x82c   :  { %2925 = vmatpush1.bf16.msra.mxu0 %v13542_v22 }
 0x82d   :  { %3599 = vmatprep.subr.bf16.mxu0 %v13362_v56 }
 0x84b   :  { %v3376_v27 = vpop.f32.mrb[72].mxu1 }
 0x84c   :  { %v3377_v28 = vadd.f32 %v3376_v27, %v12861_v18  ;;  %v3378_v29 = vpop.f32.mrb[73].mxu1 }
 0x84d   :  { %v3379_v30 = vadd.f32 %v3378_v29, %v12864_v57  ;;  %v3380_v31 = vpop.f32.mrb[74].mxu1 }
 0x84e   :  { %v3381_v34 = vadd.f32 %v3380_v31, %v12861_v18  ;;  %v3382_v36 = vpop.f32.mrb[75].mxu1  ;;  %v3395_v39 = vmax.f32 %v3377_v28, 0.0 }
 0x84f   :  { %v3383_v37 = vadd.f32 %v3382_v36, %v12864_v57  ;;  %v3396_v42 = vmax.f32 %v3379_v30, 0.0 }
 0x850   :  { %v3397_v40 = vmax.f32 %v3381_v34, 0.0 }
 0x851   :  { %v3398_v43 = vmax.f32 %v3383_v37, 0.0 }
 0x852   :  { %v13551_v44 = vpack.c.bf16 %v3397_v40, %v3395_v39 }
 0x853   :  { %v13553_v45 = vpack.c.bf16 %v3398_v43, %v3396_v42  ;;  %v3386_v46 = vpop.f32.mrb[76].mxu1 }
 0x854   :  { %v3387_v47 = vadd.f32 %v3386_v46, %v12861_v18  ;;  %v3388_v49 = vpop.f32.mrb[77].mxu1 }
 0x855   :  { %v3389_v50 = vadd.f32 %v3388_v49, %v12864_v57  ;;  %v3390_v51 = vpop.f32.mrb[78].mxu1 }
 0x856   :  { %v3391_v53 = vadd.f32 %v3390_v51, %v12861_v18  ;;  %v3392_v27 = vpop.f32.mrb[79].mxu1  ;;  %v3399_v28 = vmax.f32 %v3387_v47, 0.0 }
 0x857   :  { %v3393_v29 = vadd.f32 %v3392_v27, %v12864_v57  ;;  %v3400_v30 = vmax.f32 %v3389_v50, 0.0 }
 0x858   :  { %v3401_v31 = vmax.f32 %v3391_v53, 0.0 }
 0x859   :  { %v3402_v34 = vmax.f32 %v3393_v29, 0.0 }
 0x85a   :  { %v13559_v36 = vpack.c.bf16 %v3401_v31, %v3399_v28 }
 0x85b   :  { %v13561_v37 = vpack.c.bf16 %v3402_v34, %v3400_v30  ;;  %v11332_v39 = vpop.f32.mrb[80].mxu1  ;;  %v11727_v30 = vld [vmem:[%s15784_s5 + $0x8] sm:$0xff]   ;;  %v11728_v34 = vld [vmem:[%s15784_s5 + $0x10] sm:$0xff]  }
 0x85c   :  { %v3778_v40 = vadd.f32 %v13308_v26, %v11332_v39  ;;  %v3769_v42 = vpop.f32.mrb[81].mxu1  ;;  %v11729_v39 = vld [vmem:[%s15784_s5 + $0x18] sm:$0xff]  }
 0x85d   :  { %v3770_v43 = vadd.f32 %v13308_v26, %v3769_v42  ;;  %v11333_v46 = vpop.f32.mrb[82].mxu1  ;;  %v11783_v42 = vld [vmem:[%s15786_s7 + $0x14] ss:$8 sps:$4 sm:$0xff]  }
 0x85e   :  { %v3781_v49 = vadd.f32 %v13308_v26, %v11333_v46  ;;  %v3772_v51 = vpop.f32.mrb[83].mxu1  ;;  %v3786_v47 = vmax.f32 %v3778_v40, 0.0  ;;  %v11778_v40 = vld [vmem:[%s15786_s7] ss:$8 sps:$4 sm:$0xff]   ;;  %v13598_v46 = vld [vmem:[%s15786_s7 + $0x24] ss:$8 sps:$4 sm:$0xff]  }
 0x85f   :  { %v3773_v27 = vadd.f32 %v13308_v26, %v3772_v51  ;;  %v3784_v50 = vmax.f32 %v3770_v43, 0.0  ;;  %v11781_v43 = vld [vmem:[%s15786_s7 + $0x10] ss:$8 sps:$4 sm:$0xff]   ;;  %v13610_v51 = vld [vmem:[%s15786_s7 + $0x34] ss:$8 sps:$4 sm:$0xff]  }
 0x860   :  { %v3787_v53 = vmax.f32 %v3781_v49, 0.0  ;;  %v13603_v49 = vld [vmem:[%s15786_s7 + $0x20] ss:$8 sps:$4 sm:$0xff]   ;;  %15862 = vst [vmem:[#allocation19_spill] sm:$0xff] %v13610_v51 }
 0x861   :  { %v3785_v29 = vmax.f32 %v3773_v27, 0.0  ;;  %v13615_v27 = vld [vmem:[%s15786_s7 + $0x30] ss:$8 sps:$4 sm:$0xff]  }
 0x862   :  { %v3789_v28 = vpack.c.bf16 %v3787_v53, %v3786_v47  ;;  %15863 = vst [vmem:[#allocation15_spill] sm:$0xff] %v13615_v27  ;;  %v13622_v47 = vld [vmem:[%s15786_s7 + $0x44] ss:$8 sps:$4 sm:$0xff]  }
 0x863   :  { %v3788_v31 = vpack.c.bf16 %v3785_v29, %v3784_v50  ;;  %15864 = vst [vmem:[#allocation20_spill] sm:$0xff] %v13622_v47  ;;  %v13627_v50 = vld [vmem:[%s15786_s7 + $0x40] ss:$8 sps:$4 sm:$0xff]  }
 0x864   :  { %15865 = vst [vmem:[#allocation16_spill] sm:$0xff] %v13627_v50 }
 0x865   :  { %3919 = vmatmul.mubr.bf16.vlgmr.msra.gmra.mrb[84].mxu1 %v3788_v31 }
 0x866   :  { %11335 = vmatpush3.bf16.msra.mxu1 %v13346_v35  ;;  %3928 = vmatprep.mubr.bf16.mxu1 %v15840_v59  ;;  %v11780_v35 = vld [vmem:[%s15786_s7 + $0x4] ss:$8 sps:$4 sm:$0xff]  }
 0x867   :  { %11336 = vmatprep.subr.bf16.mxu1 %v11727_v30 }
 0x86a   :  { %11337 = vmatpush3.bf16.msra.mxu1 %v11727_v30 }
 0x86b   :  { %11338 = vmatprep.subr.bf16.mxu1 %v11728_v34 }
 0x86d   :  { %3929 = vmatmul.mubr.bf16.gmra.mrb[88].mxu1 %v3789_v28 }
 0x86e   :  { %11339 = vmatpush3.bf16.msra.mxu1 %v11728_v34  ;;  %11342 = vmatprep.mubr.msk.bf16.mxu1 %vm829_vm0, %v13173_v38 }
 0x86f   :  { %11340 = vmatprep.subr.bf16.mxu1 %v11729_v39 }
 0x872   :  { %11341 = vmatpush3.bf16.msra.mxu1 %v11729_v39 }
 0x873   :  { %4424 = vmatprep.subr.bf16.mxu1 %v11780_v35  ;;  %v13637_v35 = vld [vmem:[%s15786_s7 + $0x54] ss:$8 sps:$4 sm:$0xff]  }
 0x875   :  { %11343 = vmatmul.mubr.msk.bf16.vlgmr.msra.gmra.mrb[92].mxu1 %vm829_vm0, %v13198_v48 }
 0x876   :  { %4456 = vmatprep.mubr.bf16.mxu1 %v15840_v59  ;;  %4425 = vmatpush1.bf16.msra.mxu1 %v11778_v40 }
 0x877   :  { %4426 = vmatprep.subr.bf16.mxu1 %v11783_v42  ;;  %v13643_v42 = vld [vmem:[%s15786_s7 + $0x50] ss:$8 sps:$4 sm:$0xff]  }
 0x87a   :  { %4427 = vmatpush1.bf16.msra.mxu1 %v11781_v43 }
 0x87b   :  { %4428 = vmatprep.subr.bf16.mxu1 %v13598_v46 }
 0x87e   :  { %4429 = vmatpush1.bf16.msra.mxu1 %v13603_v49 }
 0x87f   :  { %4430 = vmatprep.subr.bf16.mxu1 %v13610_v51  ;;  %v13655_v51 = vld [vmem:[%s15786_s7 + $0x60] ss:$8 sps:$4 sm:$0xff]  }
 0x880   :  { %15866 = vst [vmem:[#allocation21_spill] sm:$0xff] %v13655_v51 }
 0x882   :  { %4431 = vmatpush1.bf16.msra.mxu1 %v13615_v27 }
 0x883   :  { %4432 = vmatprep.subr.bf16.mxu1 %v13622_v47  ;;  %v13650_v47 = vld [vmem:[%s15786_s7 + $0x64] ss:$8 sps:$4 sm:$0xff]  }
 0x886   :  { %4433 = vmatpush1.bf16.msra.mxu1 %v13627_v50 }
 0x887   :  { %4434 = vmatprep.subr.bf16.mxu1 %v13637_v35 }
 0x88a   :  { %4435 = vmatpush1.bf16.msra.mxu1 %v13643_v42 }
 0x88b   :  { %4436 = vmatprep.subr.bf16.mxu1 %v13650_v47 }
 0x88e   :  { %4437 = vmatpush1.bf16.msra.mxu1 %v13655_v51 }
 0x8c2   :  { %v2671_v53 = vpop.f32.mrb[28].mxu0 }
 0x8c3   :  { %v2672_v29 = vadd.f32 %v2671_v53, %v12861_v18  ;;  %v2673_v28 = vpop.f32.mrb[29].mxu0 }
 0x8c4   :  { %v2674_v31 = vadd.f32 %v2673_v28, %v12864_v57  ;;  %v2675_v30 = vpop.f32.mrb[30].mxu0 }
 0x8c5   :  { %v2676_v34 = vadd.f32 %v2675_v30, %v12861_v18  ;;  %v2677_v39 = vpop.f32.mrb[31].mxu0  ;;  %v2690_v43 = vmax.f32 %v2672_v29, 0.0 }
 0x8c6   :  { %v2678_v40 = vadd.f32 %v2677_v39, %v12864_v57  ;;  %v2691_v28 = vmax.f32 %v2674_v31, 0.0 }
 0x8c7   :  { %v2692_v53 = vmax.f32 %v2676_v34, 0.0 }
 0x8c8   :  { %v2693_v50 = vmax.f32 %v2678_v40, 0.0 }
 0x8c9   :  { %v2698_v30 = vpack.c.bf16 %v2692_v53, %v2690_v43  ;;  %v13665_v53 = vld [vmem:[%s15786_s7 + $0x74] ss:$8 sps:$4 sm:$0xff]  }
 0x8ca   :  { %v2699_v39 = vpack.c.bf16 %v2693_v50, %v2691_v28  ;;  %v2681_v27 = vpop.f32.mrb[32].mxu0  ;;  %15867 = vst [vmem:[#allocation17_spill] sm:$0xff] %v13665_v53  ;;  %v13672_v28 = vld [vmem:[%s15786_s7 + $0x70] ss:$8 sps:$4 sm:$0xff]   ;;  %4438 = vmatprep.subr.bf16.mxu1 %v13665_v53 }
 0x8cb   :  { %v2682_v29 = vadd.f32 %v2681_v27, %v12861_v18  ;;  %v2683_v34 = vpop.f32.mrb[33].mxu0  ;;  %15868 = vst [vmem:[#allocation4_spill] sm:$0xff] %v13672_v28  ;;  %4439 = vmatpush1.bf16.msra.mxu1 %v13672_v28 }
 0x8cc   :  { %v2684_v31 = vadd.f32 %v2683_v34, %v12864_v57  ;;  %v2685_v40 = vpop.f32.mrb[34].mxu0  ;;  %2926 = vmatprep.mubr.bf16.mxu0 %v2699_v39  ;;  %4681 = vmatprep.subr.bf16.mxu1 %v13362_v56 }
 0x8cd   :  { %v2686_v43 = vadd.f32 %v2685_v40, %v12861_v18  ;;  %v2687_v50 = vpop.f32.mrb[35].mxu0  ;;  %2927 = vmatmul.mubr.bf16.vlgmr.msra.gmra.mrb[36].mxu0 %v2698_v30  ;;  %v2694_v39 = vmax.f32 %v2682_v29, 0.0 }
 0x8ce   :  { %v2688_v27 = vadd.f32 %v2687_v50, %v12864_v57  ;;  %3600 = vmatpush1.bf16.msra.mxu0 %v13357_v54  ;;  %v2695_v30 = vmax.f32 %v2684_v31, 0.0 }
 0x8cf   :  { %v2696_v34 = vmax.f32 %v2686_v43, 0.0  ;;  %3601 = vmatprep.subr.bf16.mxu0 %v13367_v58 }
 0x8d0   :  { %v2697_v40 = vmax.f32 %v2688_v27, 0.0 }
 0x8d1   :  { %v2700_v51 = vpack.c.bf16 %v2696_v34, %v2694_v39 }
 0x8d2   :  { %v2701_v50 = vpack.c.bf16 %v2697_v40, %v2695_v30  ;;  %3602 = vmatpush1.bf16.msra.mxu0 %v13374_v55 }
 0x8d3   :  { %3603 = vmatprep.subr.bf16.mxu0 %v13380_v1 }
 0x8d4   :  { %2936 = vmatprep.mubr.bf16.mxu0 %v2701_v50 }
 0x8d5   :  { %2937 = vmatmul.mubr.bf16.gmra.mrb[40].mxu0 %v2700_v51 }
 0x8d6   :  { %3604 = vmatpush1.bf16.msra.mxu0 %v13386_v4  ;;  %3631 = vmatprep.mubr.bf16.mxu0 %v13553_v45 }
 0x8d7   :  { %3605 = vmatprep.subr.bf16.mxu0 %v13392_v6 }
 0x8da   :  { %3606 = vmatpush1.bf16.msra.mxu0 %v13398_v7 }
 0x8db   :  { %3607 = vmatprep.subr.bf16.mxu0 %v13404_v2 }
 0x8de   :  { %3608 = vmatpush1.bf16.msra.mxu0 %v13410_v10 }
 0x8df   :  { %3609 = vmatprep.subr.bf16.mxu0 %v13416_v11 }
 0x8e2   :  { %3610 = vmatpush1.bf16.msra.mxu0 %v13422_v13 }
 0x8e3   :  { %3611 = vmatprep.subr.bf16.mxu0 %v13428_v32 }
 0x8e6   :  { %3612 = vmatpush1.bf16.msra.mxu0 %v13434_v20 }
 0x8e7   :  { %3613 = vmatprep.subr.bf16.mxu0 %v13440_v16 }
 0x8ea   :  { %3614 = vmatpush1.bf16.msra.mxu0 %v13446_v15 }
 0x8eb   :  { %3615 = vmatprep.subr.bf16.mxu0 %v13452_v9 }
 0x8ee   :  { %3616 = vmatpush1.bf16.msra.mxu0 %v13458_v24 }
 0x8ef   :  { %3617 = vmatprep.subr.bf16.mxu0 %v13464_v25 }
 0x8f2   :  { %3618 = vmatpush1.bf16.msra.mxu0 %v13470_v41 }
 0x8f3   :  { %3619 = vmatprep.subr.bf16.mxu0 %v13476_v52 }
 0x8f6   :  { %3620 = vmatpush1.bf16.msra.mxu0 %v13482_v60 }
 0x8f7   :  { %3621 = vmatprep.subr.bf16.mxu0 %v13488_v8 }
 0x8fa   :  { %3622 = vmatpush1.bf16.msra.mxu0 %v13494_v61 }
 0x8fb   :  { %3623 = vmatprep.subr.bf16.mxu0 %v13500_v0 }
 0x8fe   :  { %3624 = vmatpush1.bf16.msra.mxu0 %v13506_v23 }
 0x8ff   :  { %3625 = vmatprep.subr.bf16.mxu0 %v13512_v17 }
 0x902   :  { %3626 = vmatpush1.bf16.msra.mxu0 %v13518_v21 }
 0x903   :  { %3627 = vmatprep.subr.bf16.mxu0 %v13525_v63 }
 0x906   :  { %3628 = vmatpush1.bf16.msra.mxu0 %v13530_v3 }
 0x907   :  { %3629 = vmatprep.subr.bf16.mxu0 %v13537_v19 }
 0x90a   :  { %3630 = vmatpush1.bf16.msra.mxu0 %v13542_v22 }
 0x90b   :  { %4143 = vmatprep.subr.bf16.mxu0 %v13362_v56 }
 0x90d   :  { %3632 = vmatmul.mubr.bf16.vlgmr.msra.gmra.mrb[44].mxu0 %v13551_v44 }
 0x90e   :  { %3641 = vmatprep.mubr.bf16.mxu0 %v13561_v37  ;;  %4144 = vmatpush1.bf16.msra.mxu0 %v13357_v54 }
 0x90f   :  { %4145 = vmatprep.subr.bf16.mxu0 %v13367_v58 }
 0x912   :  { %4146 = vmatpush1.bf16.msra.mxu0 %v13374_v55 }
 0x913   :  { %4147 = vmatprep.subr.bf16.mxu0 %v13380_v1 }
 0x915   :  { %3642 = vmatmul.mubr.bf16.gmra.mrb[48].mxu0 %v13559_v36 }
 0x916   :  { %4148 = vmatpush1.bf16.msra.mxu0 %v13386_v4 }
 0x917   :  { %4149 = vmatprep.subr.bf16.mxu0 %v13392_v6 }
 0x91a   :  { %4150 = vmatpush1.bf16.msra.mxu0 %v13398_v7 }
 0x91b   :  { %4151 = vmatprep.subr.bf16.mxu0 %v13404_v2 }
 0x91e   :  { %4152 = vmatpush1.bf16.msra.mxu0 %v13410_v10 }
 0x91f   :  { %4153 = vmatprep.subr.bf16.mxu0 %v13416_v11 }
 0x922   :  { %4154 = vmatpush1.bf16.msra.mxu0 %v13422_v13 }
 0x923   :  { %4155 = vmatprep.subr.bf16.mxu0 %v13428_v32 }
 0x926   :  { %4156 = vmatpush1.bf16.msra.mxu0 %v13434_v20 }
 0x927   :  { %4157 = vmatprep.subr.bf16.mxu0 %v13440_v16 }
 0x92a   :  { %4158 = vmatpush1.bf16.msra.mxu0 %v13446_v15 }
 0x92b   :  { %4159 = vmatprep.subr.bf16.mxu0 %v13452_v9 }
 0x92e   :  { %4160 = vmatpush1.bf16.msra.mxu0 %v13458_v24 }
 0x92f   :  { %4161 = vmatprep.subr.bf16.mxu0 %v13464_v25 }
 0x932   :  { %4162 = vmatpush1.bf16.msra.mxu0 %v13470_v41 }
 0x933   :  { %4163 = vmatprep.subr.bf16.mxu0 %v13476_v52 }
 0x936   :  { %4164 = vmatpush1.bf16.msra.mxu0 %v13482_v60 }
 0x937   :  { %4165 = vmatprep.subr.bf16.mxu0 %v13488_v8 }
 0x938   :  { %v3920_v56 = vpop.f32.mrb[84].mxu1 }
 0x939   :  { %v3921_v44 = vadd.f32 %v3920_v56, %v12861_v18  ;;  %v3922_v45 = vpop.f32.mrb[85].mxu1 }
 0x93a   :  { %v3923_v36 = vadd.f32 %v3922_v45, %v12864_v57  ;;  %4166 = vmatpush1.bf16.msra.mxu0 %v13494_v61  ;;  %v3924_v37 = vpop.f32.mrb[86].mxu1 }
 0x93b   :  { %v3925_v51 = vadd.f32 %v3924_v37, %v12861_v18  ;;  %v3926_v29 = vpop.f32.mrb[87].mxu1  ;;  %4167 = vmatprep.subr.bf16.mxu0 %v13500_v0  ;;  %v3939_v43 = vmax.f32 %v3921_v44, 0.0 }
 0x93c   :  { %v3927_v31 = vadd.f32 %v3926_v29, %v12864_v57  ;;  %v3940_v39 = vmax.f32 %v3923_v36, 0.0 }
 0x93d   :  { %v3941_v27 = vmax.f32 %v3925_v51, 0.0 }
 0x93e   :  { %v3942_v34 = vmax.f32 %v3927_v31, 0.0  ;;  %4168 = vmatpush1.bf16.msra.mxu0 %v13506_v23 }
 0x93f   :  { %v3947_v30 = vpack.c.bf16 %v3941_v27, %v3939_v43  ;;  %4169 = vmatprep.subr.bf16.mxu0 %v13512_v17 }
 0x940   :  { %v3948_v40 = vpack.c.bf16 %v3942_v34, %v3940_v39  ;;  %v3930_v50 = vpop.f32.mrb[88].mxu1 }
 0x941   :  { %v3931_v56 = vadd.f32 %v3930_v50, %v12861_v18  ;;  %v3932_v45 = vpop.f32.mrb[89].mxu1 }
 0x942   :  { %v3933_v37 = vadd.f32 %v3932_v45, %v12864_v57  ;;  %4170 = vmatpush1.bf16.msra.mxu0 %v13518_v21  ;;  %v3934_v28 = vpop.f32.mrb[90].mxu1  ;;  %4175 = vmatprep.mubr.bf16.mxu0 %v3948_v40 }
 0x943   :  { %v3935_v44 = vadd.f32 %v3934_v28, %v12861_v18  ;;  %v3936_v36 = vpop.f32.mrb[91].mxu1  ;;  %4171 = vmatprep.subr.bf16.mxu0 %v13525_v63  ;;  %v3943_v29 = vmax.f32 %v3931_v56, 0.0 }
 0x944   :  { %v3937_v51 = vadd.f32 %v3936_v36, %v12864_v57  ;;  %v3944_v43 = vmax.f32 %v3933_v37, 0.0 }
 0x945   :  { %v3945_v31 = vmax.f32 %v3935_v44, 0.0 }
 0x946   :  { %v3946_v27 = vmax.f32 %v3937_v51, 0.0  ;;  %4172 = vmatpush1.bf16.msra.mxu0 %v13530_v3 }
 0x947   :  { %v3949_v39 = vpack.c.bf16 %v3945_v31, %v3943_v29  ;;  %4173 = vmatprep.subr.bf16.mxu0 %v13537_v19 }
 0x948   :  { %v3950_v34 = vpack.c.bf16 %v3946_v27, %v3944_v43  ;;  %v11344_v50 = vpop.f32.mrb[92].mxu1 }
 0x949   :  { %v4316_v40 = vadd.f32 %v13308_v26, %v11344_v50  ;;  %v4307_v45 = vpop.f32.mrb[93].mxu1 }
 0x94a   :  { %4174 = vmatpush1.bf16.msra.mxu0 %v13542_v22  ;;  %v4308_v28 = vadd.f32 %v13308_v26, %v4307_v45  ;;  %v11345_v53 = vpop.f32.mrb[94].mxu1 }
 0x94b   :  { %v4319_v56 = vadd.f32 %v13308_v26, %v11345_v53  ;;  %v4310_v44 = vpop.f32.mrb[95].mxu1  ;;  %v4324_v36 = vmax.f32 %v4316_v40, 0.0 }
 0x94c   :  { %v4311_v37 = vadd.f32 %v13308_v26, %v4310_v44  ;;  %v4322_v29 = vmax.f32 %v4308_v28, 0.0 }
 0x94d   :  { %v4325_v51 = vmax.f32 %v4319_v56, 0.0  ;;  %4176 = vmatmul.mubr.bf16.vlgmr.msra.gmra.mrb[52].mxu0 %v3947_v30 }
 0x94e   :  { %v4323_v19 = vmax.f32 %v4311_v37, 0.0  ;;  %4185 = vmatprep.mubr.bf16.mxu0 %v3950_v34 }
 0x94f   :  { %v4327_v31 = vpack.c.bf16 %v4325_v51, %v4324_v36 }
 0x950   :  { %v4326_v43 = vpack.c.bf16 %v4323_v19, %v4322_v29 }
 0x952   :  { %4457 = vmatmul.mubr.bf16.vlgmr.msra.gmra.mrb[96].mxu1 %v4326_v43 }
 0x953   :  { %4466 = vmatprep.mubr.bf16.mxu1 %v15840_v59  ;;  %4682 = vmatpush1.bf16.msra.mxu1 %v13357_v54 }
 0x954   :  { %4683 = vmatprep.subr.bf16.mxu1 %v13367_v58 }
 0x955   :  { %4186 = vmatmul.mubr.bf16.gmra.mrb[56].mxu0 %v3949_v39 }
 0x957   :  { %4684 = vmatpush1.bf16.msra.mxu1 %v13374_v55 }
 0x958   :  { %4685 = vmatprep.subr.bf16.mxu1 %v13380_v1 }
 0x95a   :  { %4467 = vmatmul.mubr.bf16.gmra.mrb[100].mxu1 %v4327_v31 }
 0x95b   :  { %4686 = vmatpush1.bf16.msra.mxu1 %v13386_v4 }
 0x95c   :  { %4687 = vmatprep.subr.bf16.mxu1 %v13392_v6 }
 0x95f   :  { %4688 = vmatpush1.bf16.msra.mxu1 %v13398_v7 }
 0x960   :  { %4689 = vmatprep.subr.bf16.mxu1 %v13404_v2 }
 0x963   :  { %4690 = vmatpush1.bf16.msra.mxu1 %v13410_v10 }
 0x964   :  { %4691 = vmatprep.subr.bf16.mxu1 %v13416_v11 }
 0x967   :  { %4692 = vmatpush1.bf16.msra.mxu1 %v13422_v13 }
 0x968   :  { %4693 = vmatprep.subr.bf16.mxu1 %v13428_v32 }
 0x96b   :  { %4694 = vmatpush1.bf16.msra.mxu1 %v13434_v20 }
 0x96c   :  { %4695 = vmatprep.subr.bf16.mxu1 %v13440_v16 }
 0x96f   :  { %4696 = vmatpush1.bf16.msra.mxu1 %v13446_v15 }
 0x970   :  { %4697 = vmatprep.subr.bf16.mxu1 %v13452_v9 }
 0x973   :  { %4698 = vmatpush1.bf16.msra.mxu1 %v13458_v24 }
 0x974   :  { %4699 = vmatprep.subr.bf16.mxu1 %v13464_v25 }
 0x977   :  { %4700 = vmatpush1.bf16.msra.mxu1 %v13470_v41  ;;  %v11804_v41 = vld [vmem:[%s15787_s9 + $0xf4] ss:$8 sps:$4 sm:$0xff]  }
 0x978   :  { %4701 = vmatprep.subr.bf16.mxu1 %v13476_v52 }
 0x97b   :  { %4702 = vmatpush1.bf16.msra.mxu1 %v13482_v60 }
 0x97c   :  { %4703 = vmatprep.subr.bf16.mxu1 %v13488_v8 }
 0x97f   :  { %4704 = vmatpush1.bf16.msra.mxu1 %v13494_v61  ;;  %v11802_v61 = vld [vmem:[%s15787_s9 + $0xf0] ss:$8 sps:$4 sm:$0xff]  }
 0x980   :  { %4705 = vmatprep.subr.bf16.mxu1 %v13500_v0 }
 0x983   :  { %4706 = vmatpush1.bf16.msra.mxu1 %v13506_v23 }
 0x984   :  { %4707 = vmatprep.subr.bf16.mxu1 %v13512_v17 }
 0x987   :  { %4708 = vmatpush1.bf16.msra.mxu1 %v13518_v21 }
 0x988   :  { %4709 = vmatprep.subr.bf16.mxu1 %v13525_v63 }
 0x98b   :  { %4710 = vmatpush1.bf16.msra.mxu1 %v13530_v3  ;;  %v11807_v3 = vld [vmem:[%s15782_s3 + $0x4] ss:$8 sps:$4 sm:$0xff]  }
 0x98c   :  { %4711 = vmatprep.subr.bf16.mxu1 %v11804_v41 }
 0x98f   :  { %4712 = vmatpush1.bf16.msra.mxu1 %v11802_v61 }
 0x990   :  { %5413 = vmatprep.subr.bf16.mxu1 %v11807_v3 }
 0x9a0   :  { %v2928_v26 = vpop.f32.mrb[36].mxu0 }
 0x9a1   :  { %v2929_v54 = vadd.f32 %v2928_v26, %v12947_v12  ;;  %v2930_v58 = vpop.f32.mrb[37].mxu0 }
 0x9a2   :  { %v2931_v55 = vadd.f32 %v2930_v58, %v12950_v14  ;;  %v2932_v1 = vpop.f32.mrb[38].mxu0 }
 0x9a3   :  { %v2947_v4 = vmax.f32 %v2929_v54, 0.0  ;;  %v2933_v6 = vadd.f32 %v2932_v1, %v12947_v12  ;;  %v2934_v7 = vpop.f32.mrb[39].mxu0 }
 0x9a4   :  { %v2948_v2 = vmax.f32 %v2931_v55, 0.0  ;;  %v2935_v10 = vadd.f32 %v2934_v7, %v12950_v14 }
 0x9a5   :  { %v2949_v11 = vmax.f32 %v2933_v6, 0.0 }
 0x9a6   :  { %v11114_v13 = vpack.c.bf16 %v2948_v2, %v2947_v4  ;;  %v2950_v32 = vmax.f32 %v2935_v10, 0.0 }
 0x9a8   :  { %10306 = vst.msk [vmem:[%s15791_s11 + $0x60] sm:$0xff] %vm12956_vm3, %v11114_v13  ;;  %v11115_v20 = vpack.c.bf16 %v2950_v32, %v2949_v11  ;;  %v2938_v16 = vpop.f32.mrb[40].mxu0 }
 0x9a9   :  { %v2939_v15 = vadd.f32 %v2938_v16, %v12947_v12  ;;  %v2940_v9 = vpop.f32.mrb[41].mxu0 }
 0x9aa   :  { %10307 = vst.msk [vmem:[%s15791_s11 + $0x68] sm:$0xff] %vm12956_vm3, %v11115_v20  ;;  %v2941_v24 = vadd.f32 %v2940_v9, %v12950_v14  ;;  %v2942_v25 = vpop.f32.mrb[42].mxu0 }
 0x9ab   :  { %v2951_v52 = vmax.f32 %v2939_v15, 0.0  ;;  %v2943_v60 = vadd.f32 %v2942_v25, %v12947_v12  ;;  %v2944_v8 = vpop.f32.mrb[43].mxu0 }
 0x9ac   :  { %v2952_v0 = vmax.f32 %v2941_v24, 0.0  ;;  %v2945_v23 = vadd.f32 %v2944_v8, %v12950_v14 }
 0x9ad   :  { %v2953_v17 = vmax.f32 %v2943_v60, 0.0 }
 0x9ae   :  { %v11116_v21 = vpack.c.bf16 %v2952_v0, %v2951_v52  ;;  %v2954_v63 = vmax.f32 %v2945_v23, 0.0 }
 0x9b0   :  { %10308 = vst.msk [vmem:[%s15791_s11 + $0x70] sm:$0xff] %vm12956_vm3, %v11116_v21  ;;  %v11117_v22 = vpack.c.bf16 %v2954_v63, %v2953_v17 }
 0x9b2   :  { %10309 = vst.msk [vmem:[%s15791_s11 + $0x78] sm:$0xff] %vm12956_vm3, %v11117_v22 }
 0x9e0   :  { %v3633_v53 = vpop.f32.mrb[44].mxu0 }
 0x9e1   :  { %v3634_v30 = vadd.f32 %v3633_v53, %v12947_v12  ;;  %v3635_v27 = vpop.f32.mrb[45].mxu0 }
 0x9e2   :  { %v3636_v39 = vadd.f32 %v3635_v27, %v12950_v14  ;;  %v3637_v34 = vpop.f32.mrb[46].mxu0 }
 0x9e3   :  { %v3652_v50 = vmax.f32 %v3634_v30, 0.0  ;;  %v3638_v40 = vadd.f32 %v3637_v34, %v12947_v12  ;;  %v3639_v45 = vpop.f32.mrb[47].mxu0 }
 0x9e4   :  { %v3653_v28 = vmax.f32 %v3636_v39, 0.0  ;;  %v3640_v56 = vadd.f32 %v3639_v45, %v12950_v14 }
 0x9e5   :  { %v3654_v44 = vmax.f32 %v3638_v40, 0.0 }
 0x9e6   :  { %v11118_v37 = vpack.c.bf16 %v3653_v28, %v3652_v50  ;;  %v3655_v36 = vmax.f32 %v3640_v56, 0.0 }
 0x9e8   :  { %10384 = vst.msk [vmem:[%s15791_s11 + $0x80] sm:$0xff] %vm12956_vm3, %v11118_v37  ;;  %v11119_v51 = vpack.c.bf16 %v3655_v36, %v3654_v44  ;;  %v3643_v29 = vpop.f32.mrb[48].mxu0 }
 0x9e9   :  { %v3644_v19 = vadd.f32 %v3643_v29, %v12947_v12  ;;  %v3645_v31 = vpop.f32.mrb[49].mxu0 }
 0x9ea   :  { %10385 = vst.msk [vmem:[%s15791_s11 + $0x88] sm:$0xff] %vm12956_vm3, %v11119_v51  ;;  %v3646_v43 = vadd.f32 %v3645_v31, %v12950_v14  ;;  %v3647_v26 = vpop.f32.mrb[50].mxu0 }
 0x9eb   :  { %v3656_v54 = vmax.f32 %v3644_v19, 0.0  ;;  %v3648_v58 = vadd.f32 %v3647_v26, %v12947_v12  ;;  %v3649_v55 = vpop.f32.mrb[51].mxu0 }
 0x9ec   :  { %v3657_v1 = vmax.f32 %v3646_v43, 0.0  ;;  %v3650_v4 = vadd.f32 %v3649_v55, %v12950_v14 }
 0x9ed   :  { %v3658_v6 = vmax.f32 %v3648_v58, 0.0 }
 0x9ee   :  { %v11120_v7 = vpack.c.bf16 %v3657_v1, %v3656_v54  ;;  %v3659_v2 = vmax.f32 %v3650_v4, 0.0  ;;  %v11805_v54 = vld [vmem:[%s15782_s3] ss:$8 sps:$4 sm:$0xff]  }
 0x9f0   :  { %10386 = vst.msk [vmem:[%s15791_s11 + $0x90] sm:$0xff] %vm12956_vm3, %v11120_v7  ;;  %v11121_v10 = vpack.c.bf16 %v3659_v2, %v3658_v6  ;;  %v11810_v6 = vld [vmem:[%s15782_s3 + $0x14] ss:$8 sps:$4 sm:$0xff]  }
 0x9f2   :  { %10387 = vst.msk [vmem:[%s15791_s11 + $0x98] sm:$0xff] %vm12956_vm3, %v11121_v10 }
 0xa20   :  { %v4177_v11 = vpop.f32.mrb[52].mxu0 }
 0xa21   :  { %v4178_v13 = vadd.f32 %v4177_v11, %v12947_v12  ;;  %v4179_v32 = vpop.f32.mrb[53].mxu0 }
 0xa22   :  { %v4180_v20 = vadd.f32 %v4179_v32, %v12950_v14  ;;  %v4181_v16 = vpop.f32.mrb[54].mxu0 }
 0xa23   :  { %v4196_v15 = vmax.f32 %v4178_v13, 0.0  ;;  %v4182_v9 = vadd.f32 %v4181_v16, %v12947_v12  ;;  %v4183_v24 = vpop.f32.mrb[55].mxu0 }
 0xa24   :  { %v4197_v25 = vmax.f32 %v4180_v20, 0.0  ;;  %v4184_v41 = vadd.f32 %v4183_v24, %v12950_v14  ;;  %v11808_v20 = vld [vmem:[%s15782_s3 + $0x10] ss:$8 sps:$4 sm:$0xff]  }
 0xa25   :  { %v4198_v52 = vmax.f32 %v4182_v9, 0.0  ;;  %v4458_v60 = vpop.f32.mrb[96].mxu1  ;;  %v11813_v9 = vld [vmem:[%s15782_s3 + $0x24] ss:$8 sps:$4 sm:$0xff]  }
 0xa26   :  { %v11122_v8 = vpack.c.bf16 %v4197_v25, %v4196_v15  ;;  %v4199_v61 = vmax.f32 %v4184_v41, 0.0  ;;  %v4459_v0 = vadd.f32 %v4458_v60, %v12861_v18  ;;  %v4460_v23 = vpop.f32.mrb[97].mxu1  ;;  %v11811_v60 = vld [vmem:[%s15782_s3 + $0x20] ss:$8 sps:$4 sm:$0xff]  }
 0xa27   :  { %v4461_v17 = vadd.f32 %v4460_v23, %v12864_v57  ;;  %v4462_v21 = vpop.f32.mrb[98].mxu1  ;;  %v11817_v23 = vld [vmem:[%s15782_s3 + $0x40] ss:$8 sps:$4 sm:$0xff]  }
 0xa28   :  { %10446 = vst.msk [vmem:[%s15791_s11 + $0xa0] sm:$0xff] %vm12956_vm3, %v11122_v8  ;;  %v11123_v63 = vpack.c.bf16 %v4199_v61, %v4198_v52  ;;  %v4187_v3 = vpop.f32.mrb[56].mxu0  ;;  %v4463_v22 = vadd.f32 %v4462_v21, %v12861_v18  ;;  %v4464_v53 = vpop.f32.mrb[99].mxu1  ;;  %v4477_v34 = vmax.f32 %v4459_v0, 0.0  ;;  %v11816_v8 = vld [vmem:[%s15782_s3 + $0x34] ss:$8 sps:$4 sm:$0xff]  }
 0xa29   :  { %v4188_v30 = vadd.f32 %v4187_v3, %v12947_v12  ;;  %v4189_v27 = vpop.f32.mrb[57].mxu0  ;;  %v4465_v39 = vadd.f32 %v4464_v53, %v12864_v57  ;;  %v4478_v28 = vmax.f32 %v4461_v17, 0.0  ;;  %v11814_v61 = vld [vmem:[%s15782_s3 + $0x30] ss:$8 sps:$4 sm:$0xff]   ;;  %v11819_v0 = vld [vmem:[%s15782_s3 + $0x44] ss:$8 sps:$4 sm:$0xff]  }
 0xa2a   :  { %10447 = vst.msk [vmem:[%s15791_s11 + $0xa8] sm:$0xff] %vm12956_vm3, %v11123_v63  ;;  %v4479_v50 = vmax.f32 %v4463_v22, 0.0  ;;  %v4190_v40 = vadd.f32 %v4189_v27, %v12950_v14  ;;  %v4191_v45 = vpop.f32.mrb[58].mxu0  ;;  %v11822_v17 = vld [vmem:[%s15782_s3 + $0x54] ss:$8 sps:$4 sm:$0xff]  }
 0xa2b   :  { %v4200_v56 = vmax.f32 %v4188_v30, 0.0  ;;  %v4480_v44 = vmax.f32 %v4465_v39, 0.0  ;;  %v4192_v37 = vadd.f32 %v4191_v45, %v12947_v12  ;;  %v4193_v36 = vpop.f32.mrb[59].mxu0  ;;  %v11820_v21 = vld [vmem:[%s15782_s3 + $0x50] ss:$8 sps:$4 sm:$0xff]   ;;  %v15869_v30 = vld [vmem:[#allocation8_spill] sm:$0xff] }
 0xa2c   :  { %v4485_v51 = vpack.c.bf16 %v4479_v50, %v4477_v34  ;;  %v4201_v29 = vmax.f32 %v4190_v40, 0.0  ;;  %v4194_v19 = vadd.f32 %v4193_v36, %v12950_v14  ;;  %v11825_v63 = vld [vmem:[%s15782_s3 + $0x64] ss:$8 sps:$4 sm:$0xff]   ;;  %v11823_v3 = vld [vmem:[%s15782_s3 + $0x60] ss:$8 sps:$4 sm:$0xff]   ;;  %v15870_v27 = vld [vmem:[#allocation10_spill] sm:$0xff] }
 0xa2d   :  { %v4486_v31 = vpack.c.bf16 %v4480_v44, %v4478_v28  ;;  %v4202_v43 = vmax.f32 %v4192_v37, 0.0  ;;  %v4468_v26 = vpop.f32.mrb[100].mxu1  ;;  %v11828_v22 = vld [vmem:[%s15782_s3 + $0x74] ss:$8 sps:$4 sm:$0xff]   ;;  %v11826_v53 = vld [vmem:[%s15782_s3 + $0x70] ss:$8 sps:$4 sm:$0xff]  }
 0xa2e   :  { %v11124_v58 = vpack.c.bf16 %v4201_v29, %v4200_v56  ;;  %v4203_v55 = vmax.f32 %v4194_v19, 0.0  ;;  %v4469_v1 = vadd.f32 %v4468_v26, %v12861_v18  ;;  %v4470_v4 = vpop.f32.mrb[101].mxu1  ;;  %v11829_v39 = vld [vmem:[%s15784_s5] sm:$0xff]   ;;  %v11830_v34 = vld [vmem:[%s15784_s5 + $0x8] sm:$0xff]   ;;  %v11831_v50 = vld [vmem:[%s15784_s5 + $0x10] sm:$0xff]  }
 0xa2f   :  { %v4471_v7 = vadd.f32 %v4470_v4, %v12864_v57  ;;  %v4472_v2 = vpop.f32.mrb[102].mxu1  ;;  %4713 = vmatprep.mubr.bf16.mxu1 %v4486_v31  ;;  %v11832_v40 = vld [vmem:[%s15784_s5 + $0x18] sm:$0xff]   ;;  %v11833_v45 = vld [vmem:[%s15784_s5] sm:$0xff]  }
 0xa30   :  { %10448 = vst.msk [vmem:[%s15791_s11 + $0xb0] sm:$0xff] %vm12956_vm3, %v11124_v58  ;;  %v11125_v10 = vpack.c.bf16 %v4203_v55, %v4202_v43  ;;  %v4473_v11 = vadd.f32 %v4472_v2, %v12861_v18  ;;  %v4474_v13 = vpop.f32.mrb[103].mxu1  ;;  %4714 = vmatmul.mubr.bf16.vlgmr.msra.gmra.mrb[104].mxu1 %v4485_v51  ;;  %v4481_v16 = vmax.f32 %v4469_v1, 0.0  ;;  %11346 = vmatprep.subr.bf16.mxu0 %v11833_v45 }
 0xa31   :  { %v4475_v32 = vadd.f32 %v4474_v13, %v12864_v57  ;;  %5414 = vmatpush1.bf16.msra.mxu1 %v11805_v54  ;;  %v4482_v24 = vmax.f32 %v4471_v7, 0.0  ;;  %11347 = vmatpush3.bf16.msra.mxu0 %v11833_v45 }
 0xa32   :  { %10449 = vst.msk [vmem:[%s15791_s11 + $0xb8] sm:$0xff] %vm12956_vm3, %v11125_v10  ;;  %v4483_v15 = vmax.f32 %v4473_v11, 0.0  ;;  %5415 = vmatprep.subr.bf16.mxu1 %v11810_v6 }
 0xa33   :  { %v4484_v25 = vmax.f32 %v4475_v32, 0.0 }
 0xa34   :  { %v4487_v41 = vpack.c.bf16 %v4483_v15, %v4481_v16 }
 0xa35   :  { %v4488_v52 = vpack.c.bf16 %v4484_v25, %v4482_v24  ;;  %5416 = vmatpush1.bf16.msra.mxu1 %v11808_v20  ;;  %v11834_v25 = vld [vmem:[%s15784_s5 + $0x8] sm:$0xff]  }
 0xa36   :  { %5417 = vmatprep.subr.bf16.mxu1 %v11813_v9  ;;  %11348 = vmatprep.subr.bf16.mxu0 %v11834_v25 }
 0xa37   :  { %4723 = vmatprep.mubr.bf16.mxu1 %v4488_v52  ;;  %11349 = vmatpush3.bf16.msra.mxu0 %v11834_v25  ;;  %v11859_v25 = vld [vmem:[%s15786_s7 + $0x60] ss:$8 sps:$4 sm:$0xff]  }
 0xa38   :  { %4724 = vmatmul.mubr.bf16.gmra.mrb[108].mxu1 %v4487_v41  ;;  %v11835_v41 = vld [vmem:[%s15784_s5 + $0x10] sm:$0xff]  }
 0xa39   :  { %5418 = vmatpush1.bf16.msra.mxu1 %v11811_v60  ;;  %5445 = vmatprep.mubr.bf16.mxu1 %v15840_v59 }
 0xa3a   :  { %5419 = vmatprep.subr.bf16.mxu1 %v11816_v8  ;;  %11350 = vmatprep.subr.bf16.mxu0 %v11835_v41 }
 0xa3b   :  { %11351 = vmatpush3.bf16.msra.mxu0 %v11835_v41  ;;  %v11864_v41 = vld [vmem:[%s15786_s7 + $0x74] ss:$8 sps:$4 sm:$0xff]  }
 0xa3d   :  { %5420 = vmatpush1.bf16.msra.mxu1 %v11814_v61 }
 0xa3e   :  { %5421 = vmatprep.subr.bf16.mxu1 %v11819_v0 }
 0xa41   :  { %5422 = vmatpush1.bf16.msra.mxu1 %v11817_v23 }
 0xa42   :  { %5423 = vmatprep.subr.bf16.mxu1 %v11822_v17 }
 0xa45   :  { %5424 = vmatpush1.bf16.msra.mxu1 %v11820_v21  ;;  %v11836_v21 = vld [vmem:[%s15784_s5 + $0x18] sm:$0xff]  }
 0xa46   :  { %5425 = vmatprep.subr.bf16.mxu1 %v11825_v63  ;;  %11352 = vmatprep.subr.bf16.mxu0 %v11836_v21 }
 0xa47   :  { %11353 = vmatpush3.bf16.msra.mxu0 %v11836_v21 }
 0xa49   :  { %5426 = vmatpush1.bf16.msra.mxu1 %v11823_v3 }
 0xa4a   :  { %5427 = vmatprep.subr.bf16.mxu1 %v11828_v22 }
 0xa4d   :  { %5428 = vmatpush1.bf16.msra.mxu1 %v11826_v53 }
 0xa4e   :  { %11358 = vmatprep.subr.bf16.mxu1 %v11829_v39 }
 0xa50   :  { %5446 = vmatmul.mubr.bf16.vlgmr.msra.gmra.mrb[112].mxu1 %v15869_v30 }
 0xa51   :  { %5455 = vmatprep.mubr.bf16.mxu1 %v15840_v59  ;;  %11359 = vmatpush3.bf16.msra.mxu1 %v11829_v39 }
 0xa52   :  { %11360 = vmatprep.subr.bf16.mxu1 %v11830_v34 }
 0xa55   :  { %11361 = vmatpush3.bf16.msra.mxu1 %v11830_v34 }
 0xa56   :  { %11362 = vmatprep.subr.bf16.mxu1 %v11831_v50 }
 0xa58   :  { %5456 = vmatmul.mubr.bf16.gmra.mrb[116].mxu1 %v15870_v27 }
 0xa59   :  { %11363 = vmatpush3.bf16.msra.mxu1 %v11831_v50 }
 0xa5a   :  { %11364 = vmatprep.subr.bf16.mxu1 %v11832_v40 }
 0xa5d   :  { %11365 = vmatpush3.bf16.msra.mxu1 %v11832_v40 }
 0xb03   :  { %v4715_v28 = vpop.f32.mrb[104].mxu1 }
 0xb04   :  { %v4716_v56 = vadd.f32 %v4715_v28, %v12947_v12  ;;  %v4717_v44 = vpop.f32.mrb[105].mxu1 }
 0xb05   :  { %v4718_v37 = vadd.f32 %v4717_v44, %v12950_v14  ;;  %v4719_v36 = vpop.f32.mrb[106].mxu1 }
 0xb06   :  { %v4734_v51 = vmax.f32 %v4716_v56, 0.0  ;;  %v4720_v29 = vadd.f32 %v4719_v36, %v12947_v12  ;;  %v4721_v19 = vpop.f32.mrb[107].mxu1 }
 0xb07   :  { %v4735_v31 = vmax.f32 %v4718_v37, 0.0  ;;  %v4722_v43 = vadd.f32 %v4721_v19, %v12950_v14  ;;  %v14001_v37 = vld [vmem:[%s15786_s7 + $0x4] ss:$8 sps:$4 sm:$0xff]  }
 0xb08   :  { %v4736_v26 = vmax.f32 %v4720_v29, 0.0  ;;  %5673 = vmatprep.subr.bf16.mxu1 %v14001_v37  ;;  %4968 = vmatprep.subr.bf16.mxu0 %v14001_v37 }
 0xb09   :  { %v11126_v54 = vpack.c.bf16 %v4735_v31, %v4734_v51  ;;  %v4737_v58 = vmax.f32 %v4722_v43, 0.0 }
 0xb0b   :  { %10508 = vst.msk [vmem:[%s15791_s11 + $0xc0] sm:$0xff] %vm12956_vm3, %v11126_v54  ;;  %v11127_v55 = vpack.c.bf16 %v4737_v58, %v4736_v26  ;;  %v4725_v1 = vpop.f32.mrb[108].mxu1  ;;  %v14011_v26 = vld [vmem:[%s15786_s7] ss:$8 sps:$4 sm:$0xff]   ;;  %v14018_v58 = vld [vmem:[%s15786_s7 + $0x14] ss:$8 sps:$4 sm:$0xff]  }
 0xb0c   :  { %v4726_v4 = vadd.f32 %v4725_v1, %v12947_v12  ;;  %v4727_v6 = vpop.f32.mrb[109].mxu1  ;;  %v15872_v1 = vld [vmem:[#allocation15_spill] sm:$0xff] }
 0xb0d   :  { %10509 = vst.msk [vmem:[%s15791_s11 + $0xc8] sm:$0xff] %vm12956_vm3, %v11127_v55  ;;  %v4728_v7 = vadd.f32 %v4727_v6, %v12950_v14  ;;  %v4729_v2 = vpop.f32.mrb[110].mxu1  ;;  %v15871_v55 = vld [vmem:[#allocation19_spill] sm:$0xff]  ;;  %v15874_v6 = vld [vmem:[#allocation16_spill] sm:$0xff] }
 0xb0e   :  { %v4738_v10 = vmax.f32 %v4726_v4, 0.0  ;;  %v4730_v11 = vadd.f32 %v4729_v2, %v12947_v12  ;;  %v4731_v13 = vpop.f32.mrb[111].mxu1  ;;  %v15873_v4 = vld [vmem:[#allocation20_spill] sm:$0xff] }
 0xb0f   :  { %v4739_v32 = vmax.f32 %v4728_v7, 0.0  ;;  %v4732_v20 = vadd.f32 %v4731_v13, %v12950_v14  ;;  %v15877_v7 = vld [vmem:[#allocation4_spill] sm:$0xff]  ;;  %v14072_v13 = vld [vmem:[%s15786_s7 + $0x34] ss:$8 sps:$4 sm:$0xff]  }
 0xb10   :  { %v4740_v16 = vmax.f32 %v4730_v11, 0.0 }
 0xb11   :  { %v11128_v15 = vpack.c.bf16 %v4739_v32, %v4738_v10  ;;  %v4741_v9 = vmax.f32 %v4732_v20, 0.0  ;;  %v14078_v32 = vld [vmem:[%s15786_s7 + $0x30] ss:$8 sps:$4 sm:$0xff]   ;;  %v11855_v20 = vld [vmem:[%s15786_s7 + $0x44] ss:$8 sps:$4 sm:$0xff]  }
 0xb13   :  { %10510 = vst.msk [vmem:[%s15791_s11 + $0xd0] sm:$0xff] %vm12956_vm3, %v11128_v15  ;;  %v11129_v24 = vpack.c.bf16 %v4741_v9, %v4740_v16  ;;  %v11853_v16 = vld [vmem:[%s15786_s7 + $0x40] ss:$8 sps:$4 sm:$0xff]   ;;  %v11858_v15 = vld [vmem:[%s15786_s7 + $0x54] ss:$8 sps:$4 sm:$0xff]  }
 0xb14   :  { %v11856_v9 = vld [vmem:[%s15786_s7 + $0x50] ss:$8 sps:$4 sm:$0xff]  }
 0xb15   :  { %10511 = vst.msk [vmem:[%s15791_s11 + $0xd8] sm:$0xff] %vm12956_vm3, %v11129_v24  ;;  %v11861_v24 = vld [vmem:[%s15786_s7 + $0x64] ss:$8 sps:$4 sm:$0xff]  }
 0xb23   :  { %v5447_v52 = vpop.f32.mrb[112].mxu1 }
 0xb24   :  { %v5448_v60 = vadd.f32 %v5447_v52, %v15860_v33  ;;  %v5449_v8 = vpop.f32.mrb[113].mxu1  ;;  %v11862_v52 = vld [vmem:[%s15786_s7 + $0x70] ss:$8 sps:$4 sm:$0xff]  }
 0xb25   :  { %v5450_v61 = vadd.f32 %v5449_v8, %v15861_v5  ;;  %v5451_v0 = vpop.f32.mrb[114].mxu1  ;;  %v14109_v8 = vld [vmem:[%s15788_s6] ss:$0 sm:$0xff] }
 0xb26   :  { %v5452_v23 = vadd.f32 %v5451_v0, %v15860_v33  ;;  %v5453_v17 = vpop.f32.mrb[115].mxu1  ;;  %v5466_v3 = vmax.f32 %v5448_v60, 0.0 }
 0xb27   :  { %v5454_v63 = vadd.f32 %v5453_v17, %v15861_v5  ;;  %v5467_v53 = vmax.f32 %v5450_v61, 0.0 }
 0xb28   :  { %v5468_v22 = vmax.f32 %v5452_v23, 0.0 }
 0xb29   :  { %v5469_v30 = vmax.f32 %v5454_v63, 0.0 }
 0xb2a   :  { %v5474_v27 = vpack.c.bf16 %v5468_v22, %v5466_v3 }
 0xb2b   :  { %v13991_v39 = vpack.c.bf16 %v5469_v30, %v5467_v53  ;;  %v5457_v34 = vpop.f32.mrb[116].mxu1 }
 0xb2c   :  { %v5458_v50 = vadd.f32 %v5457_v34, %v15860_v33  ;;  %v5459_v40 = vpop.f32.mrb[117].mxu1  ;;  %6032 = vrot.lane.b32.xlu0 %v5474_v27, %s12144_s4  ;;  %11366 = vmatprep.mubr.msk.bf16.mxu1 %vm829_vm0, %v5474_v27 }
 0xb2d   :  { %v5460_v45 = vadd.f32 %v5459_v40, %v15861_v5  ;;  %v5461_v28 = vpop.f32.mrb[118].mxu1  ;;  %v11844_v40 = vld [vmem:[%s15784_s5 + $0x8] sm:$0xff]  }
 0xb2e   :  { %v5462_v56 = vadd.f32 %v5461_v28, %v15860_v33  ;;  %v5463_v44 = vpop.f32.mrb[119].mxu1  ;;  %v5470_v51 = vmax.f32 %v5458_v50, 0.0  ;;  %v11846_v28 = vld [vmem:[%s15784_s5 + $0x18] sm:$0xff]  }
 0xb2f   :  { %v5464_v36 = vadd.f32 %v5463_v44, %v15861_v5  ;;  %v5471_v19 = vmax.f32 %v5460_v45, 0.0  ;;  %v11845_v45 = vld [vmem:[%s15784_s5 + $0x10] sm:$0xff]  }
 0xb30   :  { %v5472_v29 = vmax.f32 %v5462_v56, 0.0  ;;  %4783 = vrot.lane.b32.xlu0 %v13173_v38, %s12144_s4  ;;  %v14028_v38 = vld [vmem:[%s15786_s7 + $0x10] ss:$8 sps:$4 sm:$0xff]   ;;  %v14139_v56 = vld [vmem:[%s15784_s5] sm:$0xff]  }
 0xb31   :  { %v5473_v31 = vmax.f32 %v5464_v36, 0.0 }
 0xb32   :  { %v5476_v43 = vpack.c.bf16 %v5472_v29, %v5470_v51 }
 0xb33   :  { %v14013_v54 = vpack.c.bf16 %v5473_v31, %v5471_v19 }
 0xb34   :  { %6034 = vrot.lane.b32.xlu1 %v5476_v43, %s12144_s4  ;;  %7114 = vrot.lane.b32.xlu0 %v13991_v39, %s12144_s4 }
 0xb35   :  { %11367 = vmatmul.mubr.msk.bf16.vlgmr.msra.gmra.mrb[120].mxu1 %vm829_vm0, %v5476_v43 }
 0xb36   :  { %5674 = vmatpush1.bf16.msra.mxu1 %v14011_v26  ;;  %5705 = vmatprep.mubr.bf16.mxu1 %v15840_v59 }
 0xb37   :  { %5675 = vmatprep.subr.bf16.mxu1 %v14018_v58 }
 0xb38   :  { %4785 = vrot.lane.b32.xlu1 %v13198_v48, %s12144_s4  ;;  %v15875_v48 = vld [vmem:[#allocation21_spill] sm:$0xff] }
 0xb3a   :  { %5676 = vmatpush1.bf16.msra.mxu1 %v14028_v38 }
 0xb3b   :  { %5677 = vmatprep.subr.bf16.mxu1 %v13598_v46  ;;  %v15876_v46 = vld [vmem:[#allocation17_spill] sm:$0xff] }
 0xb3c   :  { %7116 = vrot.lane.b32.xlu1 %v14013_v54, %s12144_s4 }
 0xb3e   :  { %5678 = vmatpush1.bf16.msra.mxu1 %v13603_v49  ;;  %v11843_v49 = vld [vmem:[%s15784_s5] sm:$0xff]  }
 0xb3f   :  { %5679 = vmatprep.subr.bf16.mxu1 %v15871_v55 }
 0xb42   :  { %5680 = vmatpush1.bf16.msra.mxu1 %v15872_v1 }
 0xb43   :  { %5681 = vmatprep.subr.bf16.mxu1 %v15873_v4 }
 0xb46   :  { %5682 = vmatpush1.bf16.msra.mxu1 %v15874_v6  ;;  %v14150_v6 = vld [vmem:[%s15787_s9] ss:$8 sps:$4 sm:$0xff]  }
 0xb47   :  { %5683 = vmatprep.subr.bf16.mxu1 %v13637_v35 }
 0xb4a   :  { %5684 = vmatpush1.bf16.msra.mxu1 %v13643_v42  ;;  %v14066_v42 = vld [vmem:[%s15786_s7 + $0x20] ss:$8 sps:$4 sm:$0xff]  }
 0xb4b   :  { %5685 = vmatprep.subr.bf16.mxu1 %v13650_v47  ;;  %v14060_v47 = vld [vmem:[%s15786_s7 + $0x24] ss:$8 sps:$4 sm:$0xff]  }
 0xb4e   :  { %5686 = vmatpush1.bf16.msra.mxu1 %v15875_v48  ;;  %v14155_v48 = vld [vmem:[%s15787_s9 + $0x4] ss:$8 sps:$4 sm:$0xff]  }
 0xb4f   :  { %5687 = vmatprep.subr.bf16.mxu1 %v15876_v46  ;;  %v14160_v46 = vld [vmem:[%s15787_s9 + $0x14] ss:$8 sps:$4 sm:$0xff]  }
 0xb52   :  { %5688 = vmatpush1.bf16.msra.mxu1 %v15877_v7  ;;  %v14167_v7 = vld [vmem:[%s15787_s9 + $0x10] ss:$8 sps:$4 sm:$0xff]  }
 0xb53   :  { %11370 = vmatprep.subr.bf16.mxu1 %v11843_v49 }
 0xb9e   :  { %v6033_v2 = vpop.permute.xlu0 %6032 }
 0xba2   :  { %v4784_v10 = vpop.permute.xlu0 %4783 }
 0xba3   :  { %11354 = vmatprep.mubr.msk.bf16.mxu0 %vm829_vm0, %v4784_v10  ;;  %v14185_v10 = vld [vmem:[%s15787_s9 + $0x34] ss:$8 sps:$4 sm:$0xff]  }
 0xba6   :  { %v6035_v35 = vpop.permute.xlu1 %6034 }
 0xbaa   :  { %v4786_v11 = vpop.permute.xlu1 %4785 }
 0xbab   :  { %11355 = vmatmul.mubr.msk.bf16.vlgmr.msra.gmra.mrb[60].mxu0 %vm829_vm0, %v4786_v11  ;;  %v14197_v11 = vld [vmem:[%s15787_s9 + $0x44] ss:$8 sps:$4 sm:$0xff]  }
 0xbac   :  { %4969 = vmatpush1.bf16.msra.mxu0 %v14011_v26  ;;  %5000 = vmatprep.mubr.bf16.mxu0 %v15840_v59 }
 0xbad   :  { %4970 = vmatprep.subr.bf16.mxu0 %v14018_v58 }
 0xbb0   :  { %4971 = vmatpush1.bf16.msra.mxu0 %v14028_v38 }
 0xbb1   :  { %4972 = vmatprep.subr.bf16.mxu0 %v14060_v47 }
 0xbb4   :  { %4973 = vmatpush1.bf16.msra.mxu0 %v14066_v42 }
 0xbb5   :  { %4974 = vmatprep.subr.bf16.mxu0 %v14072_v13 }
 0xbb8   :  { %4975 = vmatpush1.bf16.msra.mxu0 %v14078_v32 }
 0xbb9   :  { %4976 = vmatprep.subr.bf16.mxu0 %v11855_v20 }
 0xbbc   :  { %4977 = vmatpush1.bf16.msra.mxu0 %v11853_v16 }
 0xbbd   :  { %4978 = vmatprep.subr.bf16.mxu0 %v11858_v15 }
 0xbc0   :  { %4979 = vmatpush1.bf16.msra.mxu0 %v11856_v9 }
 0xbc1   :  { %4980 = vmatprep.subr.bf16.mxu0 %v11861_v24 }
 0xbc4   :  { %4981 = vmatpush1.bf16.msra.mxu0 %v11859_v25 }
 0xbc5   :  { %4982 = vmatprep.subr.bf16.mxu0 %v11864_v41 }
 0xbc8   :  { %4983 = vmatpush1.bf16.msra.mxu0 %v11862_v52 }
 0xbc9   :  { %5225 = vmatprep.subr.bf16.mxu0 %v14155_v48 }
 0xc08   :  { %v11368_v60 = vpop.f32.mrb[120].mxu1 }
 0xc09   :  { %v5565_v61 = vadd.f32 %v14109_v8, %v11368_v60  ;;  %v5556_v0 = vpop.f32.mrb[121].mxu1  ;;  %v14251_v60 = vld [vmem:[%s15787_s9 + $0x80] ss:$8 sps:$4 sm:$0xff]  }
 0xc0a   :  { %v5557_v23 = vadd.f32 %v14109_v8, %v5556_v0  ;;  %v11369_v17 = vpop.f32.mrb[122].mxu1  ;;  %v14263_v0 = vld [vmem:[%s15787_s9 + $0x90] ss:$8 sps:$4 sm:$0xff]  }
 0xc0b   :  { %v5568_v21 = vadd.f32 %v14109_v8, %v11369_v17  ;;  %v5559_v63 = vpop.f32.mrb[123].mxu1  ;;  %v5573_v22 = vmax.f32 %v5565_v61, 0.0  ;;  %v14257_v61 = vld [vmem:[%s15787_s9 + $0x94] ss:$8 sps:$4 sm:$0xff]   ;;  %v14275_v17 = vld [vmem:[%s15787_s9 + $0xa0] ss:$8 sps:$4 sm:$0xff]  }
 0xc0c   :  { %v5560_v3 = vadd.f32 %v14109_v8, %v5559_v63  ;;  %v5571_v30 = vmax.f32 %v5557_v23, 0.0  ;;  %v14269_v23 = vld [vmem:[%s15787_s9 + $0xa4] ss:$8 sps:$4 sm:$0xff]   ;;  %v14287_v63 = vld [vmem:[%s15787_s9 + $0xb0] ss:$8 sps:$4 sm:$0xff]  }
 0xc0d   :  { %v5574_v53 = vmax.f32 %v5568_v21, 0.0  ;;  %v14281_v21 = vld [vmem:[%s15787_s9 + $0xb4] ss:$8 sps:$4 sm:$0xff]  }
 0xc0e   :  { %v5572_v27 = vmax.f32 %v5560_v3, 0.0  ;;  %v14293_v3 = vld [vmem:[%s15787_s9 + $0xc4] ss:$8 sps:$4 sm:$0xff]  }
 0xc0f   :  { %v5576_v34 = vpack.c.bf16 %v5574_v53, %v5573_v22  ;;  %v14299_v22 = vld [vmem:[%s15787_s9 + $0xc0] ss:$8 sps:$4 sm:$0xff]   ;;  %v14305_v53 = vld [vmem:[%s15787_s9 + $0xd4] ss:$8 sps:$4 sm:$0xff]  }
 0xc10   :  { %v5575_v50 = vpack.c.bf16 %v5572_v27, %v5571_v30  ;;  %v14311_v30 = vld [vmem:[%s15787_s9 + $0xd0] ss:$8 sps:$4 sm:$0xff]   ;;  %v14318_v27 = vld [vmem:[%s15787_s9 + $0xe4] ss:$8 sps:$4 sm:$0xff]  }
 0xc12   :  { %5706 = vmatmul.mubr.bf16.vlgmr.msra.gmra.mrb[124].mxu1 %v5575_v50  ;;  %v14330_v50 = vld [vmem:[%s15787_s9 + $0xf4] ss:$8 sps:$4 sm:$0xff]  }
 0xc13   :  { %11371 = vmatpush3.bf16.msra.mxu1 %v11843_v49  ;;  %5715 = vmatprep.mubr.bf16.mxu1 %v15840_v59  ;;  %v14173_v49 = vld [vmem:[%s15787_s9 + $0x24] ss:$8 sps:$4 sm:$0xff]  }
 0xc14   :  { %11372 = vmatprep.subr.bf16.mxu1 %v11844_v40 }
 0xc17   :  { %11373 = vmatpush3.bf16.msra.mxu1 %v11844_v40  ;;  %v14335_v40 = vld [vmem:[%s15787_s9 + $0xf0] ss:$8 sps:$4 sm:$0xff]  }
 0xc18   :  { %11374 = vmatprep.subr.bf16.mxu1 %v11845_v45 }
 0xc1a   :  { %5716 = vmatmul.mubr.bf16.gmra.mrb[128].mxu1 %v5576_v34  ;;  %v14323_v34 = vld [vmem:[%s15787_s9 + $0xe0] ss:$8 sps:$4 sm:$0xff]  }
 0xc1b   :  { %11375 = vmatpush3.bf16.msra.mxu1 %v11845_v45  ;;  %11378 = vmatprep.mubr.msk.bf16.mxu1 %vm829_vm0, %v6033_v2  ;;  %v14179_v2 = vld [vmem:[%s15787_s9 + $0x20] ss:$8 sps:$4 sm:$0xff]  }
 0xc1c   :  { %11376 = vmatprep.subr.bf16.mxu1 %v11846_v28 }
 0xc1f   :  { %11377 = vmatpush3.bf16.msra.mxu1 %v11846_v28 }
 0xc20   :  { %6217 = vmatprep.subr.bf16.mxu1 %v14001_v37 }
 0xc22   :  { %11379 = vmatmul.mubr.msk.bf16.vlgmr.msra.gmra.mrb[132].mxu1 %vm829_vm0, %v6035_v35  ;;  %v14191_v35 = vld [vmem:[%s15787_s9 + $0x30] ss:$8 sps:$4 sm:$0xff]  }
 0xc23   :  { %6218 = vmatpush1.bf16.msra.mxu1 %v14011_v26  ;;  %6249 = vmatprep.mubr.bf16.mxu1 %v15840_v59 }
 0xc24   :  { %6219 = vmatprep.subr.bf16.mxu1 %v14018_v58 }
 0xc27   :  { %6220 = vmatpush1.bf16.msra.mxu1 %v14028_v38 }
 0xc28   :  { %6221 = vmatprep.subr.bf16.mxu1 %v14060_v47 }
 0xc2b   :  { %6222 = vmatpush1.bf16.msra.mxu1 %v14066_v42 }
 0xc2c   :  { %6223 = vmatprep.subr.bf16.mxu1 %v14072_v13 }
 0xc2f   :  { %6224 = vmatpush1.bf16.msra.mxu1 %v14078_v32 }
 0xc30   :  { %6225 = vmatprep.subr.bf16.mxu1 %v11855_v20  ;;  %v14203_v20 = vld [vmem:[%s15787_s9 + $0x40] ss:$8 sps:$4 sm:$0xff]  }
 0xc33   :  { %6226 = vmatpush1.bf16.msra.mxu1 %v11853_v16  ;;  %v14209_v16 = vld [vmem:[%s15787_s9 + $0x54] ss:$8 sps:$4 sm:$0xff]  }
 0xc34   :  { %6227 = vmatprep.subr.bf16.mxu1 %v11858_v15  ;;  %v14215_v15 = vld [vmem:[%s15787_s9 + $0x50] ss:$8 sps:$4 sm:$0xff]  }
 0xc37   :  { %6228 = vmatpush1.bf16.msra.mxu1 %v11856_v9  ;;  %v14221_v9 = vld [vmem:[%s15787_s9 + $0x64] ss:$8 sps:$4 sm:$0xff]  }
 0xc38   :  { %6229 = vmatprep.subr.bf16.mxu1 %v11861_v24  ;;  %v14227_v24 = vld [vmem:[%s15787_s9 + $0x60] ss:$8 sps:$4 sm:$0xff]  }
 0xc3b   :  { %6230 = vmatpush1.bf16.msra.mxu1 %v11859_v25  ;;  %v14233_v25 = vld [vmem:[%s15787_s9 + $0x74] ss:$8 sps:$4 sm:$0xff]  }
 0xc3c   :  { %6231 = vmatprep.subr.bf16.mxu1 %v11864_v41  ;;  %v14239_v41 = vld [vmem:[%s15787_s9 + $0x70] ss:$8 sps:$4 sm:$0xff]  }
 0xc3f   :  { %6232 = vmatpush1.bf16.msra.mxu1 %v11862_v52  ;;  %v14245_v52 = vld [vmem:[%s15787_s9 + $0x84] ss:$8 sps:$4 sm:$0xff]  }
 0xc40   :  { %11382 = vmatprep.subr.bf16.mxu1 %v14139_v56 }
 0xc7e   :  { %v11356_v44 = vpop.f32.mrb[60].mxu0 }
 0xc7f   :  { %v4860_v37 = vadd.f32 %v14109_v8, %v11356_v44  ;;  %v4851_v36 = vpop.f32.mrb[61].mxu0 }
 0xc80   :  { %v4852_v51 = vadd.f32 %v14109_v8, %v4851_v36  ;;  %v11357_v29 = vpop.f32.mrb[62].mxu0 }
 0xc81   :  { %v4863_v19 = vadd.f32 %v14109_v8, %v11357_v29  ;;  %v4854_v31 = vpop.f32.mrb[63].mxu0  ;;  %v4868_v26 = vmax.f32 %v4860_v37, 0.0 }
 0xc82   :  { %v4855_v43 = vadd.f32 %v14109_v8, %v4854_v31  ;;  %v4866_v38 = vmax.f32 %v4852_v51, 0.0 }
 0xc83   :  { %v4869_v58 = vmax.f32 %v4863_v19, 0.0 }
 0xc84   :  { %v4867_v55 = vmax.f32 %v4855_v43, 0.0 }
 0xc85   :  { %v4871_v1 = vpack.c.bf16 %v4869_v58, %v4868_v26 }
 0xc86   :  { %v4870_v4 = vpack.c.bf16 %v4867_v55, %v4866_v38 }
 0xc88   :  { %5001 = vmatmul.mubr.bf16.vlgmr.msra.gmra.mrb[64].mxu0 %v4870_v4 }
 0xc89   :  { %5010 = vmatprep.mubr.bf16.mxu0 %v15840_v59  ;;  %5226 = vmatpush1.bf16.msra.mxu0 %v14150_v6 }
 0xc8a   :  { %5227 = vmatprep.subr.bf16.mxu0 %v14160_v46 }
 0xc8d   :  { %5228 = vmatpush1.bf16.msra.mxu0 %v14167_v7 }
 0xc8e   :  { %5229 = vmatprep.subr.bf16.mxu0 %v14173_v49 }
 0xc90   :  { %5011 = vmatmul.mubr.bf16.gmra.mrb[68].mxu0 %v4871_v1 }
 0xc91   :  { %5230 = vmatpush1.bf16.msra.mxu0 %v14179_v2 }
 0xc92   :  { %5231 = vmatprep.subr.bf16.mxu0 %v14185_v10 }
 0xc95   :  { %5232 = vmatpush1.bf16.msra.mxu0 %v14191_v35 }
 0xc96   :  { %5233 = vmatprep.subr.bf16.mxu0 %v14197_v11 }
 0xc99   :  { %5234 = vmatpush1.bf16.msra.mxu0 %v14203_v20 }
 0xc9a   :  { %5235 = vmatprep.subr.bf16.mxu0 %v14209_v16 }
 0xc9d   :  { %5236 = vmatpush1.bf16.msra.mxu0 %v14215_v15 }
 0xc9e   :  { %5237 = vmatprep.subr.bf16.mxu0 %v14221_v9 }
 0xca1   :  { %5238 = vmatpush1.bf16.msra.mxu0 %v14227_v24 }
 0xca2   :  { %5239 = vmatprep.subr.bf16.mxu0 %v14233_v25 }
 0xca5   :  { %5240 = vmatpush1.bf16.msra.mxu0 %v14239_v41 }
 0xca6   :  { %5241 = vmatprep.subr.bf16.mxu0 %v14245_v52 }
 0xca9   :  { %5242 = vmatpush1.bf16.msra.mxu0 %v14251_v60 }
 0xcaa   :  { %5243 = vmatprep.subr.bf16.mxu0 %v14257_v61 }
 0xcad   :  { %5244 = vmatpush1.bf16.msra.mxu0 %v14263_v0 }
 0xcae   :  { %5245 = vmatprep.subr.bf16.mxu0 %v14269_v23 }
 0xcb1   :  { %5246 = vmatpush1.bf16.msra.mxu0 %v14275_v17 }
 0xcb2   :  { %5247 = vmatprep.subr.bf16.mxu0 %v14281_v21 }
 0xcb5   :  { %5248 = vmatpush1.bf16.msra.mxu0 %v14287_v63 }
 0xcb6   :  { %5249 = vmatprep.subr.bf16.mxu0 %v14293_v3 }
 0xcb9   :  { %5250 = vmatpush1.bf16.msra.mxu0 %v14299_v22 }
 0xcba   :  { %5251 = vmatprep.subr.bf16.mxu0 %v14305_v53 }
 0xcbd   :  { %5252 = vmatpush1.bf16.msra.mxu0 %v14311_v30 }
 0xcbe   :  { %5253 = vmatprep.subr.bf16.mxu0 %v14318_v27 }
 0xcc1   :  { %5254 = vmatpush1.bf16.msra.mxu0 %v14323_v34 }
 0xcc2   :  { %5255 = vmatprep.subr.bf16.mxu0 %v14330_v50 }
 0xcc5   :  { %5256 = vmatpush1.bf16.msra.mxu0 %v14335_v40 }
 0xcc6   :  { %5930 = vmatprep.subr.bf16.mxu0 %v14155_v48 }
 0xce5   :  { %v5707_v45 = vpop.f32.mrb[124].mxu1 }
 0xce6   :  { %v5708_v28 = vadd.f32 %v5707_v45, %v12861_v18  ;;  %v5709_v44 = vpop.f32.mrb[125].mxu1 }
 0xce7   :  { %v5710_v37 = vadd.f32 %v5709_v44, %v12864_v57  ;;  %v5711_v36 = vpop.f32.mrb[126].mxu1 }
 0xce8   :  { %v5712_v51 = vadd.f32 %v5711_v36, %v12861_v18  ;;  %v5713_v29 = vpop.f32.mrb[127].mxu1  ;;  %v5726_v31 = vmax.f32 %v5708_v28, 0.0 }
 0xce9   :  { %v5714_v19 = vadd.f32 %v5713_v29, %v12864_v57  ;;  %v5727_v26 = vmax.f32 %v5710_v37, 0.0 }
 0xcea   :  { %v5728_v43 = vmax.f32 %v5712_v51, 0.0 }
 0xceb   :  { %v5729_v58 = vmax.f32 %v5714_v19, 0.0 }
 0xcec   :  { %v14344_v38 = vpack.c.bf16 %v5728_v43, %v5726_v31 }
 0xced   :  { %v14346_v55 = vpack.c.bf16 %v5729_v58, %v5727_v26  ;;  %v5717_v1 = vpop.f32.mrb[128].mxu1 }
 0xcee   :  { %v5718_v4 = vadd.f32 %v5717_v1, %v12861_v18  ;;  %v5719_v45 = vpop.f32.mrb[129].mxu1 }
 0xcef   :  { %v5720_v44 = vadd.f32 %v5719_v45, %v12864_v57  ;;  %v5721_v5 = vpop.f32.mrb[130].mxu1 }
 0xcf0   :  { %v5722_v36 = vadd.f32 %v5721_v5, %v12861_v18  ;;  %v5723_v33 = vpop.f32.mrb[131].mxu1  ;;  %v5730_v28 = vmax.f32 %v5718_v4, 0.0 }
 0xcf1   :  { %v5724_v29 = vadd.f32 %v5723_v33, %v12864_v57  ;;  %v5731_v37 = vmax.f32 %v5720_v44, 0.0 }
 0xcf2   :  { %v5732_v51 = vmax.f32 %v5722_v36, 0.0 }
 0xcf3   :  { %v5733_v19 = vmax.f32 %v5724_v29, 0.0 }
 0xcf4   :  { %v14352_v31 = vpack.c.bf16 %v5732_v51, %v5730_v28 }
 0xcf5   :  { %v14354_v43 = vpack.c.bf16 %v5733_v19, %v5731_v37  ;;  %v11380_v26 = vpop.f32.mrb[132].mxu1  ;;  %v11866_v37 = vld [vmem:[%s15784_s5 + $0x8] sm:$0xff]  }
 0xcf6   :  { %v6109_v58 = vadd.f32 %v14109_v8, %v11380_v26  ;;  %v6100_v1 = vpop.f32.mrb[133].mxu1  ;;  %v14384_v19 = vld [vmem:[%s15786_s7] ss:$8 sps:$4 sm:$0xff]   ;;  %v14407_v26 = vld [vmem:[%s15786_s7 + $0x44] ss:$8 sps:$4 sm:$0xff]  }
 0xcf7   :  { %v6101_v45 = vadd.f32 %v14109_v8, %v6100_v1  ;;  %v11381_v62 = vpop.f32.mrb[134].mxu1  ;;  %v14412_v1 = vld [vmem:[%s15786_s7 + $0x40] ss:$8 sps:$4 sm:$0xff]  }
 0xcf8   :  { %v6112_v5 = vadd.f32 %v14109_v8, %v11381_v62  ;;  %v6103_v14 = vpop.f32.mrb[135].mxu1  ;;  %v6117_v4 = vmax.f32 %v6109_v58, 0.0  ;;  %v11868_v62 = vld [vmem:[%s15784_s5 + $0x18] sm:$0xff]  }
 0xcf9   :  { %v6104_v33 = vadd.f32 %v14109_v8, %v6103_v14  ;;  %v6115_v44 = vmax.f32 %v6101_v45, 0.0  ;;  %v11867_v14 = vld [vmem:[%s15784_s5 + $0x10] sm:$0xff]  }
 0xcfa   :  { %v6118_v36 = vmax.f32 %v6112_v5, 0.0 }
 0xcfb   :  { %v6116_v29 = vmax.f32 %v6104_v33, 0.0  ;;  %v14422_v33 = vld [vmem:[%s15786_s7 + $0x54] ss:$8 sps:$4 sm:$0xff]  }
 0xcfc   :  { %v6120_v28 = vpack.c.bf16 %v6118_v36, %v6117_v4  ;;  %v14428_v36 = vld [vmem:[%s15786_s7 + $0x50] ss:$8 sps:$4 sm:$0xff]  }
 0xcfd   :  { %v6119_v51 = vpack.c.bf16 %v6116_v29, %v6115_v44 }
 0xcff   :  { %6250 = vmatmul.mubr.bf16.vlgmr.msra.gmra.mrb[136].mxu1 %v6119_v51 }
 0xd00   :  { %11383 = vmatpush3.bf16.msra.mxu1 %v14139_v56  ;;  %6259 = vmatprep.mubr.bf16.mxu1 %v15840_v59  ;;  %v14379_v56 = vld [vmem:[%s15786_s7 + $0x4] ss:$8 sps:$4 sm:$0xff]  }
 0xd01   :  { %11384 = vmatprep.subr.bf16.mxu1 %v11866_v37 }
 0xd04   :  { %11385 = vmatpush3.bf16.msra.mxu1 %v11866_v37 }
 0xd05   :  { %11386 = vmatprep.subr.bf16.mxu1 %v11867_v14 }
 0xd07   :  { %6260 = vmatmul.mubr.bf16.gmra.mrb[140].mxu1 %v6120_v28 }
 0xd08   :  { %11387 = vmatpush3.bf16.msra.mxu1 %v11867_v14  ;;  %11390 = vmatprep.mubr.msk.bf16.mxu1 %vm829_vm0, %v13991_v39  ;;  %v14391_v39 = vld [vmem:[%s15786_s7 + $0x14] ss:$8 sps:$4 sm:$0xff]   ;;  %v14435_v14 = vld [vmem:[%s15786_s7 + $0x64] ss:$8 sps:$4 sm:$0xff]  }
 0xd09   :  { %11388 = vmatprep.subr.bf16.mxu1 %v11868_v62 }
 0xd0c   :  { %11389 = vmatpush3.bf16.msra.mxu1 %v11868_v62 }
 0xd0d   :  { %6755 = vmatprep.subr.bf16.mxu1 %v14379_v56 }
 0xd0f   :  { %11391 = vmatmul.mubr.msk.bf16.vlgmr.msra.gmra.mrb[144].mxu1 %vm829_vm0, %v14013_v54  ;;  %v14396_v54 = vld [vmem:[%s15786_s7 + $0x10] ss:$8 sps:$4 sm:$0xff]  }
 0xd10   :  { %6787 = vmatprep.mubr.bf16.mxu1 %v15840_v59  ;;  %6756 = vmatpush1.bf16.msra.mxu1 %v14384_v19 }
 0xd11   :  { %6757 = vmatprep.subr.bf16.mxu1 %v14391_v39 }
 0xd14   :  { %6758 = vmatpush1.bf16.msra.mxu1 %v14396_v54 }
 0xd15   :  { %6759 = vmatprep.subr.bf16.mxu1 %v14060_v47 }
 0xd18   :  { %6760 = vmatpush1.bf16.msra.mxu1 %v14066_v42 }
 0xd19   :  { %6761 = vmatprep.subr.bf16.mxu1 %v14072_v13 }
 0xd1c   :  { %6762 = vmatpush1.bf16.msra.mxu1 %v14078_v32 }
 0xd1d   :  { %6763 = vmatprep.subr.bf16.mxu1 %v14407_v26 }
 0xd20   :  { %6764 = vmatpush1.bf16.msra.mxu1 %v14412_v1 }
 0xd21   :  { %6765 = vmatprep.subr.bf16.mxu1 %v14422_v33 }
 0xd24   :  { %6766 = vmatpush1.bf16.msra.mxu1 %v14428_v36 }
 0xd25   :  { %6767 = vmatprep.subr.bf16.mxu1 %v14435_v14 }
 0xd5b   :  { %v5002_v58 = vpop.f32.mrb[64].mxu0 }
 0xd5c   :  { %v5003_v45 = vadd.f32 %v5002_v58, %v12861_v18  ;;  %v5004_v47 = vpop.f32.mrb[65].mxu0 }
 0xd5d   :  { %v5005_v42 = vadd.f32 %v5004_v47, %v12864_v57  ;;  %v5006_v13 = vpop.f32.mrb[66].mxu0  ;;  %v14440_v47 = vld [vmem:[%s15786_s7 + $0x60] ss:$8 sps:$4 sm:$0xff]  }
 0xd5e   :  { %v5007_v32 = vadd.f32 %v5006_v13, %v12861_v18  ;;  %v5008_v5 = vpop.f32.mrb[67].mxu0  ;;  %v5021_v44 = vmax.f32 %v5003_v45, 0.0  ;;  %6768 = vmatpush1.bf16.msra.mxu1 %v14440_v47 }
 0xd5f   :  { %v5009_v4 = vadd.f32 %v5008_v5, %v12864_v57  ;;  %v5022_v28 = vmax.f32 %v5005_v42, 0.0 }
 0xd60   :  { %v5023_v29 = vmax.f32 %v5007_v32, 0.0 }
 0xd61   :  { %v5024_v51 = vmax.f32 %v5009_v4, 0.0 }
 0xd62   :  { %v5029_v37 = vpack.c.bf16 %v5023_v29, %v5021_v44  ;;  %v14450_v44 = vld [vmem:[%s15786_s7 + $0x74] ss:$8 sps:$4 sm:$0xff]  }
 0xd63   :  { %v5030_v62 = vpack.c.bf16 %v5024_v51, %v5022_v28  ;;  %v5012_v58 = vpop.f32.mrb[68].mxu0  ;;  %v14457_v28 = vld [vmem:[%s15786_s7 + $0x70] ss:$8 sps:$4 sm:$0xff]   ;;  %6769 = vmatprep.subr.bf16.mxu1 %v14450_v44 }
 0xd64   :  { %v5013_v45 = vadd.f32 %v5012_v58, %v12861_v18  ;;  %v5014_v13 = vpop.f32.mrb[69].mxu0  ;;  %6770 = vmatpush1.bf16.msra.mxu1 %v14457_v28 }
 0xd65   :  { %v5015_v42 = vadd.f32 %v5014_v13, %v12864_v57  ;;  %v5016_v32 = vpop.f32.mrb[70].mxu0  ;;  %5257 = vmatprep.mubr.bf16.mxu0 %v5030_v62  ;;  %7012 = vmatprep.subr.bf16.mxu1 %v14155_v48 }
 0xd66   :  { %v5017_v5 = vadd.f32 %v5016_v32, %v12861_v18  ;;  %v5018_v4 = vpop.f32.mrb[71].mxu0  ;;  %5258 = vmatmul.mubr.bf16.vlgmr.msra.gmra.mrb[72].mxu0 %v5029_v37  ;;  %v5025_v51 = vmax.f32 %v5013_v45, 0.0 }
 0xd67   :  { %v5019_v29 = vadd.f32 %v5018_v4, %v12864_v57  ;;  %5931 = vmatpush1.bf16.msra.mxu0 %v14150_v6  ;;  %v5026_v37 = vmax.f32 %v5015_v42, 0.0 }
 0xd68   :  { %v5027_v62 = vmax.f32 %v5017_v5, 0.0  ;;  %5932 = vmatprep.subr.bf16.mxu0 %v14160_v46 }
 0xd69   :  { %v5028_v58 = vmax.f32 %v5019_v29, 0.0 }
 0xd6a   :  { %v5031_v13 = vpack.c.bf16 %v5027_v62, %v5025_v51 }
 0xd6b   :  { %v5032_v32 = vpack.c.bf16 %v5028_v58, %v5026_v37  ;;  %5933 = vmatpush1.bf16.msra.mxu0 %v14167_v7 }
 0xd6c   :  { %5934 = vmatprep.subr.bf16.mxu0 %v14173_v49 }
 0xd6d   :  { %5267 = vmatprep.mubr.bf16.mxu0 %v5032_v32 }
 0xd6e   :  { %5268 = vmatmul.mubr.bf16.gmra.mrb[76].mxu0 %v5031_v13 }
 0xd6f   :  { %5935 = vmatpush1.bf16.msra.mxu0 %v14179_v2  ;;  %5962 = vmatprep.mubr.bf16.mxu0 %v14346_v55 }
 0xd70   :  { %5936 = vmatprep.subr.bf16.mxu0 %v14185_v10 }
 0xd73   :  { %5937 = vmatpush1.bf16.msra.mxu0 %v14191_v35 }
 0xd74   :  { %5938 = vmatprep.subr.bf16.mxu0 %v14197_v11 }
 0xd77   :  { %5939 = vmatpush1.bf16.msra.mxu0 %v14203_v20 }
 0xd78   :  { %5940 = vmatprep.subr.bf16.mxu0 %v14209_v16 }
 0xd7b   :  { %5941 = vmatpush1.bf16.msra.mxu0 %v14215_v15 }
 0xd7c   :  { %5942 = vmatprep.subr.bf16.mxu0 %v14221_v9 }
 0xd7f   :  { %5943 = vmatpush1.bf16.msra.mxu0 %v14227_v24 }
 0xd80   :  { %5944 = vmatprep.subr.bf16.mxu0 %v14233_v25 }
 0xd83   :  { %5945 = vmatpush1.bf16.msra.mxu0 %v14239_v41 }
 0xd84   :  { %5946 = vmatprep.subr.bf16.mxu0 %v14245_v52 }
 0xd87   :  { %5947 = vmatpush1.bf16.msra.mxu0 %v14251_v60 }
 0xd88   :  { %5948 = vmatprep.subr.bf16.mxu0 %v14257_v61 }
 0xd8b   :  { %5949 = vmatpush1.bf16.msra.mxu0 %v14263_v0 }
 0xd8c   :  { %5950 = vmatprep.subr.bf16.mxu0 %v14269_v23 }
 0xd8f   :  { %5951 = vmatpush1.bf16.msra.mxu0 %v14275_v17 }
 0xd90   :  { %5952 = vmatprep.subr.bf16.mxu0 %v14281_v21 }
 0xd93   :  { %5953 = vmatpush1.bf16.msra.mxu0 %v14287_v63 }
 0xd94   :  { %5954 = vmatprep.subr.bf16.mxu0 %v14293_v3 }
 0xd97   :  { %5955 = vmatpush1.bf16.msra.mxu0 %v14299_v22 }
 0xd98   :  { %5956 = vmatprep.subr.bf16.mxu0 %v14305_v53 }
 0xd9b   :  { %5957 = vmatpush1.bf16.msra.mxu0 %v14311_v30 }
 0xd9c   :  { %5958 = vmatprep.subr.bf16.mxu0 %v14318_v27 }
 0xd9f   :  { %5959 = vmatpush1.bf16.msra.mxu0 %v14323_v34 }
 0xda0   :  { %5960 = vmatprep.subr.bf16.mxu0 %v14330_v50 }
 0xda3   :  { %5961 = vmatpush1.bf16.msra.mxu0 %v14335_v40 }
 0xda4   :  { %6474 = vmatprep.subr.bf16.mxu0 %v14155_v48 }
 0xda6   :  { %5963 = vmatmul.mubr.bf16.vlgmr.msra.gmra.mrb[80].mxu0 %v14344_v38 }
 0xda7   :  { %5972 = vmatprep.mubr.bf16.mxu0 %v14354_v43  ;;  %6475 = vmatpush1.bf16.msra.mxu0 %v14150_v6 }
 0xda8   :  { %6476 = vmatprep.subr.bf16.mxu0 %v14160_v46 }
 0xdab   :  { %6477 = vmatpush1.bf16.msra.mxu0 %v14167_v7 }
 0xdac   :  { %6478 = vmatprep.subr.bf16.mxu0 %v14173_v49 }
 0xdae   :  { %5973 = vmatmul.mubr.bf16.gmra.mrb[84].mxu0 %v14352_v31 }
 0xdaf   :  { %6479 = vmatpush1.bf16.msra.mxu0 %v14179_v2 }
 0xdb0   :  { %6480 = vmatprep.subr.bf16.mxu0 %v14185_v10 }
 0xdb3   :  { %6481 = vmatpush1.bf16.msra.mxu0 %v14191_v35 }
 0xdb4   :  { %6482 = vmatprep.subr.bf16.mxu0 %v14197_v11 }
 0xdb7   :  { %6483 = vmatpush1.bf16.msra.mxu0 %v14203_v20 }
 0xdb8   :  { %6484 = vmatprep.subr.bf16.mxu0 %v14209_v16 }
 0xdbb   :  { %6485 = vmatpush1.bf16.msra.mxu0 %v14215_v15 }
 0xdbc   :  { %6486 = vmatprep.subr.bf16.mxu0 %v14221_v9 }
 0xdbf   :  { %6487 = vmatpush1.bf16.msra.mxu0 %v14227_v24 }
 0xdc0   :  { %6488 = vmatprep.subr.bf16.mxu0 %v14233_v25 }
 0xdc3   :  { %6489 = vmatpush1.bf16.msra.mxu0 %v14239_v41 }
 0xdc4   :  { %6490 = vmatprep.subr.bf16.mxu0 %v14245_v52 }
 0xdc7   :  { %6491 = vmatpush1.bf16.msra.mxu0 %v14251_v60 }
 0xdc8   :  { %6492 = vmatprep.subr.bf16.mxu0 %v14257_v61 }
 0xdcb   :  { %6493 = vmatpush1.bf16.msra.mxu0 %v14263_v0 }
 0xdcc   :  { %6494 = vmatprep.subr.bf16.mxu0 %v14269_v23 }
 0xdcf   :  { %6495 = vmatpush1.bf16.msra.mxu0 %v14275_v17 }
 0xdd0   :  { %6496 = vmatprep.subr.bf16.mxu0 %v14281_v21 }
 0xdd2   :  { %v6251_v48 = vpop.f32.mrb[136].mxu1 }
 0xdd3   :  { %v6252_v38 = vadd.f32 %v6251_v48, %v12861_v18  ;;  %v6253_v55 = vpop.f32.mrb[137].mxu1  ;;  %6497 = vmatpush1.bf16.msra.mxu0 %v14287_v63 }
 0xdd4   :  { %v6254_v31 = vadd.f32 %v6253_v55, %v12864_v57  ;;  %v6255_v43 = vpop.f32.mrb[138].mxu1  ;;  %6498 = vmatprep.subr.bf16.mxu0 %v14293_v3 }
 0xdd5   :  { %v6256_v45 = vadd.f32 %v6255_v43, %v12861_v18  ;;  %v6257_v42 = vpop.f32.mrb[139].mxu1  ;;  %v6270_v4 = vmax.f32 %v6252_v38, 0.0 }
 0xdd6   :  { %v6258_v5 = vadd.f32 %v6257_v42, %v12864_v57  ;;  %v6271_v21 = vmax.f32 %v6254_v31, 0.0 }
 0xdd7   :  { %v6272_v29 = vmax.f32 %v6256_v45, 0.0  ;;  %6499 = vmatpush1.bf16.msra.mxu0 %v14299_v22 }
 0xdd8   :  { %v6273_v51 = vmax.f32 %v6258_v5, 0.0  ;;  %6500 = vmatprep.subr.bf16.mxu0 %v14305_v53 }
 0xdd9   :  { %v6278_v62 = vpack.c.bf16 %v6272_v29, %v6270_v4 }
 0xdda   :  { %v6279_v63 = vpack.c.bf16 %v6273_v51, %v6271_v21  ;;  %v6261_v37 = vpop.f32.mrb[140].mxu1 }
 0xddb   :  { %v6262_v58 = vadd.f32 %v6261_v37, %v12861_v18  ;;  %v6263_v13 = vpop.f32.mrb[141].mxu1  ;;  %6501 = vmatpush1.bf16.msra.mxu0 %v14311_v30  ;;  %v11932_v30 = vld [vmem:[%s15784_s5] sm:$0xff]  }
 0xddc   :  { %v6264_v3 = vadd.f32 %v6263_v13, %v12864_v57  ;;  %v6265_v32 = vpop.f32.mrb[142].mxu1  ;;  %6506 = vmatprep.mubr.bf16.mxu0 %v6279_v63  ;;  %6502 = vmatprep.subr.bf16.mxu0 %v14318_v27 }
 0xddd   :  { %v6266_v22 = vadd.f32 %v6265_v32, %v12861_v18  ;;  %v6267_v48 = vpop.f32.mrb[143].mxu1  ;;  %v6274_v53 = vmax.f32 %v6262_v58, 0.0 }
 0xdde   :  { %v6268_v38 = vadd.f32 %v6267_v48, %v12864_v57  ;;  %v6275_v31 = vmax.f32 %v6264_v3, 0.0  ;;  %v11937_v3 = vld [vmem:[%s15784_s5 + $0x10] sm:$0xff]   ;;  %v7117_v48 = vpop.permute.xlu1 %7116 }
 0xddf   :  { %v6276_v55 = vmax.f32 %v6266_v22, 0.0  ;;  %6503 = vmatpush1.bf16.msra.mxu0 %v14323_v34  ;;  %v11936_v34 = vld [vmem:[%s15784_s5 + $0x8] sm:$0xff]  }
 0xde0   :  { %v6277_v43 = vmax.f32 %v6268_v38, 0.0  ;;  %6504 = vmatprep.subr.bf16.mxu0 %v14330_v50  ;;  %v14653_v38 = vld [vmem:[%s15787_s9 + $0xe0] ss:$8 sps:$4 sm:$0xff]  }
 0xde1   :  { %v6280_v45 = vpack.c.bf16 %v6276_v55, %v6274_v53 }
 0xde2   :  { %v6281_v42 = vpack.c.bf16 %v6277_v43, %v6275_v31  ;;  %v11392_v27 = vpop.f32.mrb[144].mxu1 }
 0xde3   :  { %v6647_v5 = vadd.f32 %v14109_v8, %v11392_v27  ;;  %6505 = vmatpush1.bf16.msra.mxu0 %v14335_v40  ;;  %v6638_v4 = vpop.f32.mrb[145].mxu1  ;;  %v14673_v27 = vld [vmem:[%s15787_s9 + $0xf4] ss:$8 sps:$4 sm:$0xff]  }
 0xde4   :  { %v6639_v29 = vadd.f32 %v14109_v8, %v6638_v4  ;;  %v11393_v21 = vpop.f32.mrb[146].mxu1  ;;  %11394 = vmatprep.subr.bf16.mxu0 %v11932_v30 }
 0xde5   :  { %v6650_v50 = vadd.f32 %v14109_v8, %v11393_v21  ;;  %v6641_v51 = vpop.f32.mrb[147].mxu1  ;;  %v6655_v37 = vmax.f32 %v6647_v5, 0.0 }
 0xde6   :  { %v6642_v63 = vadd.f32 %v14109_v8, %v6641_v51  ;;  %6507 = vmatmul.mubr.bf16.vlgmr.msra.gmra.mrb[88].mxu0 %v6278_v62  ;;  %v6653_v40 = vmax.f32 %v6639_v29, 0.0  ;;  %v11938_v8 = vld [vmem:[%s15784_s5 + $0x18] sm:$0xff]   ;;  %v7115_v62 = vpop.permute.xlu0 %7114 }
 0xde7   :  { %v6656_v58 = vmax.f32 %v6650_v50, 0.0  ;;  %6516 = vmatprep.mubr.bf16.mxu0 %v6281_v42  ;;  %11395 = vmatpush3.bf16.msra.mxu0 %v11932_v30  ;;  %v14680_v29 = vld [vmem:[%s15787_s9 + $0xf0] ss:$8 sps:$4 sm:$0xff]  }
 0xde8   :  { %v6654_v13 = vmax.f32 %v6642_v63, 0.0  ;;  %11396 = vmatprep.subr.bf16.mxu0 %v11936_v34 }
 0xde9   :  { %v6658_v32 = vpack.c.bf16 %v6656_v58, %v6655_v37 }
 0xdea   :  { %v6657_v22 = vpack.c.bf16 %v6654_v13, %v6653_v40 }
 0xdeb   :  { %11397 = vmatpush3.bf16.msra.mxu0 %v11936_v34 }
 0xdec   :  { %6788 = vmatmul.mubr.bf16.vlgmr.msra.gmra.mrb[148].mxu1 %v6657_v22  ;;  %11398 = vmatprep.subr.bf16.mxu0 %v11937_v3 }
 0xded   :  { %6797 = vmatprep.mubr.bf16.mxu1 %v15840_v59  ;;  %7013 = vmatpush1.bf16.msra.mxu1 %v14150_v6  ;;  %v14583_v6 = vld [vmem:[%s15787_s9 + $0xb4] ss:$8 sps:$4 sm:$0xff]  }
 0xdee   :  { %6517 = vmatmul.mubr.bf16.gmra.mrb[92].mxu0 %v6280_v45  ;;  %7014 = vmatprep.subr.bf16.mxu1 %v14160_v46  ;;  %v14589_v46 = vld [vmem:[%s15787_s9 + $0xb0] ss:$8 sps:$4 sm:$0xff]  }
 0xdef   :  { %11399 = vmatpush3.bf16.msra.mxu0 %v11937_v3  ;;  %11402 = vmatprep.mubr.msk.bf16.mxu0 %vm829_vm0, %v7115_v62 }
 0xdf0   :  { %11400 = vmatprep.subr.bf16.mxu0 %v11938_v8 }
 0xdf1   :  { %7015 = vmatpush1.bf16.msra.mxu1 %v14167_v7  ;;  %v14596_v7 = vld [vmem:[%s15787_s9 + $0xc4] ss:$8 sps:$4 sm:$0xff]  }
 0xdf2   :  { %7016 = vmatprep.subr.bf16.mxu1 %v14173_v49  ;;  %v14601_v49 = vld [vmem:[%s15787_s9 + $0xc0] ss:$8 sps:$4 sm:$0xff]  }
 0xdf3   :  { %11401 = vmatpush3.bf16.msra.mxu0 %v11938_v8 }
 0xdf4   :  { %6798 = vmatmul.mubr.bf16.gmra.mrb[152].mxu1 %v6658_v32  ;;  %7299 = vmatprep.subr.bf16.mxu0 %v14379_v56  ;;  %v14641_v56 = vld [vmem:[%s15786_s7 + $0x30] ss:$8 sps:$4 sm:$0xff]  }
 0xdf5   :  { %7017 = vmatpush1.bf16.msra.mxu1 %v14179_v2 }
 0xdf6   :  { %11403 = vmatmul.mubr.msk.bf16.vlgmr.msra.gmra.mrb[96].mxu0 %vm829_vm0, %v7117_v48  ;;  %7018 = vmatprep.subr.bf16.mxu1 %v14185_v10  ;;  %v14607_v10 = vld [vmem:[%s15786_s7 + $0x24] ss:$8 sps:$4 sm:$0xff]  }
 0xdf7   :  { %7300 = vmatpush1.bf16.msra.mxu0 %v14384_v19  ;;  %7331 = vmatprep.mubr.bf16.mxu0 %v15840_v59 }
 0xdf8   :  { %7301 = vmatprep.subr.bf16.mxu0 %v14391_v39 }
 0xdf9   :  { %7019 = vmatpush1.bf16.msra.mxu1 %v14191_v35 }
 0xdfa   :  { %7020 = vmatprep.subr.bf16.mxu1 %v14197_v11 }
 0xdfb   :  { %7302 = vmatpush1.bf16.msra.mxu0 %v14396_v54  ;;  %v14647_v54 = vld [vmem:[%s15787_s9 + $0xe4] ss:$8 sps:$4 sm:$0xff]  }
 0xdfc   :  { %7303 = vmatprep.subr.bf16.mxu0 %v14607_v10 }
 0xdfd   :  { %7021 = vmatpush1.bf16.msra.mxu1 %v14203_v20  ;;  %v14614_v20 = vld [vmem:[%s15786_s7 + $0x20] ss:$8 sps:$4 sm:$0xff]  }
 0xdfe   :  { %7022 = vmatprep.subr.bf16.mxu1 %v14209_v16  ;;  %v15878_v16 = vld [vmem:[#allocation18_spill] sm:$0xff] }
 0xdff   :  { %7304 = vmatpush1.bf16.msra.mxu0 %v14614_v20 }
 0xe01   :  { %7023 = vmatpush1.bf16.msra.mxu1 %v14215_v15 }
 0xe02   :  { %7024 = vmatprep.subr.bf16.mxu1 %v14221_v9 }
 0xe05   :  { %7025 = vmatpush1.bf16.msra.mxu1 %v14227_v24  ;;  %v14621_v24 = vld [vmem:[%s15787_s9 + $0xd4] ss:$8 sps:$4 sm:$0xff]  }
 0xe06   :  { %7026 = vmatprep.subr.bf16.mxu1 %v14233_v25 }
 0xe09   :  { %7027 = vmatpush1.bf16.msra.mxu1 %v14239_v41 }
 0xe0a   :  { %7028 = vmatprep.subr.bf16.mxu1 %v14245_v52 }
 0xe0d   :  { %7029 = vmatpush1.bf16.msra.mxu1 %v14251_v60  ;;  %v14628_v60 = vld [vmem:[%s15787_s9 + $0xd0] ss:$8 sps:$4 sm:$0xff]  }
 0xe0e   :  { %7030 = vmatprep.subr.bf16.mxu1 %v14257_v61 }
 0xe11   :  { %7031 = vmatpush1.bf16.msra.mxu1 %v14263_v0 }
 0xe12   :  { %7032 = vmatprep.subr.bf16.mxu1 %v14269_v23  ;;  %v14635_v23 = vld [vmem:[%s15786_s7 + $0x34] ss:$8 sps:$4 sm:$0xff]  }
 0xe13   :  { %7305 = vmatprep.subr.bf16.mxu0 %v14635_v23 }
 0xe14   :  { %7306 = vmatpush1.bf16.msra.mxu0 %v14641_v56 }
 0xe15   :  { %7033 = vmatpush1.bf16.msra.mxu1 %v14275_v17  ;;  %7307 = vmatprep.subr.bf16.mxu0 %v14407_v26 }
 0xe16   :  { %7034 = vmatprep.subr.bf16.mxu1 %v14583_v6 }
 0xe18   :  { %7308 = vmatpush1.bf16.msra.mxu0 %v14412_v1  ;;  %v11962_v1 = vld [vmem:[%s15782_s3 + $0x4] ss:$8 sps:$4 sm:$0xff]  }
 0xe19   :  { %7035 = vmatpush1.bf16.msra.mxu1 %v14589_v46  ;;  %7309 = vmatprep.subr.bf16.mxu0 %v14422_v33  ;;  %v14707_v33 = vld [vmem:[%s15787_s9 + $0x4] ss:$8 sps:$4 sm:$0xff]  }
 0xe1a   :  { %7036 = vmatprep.subr.bf16.mxu1 %v14596_v7 }
 0xe1c   :  { %7310 = vmatpush1.bf16.msra.mxu0 %v14428_v36 }
 0xe1d   :  { %7037 = vmatpush1.bf16.msra.mxu1 %v14601_v49  ;;  %7311 = vmatprep.subr.bf16.mxu0 %v14435_v14 }
 0xe1e   :  { %7038 = vmatprep.subr.bf16.mxu1 %v14621_v24 }
 0xe20   :  { %7312 = vmatpush1.bf16.msra.mxu0 %v14440_v47 }
 0xe21   :  { %7039 = vmatpush1.bf16.msra.mxu1 %v14628_v60  ;;  %7313 = vmatprep.subr.bf16.mxu0 %v14450_v44 }
 0xe22   :  { %7040 = vmatprep.subr.bf16.mxu1 %v14647_v54 }
 0xe24   :  { %7314 = vmatpush1.bf16.msra.mxu0 %v14457_v28 }
 0xe25   :  { %7041 = vmatpush1.bf16.msra.mxu1 %v14653_v38  ;;  %7556 = vmatprep.subr.bf16.mxu0 %v14707_v33 }
 0xe26   :  { %7042 = vmatprep.subr.bf16.mxu1 %v14673_v27 }
 0xe29   :  { %7043 = vmatpush1.bf16.msra.mxu1 %v14680_v29 }
 0xe2a   :  { %7744 = vmatprep.subr.bf16.mxu1 %v11962_v1 }
 0xe39   :  { %v5259_v2 = vpop.f32.mrb[72].mxu0 }
 0xe3a   :  { %v5260_v35 = vadd.f32 %v5259_v2, %v12947_v12  ;;  %v5261_v11 = vpop.f32.mrb[73].mxu0 }
 0xe3b   :  { %v5262_v15 = vadd.f32 %v5261_v11, %v15878_v16  ;;  %v5263_v9 = vpop.f32.mrb[74].mxu0 }
 0xe3c   :  { %v5278_v25 = vmax.f32 %v5260_v35, 0.0  ;;  %v5264_v41 = vadd.f32 %v5263_v9, %v12947_v12  ;;  %v5265_v52 = vpop.f32.mrb[75].mxu0 }
 0xe3d   :  { %v5279_v61 = vmax.f32 %v5262_v15, 0.0  ;;  %v5266_v0 = vadd.f32 %v5265_v52, %v15878_v16 }
 0xe3e   :  { %v5280_v17 = vmax.f32 %v5264_v41, 0.0 }
 0xe3f   :  { %v11130_v19 = vpack.c.bf16 %v5279_v61, %v5278_v25  ;;  %v5281_v39 = vmax.f32 %v5266_v0, 0.0 }
 0xe41   :  { %10570 = vst.msk [vmem:[%s15791_s11 + $0xe0] sm:$0xff] %vm12956_vm3, %v11130_v19  ;;  %v11131_v55 = vpack.c.bf16 %v5281_v39, %v5280_v17  ;;  %v5269_v31 = vpop.f32.mrb[76].mxu0 }
 0xe42   :  { %v5270_v43 = vadd.f32 %v5269_v31, %v12947_v12  ;;  %v5271_v30 = vpop.f32.mrb[77].mxu0 }
 0xe43   :  { %10571 = vst.msk [vmem:[%s15791_s11 + $0xe8] sm:$0xff] %vm12956_vm3, %v11131_v55  ;;  %v5272_v45 = vadd.f32 %v5271_v30, %v15878_v16  ;;  %v5273_v42 = vpop.f32.mrb[78].mxu0 }
 0xe44   :  { %v5282_v26 = vmax.f32 %v5270_v43, 0.0  ;;  %v5274_v5 = vadd.f32 %v5273_v42, %v12947_v12  ;;  %v5275_v4 = vpop.f32.mrb[79].mxu0 }
 0xe45   :  { %v5283_v21 = vmax.f32 %v5272_v45, 0.0  ;;  %v5276_v34 = vadd.f32 %v5275_v4, %v15878_v16 }
 0xe46   :  { %v5284_v50 = vmax.f32 %v5274_v5, 0.0 }
 0xe47   :  { %v11132_v51 = vpack.c.bf16 %v5283_v21, %v5282_v26  ;;  %v5285_v63 = vmax.f32 %v5276_v34, 0.0 }
 0xe49   :  { %10572 = vst.msk [vmem:[%s15791_s11 + $0xf0] sm:$0xff] %vm12956_vm3, %v11132_v51  ;;  %v11133_v37 = vpack.c.bf16 %v5285_v63, %v5284_v50 }
 0xe4b   :  { %10573 = vst.msk [vmem:[%s15791_s11 + $0xf8] sm:$0xff] %vm12956_vm3, %v11133_v37 }
 0xe79   :  { %v5964_v36 = vpop.f32.mrb[80].mxu0 }
 0xe7a   :  { %v5965_v14 = vadd.f32 %v5964_v36, %v12947_v12  ;;  %v5966_v58 = vpop.f32.mrb[81].mxu0 }
 0xe7b   :  { %v5967_v40 = vadd.f32 %v5966_v58, %v15878_v16  ;;  %v5968_v13 = vpop.f32.mrb[82].mxu0 }
 0xe7c   :  { %v5983_v3 = vmax.f32 %v5965_v14, 0.0  ;;  %v5969_v47 = vadd.f32 %v5968_v13, %v12947_v12  ;;  %v5970_v44 = vpop.f32.mrb[83].mxu0 }
 0xe7d   :  { %v5984_v32 = vmax.f32 %v5967_v40, 0.0  ;;  %v5971_v28 = vadd.f32 %v5970_v44, %v15878_v16 }
 0xe7e   :  { %v5985_v22 = vmax.f32 %v5969_v47, 0.0 }
 0xe7f   :  { %v11134_v8 = vpack.c.bf16 %v5984_v32, %v5983_v3  ;;  %v5986_v62 = vmax.f32 %v5971_v28, 0.0 }
 0xe81   :  { %10648 = vst.msk [vmem:[%s15791_s11 + $0x100] sm:$0xff] %vm12956_vm3, %v11134_v8  ;;  %v11135_v48 = vpack.c.bf16 %v5986_v62, %v5985_v22  ;;  %v5974_v2 = vpop.f32.mrb[84].mxu0 }
 0xe82   :  { %v5975_v35 = vadd.f32 %v5974_v2, %v12947_v12  ;;  %v5976_v11 = vpop.f32.mrb[85].mxu0 }
 0xe83   :  { %10649 = vst.msk [vmem:[%s15791_s11 + $0x108] sm:$0xff] %vm12956_vm3, %v11135_v48  ;;  %v5977_v15 = vadd.f32 %v5976_v11, %v15878_v16  ;;  %v5978_v9 = vpop.f32.mrb[86].mxu0 }
 0xe84   :  { %v5987_v25 = vmax.f32 %v5975_v35, 0.0  ;;  %v5979_v41 = vadd.f32 %v5978_v9, %v12947_v12  ;;  %v5980_v52 = vpop.f32.mrb[87].mxu0 }
 0xe85   :  { %v5988_v61 = vmax.f32 %v5977_v15, 0.0  ;;  %v5981_v0 = vadd.f32 %v5980_v52, %v15878_v16 }
 0xe86   :  { %v5989_v17 = vmax.f32 %v5979_v41, 0.0 }
 0xe87   :  { %v11136_v19 = vpack.c.bf16 %v5988_v61, %v5987_v25  ;;  %v5990_v39 = vmax.f32 %v5981_v0, 0.0 }
 0xe89   :  { %10650 = vst.msk [vmem:[%s15791_s11 + $0x110] sm:$0xff] %vm12956_vm3, %v11136_v19  ;;  %v11137_v55 = vpack.c.bf16 %v5990_v39, %v5989_v17 }
 0xe8b   :  { %10651 = vst.msk [vmem:[%s15791_s11 + $0x118] sm:$0xff] %vm12956_vm3, %v11137_v55  ;;  %v11960_v55 = vld [vmem:[%s15782_s3] ss:$8 sps:$4 sm:$0xff]  }
 0xeb9   :  { %v6508_v31 = vpop.f32.mrb[88].mxu0 }
 0xeba   :  { %v6509_v43 = vadd.f32 %v6508_v31, %v12947_v12  ;;  %v6510_v30 = vpop.f32.mrb[89].mxu0 }
 0xebb   :  { %v6511_v45 = vadd.f32 %v6510_v30, %v15878_v16  ;;  %v6512_v42 = vpop.f32.mrb[90].mxu0  ;;  %v11965_v30 = vld [vmem:[%s15782_s3 + $0x14] ss:$8 sps:$4 sm:$0xff]  }
 0xebc   :  { %v6527_v26 = vmax.f32 %v6509_v43, 0.0  ;;  %v6513_v5 = vadd.f32 %v6512_v42, %v12947_v12  ;;  %v6514_v4 = vpop.f32.mrb[91].mxu0 }
 0xebd   :  { %v6528_v21 = vmax.f32 %v6511_v45, 0.0  ;;  %v6515_v34 = vadd.f32 %v6514_v4, %v15878_v16 }
 0xebe   :  { %v6529_v50 = vmax.f32 %v6513_v5, 0.0 }
 0xebf   :  { %v11138_v51 = vpack.c.bf16 %v6528_v21, %v6527_v26  ;;  %v6530_v63 = vmax.f32 %v6515_v34, 0.0  ;;  %v6789_v1 = vpop.f32.mrb[148].mxu1  ;;  %v14777_v21 = vld [vmem:[%s15788_s6] ss:$0 sm:$0xff] }
 0xec0   :  { %v6790_v37 = vadd.f32 %v6789_v1, %v12861_v18  ;;  %v6791_v36 = vpop.f32.mrb[149].mxu1 }
 0xec1   :  { %10710 = vst.msk [vmem:[%s15791_s11 + $0x120] sm:$0xff] %vm12956_vm3, %v11138_v51  ;;  %v11139_v14 = vpack.c.bf16 %v6530_v63, %v6529_v50  ;;  %v6792_v58 = vadd.f32 %v6791_v36, %v12864_v57  ;;  %v6518_v40 = vpop.f32.mrb[92].mxu0  ;;  %v6793_v13 = vpop.f32.mrb[150].mxu1  ;;  %v11963_v36 = vld [vmem:[%s15782_s3 + $0x10] ss:$8 sps:$4 sm:$0xff]  }
 0xec2   :  { %v6519_v3 = vadd.f32 %v6518_v40, %v12947_v12  ;;  %v6794_v47 = vadd.f32 %v6793_v13, %v12861_v18  ;;  %v6520_v44 = vpop.f32.mrb[93].mxu0  ;;  %v6795_v32 = vpop.f32.mrb[151].mxu1  ;;  %v6808_v62 = vmax.f32 %v6790_v37, 0.0 }
 0xec3   :  { %10711 = vst.msk [vmem:[%s15791_s11 + $0x128] sm:$0xff] %vm12956_vm3, %v11139_v14  ;;  %v6521_v28 = vadd.f32 %v6520_v44, %v15878_v16  ;;  %v6796_v22 = vadd.f32 %v6795_v32, %v12864_v57  ;;  %v6522_v8 = vpop.f32.mrb[94].mxu0  ;;  %v6809_v15 = vmax.f32 %v6792_v58, 0.0 }
 0xec4   :  { %v6531_v48 = vmax.f32 %v6519_v3, 0.0  ;;  %v6810_v2 = vmax.f32 %v6794_v47, 0.0  ;;  %v6523_v35 = vadd.f32 %v6522_v8, %v12947_v12  ;;  %v6524_v11 = vpop.f32.mrb[95].mxu0  ;;  %v11968_v3 = vld [vmem:[%s15782_s3 + $0x24] ss:$8 sps:$4 sm:$0xff]  }
 0xec5   :  { %v6532_v9 = vmax.f32 %v6521_v28, 0.0  ;;  %v6811_v25 = vmax.f32 %v6796_v22, 0.0  ;;  %v6525_v41 = vadd.f32 %v6524_v11, %v15878_v16 }
 0xec6   :  { %v6816_v52 = vpack.c.bf16 %v6810_v2, %v6808_v62  ;;  %v6533_v61 = vmax.f32 %v6523_v35, 0.0  ;;  %v11966_v35 = vld [vmem:[%s15782_s3 + $0x20] ss:$8 sps:$4 sm:$0xff]  }
 0xec7   :  { %v11140_v0 = vpack.c.bf16 %v6532_v9, %v6531_v48  ;;  %v6817_v17 = vpack.c.bf16 %v6811_v25, %v6809_v15  ;;  %v6534_v19 = vmax.f32 %v6525_v41, 0.0  ;;  %v6799_v39 = vpop.f32.mrb[152].mxu1  ;;  %v11971_v15 = vld [vmem:[%s15782_s3 + $0x34] ss:$8 sps:$4 sm:$0xff]   ;;  %v14804_v25 = vld [vmem:[%s15787_s9] ss:$8 sps:$4 sm:$0xff]  }
 0xec8   :  { %v6800_v31 = vadd.f32 %v6799_v39, %v12861_v18  ;;  %v6801_v43 = vpop.f32.mrb[153].mxu1  ;;  %v14809_v41 = vld [vmem:[%s15787_s9 + $0x14] ss:$8 sps:$4 sm:$0xff]  }
 0xec9   :  { %10712 = vst.msk [vmem:[%s15791_s11 + $0x130] sm:$0xff] %vm12956_vm3, %v11140_v0  ;;  %v11141_v45 = vpack.c.bf16 %v6534_v19, %v6533_v61  ;;  %v6802_v42 = vadd.f32 %v6801_v43, %v12864_v57  ;;  %v6803_v26 = vpop.f32.mrb[154].mxu1  ;;  %7044 = vmatprep.mubr.bf16.mxu1 %v6817_v17  ;;  %v11404_v5 = vpop.f32.mrb[96].mxu0  ;;  %v11974_v61 = vld [vmem:[%s15782_s3 + $0x44] ss:$8 sps:$4 sm:$0xff]  }
 0xeca   :  { %v6804_v4 = vadd.f32 %v6803_v26, %v12861_v18  ;;  %v7191_v34 = vadd.f32 %v14777_v21, %v11404_v5  ;;  %v6805_v50 = vpop.f32.mrb[155].mxu1  ;;  %7045 = vmatmul.mubr.bf16.vlgmr.msra.gmra.mrb[156].mxu1 %v6816_v52  ;;  %v7182_v51 = vpop.f32.mrb[97].mxu0  ;;  %v6812_v14 = vmax.f32 %v6800_v31, 0.0  ;;  %v11969_v52 = vld [vmem:[%s15782_s3 + $0x30] ss:$8 sps:$4 sm:$0xff]  }
 0xecb   :  { %10713 = vst.msk [vmem:[%s15791_s11 + $0x138] sm:$0xff] %vm12956_vm3, %v11141_v45  ;;  %v6806_v63 = vadd.f32 %v6805_v50, %v12864_v57  ;;  %v7183_v1 = vadd.f32 %v14777_v21, %v7182_v51  ;;  %7745 = vmatpush1.bf16.msra.mxu1 %v11960_v55  ;;  %v11405_v37 = vpop.f32.mrb[98].mxu0  ;;  %v6813_v47 = vmax.f32 %v6802_v42, 0.0  ;;  %v14823_v0 = vld [vmem:[%s15787_s9 + $0x10] ss:$8 sps:$4 sm:$0xff]  }
 0xecc   :  { %v6814_v58 = vmax.f32 %v6804_v4, 0.0  ;;  %v7194_v40 = vadd.f32 %v14777_v21, %v11405_v37  ;;  %v7185_v13 = vpop.f32.mrb[99].mxu0  ;;  %7746 = vmatprep.subr.bf16.mxu1 %v11965_v30  ;;  %v7199_v22 = vmax.f32 %v7191_v34, 0.0  ;;  %v14829_v17 = vld [vmem:[%s15787_s9 + $0x24] ss:$8 sps:$4 sm:$0xff]  }
 0xecd   :  { %v6815_v44 = vmax.f32 %v6806_v63, 0.0  ;;  %v7186_v32 = vadd.f32 %v14777_v21, %v7185_v13  ;;  %v7197_v48 = vmax.f32 %v7183_v1, 0.0  ;;  %v11972_v19 = vld [vmem:[%s15782_s3 + $0x40] ss:$8 sps:$4 sm:$0xff]   ;;  %v11977_v39 = vld [vmem:[%s15782_s3 + $0x54] ss:$8 sps:$4 sm:$0xff]  }
 0xece   :  { %v6818_v28 = vpack.c.bf16 %v6814_v58, %v6812_v14  ;;  %v7200_v8 = vmax.f32 %v7194_v40, 0.0  ;;  %v14841_v55 = vld [vmem:[%s15787_s9 + $0x20] ss:$8 sps:$4 sm:$0xff]   ;;  %v14847_v31 = vld [vmem:[%s15787_s9 + $0x34] ss:$8 sps:$4 sm:$0xff]  }
 0xecf   :  { %v6819_v62 = vpack.c.bf16 %v6815_v44, %v6813_v47  ;;  %v7198_v2 = vmax.f32 %v7186_v32, 0.0  ;;  %7747 = vmatpush1.bf16.msra.mxu1 %v11963_v36  ;;  %v11975_v43 = vld [vmem:[%s15782_s3 + $0x50] ss:$8 sps:$4 sm:$0xff]   ;;  %v11980_v30 = vld [vmem:[%s15782_s3 + $0x64] ss:$8 sps:$4 sm:$0xff]  }
 0xed0   :  { %v7202_v11 = vpack.c.bf16 %v7200_v8, %v7199_v22  ;;  %7748 = vmatprep.subr.bf16.mxu1 %v11968_v3  ;;  %v14859_v45 = vld [vmem:[%s15787_s9 + $0x30] ss:$8 sps:$4 sm:$0xff]   ;;  %v14865_v42 = vld [vmem:[%s15787_s9 + $0x44] ss:$8 sps:$4 sm:$0xff]   ;;  %v11978_v26 = vld [vmem:[%s15782_s3 + $0x60] ss:$8 sps:$4 sm:$0xff]  }
 0xed1   :  { %v7201_v9 = vpack.c.bf16 %v7198_v2, %v7197_v48  ;;  %7054 = vmatprep.mubr.bf16.mxu1 %v6819_v62  ;;  %v11983_v5 = vld [vmem:[%s15782_s3 + $0x74] ss:$8 sps:$4 sm:$0xff]   ;;  %v14877_v4 = vld [vmem:[%s15787_s9 + $0x40] ss:$8 sps:$4 sm:$0xff]   ;;  %v11981_v50 = vld [vmem:[%s15782_s3 + $0x70] ss:$8 sps:$4 sm:$0xff]  }
 0xed2   :  { %7055 = vmatmul.mubr.bf16.gmra.mrb[160].mxu1 %v6818_v28  ;;  %v14883_v34 = vld [vmem:[%s15787_s9 + $0x54] ss:$8 sps:$4 sm:$0xff]   ;;  %v14892_v51 = vld [vmem:[%s15787_s9 + $0x50] ss:$8 sps:$4 sm:$0xff]   ;;  %v14898_v63 = vld [vmem:[%s15787_s9 + $0x64] ss:$8 sps:$4 sm:$0xff]  }
 0xed3   :  { %7749 = vmatpush1.bf16.msra.mxu1 %v11966_v35  ;;  %7332 = vmatmul.mubr.bf16.vlgmr.msra.gmra.mrb[100].mxu0 %v7201_v9  ;;  %v14904_v1 = vld [vmem:[%s15787_s9 + $0x60] ss:$8 sps:$4 sm:$0xff]   ;;  %v14911_v36 = vld [vmem:[%s15787_s9 + $0x74] ss:$8 sps:$4 sm:$0xff]   ;;  %v14918_v14 = vld [vmem:[%s15787_s9 + $0x70] ss:$8 sps:$4 sm:$0xff]  }
 0xed4   :  { %7750 = vmatprep.subr.bf16.mxu1 %v11971_v15  ;;  %7341 = vmatprep.mubr.bf16.mxu0 %v15840_v59  ;;  %v15880_v37 = vld [vmem:[#allocation9_spill] sm:$0xff]  ;;  %v15881_v13 = vld [vmem:[#allocation11_spill] sm:$0xff] }
 0xed5   :  { %7776 = vmatprep.mubr.bf16.mxu1 %v15840_v59  ;;  %7557 = vmatpush1.bf16.msra.mxu0 %v14804_v25  ;;  %v14924_v58 = vld [vmem:[%s15787_s9 + $0x84] ss:$8 sps:$4 sm:$0xff]   ;;  %v14930_v40 = vld [vmem:[%s15787_s9 + $0x80] ss:$8 sps:$4 sm:$0xff]   ;;  %v14937_v3 = vld [vmem:[%s15787_s9 + $0x94] ss:$8 sps:$4 sm:$0xff]  }
 0xed6   :  { %7558 = vmatprep.subr.bf16.mxu0 %v14809_v41  ;;  %v14943_v47 = vld [vmem:[%s15787_s9 + $0x90] ss:$8 sps:$4 sm:$0xff]   ;;  %v14949_v44 = vld [vmem:[%s15787_s9 + $0xa4] ss:$8 sps:$4 sm:$0xff]   ;;  %v14955_v32 = vld [vmem:[%s15787_s9 + $0xa0] ss:$8 sps:$4 sm:$0xff]  }
 0xed7   :  { %7751 = vmatpush1.bf16.msra.mxu1 %v11969_v52 }
 0xed8   :  { %7752 = vmatprep.subr.bf16.mxu1 %v11974_v61 }
 0xed9   :  { %7559 = vmatpush1.bf16.msra.mxu0 %v14823_v0 }
 0xeda   :  { %7560 = vmatprep.subr.bf16.mxu0 %v14829_v17 }
 0xedb   :  { %7753 = vmatpush1.bf16.msra.mxu1 %v11972_v19  ;;  %7342 = vmatmul.mubr.bf16.gmra.mrb[104].mxu0 %v7202_v11 }
 0xedc   :  { %7754 = vmatprep.subr.bf16.mxu1 %v11977_v39 }
 0xedd   :  { %7561 = vmatpush1.bf16.msra.mxu0 %v14841_v55 }
 0xede   :  { %7562 = vmatprep.subr.bf16.mxu0 %v14847_v31 }
 0xedf   :  { %7755 = vmatpush1.bf16.msra.mxu1 %v11975_v43 }
 0xee0   :  { %7756 = vmatprep.subr.bf16.mxu1 %v11980_v30 }
 0xee1   :  { %7563 = vmatpush1.bf16.msra.mxu0 %v14859_v45 }
 0xee2   :  { %7564 = vmatprep.subr.bf16.mxu0 %v14865_v42 }
 0xee3   :  { %7757 = vmatpush1.bf16.msra.mxu1 %v11978_v26 }
 0xee4   :  { %7758 = vmatprep.subr.bf16.mxu1 %v11983_v5 }
 0xee5   :  { %7565 = vmatpush1.bf16.msra.mxu0 %v14877_v4 }
 0xee6   :  { %7566 = vmatprep.subr.bf16.mxu0 %v14883_v34 }
 0xee7   :  { %7759 = vmatpush1.bf16.msra.mxu1 %v11981_v50 }
 0xee9   :  { %7567 = vmatpush1.bf16.msra.mxu0 %v14892_v51 }
 0xeea   :  { %7777 = vmatmul.mubr.bf16.vlgmr.msra.gmra.mrb[164].mxu1 %v15880_v37  ;;  %7568 = vmatprep.subr.bf16.mxu0 %v14898_v63 }
 0xeeb   :  { %7786 = vmatprep.mubr.bf16.mxu1 %v15840_v59 }
 0xeed   :  { %7569 = vmatpush1.bf16.msra.mxu0 %v14904_v1 }
 0xeee   :  { %7570 = vmatprep.subr.bf16.mxu0 %v14911_v36 }
 0xef1   :  { %7571 = vmatpush1.bf16.msra.mxu0 %v14918_v14 }
 0xef2   :  { %7787 = vmatmul.mubr.bf16.gmra.mrb[168].mxu1 %v15881_v13  ;;  %7572 = vmatprep.subr.bf16.mxu0 %v14924_v58 }
 0xef5   :  { %7573 = vmatpush1.bf16.msra.mxu0 %v14930_v40 }
 0xef6   :  { %7574 = vmatprep.subr.bf16.mxu0 %v14937_v3 }
 0xef9   :  { %7575 = vmatpush1.bf16.msra.mxu0 %v14943_v47 }
 0xefa   :  { %7576 = vmatprep.subr.bf16.mxu0 %v14949_v44 }
 0xefd   :  { %7577 = vmatpush1.bf16.msra.mxu0 %v14955_v32 }
 0xefe   :  { %7578 = vmatprep.subr.bf16.mxu0 %v14583_v6  ;;  %v12017_v6 = vld [vmem:[%s15784_s5] sm:$0xff]  }
 0xeff   :  { %11406 = vmatprep.subr.bf16.mxu1 %v12017_v6 }
 0xf00   :  { %11407 = vmatpush3.bf16.msra.mxu1 %v12017_v6 }
 0xf01   :  { %7579 = vmatpush1.bf16.msra.mxu0 %v14589_v46  ;;  %v12018_v46 = vld [vmem:[%s15784_s5 + $0x8] sm:$0xff]  }
 0xf02   :  { %7580 = vmatprep.subr.bf16.mxu0 %v14596_v7  ;;  %11408 = vmatprep.subr.bf16.mxu1 %v12018_v46  ;;  %v12019_v7 = vld [vmem:[%s15784_s5 + $0x10] sm:$0xff]  }
 0xf04   :  { %11409 = vmatpush3.bf16.msra.mxu1 %v12018_v46 }
 0xf05   :  { %7581 = vmatpush1.bf16.msra.mxu0 %v14601_v49  ;;  %11410 = vmatprep.subr.bf16.mxu1 %v12019_v7  ;;  %v12020_v49 = vld [vmem:[%s15784_s5 + $0x18] sm:$0xff]  }
 0xf06   :  { %7582 = vmatprep.subr.bf16.mxu0 %v14621_v24 }
 0xf08   :  { %11411 = vmatpush3.bf16.msra.mxu1 %v12019_v7 }
 0xf09   :  { %7583 = vmatpush1.bf16.msra.mxu0 %v14628_v60  ;;  %11412 = vmatprep.subr.bf16.mxu1 %v12020_v49 }
 0xf0a   :  { %7584 = vmatprep.subr.bf16.mxu0 %v14647_v54 }
 0xf0c   :  { %11413 = vmatpush3.bf16.msra.mxu1 %v12020_v49 }
 0xf0d   :  { %7585 = vmatpush1.bf16.msra.mxu0 %v14653_v38 }
 0xf0e   :  { %7586 = vmatprep.subr.bf16.mxu0 %v14673_v27 }
 0xf11   :  { %7587 = vmatpush1.bf16.msra.mxu0 %v14680_v29 }
 0xf12   :  { %8261 = vmatprep.subr.bf16.mxu0 %v14707_v33 }
 0xf9d   :  { %v7046_v24 = vpop.f32.mrb[156].mxu1 }
 0xf9e   :  { %v7047_v60 = vadd.f32 %v7046_v24, %v12947_v12  ;;  %v7048_v54 = vpop.f32.mrb[157].mxu1 }
 0xf9f   :  { %v7049_v38 = vadd.f32 %v7048_v54, %v15878_v16  ;;  %v7050_v27 = vpop.f32.mrb[158].mxu1 }
 0xfa0   :  { %v7065_v29 = vmax.f32 %v7047_v60, 0.0  ;;  %v7051_v33 = vadd.f32 %v7050_v27, %v12947_v12  ;;  %v7052_v28 = vpop.f32.mrb[159].mxu1 }
 0xfa1   :  { %v7066_v22 = vmax.f32 %v7049_v38, 0.0  ;;  %v7053_v8 = vadd.f32 %v7052_v28, %v15878_v16 }
 0xfa2   :  { %v7067_v62 = vmax.f32 %v7051_v33, 0.0 }
 0xfa3   :  { %v11142_v48 = vpack.c.bf16 %v7066_v22, %v7065_v29  ;;  %v7068_v2 = vmax.f32 %v7053_v8, 0.0 }
 0xfa5   :  { %10772 = vst.msk [vmem:[%s15791_s11 + $0x140] sm:$0xff] %vm12956_vm3, %v11142_v48  ;;  %v11143_v35 = vpack.c.bf16 %v7068_v2, %v7067_v62  ;;  %v7056_v11 = vpop.f32.mrb[160].mxu1 }
 0xfa6   :  { %v7057_v15 = vadd.f32 %v7056_v11, %v12947_v12  ;;  %v7058_v9 = vpop.f32.mrb[161].mxu1  ;;  %v7333_v52 = vpop.f32.mrb[100].mxu0 }
 0xfa7   :  { %10773 = vst.msk [vmem:[%s15791_s11 + $0x148] sm:$0xff] %vm12956_vm3, %v11143_v35  ;;  %v7059_v61 = vadd.f32 %v7058_v9, %v15878_v16  ;;  %v7334_v19 = vadd.f32 %v7333_v52, %v12861_v18  ;;  %v7060_v39 = vpop.f32.mrb[162].mxu1  ;;  %v7335_v43 = vpop.f32.mrb[101].mxu0 }
 0xfa8   :  { %v7069_v30 = vmax.f32 %v7057_v15, 0.0  ;;  %v7061_v26 = vadd.f32 %v7060_v39, %v12947_v12  ;;  %v7336_v5 = vadd.f32 %v7335_v43, %v12864_v57  ;;  %v7062_v50 = vpop.f32.mrb[163].mxu1  ;;  %v7337_v37 = vpop.f32.mrb[102].mxu0 }
 0xfa9   :  { %v7070_v13 = vmax.f32 %v7059_v61, 0.0  ;;  %v7063_v6 = vadd.f32 %v7062_v50, %v15878_v16  ;;  %v7338_v46 = vadd.f32 %v7337_v37, %v12861_v18  ;;  %v7339_v7 = vpop.f32.mrb[103].mxu0  ;;  %v7352_v54 = vmax.f32 %v7334_v19, 0.0 }
 0xfaa   :  { %v7071_v49 = vmax.f32 %v7061_v26, 0.0  ;;  %v7340_v24 = vadd.f32 %v7339_v7, %v12864_v57  ;;  %v7353_v29 = vmax.f32 %v7336_v5, 0.0 }
 0xfab   :  { %v11144_v60 = vpack.c.bf16 %v7070_v13, %v7069_v30  ;;  %v7072_v38 = vmax.f32 %v7063_v6, 0.0  ;;  %v7354_v27 = vmax.f32 %v7338_v46, 0.0 }
 0xfac   :  { %v7355_v33 = vmax.f32 %v7340_v24, 0.0 }
 0xfad   :  { %10774 = vst.msk [vmem:[%s15791_s11 + $0x150] sm:$0xff] %vm12956_vm3, %v11144_v60  ;;  %v11145_v28 = vpack.c.bf16 %v7072_v38, %v7071_v49  ;;  %v7360_v22 = vpack.c.bf16 %v7354_v27, %v7352_v54 }
 0xfae   :  { %v7361_v8 = vpack.c.bf16 %v7355_v33, %v7353_v29  ;;  %v7343_v62 = vpop.f32.mrb[104].mxu0 }
 0xfaf   :  { %10775 = vst.msk [vmem:[%s15791_s11 + $0x158] sm:$0xff] %vm12956_vm3, %v11145_v28  ;;  %v7344_v48 = vadd.f32 %v7343_v62, %v12861_v18  ;;  %v7345_v2 = vpop.f32.mrb[105].mxu0 }
 0xfb0   :  { %v7346_v35 = vadd.f32 %v7345_v2, %v12864_v57  ;;  %v7347_v11 = vpop.f32.mrb[106].mxu0  ;;  %7588 = vmatprep.mubr.bf16.mxu0 %v7361_v8  ;;  %v15152_v2 = vld [vmem:[%s15787_s9 + $0xc4] ss:$8 sps:$4 sm:$0xff]  }
 0xfb1   :  { %v7348_v15 = vadd.f32 %v7347_v11, %v12861_v18  ;;  %v7349_v9 = vpop.f32.mrb[107].mxu0  ;;  %7589 = vmatmul.mubr.bf16.vlgmr.msra.gmra.mrb[108].mxu0 %v7360_v22  ;;  %v7356_v61 = vmax.f32 %v7344_v48, 0.0  ;;  %v15147_v48 = vld [vmem:[%s15787_s9 + $0xb4] ss:$8 sps:$4 sm:$0xff]  }
 0xfb2   :  { %v7350_v52 = vadd.f32 %v7349_v9, %v12864_v57  ;;  %8262 = vmatpush1.bf16.msra.mxu0 %v14804_v25  ;;  %v7357_v39 = vmax.f32 %v7346_v35, 0.0  ;;  %v15882_v25 = vld [vmem:[#allocation12_spill] sm:$0xff]  ;;  %v15165_v11 = vld [vmem:[%s15787_s9 + $0xd4] ss:$8 sps:$4 sm:$0xff]  }
 0xfb3   :  { %v7358_v19 = vmax.f32 %v7348_v15, 0.0  ;;  %8263 = vmatprep.subr.bf16.mxu0 %v14809_v41  ;;  %v15883_v41 = vld [vmem:[#allocation13_spill] sm:$0xff]  ;;  %v15171_v15 = vld [vmem:[%s15787_s9 + $0xd0] ss:$8 sps:$4 sm:$0xff]  }
 0xfb4   :  { %v7359_v43 = vmax.f32 %v7350_v52, 0.0  ;;  %v15159_v35 = vld [vmem:[%s15787_s9 + $0xc0] ss:$8 sps:$4 sm:$0xff]  }
 0xfb5   :  { %v7362_v30 = vpack.c.bf16 %v7358_v19, %v7356_v61 }
 0xfb6   :  { %v7363_v26 = vpack.c.bf16 %v7359_v43, %v7357_v39  ;;  %8264 = vmatpush1.bf16.msra.mxu0 %v14823_v0 }
 0xfb7   :  { %8265 = vmatprep.subr.bf16.mxu0 %v14829_v17 }
 0xfb8   :  { %7598 = vmatprep.mubr.bf16.mxu0 %v7363_v26 }
 0xfb9   :  { %7599 = vmatmul.mubr.bf16.gmra.mrb[112].mxu0 %v7362_v30 }
 0xfba   :  { %8266 = vmatpush1.bf16.msra.mxu0 %v14841_v55 }
 0xfbb   :  { %8267 = vmatprep.subr.bf16.mxu0 %v14847_v31 }
 0xfbd   :  { %v7778_v5 = vpop.f32.mrb[164].mxu1 }
 0xfbe   :  { %v7779_v50 = vadd.f32 %v7778_v5, %v15882_v25  ;;  %v7780_v37 = vpop.f32.mrb[165].mxu1  ;;  %8268 = vmatpush1.bf16.msra.mxu0 %v14859_v45 }
 0xfbf   :  { %v7781_v13 = vadd.f32 %v7780_v37, %v15883_v41  ;;  %v7782_v6 = vpop.f32.mrb[166].mxu1  ;;  %8269 = vmatprep.subr.bf16.mxu0 %v14865_v42 }
 0xfc0   :  { %v7783_v0 = vadd.f32 %v7782_v6, %v15882_v25  ;;  %v7784_v17 = vpop.f32.mrb[167].mxu1  ;;  %v7797_v7 = vmax.f32 %v7779_v50, 0.0 }
 0xfc1   :  { %v7785_v46 = vadd.f32 %v7784_v17, %v15883_v41  ;;  %v7798_v31 = vmax.f32 %v7781_v13, 0.0 }
 0xfc2   :  { %v7799_v55 = vmax.f32 %v7783_v0, 0.0  ;;  %8270 = vmatpush1.bf16.msra.mxu0 %v14877_v4 }
 0xfc3   :  { %v7800_v49 = vmax.f32 %v7785_v46, 0.0  ;;  %8271 = vmatprep.subr.bf16.mxu0 %v14883_v34 }
 0xfc4   :  { %v7805_v24 = vpack.c.bf16 %v7799_v55, %v7797_v7 }
 0xfc5   :  { %v15032_v45 = vpack.c.bf16 %v7800_v49, %v7798_v31  ;;  %v7788_v60 = vpop.f32.mrb[168].mxu1 }
 0xfc6   :  { %v7789_v54 = vadd.f32 %v7788_v60, %v15882_v25  ;;  %v7790_v42 = vpop.f32.mrb[169].mxu1  ;;  %8363 = vrot.lane.b32.xlu0 %v7805_v24, %s12144_s4  ;;  %11414 = vmatprep.mubr.msk.bf16.mxu1 %vm829_vm0, %v7805_v24 }
 0xfc7   :  { %v7791_v38 = vadd.f32 %v7790_v42, %v15883_v41  ;;  %v7792_v27 = vpop.f32.mrb[170].mxu1  ;;  %8272 = vmatpush1.bf16.msra.mxu0 %v14892_v51 }
 0xfc8   :  { %v7793_v4 = vadd.f32 %v7792_v27, %v15882_v25  ;;  %v7794_v29 = vpop.f32.mrb[171].mxu1  ;;  %8273 = vmatprep.subr.bf16.mxu0 %v14898_v63  ;;  %v7801_v33 = vmax.f32 %v7789_v54, 0.0  ;;  %v15063_v63 = vld [vmem:[%s15786_s7 + $0x4] ss:$8 sps:$4 sm:$0xff]  }
 0xfc9   :  { %v7795_v34 = vadd.f32 %v7794_v29, %v15883_v41  ;;  %v7802_v22 = vmax.f32 %v7791_v38, 0.0  ;;  %8004 = vmatprep.subr.bf16.mxu1 %v15063_v63 }
 0xfca   :  { %v7803_v28 = vmax.f32 %v7793_v4, 0.0  ;;  %9445 = vrot.lane.b32.xlu0 %v15032_v45, %s12144_s4 }
 0xfcb   :  { %v7804_v8 = vmax.f32 %v7795_v34, 0.0  ;;  %8274 = vmatpush1.bf16.msra.mxu0 %v14904_v1  ;;  %v15068_v1 = vld [vmem:[%s15786_s7] ss:$8 sps:$4 sm:$0xff]  }
 0xfcc   :  { %v7807_v62 = vpack.c.bf16 %v7803_v28, %v7801_v33  ;;  %8275 = vmatprep.subr.bf16.mxu0 %v14911_v36  ;;  %v15075_v36 = vld [vmem:[%s15786_s7 + $0x14] ss:$8 sps:$4 sm:$0xff]  }
 0xfcd   :  { %v15046_v51 = vpack.c.bf16 %v7804_v8, %v7802_v22 }
 0xfce   :  { %8365 = vrot.lane.b32.xlu1 %v7807_v62, %s12144_s4  ;;  %11415 = vmatmul.mubr.msk.bf16.vlgmr.msra.gmra.mrb[172].mxu1 %vm829_vm0, %v7807_v62 }
 0xfcf   :  { %8036 = vmatprep.mubr.bf16.mxu1 %v15840_v59  ;;  %8276 = vmatpush1.bf16.msra.mxu0 %v14918_v14  ;;  %v15080_v14 = vld [vmem:[%s15786_s7 + $0x10] ss:$8 sps:$4 sm:$0xff]  }
 0xfd0   :  { %8277 = vmatprep.subr.bf16.mxu0 %v14924_v58  ;;  %8005 = vmatpush1.bf16.msra.mxu1 %v15068_v1  ;;  %v15090_v58 = vld [vmem:[%s15786_s7 + $0x44] ss:$8 sps:$4 sm:$0xff]  }
 0xfd1   :  { %8006 = vmatprep.subr.bf16.mxu1 %v15075_v36 }
 0xfd2   :  { %9447 = vrot.lane.b32.xlu1 %v15046_v51, %s12144_s4 }
 0xfd3   :  { %8278 = vmatpush1.bf16.msra.mxu0 %v14930_v40  ;;  %v15096_v40 = vld [vmem:[%s15786_s7 + $0x40] ss:$8 sps:$4 sm:$0xff]  }
 0xfd4   :  { %8279 = vmatprep.subr.bf16.mxu0 %v14937_v3  ;;  %8007 = vmatpush1.bf16.msra.mxu1 %v15080_v14  ;;  %v15127_v3 = vld [vmem:[%s15786_s7 + $0x74] ss:$8 sps:$4 sm:$0xff]  }
 0xfd5   :  { %8008 = vmatprep.subr.bf16.mxu1 %v14607_v10  ;;  %v15102_v10 = vld [vmem:[%s15786_s7 + $0x54] ss:$8 sps:$4 sm:$0xff]  }
 0xfd7   :  { %8280 = vmatpush1.bf16.msra.mxu0 %v14943_v47  ;;  %v15132_v47 = vld [vmem:[%s15786_s7 + $0x70] ss:$8 sps:$4 sm:$0xff]  }
 0xfd8   :  { %8281 = vmatprep.subr.bf16.mxu0 %v14949_v44  ;;  %8009 = vmatpush1.bf16.msra.mxu1 %v14614_v20  ;;  %v15108_v20 = vld [vmem:[%s15786_s7 + $0x50] ss:$8 sps:$4 sm:$0xff]   ;;  %v12039_v44 = vld [vmem:[%s15784_s5] sm:$0xff]  }
 0xfd9   :  { %8010 = vmatprep.subr.bf16.mxu1 %v14635_v23  ;;  %v15115_v23 = vld [vmem:[%s15786_s7 + $0x64] ss:$8 sps:$4 sm:$0xff]  }
 0xfdb   :  { %8282 = vmatpush1.bf16.msra.mxu0 %v14955_v32  ;;  %v15142_v32 = vld [vmem:[%s15787_s9 + $0xb0] ss:$8 sps:$4 sm:$0xff]  }
 0xfdc   :  { %8011 = vmatpush1.bf16.msra.mxu1 %v14641_v56  ;;  %v15120_v56 = vld [vmem:[%s15786_s7 + $0x60] ss:$8 sps:$4 sm:$0xff]   ;;  %8283 = vmatprep.subr.bf16.mxu0 %v15147_v48 }
 0xfdd   :  { %8012 = vmatprep.subr.bf16.mxu1 %v15090_v58 }
 0xfdf   :  { %8284 = vmatpush1.bf16.msra.mxu0 %v15142_v32 }
 0xfe0   :  { %8013 = vmatpush1.bf16.msra.mxu1 %v15096_v40  ;;  %8285 = vmatprep.subr.bf16.mxu0 %v15152_v2 }
 0xfe1   :  { %8014 = vmatprep.subr.bf16.mxu1 %v15102_v10 }
 0xfe3   :  { %8286 = vmatpush1.bf16.msra.mxu0 %v15159_v35 }
 0xfe4   :  { %8015 = vmatpush1.bf16.msra.mxu1 %v15108_v20  ;;  %8287 = vmatprep.subr.bf16.mxu0 %v15165_v11 }
 0xfe5   :  { %8016 = vmatprep.subr.bf16.mxu1 %v15115_v23 }
 0xfe7   :  { %8288 = vmatpush1.bf16.msra.mxu0 %v15171_v15 }
 0xfe8   :  { %8017 = vmatpush1.bf16.msra.mxu1 %v15120_v56 }
 0xfe9   :  { %8018 = vmatprep.subr.bf16.mxu1 %v15127_v3 }
 0xfec   :  { %8019 = vmatpush1.bf16.msra.mxu1 %v15132_v47 }
 0xfed   :  { %11418 = vmatprep.subr.bf16.mxu1 %v12039_v44 }
0x1084   :  { %v7590_v9 = vpop.f32.mrb[108].mxu0 }
0x1085   :  { %v7591_v52 = vadd.f32 %v7590_v9, %v12947_v12  ;;  %v7592_v61 = vpop.f32.mrb[109].mxu0 }
0x1086   :  { %v7593_v19 = vadd.f32 %v7592_v61, %v15878_v16  ;;  %v7594_v39 = vpop.f32.mrb[110].mxu0 }
0x1087   :  { %v7609_v43 = vmax.f32 %v7591_v52, 0.0  ;;  %v7595_v30 = vadd.f32 %v7594_v39, %v12947_v12  ;;  %v7596_v26 = vpop.f32.mrb[111].mxu0 }
0x1088   :  { %v7610_v5 = vmax.f32 %v7593_v19, 0.0  ;;  %v7597_v25 = vadd.f32 %v7596_v26, %v15878_v16  ;;  %v12041_v26 = vld [vmem:[%s15784_s5 + $0x10] sm:$0xff]  }
0x1089   :  { %v7611_v50 = vmax.f32 %v7595_v30, 0.0  ;;  %v12040_v30 = vld [vmem:[%s15784_s5 + $0x8] sm:$0xff]  }
0x108a   :  { %v11146_v37 = vpack.c.bf16 %v7610_v5, %v7609_v43  ;;  %v7612_v41 = vmax.f32 %v7597_v25, 0.0  ;;  %v12042_v5 = vld [vmem:[%s15784_s5 + $0x18] sm:$0xff]   ;;  %v8364_v25 = vpop.permute.xlu0 %8363 }
0x108c   :  { %10834 = vst.msk [vmem:[%s15791_s11 + $0x160] sm:$0xff] %vm12956_vm3, %v11146_v37  ;;  %v11147_v13 = vpack.c.bf16 %v7612_v41, %v7611_v50  ;;  %v7600_v6 = vpop.f32.mrb[112].mxu0  ;;  %v15227_v50 = vld [vmem:[%s15786_s7 + $0x24] ss:$8 sps:$4 sm:$0xff]   ;;  %v15232_v37 = vld [vmem:[%s15786_s7 + $0x20] ss:$8 sps:$4 sm:$0xff]  }
0x108d   :  { %v7601_v0 = vadd.f32 %v7600_v6, %v12947_v12  ;;  %v7602_v17 = vpop.f32.mrb[113].mxu0  ;;  %v15237_v41 = vld [vmem:[%s15787_s9 + $0xe4] ss:$8 sps:$4 sm:$0xff]   ;;  %v15251_v6 = vld [vmem:[%s15786_s7 + $0x34] ss:$8 sps:$4 sm:$0xff]  }
0x108e   :  { %10835 = vst.msk [vmem:[%s15791_s11 + $0x168] sm:$0xff] %vm12956_vm3, %v11147_v13  ;;  %v7603_v46 = vadd.f32 %v7602_v17, %v15878_v16  ;;  %v7604_v7 = vpop.f32.mrb[114].mxu0  ;;  %v15243_v13 = vld [vmem:[%s15787_s9 + $0xe0] ss:$8 sps:$4 sm:$0xff]   ;;  %8289 = vmatprep.subr.bf16.mxu0 %v15237_v41  ;;  %v15261_v17 = vld [vmem:[%s15787_s9 + $0xf4] ss:$8 sps:$4 sm:$0xff]  }
0x108f   :  { %v7613_v55 = vmax.f32 %v7601_v0, 0.0  ;;  %v7605_v31 = vadd.f32 %v7604_v7, %v12947_v12  ;;  %v7606_v49 = vpop.f32.mrb[115].mxu0  ;;  %8290 = vmatpush1.bf16.msra.mxu0 %v15243_v13  ;;  %v15256_v0 = vld [vmem:[%s15786_s7 + $0x30] ss:$8 sps:$4 sm:$0xff]   ;;  %v15283_v7 = vld [vmem:[%s15784_s5] sm:$0xff]  }
0x1090   :  { %v7614_v24 = vmax.f32 %v7603_v46, 0.0  ;;  %v7607_v60 = vadd.f32 %v7606_v49, %v15878_v16  ;;  %v15267_v46 = vld [vmem:[%s15787_s9 + $0xf0] ss:$8 sps:$4 sm:$0xff]   ;;  %8291 = vmatprep.subr.bf16.mxu0 %v15261_v17 }
0x1091   :  { %v7615_v54 = vmax.f32 %v7605_v31, 0.0 }
0x1092   :  { %v11148_v42 = vpack.c.bf16 %v7614_v24, %v7613_v55  ;;  %v7616_v38 = vmax.f32 %v7607_v60, 0.0  ;;  %v15289_v55 = vld [vmem:[%s15787_s9 + $0x4] ss:$8 sps:$4 sm:$0xff]  }
0x1093   :  { %8292 = vmatpush1.bf16.msra.mxu0 %v15267_v46 }
0x1094   :  { %10836 = vst.msk [vmem:[%s15791_s11 + $0x170] sm:$0xff] %vm12956_vm3, %v11148_v42  ;;  %v11149_v27 = vpack.c.bf16 %v7616_v38, %v7615_v54  ;;  %8805 = vmatprep.subr.bf16.mxu0 %v15289_v55 }
0x1096   :  { %10837 = vst.msk [vmem:[%s15791_s11 + $0x178] sm:$0xff] %vm12956_vm3, %v11149_v27 }
0x10a1   :  { %v11416_v4 = vpop.f32.mrb[172].mxu1 }
0x10a2   :  { %v7896_v29 = vadd.f32 %v14777_v21, %v11416_v4  ;;  %v7887_v34 = vpop.f32.mrb[173].mxu1 }
0x10a3   :  { %v7888_v33 = vadd.f32 %v14777_v21, %v7887_v34  ;;  %v11417_v28 = vpop.f32.mrb[174].mxu1 }
0x10a4   :  { %v7899_v22 = vadd.f32 %v14777_v21, %v11417_v28  ;;  %v7890_v8 = vpop.f32.mrb[175].mxu1  ;;  %v7904_v9 = vmax.f32 %v7896_v29, 0.0 }
0x10a5   :  { %v7891_v62 = vadd.f32 %v14777_v21, %v7890_v8  ;;  %v7902_v61 = vmax.f32 %v7888_v33, 0.0 }
0x10a6   :  { %v7905_v52 = vmax.f32 %v7899_v22, 0.0 }
0x10a7   :  { %v7903_v19 = vmax.f32 %v7891_v62, 0.0  ;;  %v15299_v62 = vld [vmem:[%s15787_s9] ss:$8 sps:$4 sm:$0xff]  }
0x10a8   :  { %v7907_v39 = vpack.c.bf16 %v7905_v52, %v7904_v9 }
0x10a9   :  { %v7906_v43 = vpack.c.bf16 %v7903_v19, %v7902_v61  ;;  %v15305_v61 = vld [vmem:[%s15787_s9 + $0x14] ss:$8 sps:$4 sm:$0xff]  }
0x10ab   :  { %8037 = vmatmul.mubr.bf16.vlgmr.msra.gmra.mrb[176].mxu1 %v7906_v43 }
0x10ac   :  { %11419 = vmatpush3.bf16.msra.mxu1 %v12039_v44  ;;  %8046 = vmatprep.mubr.bf16.mxu1 %v15840_v59  ;;  %v8366_v44 = vpop.permute.xlu1 %8365 }
0x10ad   :  { %11420 = vmatprep.subr.bf16.mxu1 %v12040_v30 }
0x10b0   :  { %11421 = vmatpush3.bf16.msra.mxu1 %v12040_v30 }
0x10b1   :  { %11422 = vmatprep.subr.bf16.mxu1 %v12041_v26 }
0x10b3   :  { %8047 = vmatmul.mubr.bf16.gmra.mrb[180].mxu1 %v7907_v39 }
0x10b4   :  { %11423 = vmatpush3.bf16.msra.mxu1 %v12041_v26  ;;  %11426 = vmatprep.mubr.msk.bf16.mxu1 %vm829_vm0, %v8364_v25 }
0x10b5   :  { %11424 = vmatprep.subr.bf16.mxu1 %v12042_v5 }
0x10b8   :  { %11425 = vmatpush3.bf16.msra.mxu1 %v12042_v5  ;;  %v15314_v5 = vld [vmem:[%s15787_s9 + $0x10] ss:$8 sps:$4 sm:$0xff]  }
0x10b9   :  { %8548 = vmatprep.subr.bf16.mxu1 %v15063_v63 }
0x10bb   :  { %11427 = vmatmul.mubr.msk.bf16.vlgmr.msra.gmra.mrb[184].mxu1 %vm829_vm0, %v8366_v44 }
0x10bc   :  { %8549 = vmatpush1.bf16.msra.mxu1 %v15068_v1  ;;  %8580 = vmatprep.mubr.bf16.mxu1 %v15840_v59 }
0x10bd   :  { %8550 = vmatprep.subr.bf16.mxu1 %v15075_v36 }
0x10c0   :  { %8551 = vmatpush1.bf16.msra.mxu1 %v15080_v14 }
0x10c1   :  { %8552 = vmatprep.subr.bf16.mxu1 %v15227_v50 }
0x10c4   :  { %8553 = vmatpush1.bf16.msra.mxu1 %v15232_v37 }
0x10c5   :  { %8554 = vmatprep.subr.bf16.mxu1 %v15251_v6 }
0x10c8   :  { %8555 = vmatpush1.bf16.msra.mxu1 %v15256_v0 }
0x10c9   :  { %8556 = vmatprep.subr.bf16.mxu1 %v15090_v58 }
0x10cc   :  { %8557 = vmatpush1.bf16.msra.mxu1 %v15096_v40 }
0x10cd   :  { %8558 = vmatprep.subr.bf16.mxu1 %v15102_v10 }
0x10d0   :  { %8559 = vmatpush1.bf16.msra.mxu1 %v15108_v20 }
0x10d1   :  { %8560 = vmatprep.subr.bf16.mxu1 %v15115_v23 }
0x10d4   :  { %8561 = vmatpush1.bf16.msra.mxu1 %v15120_v56 }
0x10d5   :  { %8562 = vmatprep.subr.bf16.mxu1 %v15127_v3 }
0x10d8   :  { %8563 = vmatpush1.bf16.msra.mxu1 %v15132_v47 }
0x10d9   :  { %11430 = vmatprep.subr.bf16.mxu1 %v15283_v7 }
0x117e   :  { %v8038_v31 = vpop.f32.mrb[176].mxu1 }
0x117f   :  { %v8039_v49 = vadd.f32 %v8038_v31, %v12861_v18  ;;  %v8040_v24 = vpop.f32.mrb[177].mxu1  ;;  %v15320_v31 = vld [vmem:[%s15787_s9 + $0x24] ss:$8 sps:$4 sm:$0xff]  }
0x1180   :  { %v8041_v60 = vadd.f32 %v8040_v24, %v12864_v57  ;;  %v8042_v54 = vpop.f32.mrb[178].mxu1 }
0x1181   :  { %v8043_v42 = vadd.f32 %v8042_v54, %v12861_v18  ;;  %v8044_v38 = vpop.f32.mrb[179].mxu1  ;;  %v8057_v4 = vmax.f32 %v8039_v49, 0.0 }
0x1182   :  { %v8045_v27 = vadd.f32 %v8044_v38, %v12864_v57  ;;  %v8058_v34 = vmax.f32 %v8041_v60, 0.0  ;;  %v15326_v38 = vld [vmem:[%s15787_s9 + $0x20] ss:$8 sps:$4 sm:$0xff]  }
0x1183   :  { %v8059_v29 = vmax.f32 %v8043_v42, 0.0 }
0x1184   :  { %v8060_v33 = vmax.f32 %v8045_v27, 0.0 }
0x1185   :  { %v8065_v28 = vpack.c.bf16 %v8059_v29, %v8057_v4  ;;  %v15333_v29 = vld [vmem:[%s15787_s9 + $0x34] ss:$8 sps:$4 sm:$0xff]  }
0x1186   :  { %v8066_v22 = vpack.c.bf16 %v8060_v33, %v8058_v34  ;;  %v8048_v8 = vpop.f32.mrb[180].mxu1 }
0x1187   :  { %v8049_v9 = vadd.f32 %v8048_v8, %v12861_v18  ;;  %v8050_v52 = vpop.f32.mrb[181].mxu1 }
0x1188   :  { %v8051_v19 = vadd.f32 %v8050_v52, %v12864_v57  ;;  %v8052_v39 = vpop.f32.mrb[182].mxu1  ;;  %8293 = vmatprep.mubr.bf16.mxu0 %v8066_v22 }
0x1189   :  { %v8053_v43 = vadd.f32 %v8052_v39, %v12861_v18  ;;  %v8054_v30 = vpop.f32.mrb[183].mxu1  ;;  %8294 = vmatmul.mubr.bf16.vlgmr.msra.gmra.mrb[116].mxu0 %v8065_v28  ;;  %v8061_v25 = vmax.f32 %v8049_v9, 0.0  ;;  %v15342_v9 = vld [vmem:[%s15787_s9 + $0x30] ss:$8 sps:$4 sm:$0xff]   ;;  %v15348_v39 = vld [vmem:[%s15787_s9 + $0x44] ss:$8 sps:$4 sm:$0xff]  }
0x118a   :  { %v8055_v26 = vadd.f32 %v8054_v30, %v12864_v57  ;;  %8806 = vmatpush1.bf16.msra.mxu0 %v15299_v62  ;;  %v8062_v49 = vmax.f32 %v8051_v19, 0.0 }
0x118b   :  { %v8063_v44 = vmax.f32 %v8053_v43, 0.0  ;;  %8807 = vmatprep.subr.bf16.mxu0 %v15305_v61 }
0x118c   :  { %v8064_v24 = vmax.f32 %v8055_v26, 0.0 }
0x118d   :  { %v8067_v60 = vpack.c.bf16 %v8063_v44, %v8061_v25  ;;  %v12065_v25 = vld [vmem:[%s15784_s5 + $0x8] sm:$0xff]  }
0x118e   :  { %v8068_v54 = vpack.c.bf16 %v8064_v24, %v8062_v49  ;;  %v11428_v42 = vpop.f32.mrb[184].mxu1  ;;  %8808 = vmatpush1.bf16.msra.mxu0 %v15314_v5  ;;  %v15357_v44 = vld [vmem:[%s15787_s9 + $0x40] ss:$8 sps:$4 sm:$0xff]   ;;  %v15363_v49 = vld [vmem:[%s15787_s9 + $0x54] ss:$8 sps:$4 sm:$0xff]  }
0x118f   :  { %v8440_v27 = vadd.f32 %v14777_v21, %v11428_v42  ;;  %v8431_v4 = vpop.f32.mrb[185].mxu1  ;;  %8809 = vmatprep.subr.bf16.mxu0 %v15320_v31  ;;  %v12066_v24 = vld [vmem:[%s15784_s5 + $0x10] sm:$0xff]   ;;  %v15389_v42 = vld [vmem:[%s15787_s9 + $0x60] ss:$8 sps:$4 sm:$0xff]  }
0x1190   :  { %v8432_v34 = vadd.f32 %v14777_v21, %v8431_v4  ;;  %8303 = vmatprep.mubr.bf16.mxu0 %v8068_v54  ;;  %v11429_v33 = vpop.f32.mrb[186].mxu1  ;;  %v12067_v54 = vld [vmem:[%s15784_s5 + $0x18] sm:$0xff]  }
0x1191   :  { %v8443_v28 = vadd.f32 %v14777_v21, %v11429_v33  ;;  %8304 = vmatmul.mubr.bf16.gmra.mrb[120].mxu0 %v8067_v60  ;;  %v8434_v22 = vpop.f32.mrb[187].mxu1  ;;  %v8448_v52 = vmax.f32 %v8440_v27, 0.0  ;;  %v15374_v60 = vld [vmem:[%s15787_s9 + $0x50] ss:$8 sps:$4 sm:$0xff]   ;;  %v15395_v27 = vld [vmem:[%s15787_s9 + $0x74] ss:$8 sps:$4 sm:$0xff]  }
0x1192   :  { %v8435_v8 = vadd.f32 %v14777_v21, %v8434_v22  ;;  %8810 = vmatpush1.bf16.msra.mxu0 %v15326_v38  ;;  %v8446_v43 = vmax.f32 %v8432_v34, 0.0  ;;  %v15403_v4 = vld [vmem:[%s15787_s9 + $0x70] ss:$8 sps:$4 sm:$0xff]   ;;  %v15409_v34 = vld [vmem:[%s15787_s9 + $0x84] ss:$8 sps:$4 sm:$0xff]  }
0x1193   :  { %v8449_v19 = vmax.f32 %v8443_v28, 0.0  ;;  %8811 = vmatprep.subr.bf16.mxu0 %v15333_v29  ;;  %v15422_v33 = vld [vmem:[%s15787_s9 + $0x94] ss:$8 sps:$4 sm:$0xff]  }
0x1194   :  { %v8447_v30 = vmax.f32 %v8435_v8, 0.0 }
0x1195   :  { %v8451_v26 = vpack.c.bf16 %v8449_v19, %v8448_v52 }
0x1196   :  { %v8450_v21 = vpack.c.bf16 %v8447_v30, %v8446_v43  ;;  %8812 = vmatpush1.bf16.msra.mxu0 %v15342_v9 }
0x1197   :  { %8813 = vmatprep.subr.bf16.mxu0 %v15348_v39 }
0x1198   :  { %8581 = vmatmul.mubr.bf16.vlgmr.msra.gmra.mrb[188].mxu1 %v8450_v21 }
0x1199   :  { %11431 = vmatpush3.bf16.msra.mxu1 %v15283_v7  ;;  %8590 = vmatprep.mubr.bf16.mxu1 %v15840_v59  ;;  %v15380_v7 = vld [vmem:[%s15787_s9 + $0x64] ss:$8 sps:$4 sm:$0xff]  }
0x119a   :  { %11432 = vmatprep.subr.bf16.mxu1 %v12065_v25  ;;  %8814 = vmatpush1.bf16.msra.mxu0 %v15357_v44 }
0x119b   :  { %8815 = vmatprep.subr.bf16.mxu0 %v15363_v49 }
0x119d   :  { %11433 = vmatpush3.bf16.msra.mxu1 %v12065_v25 }
0x119e   :  { %11434 = vmatprep.subr.bf16.mxu1 %v12066_v24  ;;  %8816 = vmatpush1.bf16.msra.mxu0 %v15374_v60 }
0x119f   :  { %8817 = vmatprep.subr.bf16.mxu0 %v15380_v7 }
0x11a0   :  { %8591 = vmatmul.mubr.bf16.gmra.mrb[192].mxu1 %v8451_v26 }
0x11a1   :  { %11435 = vmatpush3.bf16.msra.mxu1 %v12066_v24  ;;  %11438 = vmatprep.mubr.msk.bf16.mxu1 %vm829_vm0, %v15032_v45  ;;  %v15415_v45 = vld [vmem:[%s15787_s9 + $0x80] ss:$8 sps:$4 sm:$0xff]  }
0x11a2   :  { %11436 = vmatprep.subr.bf16.mxu1 %v12067_v54  ;;  %8818 = vmatpush1.bf16.msra.mxu0 %v15389_v42 }
0x11a3   :  { %8819 = vmatprep.subr.bf16.mxu0 %v15395_v27 }
0x11a5   :  { %11437 = vmatpush3.bf16.msra.mxu1 %v12067_v54 }
0x11a6   :  { %8820 = vmatpush1.bf16.msra.mxu0 %v15403_v4  ;;  %9086 = vmatprep.subr.bf16.mxu1 %v15063_v63  ;;  %v15432_v63 = vld [vmem:[%s15787_s9 + $0x90] ss:$8 sps:$4 sm:$0xff]  }
0x11a7   :  { %8821 = vmatprep.subr.bf16.mxu0 %v15409_v34 }
0x11a8   :  { %11439 = vmatmul.mubr.msk.bf16.vlgmr.msra.gmra.mrb[196].mxu1 %vm829_vm0, %v15046_v51  ;;  %v15454_v51 = vld [vmem:[%s15787_s9 + $0xa4] ss:$8 sps:$4 sm:$0xff]  }
0x11a9   :  { %9087 = vmatpush1.bf16.msra.mxu1 %v15068_v1  ;;  %9118 = vmatprep.mubr.bf16.mxu1 %v15840_v59  ;;  %v15459_v1 = vld [vmem:[%s15787_s9 + $0xa0] ss:$8 sps:$4 sm:$0xff]  }
0x11aa   :  { %8822 = vmatpush1.bf16.msra.mxu0 %v15415_v45  ;;  %9088 = vmatprep.subr.bf16.mxu1 %v15075_v36  ;;  %v12101_v36 = vld [vmem:[%s15784_s5] sm:$0xff]  }
0x11ab   :  { %8823 = vmatprep.subr.bf16.mxu0 %v15422_v33 }
0x11ad   :  { %9089 = vmatpush1.bf16.msra.mxu1 %v15080_v14 }
0x11ae   :  { %8824 = vmatpush1.bf16.msra.mxu0 %v15432_v63  ;;  %9090 = vmatprep.subr.bf16.mxu1 %v15227_v50 }
0x11af   :  { %8825 = vmatprep.subr.bf16.mxu0 %v15454_v51 }
0x11b1   :  { %9091 = vmatpush1.bf16.msra.mxu1 %v15232_v37 }
0x11b2   :  { %9092 = vmatprep.subr.bf16.mxu1 %v15251_v6  ;;  %8826 = vmatpush1.bf16.msra.mxu0 %v15459_v1 }
0x11b3   :  { %8827 = vmatprep.subr.bf16.mxu0 %v15147_v48 }
0x11b5   :  { %9093 = vmatpush1.bf16.msra.mxu1 %v15256_v0 }
0x11b6   :  { %9094 = vmatprep.subr.bf16.mxu1 %v15090_v58  ;;  %8828 = vmatpush1.bf16.msra.mxu0 %v15142_v32 }
0x11b7   :  { %8829 = vmatprep.subr.bf16.mxu0 %v15152_v2 }
0x11b9   :  { %9095 = vmatpush1.bf16.msra.mxu1 %v15096_v40 }
0x11ba   :  { %9096 = vmatprep.subr.bf16.mxu1 %v15102_v10  ;;  %8830 = vmatpush1.bf16.msra.mxu0 %v15159_v35 }
0x11bb   :  { %8831 = vmatprep.subr.bf16.mxu0 %v15165_v11 }
0x11bd   :  { %9097 = vmatpush1.bf16.msra.mxu1 %v15108_v20 }
0x11be   :  { %9098 = vmatprep.subr.bf16.mxu1 %v15115_v23  ;;  %8832 = vmatpush1.bf16.msra.mxu0 %v15171_v15 }
0x11bf   :  { %8833 = vmatprep.subr.bf16.mxu0 %v15237_v41 }
0x11c1   :  { %9099 = vmatpush1.bf16.msra.mxu1 %v15120_v56 }
0x11c2   :  { %9100 = vmatprep.subr.bf16.mxu1 %v15127_v3  ;;  %8834 = vmatpush1.bf16.msra.mxu0 %v15243_v13 }
0x11c3   :  { %8835 = vmatprep.subr.bf16.mxu0 %v15261_v17 }
0x11c5   :  { %9101 = vmatpush1.bf16.msra.mxu1 %v15132_v47 }
0x11c6   :  { %9343 = vmatprep.subr.bf16.mxu1 %v15289_v55  ;;  %8836 = vmatpush1.bf16.msra.mxu0 %v15267_v46 }
0x11c7   :  { %11442 = vmatprep.subr.bf16.mxu0 %v12101_v36 }
0x125c   :  { %v8295_v14 = vpop.f32.mrb[116].mxu0 }
0x125d   :  { %v8296_v58 = vadd.f32 %v8295_v14, %v12947_v12  ;;  %v8297_v40 = vpop.f32.mrb[117].mxu0 }
0x125e   :  { %v8298_v10 = vadd.f32 %v8297_v40, %v15878_v16  ;;  %v8299_v20 = vpop.f32.mrb[118].mxu0 }
0x125f   :  { %v8314_v23 = vmax.f32 %v8296_v58, 0.0  ;;  %v8300_v56 = vadd.f32 %v8299_v20, %v12947_v12  ;;  %v8301_v3 = vpop.f32.mrb[119].mxu0 }
0x1260   :  { %v8315_v47 = vmax.f32 %v8298_v10, 0.0  ;;  %v8302_v11 = vadd.f32 %v8301_v3, %v15878_v16 }
0x1261   :  { %v8316_v15 = vmax.f32 %v8300_v56, 0.0 }
0x1262   :  { %v11150_v41 = vpack.c.bf16 %v8315_v47, %v8314_v23  ;;  %v8317_v13 = vmax.f32 %v8302_v11, 0.0 }
0x1264   :  { %10912 = vst.msk [vmem:[%s15791_s11 + $0x180] sm:$0xff] %vm12956_vm3, %v11150_v41  ;;  %v11151_v17 = vpack.c.bf16 %v8317_v13, %v8316_v15  ;;  %v8305_v46 = vpop.f32.mrb[120].mxu0 }
0x1265   :  { %v8306_v28 = vadd.f32 %v8305_v46, %v12947_v12  ;;  %v8307_v22 = vpop.f32.mrb[121].mxu0 }
0x1266   :  { %10913 = vst.msk [vmem:[%s15791_s11 + $0x188] sm:$0xff] %vm12956_vm3, %v11151_v17  ;;  %v8308_v8 = vadd.f32 %v8307_v22, %v15878_v16  ;;  %v8309_v52 = vpop.f32.mrb[122].mxu0 }
0x1267   :  { %v8318_v19 = vmax.f32 %v8306_v28, 0.0  ;;  %v8310_v43 = vadd.f32 %v8309_v52, %v12947_v12  ;;  %v8311_v30 = vpop.f32.mrb[123].mxu0  ;;  %v12102_v52 = vld [vmem:[%s15784_s5 + $0x8] sm:$0xff]  }
0x1268   :  { %v8319_v26 = vmax.f32 %v8308_v8, 0.0  ;;  %v8312_v21 = vadd.f32 %v8311_v30, %v15878_v16 }
0x1269   :  { %v8320_v25 = vmax.f32 %v8310_v43, 0.0 }
0x126a   :  { %v11152_v24 = vpack.c.bf16 %v8319_v26, %v8318_v19  ;;  %v8321_v54 = vmax.f32 %v8312_v21, 0.0 }
0x126b   :  { %v8582_v14 = vpop.f32.mrb[188].mxu1 }
0x126c   :  { %10914 = vst.msk [vmem:[%s15791_s11 + $0x190] sm:$0xff] %vm12956_vm3, %v11152_v24  ;;  %v11153_v58 = vpack.c.bf16 %v8321_v54, %v8320_v25  ;;  %v8583_v40 = vadd.f32 %v8582_v14, %v12861_v18  ;;  %v8584_v10 = vpop.f32.mrb[189].mxu1  ;;  %v12103_v54 = vld [vmem:[%s15784_s5 + $0x10] sm:$0xff]  }
0x126d   :  { %v8585_v20 = vadd.f32 %v8584_v10, %v12864_v57  ;;  %v8586_v23 = vpop.f32.mrb[190].mxu1 }
0x126e   :  { %10915 = vst.msk [vmem:[%s15791_s11 + $0x198] sm:$0xff] %vm12956_vm3, %v11153_v58  ;;  %v8587_v56 = vadd.f32 %v8586_v23, %v12861_v18  ;;  %v8588_v3 = vpop.f32.mrb[191].mxu1  ;;  %v8601_v11 = vmax.f32 %v8583_v40, 0.0  ;;  %v15521_v23 = vld [vmem:[%s15788_s6] ss:$0 sm:$0xff] }
0x126f   :  { %v8589_v47 = vadd.f32 %v8588_v3, %v12864_v57  ;;  %v8602_v41 = vmax.f32 %v8585_v20, 0.0  ;;  %v12104_v3 = vld [vmem:[%s15784_s5 + $0x18] sm:$0xff]  }
0x1270   :  { %v8603_v15 = vmax.f32 %v8587_v56, 0.0 }
0x1271   :  { %v8604_v13 = vmax.f32 %v8589_v47, 0.0 }
0x1272   :  { %v8609_v17 = vpack.c.bf16 %v8603_v15, %v8601_v11  ;;  %v9446_v15 = vpop.permute.xlu0 %9445 }
0x1273   :  { %v8610_v46 = vpack.c.bf16 %v8604_v13, %v8602_v41  ;;  %v8592_v28 = vpop.f32.mrb[192].mxu1 }
0x1274   :  { %v8593_v22 = vadd.f32 %v8592_v28, %v12861_v18  ;;  %v8594_v8 = vpop.f32.mrb[193].mxu1 }
0x1275   :  { %v8595_v19 = vadd.f32 %v8594_v8, %v12864_v57  ;;  %v8596_v43 = vpop.f32.mrb[194].mxu1  ;;  %8837 = vmatprep.mubr.bf16.mxu0 %v8610_v46 }
0x1276   :  { %v8597_v30 = vadd.f32 %v8596_v43, %v12861_v18  ;;  %v8598_v26 = vpop.f32.mrb[195].mxu1  ;;  %8838 = vmatmul.mubr.bf16.vlgmr.msra.gmra.mrb[124].mxu0 %v8609_v17  ;;  %v8605_v25 = vmax.f32 %v8593_v22, 0.0  ;;  %v12107_v22 = vld [vmem:[%s15786_s7 + $0x4] ss:$8 sps:$4 sm:$0xff]  }
0x1277   :  { %v8599_v21 = vadd.f32 %v8598_v26, %v12864_v57  ;;  %11443 = vmatpush3.bf16.msra.mxu0 %v12101_v36  ;;  %v8606_v14 = vmax.f32 %v8595_v19, 0.0  ;;  %v12110_v26 = vld [vmem:[%s15786_s7 + $0x14] ss:$8 sps:$4 sm:$0xff]  }
0x1278   :  { %v8607_v24 = vmax.f32 %v8597_v30, 0.0  ;;  %11444 = vmatprep.subr.bf16.mxu0 %v12102_v52  ;;  %v12105_v30 = vld [vmem:[%s15786_s7] ss:$8 sps:$4 sm:$0xff]  }
0x1279   :  { %v8608_v58 = vmax.f32 %v8599_v21, 0.0  ;;  %v9448_v21 = vpop.permute.xlu1 %9447 }
0x127a   :  { %v8611_v40 = vpack.c.bf16 %v8607_v24, %v8605_v25  ;;  %v12108_v25 = vld [vmem:[%s15786_s7 + $0x10] ss:$8 sps:$4 sm:$0xff]   ;;  %v15610_v24 = vld [vmem:[%s15787_s9 + $0xe0] ss:$8 sps:$4 sm:$0xff]  }
0x127b   :  { %v8612_v10 = vpack.c.bf16 %v8608_v58, %v8606_v14  ;;  %11445 = vmatpush3.bf16.msra.mxu0 %v12102_v52  ;;  %v11440_v20 = vpop.f32.mrb[196].mxu1  ;;  %v15620_v14 = vld [vmem:[%s15787_s9 + $0xf4] ss:$8 sps:$4 sm:$0xff]  }
0x127c   :  { %v8978_v36 = vadd.f32 %v15521_v23, %v11440_v20  ;;  %v8969_v56 = vpop.f32.mrb[197].mxu1  ;;  %11446 = vmatprep.subr.bf16.mxu0 %v12103_v54  ;;  %v12131_v58 = vld [vmem:[%s15786_s7 + $0x74] ss:$8 sps:$4 sm:$0xff]  }
0x127d   :  { %v8970_v47 = vadd.f32 %v15521_v23, %v8969_v56  ;;  %8847 = vmatprep.mubr.bf16.mxu0 %v8612_v10  ;;  %v11441_v11 = vpop.f32.mrb[198].mxu1  ;;  %v12129_v10 = vld [vmem:[%s15786_s7 + $0x70] ss:$8 sps:$4 sm:$0xff]  }
0x127e   :  { %v8981_v41 = vadd.f32 %v15521_v23, %v11441_v11  ;;  %8848 = vmatmul.mubr.bf16.gmra.mrb[128].mxu0 %v8611_v40  ;;  %v8972_v13 = vpop.f32.mrb[199].mxu1  ;;  %v8986_v46 = vmax.f32 %v8978_v36, 0.0  ;;  %v15628_v40 = vld [vmem:[%s15787_s9 + $0xf0] ss:$8 sps:$4 sm:$0xff]  }
0x127f   :  { %v8973_v17 = vadd.f32 %v15521_v23, %v8972_v13  ;;  %11447 = vmatpush3.bf16.msra.mxu0 %v12103_v54  ;;  %11450 = vmatprep.mubr.msk.bf16.mxu0 %vm829_vm0, %v9446_v15  ;;  %v8984_v8 = vmax.f32 %v8970_v47, 0.0  ;;  %v12123_v54 = vld [vmem:[%s15786_s7 + $0x60] ss:$8 sps:$4 sm:$0xff]  }
0x1280   :  { %v8987_v28 = vmax.f32 %v8981_v41, 0.0  ;;  %11448 = vmatprep.subr.bf16.mxu0 %v12104_v3 }
0x1281   :  { %v8985_v52 = vmax.f32 %v8973_v17, 0.0 }
0x1282   :  { %v8989_v19 = vpack.c.bf16 %v8987_v28, %v8986_v46 }
0x1283   :  { %v8988_v43 = vpack.c.bf16 %v8985_v52, %v8984_v8  ;;  %11449 = vmatpush3.bf16.msra.mxu0 %v12104_v3 }
0x1284   :  { %9630 = vmatprep.subr.bf16.mxu0 %v12107_v22 }
0x1285   :  { %9119 = vmatmul.mubr.bf16.vlgmr.msra.gmra.mrb[200].mxu1 %v8988_v43 }
0x1286   :  { %11451 = vmatmul.mubr.msk.bf16.vlgmr.msra.gmra.mrb[132].mxu0 %vm829_vm0, %v9448_v21  ;;  %9128 = vmatprep.mubr.bf16.mxu1 %v15840_v59 }
0x1287   :  { %9344 = vmatpush1.bf16.msra.mxu1 %v15299_v62  ;;  %9631 = vmatpush1.bf16.msra.mxu0 %v12105_v30 }
0x1288   :  { %9345 = vmatprep.subr.bf16.mxu1 %v15305_v61  ;;  %9632 = vmatprep.subr.bf16.mxu0 %v12110_v26 }
0x1289   :  { %9662 = vmatprep.mubr.bf16.mxu0 %v15840_v59 }
0x128b   :  { %9346 = vmatpush1.bf16.msra.mxu1 %v15314_v5  ;;  %9633 = vmatpush1.bf16.msra.mxu0 %v12108_v25 }
0x128c   :  { %9347 = vmatprep.subr.bf16.mxu1 %v15320_v31  ;;  %9634 = vmatprep.subr.bf16.mxu0 %v15227_v50  ;;  %v12113_v50 = vld [vmem:[%s15786_s7 + $0x44] ss:$8 sps:$4 sm:$0xff]  }
0x128d   :  { %9129 = vmatmul.mubr.bf16.gmra.mrb[204].mxu1 %v8989_v19 }
0x128f   :  { %9348 = vmatpush1.bf16.msra.mxu1 %v15326_v38  ;;  %9635 = vmatpush1.bf16.msra.mxu0 %v15232_v37  ;;  %v12111_v37 = vld [vmem:[%s15786_s7 + $0x40] ss:$8 sps:$4 sm:$0xff]  }
0x1290   :  { %9349 = vmatprep.subr.bf16.mxu1 %v15333_v29  ;;  %9636 = vmatprep.subr.bf16.mxu0 %v15251_v6  ;;  %v15602_v6 = vld [vmem:[%s15787_s9 + $0xe4] ss:$8 sps:$4 sm:$0xff]  }
0x1293   :  { %9350 = vmatpush1.bf16.msra.mxu1 %v15342_v9  ;;  %9637 = vmatpush1.bf16.msra.mxu0 %v15256_v0  ;;  %v12125_v0 = vld [vmem:[%s15786_s7 + $0x64] ss:$8 sps:$4 sm:$0xff]  }
0x1294   :  { %9351 = vmatprep.subr.bf16.mxu1 %v15348_v39  ;;  %9638 = vmatprep.subr.bf16.mxu0 %v12113_v50 }
0x1297   :  { %9352 = vmatpush1.bf16.msra.mxu1 %v15357_v44  ;;  %9639 = vmatpush1.bf16.msra.mxu0 %v12111_v37 }
0x1298   :  { %9353 = vmatprep.subr.bf16.mxu1 %v15363_v49 }
0x129b   :  { %9354 = vmatpush1.bf16.msra.mxu1 %v15374_v60 }
0x129c   :  { %9355 = vmatprep.subr.bf16.mxu1 %v15380_v7 }
0x129f   :  { %9356 = vmatpush1.bf16.msra.mxu1 %v15389_v42 }
0x12a0   :  { %9357 = vmatprep.subr.bf16.mxu1 %v15395_v27 }
0x12a3   :  { %9358 = vmatpush1.bf16.msra.mxu1 %v15403_v4 }
0x12a4   :  { %9359 = vmatprep.subr.bf16.mxu1 %v15409_v34 }
0x12a7   :  { %9360 = vmatpush1.bf16.msra.mxu1 %v15415_v45 }
0x12a8   :  { %9361 = vmatprep.subr.bf16.mxu1 %v15422_v33 }
0x12ab   :  { %9362 = vmatpush1.bf16.msra.mxu1 %v15432_v63 }
0x12ac   :  { %9363 = vmatprep.subr.bf16.mxu1 %v15454_v51 }
0x12af   :  { %9364 = vmatpush1.bf16.msra.mxu1 %v15459_v1 }
0x12b0   :  { %9365 = vmatprep.subr.bf16.mxu1 %v15147_v48  ;;  %v15584_v48 = vld [vmem:[%s15787_s9 + $0xd4] ss:$8 sps:$4 sm:$0xff]  }
0x12b3   :  { %9366 = vmatpush1.bf16.msra.mxu1 %v15142_v32  ;;  %v12119_v32 = vld [vmem:[%s15786_s7 + $0x54] ss:$8 sps:$4 sm:$0xff]  }
0x12b4   :  { %9367 = vmatprep.subr.bf16.mxu1 %v15152_v2  ;;  %v15592_v2 = vld [vmem:[%s15787_s9 + $0xd0] ss:$8 sps:$4 sm:$0xff]   ;;  %9640 = vmatprep.subr.bf16.mxu0 %v12119_v32 }
0x12b7   :  { %9368 = vmatpush1.bf16.msra.mxu1 %v15159_v35  ;;  %v12117_v35 = vld [vmem:[%s15786_s7 + $0x50] ss:$8 sps:$4 sm:$0xff]  }
0x12b8   :  { %9369 = vmatprep.subr.bf16.mxu1 %v15584_v48  ;;  %9641 = vmatpush1.bf16.msra.mxu0 %v12117_v35 }
0x12b9   :  { %9642 = vmatprep.subr.bf16.mxu0 %v12125_v0 }
0x12bb   :  { %9370 = vmatpush1.bf16.msra.mxu1 %v15592_v2 }
0x12bc   :  { %9371 = vmatprep.subr.bf16.mxu1 %v15602_v6  ;;  %9643 = vmatpush1.bf16.msra.mxu0 %v12123_v54 }
0x12bd   :  { %9644 = vmatprep.subr.bf16.mxu0 %v12131_v58 }
0x12bf   :  { %9372 = vmatpush1.bf16.msra.mxu1 %v15610_v24 }
0x12c0   :  { %9373 = vmatprep.subr.bf16.mxu1 %v15620_v14  ;;  %9645 = vmatpush1.bf16.msra.mxu0 %v12129_v10 }
0x12c1   :  { %9887 = vmatprep.subr.bf16.mxu0 %v15289_v55 }
0x12c3   :  { %9374 = vmatpush1.bf16.msra.mxu1 %v15628_v40 }
0x1349   :  { %v8839_v20 = vpop.f32.mrb[124].mxu0 }
0x134a   :  { %v8840_v36 = vadd.f32 %v8839_v20, %v12947_v12  ;;  %v8841_v56 = vpop.f32.mrb[125].mxu0 }
0x134b   :  { %v8842_v3 = vadd.f32 %v8841_v56, %v15878_v16  ;;  %v8843_v47 = vpop.f32.mrb[126].mxu0 }
0x134c   :  { %v8858_v11 = vmax.f32 %v8840_v36, 0.0  ;;  %v8844_v15 = vadd.f32 %v8843_v47, %v12947_v12  ;;  %v8845_v41 = vpop.f32.mrb[127].mxu0 }
0x134d   :  { %v8859_v13 = vmax.f32 %v8842_v3, 0.0  ;;  %v8846_v17 = vadd.f32 %v8845_v41, %v15878_v16 }
0x134e   :  { %v8860_v46 = vmax.f32 %v8844_v15, 0.0 }
0x134f   :  { %v11154_v28 = vpack.c.bf16 %v8859_v13, %v8858_v11  ;;  %v8861_v22 = vmax.f32 %v8846_v17, 0.0 }
0x1351   :  { %10974 = vst.msk [vmem:[%s15791_s11 + $0x1a0] sm:$0xff] %vm12956_vm3, %v11154_v28  ;;  %v11155_v55 = vpack.c.bf16 %v8861_v22, %v8860_v46  ;;  %v8849_v8 = vpop.f32.mrb[128].mxu0 }
0x1352   :  { %v8850_v52 = vadd.f32 %v8849_v8, %v12947_v12  ;;  %v8851_v19 = vpop.f32.mrb[129].mxu0 }
0x1353   :  { %10975 = vst.msk [vmem:[%s15791_s11 + $0x1a8] sm:$0xff] %vm12956_vm3, %v11155_v55  ;;  %v8852_v43 = vadd.f32 %v8851_v19, %v15878_v16  ;;  %v8853_v30 = vpop.f32.mrb[130].mxu0 }
0x1354   :  { %v8862_v26 = vmax.f32 %v8850_v52, 0.0  ;;  %v8854_v21 = vadd.f32 %v8853_v30, %v12947_v12  ;;  %v8855_v25 = vpop.f32.mrb[131].mxu0 }
0x1355   :  { %v8863_v50 = vmax.f32 %v8852_v43, 0.0  ;;  %v8856_v37 = vadd.f32 %v8855_v25, %v15878_v16 }
0x1356   :  { %v8864_v32 = vmax.f32 %v8854_v21, 0.0 }
0x1357   :  { %v11156_v35 = vpack.c.bf16 %v8863_v50, %v8862_v26  ;;  %v8865_v0 = vmax.f32 %v8856_v37, 0.0 }
0x1358   :  { %v9120_v54 = vpop.f32.mrb[200].mxu1 }
0x1359   :  { %10976 = vst.msk [vmem:[%s15791_s11 + $0x1b0] sm:$0xff] %vm12956_vm3, %v11156_v35  ;;  %v11157_v58 = vpack.c.bf16 %v8865_v0, %v8864_v32  ;;  %v9121_v10 = vadd.f32 %v9120_v54, %v12861_v18  ;;  %v9122_v20 = vpop.f32.mrb[201].mxu1  ;;  %v11452_v36 = vpop.f32.mrb[132].mxu0 }
0x135a   :  { %v9123_v56 = vadd.f32 %v9122_v20, %v12864_v57  ;;  %v9522_v3 = vadd.f32 %v15521_v23, %v11452_v36  ;;  %v9124_v47 = vpop.f32.mrb[202].mxu1  ;;  %v9513_v11 = vpop.f32.mrb[133].mxu0 }
0x135b   :  { %10977 = vst.msk [vmem:[%s15791_s11 + $0x1b8] sm:$0xff] %vm12956_vm3, %v11157_v58  ;;  %v9125_v15 = vadd.f32 %v9124_v47, %v12861_v18  ;;  %v9514_v41 = vadd.f32 %v15521_v23, %v9513_v11  ;;  %v9126_v13 = vpop.f32.mrb[203].mxu1  ;;  %v11453_v17 = vpop.f32.mrb[134].mxu0  ;;  %v9139_v55 = vmax.f32 %v9121_v10, 0.0 }
0x135c   :  { %v9127_v46 = vadd.f32 %v9126_v13, %v12864_v57  ;;  %v9525_v28 = vadd.f32 %v15521_v23, %v11453_v17  ;;  %v9516_v22 = vpop.f32.mrb[135].mxu0  ;;  %v9140_v19 = vmax.f32 %v9123_v56, 0.0  ;;  %v9530_v43 = vmax.f32 %v9522_v3, 0.0 }
0x135d   :  { %v9141_v8 = vmax.f32 %v9125_v15, 0.0  ;;  %v9517_v52 = vadd.f32 %v15521_v23, %v9516_v22  ;;  %v9528_v25 = vmax.f32 %v9514_v41, 0.0 }
0x135e   :  { %v9142_v30 = vmax.f32 %v9127_v46, 0.0  ;;  %v9531_v26 = vmax.f32 %v9525_v28, 0.0 }
0x135f   :  { %v9147_v21 = vpack.c.bf16 %v9141_v8, %v9139_v55  ;;  %v9529_v50 = vmax.f32 %v9517_v52, 0.0 }
0x1360   :  { %v9148_v37 = vpack.c.bf16 %v9142_v30, %v9140_v19  ;;  %v9533_v32 = vpack.c.bf16 %v9531_v26, %v9530_v43  ;;  %v9130_v35 = vpop.f32.mrb[204].mxu1 }
0x1361   :  { %v9532_v0 = vpack.c.bf16 %v9529_v50, %v9528_v25  ;;  %v9131_v54 = vadd.f32 %v9130_v35, %v12861_v18  ;;  %v9132_v58 = vpop.f32.mrb[205].mxu1 }
0x1362   :  { %v9133_v20 = vadd.f32 %v9132_v58, %v12864_v57  ;;  %v9134_v10 = vpop.f32.mrb[206].mxu1  ;;  %9375 = vmatprep.mubr.bf16.mxu1 %v9148_v37 }
0x1363   :  { %v9135_v23 = vadd.f32 %v9134_v10, %v12861_v18  ;;  %v9136_v36 = vpop.f32.mrb[207].mxu1  ;;  %9376 = vmatmul.mubr.bf16.vlgmr.msra.gmra.mrb[208].mxu1 %v9147_v21  ;;  %9663 = vmatmul.mubr.bf16.vlgmr.msra.gmra.mrb[136].mxu0 %v9532_v0  ;;  %v9143_v3 = vmax.f32 %v9131_v54, 0.0 }
0x1364   :  { %v9137_v56 = vadd.f32 %v9136_v36, %v12864_v57  ;;  %9672 = vmatprep.mubr.bf16.mxu0 %v15840_v59  ;;  %9888 = vmatpush1.bf16.msra.mxu0 %v15299_v62  ;;  %v9144_v11 = vmax.f32 %v9133_v20, 0.0  ;;  %v12134_v59 = vld [vmem:[%s15787_s9 + $0xb4] ss:$8 sps:$4 sm:$0xff]   ;;  %v12132_v62 = vld [vmem:[%s15787_s9 + $0xb0] ss:$8 sps:$4 sm:$0xff]  }
0x1365   :  { %v9145_v47 = vmax.f32 %v9135_v23, 0.0  ;;  %9889 = vmatprep.subr.bf16.mxu0 %v15305_v61  ;;  %v12137_v61 = vld [vmem:[%s15787_s9 + $0xc4] ss:$8 sps:$4 sm:$0xff]  }
0x1366   :  { %v9146_v15 = vmax.f32 %v9137_v56, 0.0 }
0x1367   :  { %v9149_v41 = vpack.c.bf16 %v9145_v47, %v9143_v3 }
0x1368   :  { %v9150_v13 = vpack.c.bf16 %v9146_v15, %v9144_v11  ;;  %9890 = vmatpush1.bf16.msra.mxu0 %v15314_v5  ;;  %v12135_v5 = vld [vmem:[%s15787_s9 + $0xc0] ss:$8 sps:$4 sm:$0xff]  }
0x1369   :  { %9891 = vmatprep.subr.bf16.mxu0 %v15320_v31 }
0x136a   :  { %9385 = vmatprep.mubr.bf16.mxu1 %v9150_v13 }
0x136b   :  { %9386 = vmatmul.mubr.bf16.gmra.mrb[212].mxu1 %v9149_v41  ;;  %9673 = vmatmul.mubr.bf16.gmra.mrb[140].mxu0 %v9533_v32 }
0x136c   :  { %9892 = vmatpush1.bf16.msra.mxu0 %v15326_v38 }
0x136d   :  { %9893 = vmatprep.subr.bf16.mxu0 %v15333_v29 }
0x1370   :  { %9894 = vmatpush1.bf16.msra.mxu0 %v15342_v9 }
0x1371   :  { %9895 = vmatprep.subr.bf16.mxu0 %v15348_v39 }
0x1374   :  { %9896 = vmatpush1.bf16.msra.mxu0 %v15357_v44 }
0x1375   :  { %9897 = vmatprep.subr.bf16.mxu0 %v15363_v49 }
0x1378   :  { %9898 = vmatpush1.bf16.msra.mxu0 %v15374_v60 }
0x1379   :  { %9899 = vmatprep.subr.bf16.mxu0 %v15380_v7 }
0x137c   :  { %9900 = vmatpush1.bf16.msra.mxu0 %v15389_v42 }
0x137d   :  { %9901 = vmatprep.subr.bf16.mxu0 %v15395_v27 }
0x1380   :  { %9902 = vmatpush1.bf16.msra.mxu0 %v15403_v4 }
0x1381   :  { %9903 = vmatprep.subr.bf16.mxu0 %v15409_v34 }
0x1384   :  { %9904 = vmatpush1.bf16.msra.mxu0 %v15415_v45 }
0x1385   :  { %9905 = vmatprep.subr.bf16.mxu0 %v15422_v33 }
0x1388   :  { %9906 = vmatpush1.bf16.msra.mxu0 %v15432_v63 }
0x1389   :  { %9907 = vmatprep.subr.bf16.mxu0 %v15454_v51 }
0x138c   :  { %9908 = vmatpush1.bf16.msra.mxu0 %v15459_v1 }
0x138d   :  { %9909 = vmatprep.subr.bf16.mxu0 %v12134_v59 }
0x1390   :  { %9910 = vmatpush1.bf16.msra.mxu0 %v12132_v62 }
0x1391   :  { %9911 = vmatprep.subr.bf16.mxu0 %v12137_v61 }
0x1394   :  { %9912 = vmatpush1.bf16.msra.mxu0 %v12135_v5 }
0x1395   :  { %9913 = vmatprep.subr.bf16.mxu0 %v15584_v48 }
0x1398   :  { %9914 = vmatpush1.bf16.msra.mxu0 %v15592_v2 }
0x1399   :  { %9915 = vmatprep.subr.bf16.mxu0 %v15602_v6 }
0x139c   :  { %9916 = vmatpush1.bf16.msra.mxu0 %v15610_v24 }
0x139d   :  { %9917 = vmatprep.subr.bf16.mxu0 %v15620_v14 }
0x13a0   :  { %9918 = vmatpush1.bf16.msra.mxu0 %v15628_v40 }
0x1436   :  { %v9377_v31 = vpop.f32.mrb[208].mxu1  ;;  %v9664_v38 = vpop.f32.mrb[136].mxu0 }
0x1437   :  { %v9378_v29 = vadd.f32 %v9377_v31, %v12947_v12  ;;  %v9665_v9 = vadd.f32 %v9664_v38, %v12861_v18  ;;  %v9379_v39 = vpop.f32.mrb[209].mxu1  ;;  %v9666_v44 = vpop.f32.mrb[137].mxu0 }
0x1438   :  { %v9380_v49 = vadd.f32 %v9379_v39, %v15878_v16  ;;  %v9667_v60 = vadd.f32 %v9666_v44, %v12864_v57  ;;  %v9381_v7 = vpop.f32.mrb[210].mxu1  ;;  %v9668_v42 = vpop.f32.mrb[138].mxu0 }
0x1439   :  { %v9396_v27 = vmax.f32 %v9378_v29, 0.0  ;;  %v9382_v4 = vadd.f32 %v9381_v7, %v12947_v12  ;;  %v9669_v34 = vadd.f32 %v9668_v42, %v12861_v18  ;;  %v9383_v45 = vpop.f32.mrb[211].mxu1  ;;  %v9670_v33 = vpop.f32.mrb[139].mxu0  ;;  %v9683_v48 = vmax.f32 %v9665_v9, 0.0 }
0x143a   :  { %v9397_v63 = vmax.f32 %v9380_v49, 0.0  ;;  %v9384_v51 = vadd.f32 %v9383_v45, %v15878_v16  ;;  %v9671_v1 = vadd.f32 %v9670_v33, %v12864_v57  ;;  %v9684_v14 = vmax.f32 %v9667_v60, 0.0 }
0x143b   :  { %v9398_v2 = vmax.f32 %v9382_v4, 0.0  ;;  %v9685_v6 = vmax.f32 %v9669_v34, 0.0 }
0x143c   :  { %v11158_v24 = vpack.c.bf16 %v9397_v63, %v9396_v27  ;;  %v9399_v40 = vmax.f32 %v9384_v51, 0.0  ;;  %v9686_v17 = vmax.f32 %v9671_v1, 0.0 }
0x143d   :  { %v9691_v46 = vpack.c.bf16 %v9685_v6, %v9683_v48 }
0x143e   :  { %11036 = vst.msk [vmem:[%s15791_s11 + $0x1c0] sm:$0xff] %vm12956_vm3, %v11158_v24  ;;  %v11159_v28 = vpack.c.bf16 %v9399_v40, %v9398_v2  ;;  %v9692_v22 = vpack.c.bf16 %v9686_v17, %v9684_v14  ;;  %v9387_v55 = vpop.f32.mrb[212].mxu1  ;;  %v9674_v8 = vpop.f32.mrb[140].mxu0 }
0x143f   :  { %v9388_v52 = vadd.f32 %v9387_v55, %v12947_v12  ;;  %v9675_v19 = vadd.f32 %v9674_v8, %v12861_v18  ;;  %v9389_v43 = vpop.f32.mrb[213].mxu1  ;;  %v9676_v30 = vpop.f32.mrb[141].mxu0 }
0x1440   :  { %11037 = vst.msk [vmem:[%s15791_s11 + $0x1c8] sm:$0xff] %vm12956_vm3, %v11159_v28  ;;  %v9390_v26 = vadd.f32 %v9389_v43, %v15878_v16  ;;  %v9677_v21 = vadd.f32 %v9676_v30, %v12864_v57  ;;  %v9391_v25 = vpop.f32.mrb[214].mxu1  ;;  %v9678_v50 = vpop.f32.mrb[142].mxu0  ;;  %9919 = vmatprep.mubr.bf16.mxu0 %v9692_v22 }
0x1441   :  { %v9400_v37 = vmax.f32 %v9388_v52, 0.0  ;;  %v9392_v32 = vadd.f32 %v9391_v25, %v12947_v12  ;;  %v9679_v35 = vadd.f32 %v9678_v50, %v12861_v18  ;;  %v9393_v0 = vpop.f32.mrb[215].mxu1  ;;  %v9680_v54 = vpop.f32.mrb[143].mxu0  ;;  %9920 = vmatmul.mubr.bf16.vlgmr.msra.gmra.mrb[144].mxu0 %v9691_v46  ;;  %v9687_v23 = vmax.f32 %v9675_v19, 0.0 }
0x1442   :  { %v9401_v58 = vmax.f32 %v9390_v26, 0.0  ;;  %v9394_v20 = vadd.f32 %v9393_v0, %v15878_v16  ;;  %v9681_v10 = vadd.f32 %v9680_v54, %v12864_v57  ;;  %v9688_v47 = vmax.f32 %v9677_v21, 0.0 }
0x1443   :  { %v9402_v36 = vmax.f32 %v9392_v32, 0.0  ;;  %v9689_v56 = vmax.f32 %v9679_v35, 0.0 }
0x1444   :  { %v11160_v3 = vpack.c.bf16 %v9401_v58, %v9400_v37  ;;  %v9403_v11 = vmax.f32 %v9394_v20, 0.0  ;;  %v9690_v15 = vmax.f32 %v9681_v10, 0.0 }
0x1445   :  { %v9693_v41 = vpack.c.bf16 %v9689_v56, %v9687_v23 }
0x1446   :  { %11038 = vst.msk [vmem:[%s15791_s11 + $0x1d0] sm:$0xff] %vm12956_vm3, %v11160_v3  ;;  %v11161_v18 = vpack.c.bf16 %v9403_v11, %v9402_v36  ;;  %v9694_v13 = vpack.c.bf16 %v9690_v15, %v9688_v47 }
0x1448   :  { %11039 = vst.msk [vmem:[%s15791_s11 + $0x1d8] sm:$0xff] %vm12956_vm3, %v11161_v18  ;;  %9929 = vmatprep.mubr.bf16.mxu0 %v9694_v13 }
0x1449   :  { %9930 = vmatmul.mubr.bf16.gmra.mrb[148].mxu0 %v9693_v41 }
0x1514   :  { %v9921_v57 = vpop.f32.mrb[144].mxu0 }
0x1515   :  { %v9922_v59 = vadd.f32 %v9921_v57, %v12947_v12  ;;  %v9923_v62 = vpop.f32.mrb[145].mxu0 }
0x1516   :  { %v9924_v61 = vadd.f32 %v9923_v62, %v15878_v16  ;;  %v9925_v5 = vpop.f32.mrb[146].mxu0 }
0x1517   :  { %v9940_v31 = vmax.f32 %v9922_v59, 0.0  ;;  %v9926_v38 = vadd.f32 %v9925_v5, %v12947_v12  ;;  %v9927_v29 = vpop.f32.mrb[147].mxu0 }
0x1518   :  { %v9941_v9 = vmax.f32 %v9924_v61, 0.0  ;;  %v9928_v39 = vadd.f32 %v9927_v29, %v15878_v16 }
0x1519   :  { %v9942_v44 = vmax.f32 %v9926_v38, 0.0 }
0x151a   :  { %v11162_v49 = vpack.c.bf16 %v9941_v9, %v9940_v31  ;;  %v9943_v60 = vmax.f32 %v9928_v39, 0.0 }
0x151c   :  { %11098 = vst.msk [vmem:[%s15791_s11 + $0x1e0] sm:$0xff] %vm12956_vm3, %v11162_v49  ;;  %v11163_v7 = vpack.c.bf16 %v9943_v60, %v9942_v44  ;;  %v9931_v42 = vpop.f32.mrb[148].mxu0 }
0x151d   :  { %v9932_v27 = vadd.f32 %v9931_v42, %v12947_v12  ;;  %v9933_v4 = vpop.f32.mrb[149].mxu0 }
0x151e   :  { %11099 = vst.msk [vmem:[%s15791_s11 + $0x1e8] sm:$0xff] %vm12956_vm3, %v11163_v7  ;;  %v9934_v34 = vadd.f32 %v9933_v4, %v15878_v16  ;;  %v9935_v45 = vpop.f32.mrb[150].mxu0 }
0x151f   :  { %v9944_v33 = vmax.f32 %v9932_v27, 0.0  ;;  %v9936_v63 = vadd.f32 %v9935_v45, %v12947_v12  ;;  %v9937_v51 = vpop.f32.mrb[151].mxu0 }
0x1520   :  { %v9945_v1 = vmax.f32 %v9934_v34, 0.0  ;;  %v9938_v48 = vadd.f32 %v9937_v51, %v15878_v16 }
0x1521   :  { %v9946_v2 = vmax.f32 %v9936_v63, 0.0 }
0x1522   :  { %v11164_v6 = vpack.c.bf16 %v9945_v1, %v9944_v33  ;;  %v9947_v24 = vmax.f32 %v9938_v48, 0.0 }
0x1524   :  { %11100 = vst.msk [vmem:[%s15791_s11 + $0x1f0] sm:$0xff] %vm12956_vm3, %v11164_v6  ;;  %v11165_v14 = vpack.c.bf16 %v9947_v24, %v9946_v2 }
0x1526   :  { %11101 = vst.msk [vmem:[%s15791_s11 + $0x1f8] sm:$0xff] %vm12956_vm3, %v11165_v14 }

</bundles_post_ra>
